<compile_context>
chip_gen: v7x
topology: tpu7x:2x2x1
jax: 0.10.0
libtpu: 0.0.40
codegen_flags: <defaults>
</compile_context>

<pallas_src>
import numpy as np
import jax
import jax.numpy as jnp
from jax.experimental import pallas as pl
from jax.experimental.pallas import tpu as pltpu


# --------------------------------------------------------------------------
# Host-side constant builders
# --------------------------------------------------------------------------
def _build_masks(K, pad, C, H, W):
    """(K*K, C, H*W) f32 validity masks: tap (kh, kw) at flat position p is 1
    iff the tapped pixel lies inside the image (zero-padding region -> 0)."""
    S = H * W
    m = np.zeros((K * K, C, S), np.float32)
    r = np.arange(H)[:, None]
    c = np.arange(W)[None, :]
    for kh in range(K):
        for kw in range(K):
            dh, dw = kh - pad, kw - pad
            valid = ((r + dh >= 0) & (r + dh < H) &
                     (c + dw >= 0) & (c + dw < W))
            m[kh * K + kw] = valid.reshape(-1).astype(np.float32)[None, :]
    return jnp.asarray(m)


def _build_upsample_matrix(H, W, f):
    """(H*W, H*f*W*f) 0/1 nearest-neighbour replication matrix on the flat
    row-major spatial layout (out column q copies in column q's source)."""
    S, Wf = H * W, W * f
    R = np.zeros((S, H * f * Wf), np.float32)
    for h in range(H):
        for w in range(W):
            s = h * W + w
            for i in range(f):
                for j in range(f):
                    R[s, (h * f + i) * Wf + w * f + j] = 1.0
    return jnp.asarray(R)


# --------------------------------------------------------------------------
# Kernel
# --------------------------------------------------------------------------
def _make_kernel(L, K, pad, C, H, W, f, neg_slope, KKC, KPAD):
    """Fused [conv(K,'same') + bias + LeakyReLU] * L + residual (+ upsample)."""
    S = H * W
    taps = [(kh, kw) for kh in range(K) for kw in range(K)]

    def kernel(x_ref, w_ref, m_ref, *rest):
        if f != 1:
            r_ref, out_ref, cols_ref = rest
        else:
            out_ref, cols_ref = rest

        x0 = x_ref[0].astype(jnp.float32)              # (C, S)
        w_all = w_ref[...].astype(jnp.float32)         # (L, C, KPAD)  (bias in col KKC)
        masks = [m_ref[t] for t in range(K * K)]       # K*K x (C, S), loaded once

        # Rows KKC.. of the im2col scratch: a "ones" row (carries the bias)
        # followed by zeros (padding of the contraction dim).  Written every
        # grid step (scratch persists, grid axis is parallel).
        cols_ref[KKC:KKC + 1, :] = jnp.ones((1, S), jnp.float32)
        if KPAD - KKC - 1 > 0:
            cols_ref[KKC + 1:, :] = jnp.zeros((KPAD - KKC - 1, S), jnp.float32)

        x = x0
        for l in range(L):
            # im2col: K*K rolled (XLU) + masked channel blocks -> scratch rows.
            for t, (kh, kw) in enumerate(taps):
                off = (kh - pad) * W + (kw - pad)
                shift = (-off) % S
                rolled = pltpu.roll(x, shift, 1) if shift else x
                cols_ref[t * C:(t + 1) * C, :] = rolled * masks[t]
            # Conv + bias as one (Cout, KPAD) @ (KPAD, S) MXU matmul.
            z = jnp.dot(w_all[l], cols_ref[...],
                        preferred_element_type=jnp.float32,
                        precision=jax.lax.Precision.HIGHEST)       # (C, S)
            x = jnp.where(z >= 0.0, z, neg_slope * z)               # LeakyReLU
        y = x + x0                                                  # residual

        if f != 1:
            # Fused nearest-neighbour upsample: (C, S) @ (S, S*f*f) replication.
            y = jnp.dot(y, r_ref[...],
                        preferred_element_type=jnp.float32,
                        precision=jax.lax.Precision.HIGHEST)        # (C, S*f*f)

        out_ref[0] = y.astype(out_ref.dtype)

    return kernel


def fused_res_block(x_flat, w_pack, masks, rep, *, K, pad, H, W, factor, neg_slope):
    """x_flat: (N, C, H*W) f32 -> (N, C, H*W*factor^2) f32 (final output, flat)."""
    N, C, S = x_flat.shape
    L, _, KPAD = w_pack.shape
    KKC = K * K * C
    f = int(factor)
    out_s = S * f * f

    kernel = _make_kernel(L, K, pad, C, H, W, f, neg_slope, KKC, KPAD)

    in_specs = [
        pl.BlockSpec((1, C, S), lambda n: (n, 0, 0)),          # activation (per batch)
        pl.BlockSpec((L, C, KPAD), lambda n: (0, 0, 0)),       # all weights+bias, once
        pl.BlockSpec((K * K, C, S), lambda n: (0, 0, 0)),      # boundary masks, once
    ]
    args = [x_flat, w_pack, masks]
    if f != 1:
        in_specs.append(pl.BlockSpec((S, out_s), lambda n: (0, 0)))  # replication matrix
        args.append(rep)

    return pl.pallas_call(
        kernel,
        out_shape=jax.ShapeDtypeStruct((N, C, out_s), x_flat.dtype),
        grid_spec=pltpu.PrefetchScalarGridSpec(
            num_scalar_prefetch=0,
            grid=(N,),
            in_specs=in_specs,
            out_specs=pl.BlockSpec((1, C, out_s), lambda n: (n, 0, 0)),
            scratch_shapes=[pltpu.VMEM((KPAD, S), jnp.float32)],   # im2col buffer
        ),
        compiler_params=pltpu.CompilerParams(
            dimension_semantics=("parallel",),   # batch items independent (2 v7x TCs)
        ),
    )(*args)


# --------------------------------------------------------------------------
# Module wrapper
# --------------------------------------------------------------------------
class ResModelPallas:
    """JAX/Pallas equivalent of the PyTorch ResModel (forward pass only)."""

    def __init__(self, num_conv, conv_args, factor=1, key=None):
        if key is None:
            key = jax.random.PRNGKey(0)
        Cin = conv_args["in_channels"]
        Cout = conv_args["out_channels"]
        K = conv_args["kernel_size"]
        pad = conv_args.get("padding", 0)
        assert Cin == Cout, "ResModel residual requires in_channels == out_channels"
        assert 2 * pad == K - 1, "ResModel residual requires a 'same' convolution"
        self.C, self.K, self.pad = Cin, K, pad
        self.neg_slope = 0.2
        self.factor = int(factor)
        self.num_conv = num_conv
        self._spatial_cache = {}

        # Deterministic init mimicking PyTorch Conv2d default (U(+/-1/sqrt(fan_in))).
        self.params = []
        for _ in range(num_conv):
            key, kw_key, kb_key = jax.random.split(key, 3)
            fan_in = Cin * K * K
            bound = 1.0 / float(np.sqrt(fan_in))
            w = jax.random.uniform(kw_key, (K, K, Cin, Cout), jnp.float32, -bound, bound)
            b = jax.random.uniform(kb_key, (Cout,), jnp.float32, -bound, bound)
            self.params.append((w, b))

        if num_conv > 0:
            KKC = K * K * Cin
            kpad = ((KKC + 1 + 127) // 128) * 128     # lane-aligned contraction dim
            w_stack = jnp.stack([w for w, _ in self.params])        # (L,K,K,Cin,Cout)
            b_stack = jnp.stack([b for _, b in self.params])        # (L,Cout)
            # (L, Cout, K*K*Cin) -- tap-major (kh, kw, ci) matches kernel im2col order.
            w_dense = jnp.transpose(w_stack, (0, 4, 1, 2, 3)).reshape(num_conv, Cout, KKC)
            w_pack = jnp.zeros((num_conv, Cout, kpad), jnp.float32)
            w_pack = w_pack.at[:, :, :KKC].set(w_dense)
            w_pack = w_pack.at[:, :, KKC].set(b_stack)               # bias column
            self.w_pack = w_pack
            self.kpad = kpad

    def _spatial_constants(self, H, W, f):
        key = (H, W, f)
        if key not in self._spatial_cache:
            masks = _build_masks(self.K, self.pad, self.C, H, W)
            rep = _build_upsample_matrix(H, W, f) if f != 1 else None
            self._spatial_cache[key] = (masks, rep)
        return self._spatial_cache[key]

    def __call__(self, x_nchw):
        N, C, H, W = x_nchw.shape
        assert C == self.C
        f = self.factor
        if self.num_conv == 0:
            # Empty nn.Sequential is identity: x = x0 + x0, then (optional) upsample.
            y = x_nchw + x_nchw
            if f != 1:
                y = jnp.broadcast_to(y[:, :, :, None, :, None],
                                     (N, C, H, f, W, f)).reshape(N, C, H * f, W * f)
            return y
        masks, rep = self._spatial_constants(H, W, f)
        # NCHW is already contiguous as (N, C, H*W): reshape only, no transpose.
        x_flat = x_nchw.reshape(N, C, H * W)
        y_flat = fused_res_block(
            x_flat, self.w_pack, masks, rep,
            K=self.K, pad=self.pad, H=H, W=W, factor=f, neg_slope=self.neg_slope,
        )
        return y_flat.reshape(N, C, H * f, W * f)


# --------------------------------------------------------------------------
# Pure-JAX reference (XLA conv) for correctness checking
# --------------------------------------------------------------------------
def _ref_forward(model, x_nchw):
    y = x_nchw
    for w, b in model.params:
        y = jax.lax.conv_general_dilated(
            y, w, window_strides=(1, 1),
            padding=[(model.pad, model.pad)] * 2,
            dimension_numbers=("NCHW", "HWIO", "NCHW"),
            precision=jax.lax.Precision.HIGHEST,
        )
        y = y + b.reshape(1, -1, 1, 1)
        y = jnp.where(y >= 0, y, model.neg_slope * y)
    y = y + x_nchw
    if model.factor != 1:
        y = jnp.repeat(jnp.repeat(y, model.factor, axis=2), model.factor, axis=3)
    return y


if __name__ == "__main__":
    key = jax.random.PRNGKey(0)
    kx, kp = jax.random.split(key)

    N, C, H, W = 2, 4, 16, 16
    x = jax.random.normal(kx, (N, C, H, W), jnp.float32)   # NCHW, like PyTorch

    conv_args = dict(in_channels=C, out_channels=C, kernel_size=3, padding=1)
    model = ResModelPallas(num_conv=2, conv_args=conv_args, factor=2, key=kp)

    out = jax.block_until_ready(model(x))
    assert out.shape == (N, C, H * 2, W * 2), out.shape

    ref = _ref_forward(model, x)
    # Tolerance allows for MXU f32 rounding differences vs. the XLA reference;
    # structural errors (wrong taps/masks/packing/upsample) are O(0.1 .. 1).
    np.testing.assert_allclose(np.asarray(out), np.asarray(ref), rtol=1e-2, atol=1e-2)

    print("KERNEL_OK")
</pallas_src>

<mosaic_0001>
module attributes {stable_mosaic.version = 11 : i64} {
  func.func @kernel(%arg0: i32, %arg1: memref<1x4x256xf32, #tpu.memory_space<vmem>>, %arg2: memref<2x4x128xf32, #tpu.memory_space<vmem>>, %arg3: memref<9x4x256xf32, #tpu.memory_space<vmem>>, %arg4: memref<256x1024xf32, #tpu.memory_space<vmem>>, %arg5: memref<1x4x1024xf32, #tpu.memory_space<vmem>>, %arg6: memref<128x256xf32, #tpu.memory_space<vmem>>) attributes {dimension_semantics = [#tpu.dimension_semantics<parallel>], iteration_bounds = array<i64: 2>, scalar_prefetch = 0 : i64, scratch_operands = 1 : i64, tpu.core_type = #tpu.core_type<tc>, window_params = [{transform_indices = @transform_0, window_bounds = array<i64: 1, 4, 256>}, {pipeline_mode = #tpu.pipeline_mode<synchronous>, transform_indices = @transform_1, window_bounds = array<i64: 2, 4, 128>}, {pipeline_mode = #tpu.pipeline_mode<synchronous>, transform_indices = @transform_2, window_bounds = array<i64: 9, 4, 256>}, {pipeline_mode = #tpu.pipeline_mode<synchronous>, transform_indices = @transform_3, window_bounds = array<i64: 256, 1024>}, {transform_indices = @transform_4, window_bounds = array<i64: 1, 4, 1024>}]} {
    %c0 = arith.constant 0 : index
    %c0_0 = arith.constant 0 : index
    %c0_1 = arith.constant 0 : index
    %0 = vector.load %arg1[%c0, %c0_0, %c0_1] : memref<1x4x256xf32, #tpu.memory_space<vmem>>, vector<1x4x256xf32>
    %1 = vector.shape_cast %0 : vector<1x4x256xf32> to vector<4x256xf32>
    %c0_2 = arith.constant 0 : index
    %c0_3 = arith.constant 0 : index
    %c0_4 = arith.constant 0 : index
    %2 = vector.load %arg2[%c0_2, %c0_3, %c0_4] : memref<2x4x128xf32, #tpu.memory_space<vmem>>, vector<2x4x128xf32>
    %c0_5 = arith.constant 0 : index
    %c0_6 = arith.constant 0 : index
    %c0_7 = arith.constant 0 : index
    %3 = vector.load %arg3[%c0_5, %c0_6, %c0_7] : memref<9x4x256xf32, #tpu.memory_space<vmem>>, vector<1x4x256xf32>
    %4 = vector.shape_cast %3 : vector<1x4x256xf32> to vector<4x256xf32>
    %c1 = arith.constant 1 : index
    %c0_8 = arith.constant 0 : index
    %c0_9 = arith.constant 0 : index
    %5 = vector.load %arg3[%c1, %c0_8, %c0_9] : memref<9x4x256xf32, #tpu.memory_space<vmem>>, vector<1x4x256xf32>
    %6 = vector.shape_cast %5 : vector<1x4x256xf32> to vector<4x256xf32>
    %c2 = arith.constant 2 : index
    %c0_10 = arith.constant 0 : index
    %c0_11 = arith.constant 0 : index
    %7 = vector.load %arg3[%c2, %c0_10, %c0_11] : memref<9x4x256xf32, #tpu.memory_space<vmem>>, vector<1x4x256xf32>
    %8 = vector.shape_cast %7 : vector<1x4x256xf32> to vector<4x256xf32>
    %c3 = arith.constant 3 : index
    %c0_12 = arith.constant 0 : index
    %c0_13 = arith.constant 0 : index
    %9 = vector.load %arg3[%c3, %c0_12, %c0_13] : memref<9x4x256xf32, #tpu.memory_space<vmem>>, vector<1x4x256xf32>
    %10 = vector.shape_cast %9 : vector<1x4x256xf32> to vector<4x256xf32>
    %c4 = arith.constant 4 : index
    %c0_14 = arith.constant 0 : index
    %c0_15 = arith.constant 0 : index
    %11 = vector.load %arg3[%c4, %c0_14, %c0_15] : memref<9x4x256xf32, #tpu.memory_space<vmem>>, vector<1x4x256xf32>
    %12 = vector.shape_cast %11 : vector<1x4x256xf32> to vector<4x256xf32>
    %c5 = arith.constant 5 : index
    %c0_16 = arith.constant 0 : index
    %c0_17 = arith.constant 0 : index
    %13 = vector.load %arg3[%c5, %c0_16, %c0_17] : memref<9x4x256xf32, #tpu.memory_space<vmem>>, vector<1x4x256xf32>
    %14 = vector.shape_cast %13 : vector<1x4x256xf32> to vector<4x256xf32>
    %c6 = arith.constant 6 : index
    %c0_18 = arith.constant 0 : index
    %c0_19 = arith.constant 0 : index
    %15 = vector.load %arg3[%c6, %c0_18, %c0_19] : memref<9x4x256xf32, #tpu.memory_space<vmem>>, vector<1x4x256xf32>
    %16 = vector.shape_cast %15 : vector<1x4x256xf32> to vector<4x256xf32>
    %c7 = arith.constant 7 : index
    %c0_20 = arith.constant 0 : index
    %c0_21 = arith.constant 0 : index
    %17 = vector.load %arg3[%c7, %c0_20, %c0_21] : memref<9x4x256xf32, #tpu.memory_space<vmem>>, vector<1x4x256xf32>
    %18 = vector.shape_cast %17 : vector<1x4x256xf32> to vector<4x256xf32>
    %c8 = arith.constant 8 : index
    %c0_22 = arith.constant 0 : index
    %c0_23 = arith.constant 0 : index
    %19 = vector.load %arg3[%c8, %c0_22, %c0_23] : memref<9x4x256xf32, #tpu.memory_space<vmem>>, vector<1x4x256xf32>
    %20 = vector.shape_cast %19 : vector<1x4x256xf32> to vector<4x256xf32>
    %cst = arith.constant 1.000000e+00 : f32
    %21 = vector.broadcast %cst : f32 to vector<1x256xf32>
    %c36 = arith.constant 36 : index
    %c0_24 = arith.constant 0 : index
    %22 = vector.load %arg6[%c36, %c0_24] : memref<128x256xf32, #tpu.memory_space<vmem>>, vector<1x256xf32>
    tpu.vector_store %arg6[%c36, %c0_24], %21 {strides = array<i32>} : memref<128x256xf32, #tpu.memory_space<vmem>>, vector<1x256xf32>,
    %cst_25 = arith.constant 0.000000e+00 : f32
    %23 = vector.broadcast %cst_25 : f32 to vector<91x256xf32>
    %c37 = arith.constant 37 : index
    %c0_26 = arith.constant 0 : index
    %24 = vector.load %arg6[%c37, %c0_26] : memref<128x256xf32, #tpu.memory_space<vmem>>, vector<91x256xf32>
    tpu.vector_store %arg6[%c37, %c0_26], %23 {strides = array<i32>} : memref<128x256xf32, #tpu.memory_space<vmem>>, vector<91x256xf32>,
    %c17_i32 = arith.constant 17 : i32
    %25 = tpu.dynamic_rotate %1 by %c17_i32 dim 1 : vector<4x256xf32>, i32 -> vector<4x256xf32>
    %26 = arith.mulf %25, %4 : vector<4x256xf32>
    %c0_27 = arith.constant 0 : index
    %c0_28 = arith.constant 0 : index
    %27 = vector.load %arg6[%c0_27, %c0_28] : memref<128x256xf32, #tpu.memory_space<vmem>>, vector<4x256xf32>
    tpu.vector_store %arg6[%c0_27, %c0_28], %26 {strides = array<i32>} : memref<128x256xf32, #tpu.memory_space<vmem>>, vector<4x256xf32>,
    %c16_i32 = arith.constant 16 : i32
    %28 = tpu.dynamic_rotate %1 by %c16_i32 dim 1 : vector<4x256xf32>, i32 -> vector<4x256xf32>
    %29 = arith.mulf %28, %6 : vector<4x256xf32>
    %c4_29 = arith.constant 4 : index
    %c0_30 = arith.constant 0 : index
    %30 = vector.load %arg6[%c4_29, %c0_30] : memref<128x256xf32, #tpu.memory_space<vmem>>, vector<4x256xf32>
    tpu.vector_store %arg6[%c4_29, %c0_30], %29 {strides = array<i32>} : memref<128x256xf32, #tpu.memory_space<vmem>>, vector<4x256xf32>,
    %c15_i32 = arith.constant 15 : i32
    %31 = tpu.dynamic_rotate %1 by %c15_i32 dim 1 : vector<4x256xf32>, i32 -> vector<4x256xf32>
    %32 = arith.mulf %31, %8 : vector<4x256xf32>
    %c8_31 = arith.constant 8 : index
    %c0_32 = arith.constant 0 : index
    %33 = vector.load %arg6[%c8_31, %c0_32] : memref<128x256xf32, #tpu.memory_space<vmem>>, vector<4x256xf32>
    tpu.vector_store %arg6[%c8_31, %c0_32], %32 {strides = array<i32>} : memref<128x256xf32, #tpu.memory_space<vmem>>, vector<4x256xf32>,
    %c1_i32 = arith.constant 1 : i32
    %34 = tpu.dynamic_rotate %1 by %c1_i32 dim 1 : vector<4x256xf32>, i32 -> vector<4x256xf32>
    %35 = arith.mulf %34, %10 : vector<4x256xf32>
    %c12 = arith.constant 12 : index
    %c0_33 = arith.constant 0 : index
    %36 = vector.load %arg6[%c12, %c0_33] : memref<128x256xf32, #tpu.memory_space<vmem>>, vector<4x256xf32>
    tpu.vector_store %arg6[%c12, %c0_33], %35 {strides = array<i32>} : memref<128x256xf32, #tpu.memory_space<vmem>>, vector<4x256xf32>,
    %37 = arith.mulf %1, %12 : vector<4x256xf32>
    %c16 = arith.constant 16 : index
    %c0_34 = arith.constant 0 : index
    %38 = vector.load %arg6[%c16, %c0_34] : memref<128x256xf32, #tpu.memory_space<vmem>>, vector<4x256xf32>
    tpu.vector_store %arg6[%c16, %c0_34], %37 {strides = array<i32>} : memref<128x256xf32, #tpu.memory_space<vmem>>, vector<4x256xf32>,
    %c255_i32 = arith.constant 255 : i32
    %39 = tpu.dynamic_rotate %1 by %c255_i32 dim 1 : vector<4x256xf32>, i32 -> vector<4x256xf32>
    %40 = arith.mulf %39, %14 : vector<4x256xf32>
    %c20 = arith.constant 20 : index
    %c0_35 = arith.constant 0 : index
    %41 = vector.load %arg6[%c20, %c0_35] : memref<128x256xf32, #tpu.memory_space<vmem>>, vector<4x256xf32>
    tpu.vector_store %arg6[%c20, %c0_35], %40 {strides = array<i32>} : memref<128x256xf32, #tpu.memory_space<vmem>>, vector<4x256xf32>,
    %c241_i32 = arith.constant 241 : i32
    %42 = tpu.dynamic_rotate %1 by %c241_i32 dim 1 : vector<4x256xf32>, i32 -> vector<4x256xf32>
    %43 = arith.mulf %42, %16 : vector<4x256xf32>
    %c24 = arith.constant 24 : index
    %c0_36 = arith.constant 0 : index
    %44 = vector.load %arg6[%c24, %c0_36] : memref<128x256xf32, #tpu.memory_space<vmem>>, vector<4x256xf32>
    tpu.vector_store %arg6[%c24, %c0_36], %43 {strides = array<i32>} : memref<128x256xf32, #tpu.memory_space<vmem>>, vector<4x256xf32>,
    %c240_i32 = arith.constant 240 : i32
    %45 = tpu.dynamic_rotate %1 by %c240_i32 dim 1 : vector<4x256xf32>, i32 -> vector<4x256xf32>
    %46 = arith.mulf %45, %18 : vector<4x256xf32>
    %c28 = arith.constant 28 : index
    %c0_37 = arith.constant 0 : index
    %47 = vector.load %arg6[%c28, %c0_37] : memref<128x256xf32, #tpu.memory_space<vmem>>, vector<4x256xf32>
    tpu.vector_store %arg6[%c28, %c0_37], %46 {strides = array<i32>} : memref<128x256xf32, #tpu.memory_space<vmem>>, vector<4x256xf32>,
    %c239_i32 = arith.constant 239 : i32
    %48 = tpu.dynamic_rotate %1 by %c239_i32 dim 1 : vector<4x256xf32>, i32 -> vector<4x256xf32>
    %49 = arith.mulf %48, %20 : vector<4x256xf32>
    %c32 = arith.constant 32 : index
    %c0_38 = arith.constant 0 : index
    %50 = vector.load %arg6[%c32, %c0_38] : memref<128x256xf32, #tpu.memory_space<vmem>>, vector<4x256xf32>
    tpu.vector_store %arg6[%c32, %c0_38], %49 {strides = array<i32>} : memref<128x256xf32, #tpu.memory_space<vmem>>, vector<4x256xf32>,
    %51 = vector.extract_strided_slice %2 {offsets = [0, 0, 0], sizes = [1, 4, 128], strides = [1, 1, 1]} : vector<2x4x128xf32> to vector<1x4x128xf32>
    %52 = vector.shape_cast %51 : vector<1x4x128xf32> to vector<4x128xf32>
    %c0_39 = arith.constant 0 : index
    %c0_40 = arith.constant 0 : index
    %53 = vector.load %arg6[%c0_39, %c0_40] : memref<128x256xf32, #tpu.memory_space<vmem>>, vector<128x256xf32>
    %cst_41 = arith.constant dense<0.000000e+00> : vector<4x256xf32>
    %54 = tpu.matmul %52, %53, %cst_41 {dimension_numbers = #tpu.dot_dimension_numbers<[1], [0], [0], [1], [0, 0, 1, 1], [], []>, precision = #tpu.contract_precision<fp32>} : vector<4x128xf32>, vector<128x256xf32>, vector<4x256xf32> -> vector<4x256xf32>
    %cst_42 = arith.constant 0.000000e+00 : f32
    %55 = vector.broadcast %cst_42 : f32 to vector<4x256xf32>
    %56 = arith.cmpf oge, %54, %55 : vector<4x256xf32>
    %cst_43 = arith.constant 2.000000e-01 : f32
    %57 = vector.broadcast %cst_43 : f32 to vector<4x256xf32>
    %58 = arith.mulf %57, %54 : vector<4x256xf32>
    %59 = arith.select %56, %54, %58 : vector<4x256xi1>, vector<4x256xf32>
    %c17_i32_44 = arith.constant 17 : i32
    %60 = tpu.dynamic_rotate %59 by %c17_i32_44 dim 1 : vector<4x256xf32>, i32 -> vector<4x256xf32>
    %61 = arith.mulf %60, %4 : vector<4x256xf32>
    %c0_45 = arith.constant 0 : index
    %c0_46 = arith.constant 0 : index
    %62 = vector.load %arg6[%c0_45, %c0_46] : memref<128x256xf32, #tpu.memory_space<vmem>>, vector<4x256xf32>
    tpu.vector_store %arg6[%c0_45, %c0_46], %61 {strides = array<i32>} : memref<128x256xf32, #tpu.memory_space<vmem>>, vector<4x256xf32>,
    %c16_i32_47 = arith.constant 16 : i32
    %63 = tpu.dynamic_rotate %59 by %c16_i32_47 dim 1 : vector<4x256xf32>, i32 -> vector<4x256xf32>
    %64 = arith.mulf %63, %6 : vector<4x256xf32>
    %c4_48 = arith.constant 4 : index
    %c0_49 = arith.constant 0 : index
    %65 = vector.load %arg6[%c4_48, %c0_49] : memref<128x256xf32, #tpu.memory_space<vmem>>, vector<4x256xf32>
    tpu.vector_store %arg6[%c4_48, %c0_49], %64 {strides = array<i32>} : memref<128x256xf32, #tpu.memory_space<vmem>>, vector<4x256xf32>,
    %c15_i32_50 = arith.constant 15 : i32
    %66 = tpu.dynamic_rotate %59 by %c15_i32_50 dim 1 : vector<4x256xf32>, i32 -> vector<4x256xf32>
    %67 = arith.mulf %66, %8 : vector<4x256xf32>
    %c8_51 = arith.constant 8 : index
    %c0_52 = arith.constant 0 : index
    %68 = vector.load %arg6[%c8_51, %c0_52] : memref<128x256xf32, #tpu.memory_space<vmem>>, vector<4x256xf32>
    tpu.vector_store %arg6[%c8_51, %c0_52], %67 {strides = array<i32>} : memref<128x256xf32, #tpu.memory_space<vmem>>, vector<4x256xf32>,
    %c1_i32_53 = arith.constant 1 : i32
    %69 = tpu.dynamic_rotate %59 by %c1_i32_53 dim 1 : vector<4x256xf32>, i32 -> vector<4x256xf32>
    %70 = arith.mulf %69, %10 : vector<4x256xf32>
    %c12_54 = arith.constant 12 : index
    %c0_55 = arith.constant 0 : index
    %71 = vector.load %arg6[%c12_54, %c0_55] : memref<128x256xf32, #tpu.memory_space<vmem>>, vector<4x256xf32>
    tpu.vector_store %arg6[%c12_54, %c0_55], %70 {strides = array<i32>} : memref<128x256xf32, #tpu.memory_space<vmem>>, vector<4x256xf32>,
    %72 = arith.mulf %59, %12 : vector<4x256xf32>
    %c16_56 = arith.constant 16 : index
    %c0_57 = arith.constant 0 : index
    %73 = vector.load %arg6[%c16_56, %c0_57] : memref<128x256xf32, #tpu.memory_space<vmem>>, vector<4x256xf32>
    tpu.vector_store %arg6[%c16_56, %c0_57], %72 {strides = array<i32>} : memref<128x256xf32, #tpu.memory_space<vmem>>, vector<4x256xf32>,
    %c255_i32_58 = arith.constant 255 : i32
    %74 = tpu.dynamic_rotate %59 by %c255_i32_58 dim 1 : vector<4x256xf32>, i32 -> vector<4x256xf32>
    %75 = arith.mulf %74, %14 : vector<4x256xf32>
    %c20_59 = arith.constant 20 : index
    %c0_60 = arith.constant 0 : index
    %76 = vector.load %arg6[%c20_59, %c0_60] : memref<128x256xf32, #tpu.memory_space<vmem>>, vector<4x256xf32>
    tpu.vector_store %arg6[%c20_59, %c0_60], %75 {strides = array<i32>} : memref<128x256xf32, #tpu.memory_space<vmem>>, vector<4x256xf32>,
    %c241_i32_61 = arith.constant 241 : i32
    %77 = tpu.dynamic_rotate %59 by %c241_i32_61 dim 1 : vector<4x256xf32>, i32 -> vector<4x256xf32>
    %78 = arith.mulf %77, %16 : vector<4x256xf32>
    %c24_62 = arith.constant 24 : index
    %c0_63 = arith.constant 0 : index
    %79 = vector.load %arg6[%c24_62, %c0_63] : memref<128x256xf32, #tpu.memory_space<vmem>>, vector<4x256xf32>
    tpu.vector_store %arg6[%c24_62, %c0_63], %78 {strides = array<i32>} : memref<128x256xf32, #tpu.memory_space<vmem>>, vector<4x256xf32>,
    %c240_i32_64 = arith.constant 240 : i32
    %80 = tpu.dynamic_rotate %59 by %c240_i32_64 dim 1 : vector<4x256xf32>, i32 -> vector<4x256xf32>
    %81 = arith.mulf %80, %18 : vector<4x256xf32>
    %c28_65 = arith.constant 28 : index
    %c0_66 = arith.constant 0 : index
    %82 = vector.load %arg6[%c28_65, %c0_66] : memref<128x256xf32, #tpu.memory_space<vmem>>, vector<4x256xf32>
    tpu.vector_store %arg6[%c28_65, %c0_66], %81 {strides = array<i32>} : memref<128x256xf32, #tpu.memory_space<vmem>>, vector<4x256xf32>,
    %c239_i32_67 = arith.constant 239 : i32
    %83 = tpu.dynamic_rotate %59 by %c239_i32_67 dim 1 : vector<4x256xf32>, i32 -> vector<4x256xf32>
    %84 = arith.mulf %83, %20 : vector<4x256xf32>
    %c32_68 = arith.constant 32 : index
    %c0_69 = arith.constant 0 : index
    %85 = vector.load %arg6[%c32_68, %c0_69] : memref<128x256xf32, #tpu.memory_space<vmem>>, vector<4x256xf32>
    tpu.vector_store %arg6[%c32_68, %c0_69], %84 {strides = array<i32>} : memref<128x256xf32, #tpu.memory_space<vmem>>, vector<4x256xf32>,
    %86 = vector.extract_strided_slice %2 {offsets = [1, 0, 0], sizes = [1, 4, 128], strides = [1, 1, 1]} : vector<2x4x128xf32> to vector<1x4x128xf32>
    %87 = vector.shape_cast %86 : vector<1x4x128xf32> to vector<4x128xf32>
    %c0_70 = arith.constant 0 : index
    %c0_71 = arith.constant 0 : index
    %88 = vector.load %arg6[%c0_70, %c0_71] : memref<128x256xf32, #tpu.memory_space<vmem>>, vector<128x256xf32>
    %cst_72 = arith.constant dense<0.000000e+00> : vector<4x256xf32>
    %89 = tpu.matmul %87, %88, %cst_72 {dimension_numbers = #tpu.dot_dimension_numbers<[1], [0], [0], [1], [0, 0, 1, 1], [], []>, precision = #tpu.contract_precision<fp32>} : vector<4x128xf32>, vector<128x256xf32>, vector<4x256xf32> -> vector<4x256xf32>
    %cst_73 = arith.constant 0.000000e+00 : f32
    %90 = vector.broadcast %cst_73 : f32 to vector<4x256xf32>
    %91 = arith.cmpf oge, %89, %90 : vector<4x256xf32>
    %cst_74 = arith.constant 2.000000e-01 : f32
    %92 = vector.broadcast %cst_74 : f32 to vector<4x256xf32>
    %93 = arith.mulf %92, %89 : vector<4x256xf32>
    %94 = arith.select %91, %89, %93 : vector<4x256xi1>, vector<4x256xf32>
    %95 = arith.addf %94, %1 : vector<4x256xf32>
    %c0_75 = arith.constant 0 : index
    %c0_76 = arith.constant 0 : index
    %96 = vector.load %arg4[%c0_75, %c0_76] : memref<256x1024xf32, #tpu.memory_space<vmem>>, vector<256x1024xf32>
    %cst_77 = arith.constant dense<0.000000e+00> : vector<4x1024xf32>
    %97 = tpu.matmul %95, %96, %cst_77 {dimension_numbers = #tpu.dot_dimension_numbers<[1], [0], [0], [1], [0, 0, 1, 1], [], []>, precision = #tpu.contract_precision<fp32>} : vector<4x256xf32>, vector<256x1024xf32>, vector<4x1024xf32> -> vector<4x1024xf32>
    %c0_78 = arith.constant 0 : index
    %c0_79 = arith.constant 0 : index
    %c0_80 = arith.constant 0 : index
    %98 = vector.load %arg5[%c0_78, %c0_79, %c0_80] : memref<1x4x1024xf32, #tpu.memory_space<vmem>>, vector<1x4x1024xf32>
    %99 = vector.shape_cast %98 : vector<1x4x1024xf32> to vector<4x1024xf32>
    %100 = vector.shape_cast %97 : vector<4x1024xf32> to vector<1x4x1024xf32>
    tpu.vector_store %arg5[%c0_78, %c0_79, %c0_80], %100 {strides = array<i32>} : memref<1x4x1024xf32, #tpu.memory_space<vmem>>, vector<1x4x1024xf32>,
    return
  }
  func.func @transform_0(%arg0: i32) -> (i32, i32, i32) {
    %c0_i32 = arith.constant 0 : i32
    %c0_i32_0 = arith.constant 0 : i32
    %c0_i32_1 = arith.constant 0 : i32
    return %arg0, %c0_i32, %c0_i32_0 : i32, i32, i32
  }
  func.func @transform_1(%arg0: i32) -> (i32, i32, i32) {
    %c0_i32 = arith.constant 0 : i32
    %c0_i32_0 = arith.constant 0 : i32
    %c0_i32_1 = arith.constant 0 : i32
    %c0_i32_2 = arith.constant 0 : i32
    return %c0_i32, %c0_i32_0, %c0_i32_1 : i32, i32, i32
  }
  func.func @transform_2(%arg0: i32) -> (i32, i32, i32) {
    %c0_i32 = arith.constant 0 : i32
    %c0_i32_0 = arith.constant 0 : i32
    %c0_i32_1 = arith.constant 0 : i32
    %c0_i32_2 = arith.constant 0 : i32
    return %c0_i32, %c0_i32_0, %c0_i32_1 : i32, i32, i32
  }
  func.func @transform_3(%arg0: i32) -> (i32, i32) {
    %c0_i32 = arith.constant 0 : i32
    %c0_i32_0 = arith.constant 0 : i32
    %c0_i32_1 = arith.constant 0 : i32
    return %c0_i32, %c0_i32_0 : i32, i32
  }
  func.func @transform_4(%arg0: i32) -> (i32, i32, i32) {
    %c0_i32 = arith.constant 0 : i32
    %c0_i32_0 = arith.constant 0 : i32
    %c0_i32_1 = arith.constant 0 : i32
    return %arg0, %c0_i32, %c0_i32_0 : i32, i32, i32
  }
}

</mosaic_0001>

<bundles_post_ra>
// kernel: tpu_custom_call.1
= control target key start
LH: loop header
LB: loop body
LE: loop exit
PB: predicated region body
PF: predicated region fallthrough
CT: control target
= control target key end

     0   :  { %9 = vsyncpa [#allocation4], 0  ;;  %s15114_s0 = inlined_call_operand.hbm [shape: f32[2,4,256], index: 0, kind: input, shape index: {}]   ;;  %s15115_s1 = inlined_call_operand.hbm [shape: f32[2,4,128], index: 1, kind: input, shape index: {}]   ;;  %s15116_s2 = inlined_call_operand.hbm [shape: f32[9,4,256], index: 2, kind: input, shape index: {}]   ;;  %s15117_s3 = inlined_call_operand.hbm [shape: f32[256,1024], index: 3, kind: input, shape index: {}]   ;;  %s15118_s4 = inlined_call_operand.hbm [shape: f32[2,4,1024], index: 4, kind: output, shape index: {}]  }
   0x1   :  { %11 = vsyncpa [#allocation4 + $0x1], 0 }
   0x2   :  { %12 = vsyncpa [#allocation7], 0 }
   0x3   :  { %13 = vsyncpa [#allocation10], 0 }
   0x4   :  { %14 = vsyncpa [#allocation5], 0 }
   0x5   :  { %16 = vsyncpa [#allocation5 + $0x1], 0  ;;  %s10222_s15 = smov 0   ;;  %s10224_s16 = smov 0  }
   0x6   :  { %s10226_s17 = smov 0   ;;  %s10228_s18 = smov 0  }
   0x7 LB: > { %s10243_s19 = sadd.s32 4294967295, %s10174_s18   ;;  %s7881_s20 = sadd.s32 4294967294, %s10174_s18   ;;  %s10174_s18 = sphi %s10228_s18, %s18000_s18   ;;  %s10170_s17 = sphi %s10226_s17, %s17999_s17   ;;  %s10166_s16 = sphi %s10224_s16, %s17998_s16   ;;  %s10162_s15 = sphi %s10222_s15, %s17997_s15  }
   0x8   : > { %p42_p0 = scmp.ne.s32.totalorder %s10166_s16, %s10162_s15  ;;  %p15119_p1 = scmp.eq.s32.totalorder %s10243_s19, 0 }
   0x9   : > { %p135_p3 = scmp.eq.s32.totalorder %s7881_s20, 1  ;;  %p7882_p5 = scmp.ge.s32.totalorder %s10174_s18, 1 }
   0xa   : > { %p10252_p4 = por %p15119_p1, %p42_p0  ;;  %p142_p7 = scmp.lt.s32.totalorder %s10174_s18, 3 }
   0xb   : > { %p10257_p6 = por %p135_p3, %p42_p0  ;;  %s10176_s24 = smov [#allocation6]  }
   0xc   : > { %s16005_s21 = scalar_select %p10252_p4, 1, 0 }
   0xd   : > { %s16006_s22 = scalar_select %p10257_p6, 1, 0 }
   0xe   : > { %p10262_p8 = pnand %p7882_p5, %p142_p7  ;;  %s154_s25 = sshll.u32 %s10176_s24, 4  ;;  %s10266_s25 = int_to_ptr.vmem [resolvable:$true] %s154_s25 }
   0xf   : > { %s10177_s27 = smov [#allocation8]   ;;  %s9986_s5 = scalar_lea.hbm %s15115_s1, 128 }
  0x10   : > { %s16007_s23 = scalar_select %p10262_p8, 1, 0 }
  0x11   : > { %p9899_p9 = pneg %p10262_p8  ;;  %s167_s28 = sshll.u32 %s10177_s27, 4  ;;  %s10277_s28 = int_to_ptr.vmem [resolvable:$true] %s167_s28 }
  0x12   : > { %p9987_p12 = scmp.ne.s32.totalorder %s15115_s1, %s9986_s5  ;;  %p9993_p5 = scmp.lt.u32.totalorder %s9986_s5, %s15115_s1 }
  0x13   : > { %p10273_p11 = pnand %p9899_p9, %p15119_p1 }
  0x15   : > { %p10287_p13 = pneg %p10273_p11 }
  0x17   : > { %p9989_p0 = pnand %p10287_p13, %p9987_p12 }
  0x19   : > { %p9990_p3 = pneg %p9989_p0 }
  0x1b   : > { %p9995_p7 = pnand %p9993_p5, %p9990_p3 }
  0x1d   : > { %9998 = shalt.err (!%p9995_p7)
}
  0x1e   : > { %s9999_s11 = scalar_lea.vmem %s10266_s25, 128  ;;  %p10007_p2 = scmp.lt.s32.totalorder %s10266_s25, %s10266_s25 }
  0x1f   : > { %p10000_p9 = scmp.ne.s32.totalorder %s10266_s25, %s9999_s11  ;;  %p10008_p6 = scmp.lt.s32.totalorder %s9999_s11, %s9999_s11 }
  0x21   : > { %p10002_p10 = pnand %p10000_p9, %p10287_p13  ;;  %p10009_p12 = por %p10008_p6, %p10007_p2 }
  0x23   : > { %p10003_p1 = pneg %p10002_p10 }
  0x25   : > { %p10010_p0 = pnand %p10009_p12, %p10003_p1 }
  0x27   : > { %10013 = shalt.err (!%p10010_p0)
}
  0x28   : > { %s10178_s12 = smov 64   ;;  %s10179_s13 = smov 4  }
  0x29   : > { %9902 = dma.hbm_to_vmem [thread:$0]  (!%p10273_p11), %s15115_s1, 128, %s10266_s25, [#allocation7], %s10178_s12, %s10178_s12, %s10179_s13  }
  0x2a   : > { %s10014_s29 = scalar_lea.hbm %s15116_s2, 1152 }
  0x2b   : > { %p10015_p1 = scmp.ne.s32.totalorder %s15116_s2, %s10014_s29  ;;  %p10021_p10 = scmp.lt.u32.totalorder %s10014_s29, %s15116_s2 }
  0x2d   : > { %p10017_p2 = pnand %p10015_p1, %p10287_p13 }
  0x2f   : > { %p10018_p6 = pneg %p10017_p2 }
  0x31   : > { %p10023_p3 = pnand %p10021_p10, %p10018_p6 }
  0x33   : > { %10026 = shalt.err (!%p10023_p3)
}
  0x34   : > { %s10027_s25 = scalar_lea.vmem %s10277_s28, 1152  ;;  %p10035_p12 = scmp.lt.s32.totalorder %s10277_s28, %s10277_s28 }
  0x35   : > { %p10028_p5 = scmp.ne.s32.totalorder %s10277_s28, %s10027_s25  ;;  %p10036_p0 = scmp.lt.s32.totalorder %s10027_s25, %s10027_s25 }
  0x37   : > { %p10030_p7 = pnand %p10028_p5, %p10287_p13  ;;  %p10037_p1 = por %p10036_p0, %p10035_p12 }
  0x39   : > { %p10031_p9 = pneg %p10030_p7 }
  0x3b   : > { %p10038_p2 = pnand %p10037_p1, %p10031_p9 }
  0x3d   : > { %10041 = shalt.err (!%p10038_p2)
}
  0x3e   : > { %s10180_s9 = smov 128   ;;  %s10181_s10 = smov 8  }
  0x3f   : > { %9905 = dma.hbm_to_vmem [thread:$0]  (!%p10273_p11), %s15116_s2, 1152, %s10277_s28, [#allocation7], %s10180_s9, %s10180_s9, %s10181_s10  }
  0x40   : > { %s10182_s14 = smov [#allocation9]   ;;  %s10042_s29 = scalar_lea.hbm %s15117_s3, 32768 }
  0x41   : > { %s180_s20 = sshll.u32 %s10182_s14, 4  ;;  %p10043_p6 = scmp.ne.s32.totalorder %s15117_s3, %s10042_s29  ;;  %s181_s20 = int_to_ptr.vmem [resolvable:$true] %s180_s20 }
  0x42   : > { %p10049_p5 = scmp.lt.u32.totalorder %s10042_s29, %s15117_s3 }
  0x43   : > { %p10045_p10 = pnand %p10043_p6, %p10287_p13 }
  0x45   : > { %p10046_p3 = pneg %p10045_p10 }
  0x47   : > { %p10051_p7 = pnand %p10049_p5, %p10046_p3 }
  0x49   : > { %10054 = shalt.err (!%p10051_p7)
}
  0x4a   : > { %s10055_s28 = scalar_lea.vmem %s181_s20, 32768  ;;  %p10063_p1 = scmp.lt.s32.totalorder %s181_s20, %s181_s20 }
  0x4b   : > { %p10056_p9 = scmp.ne.s32.totalorder %s181_s20, %s10055_s28  ;;  %p10064_p2 = scmp.lt.s32.totalorder %s10055_s28, %s10055_s28 }
  0x4d   : > { %p10058_p12 = pnand %p10056_p9, %p10287_p13  ;;  %p10065_p4 = por %p10064_p2, %p10063_p1 }
  0x4f   : > { %p10059_p0 = pneg %p10058_p12 }
  0x51   : > { %p10066_p8 = pnand %p10065_p4, %p10059_p0 }
  0x53   : > { %10069 = shalt.err (!%p10066_p8)
}
  0x54   : > { %s10183_s25 = smov 1024   ;;  %s10353_s8 = sadd.s32 1, %s10174_s18  }
  0x55   : > { %9908 = dma.hbm_to_vmem [thread:$0]  (!%p10273_p11), %s15117_s3, 32768, %s181_s20, [#allocation10], %s10183_s25, %s10183_s25, %s10178_s12  }
  0x56   : > { %s29_s26 = sadd.s32 1, %s10170_s17  ;;  %s26_s11 = ssub.s32 %s10174_s18, %s10353_s8 }
  0x57   : > { %p36_p4 = scmp.ne.s32.totalorder %s10170_s17, %s10166_s16  ;;  %p27_p8 = scmp.eq.s32.totalorder %s26_s11, 0 }
  0x58   : > { %p37_p13 = scmp.eq.s32.totalorder %s10174_s18, 0  ;;  %p16010_p6 = scmp.eq.s32.totalorder %s10243_s19, 1 }
  0x59   : > { %p9920_p3 = scmp.lt.s32.totalorder %s10174_s18, 2  ;;  %s194_s24 = sand.u32 1, %s10170_s17  }
  0x5a   : > { %p10363_p10 = por %p16010_p6, %p36_p4  ;;  %p38_p5 = por %p37_p13, %p36_p4 }
  0x5b   : > { %s10369_s14 = scalar_select %p27_p8, %s10170_s17, %s29_s26  }
  0x5c   : > { %s7887_s27 = sshll.u32 %s194_s24, 3  ;;  %s7901_s12 = sshll.u32 %s10174_s18, 7 }
  0x5d   : > { %s10376_s30 = scalar_lea.hbm %s15114_s0, %s7901_s12  ;;  %s198_s5 = scalar_lea.vmem [#allocation3], %s7887_s27 }
  0x5e   : > { %s206_s6 = sshll.u32 %s198_s5, 4  ;;  %p10380_p11 = pnand %p9920_p3, %p38_p5  ;;  %s10378_s6 = int_to_ptr.vmem [resolvable:$true] %s206_s6 }
  0x5f   : > { %s195_s28 = scalar_lea.sflag [#allocation4], %s194_s24  ;;  %s10070_s25 = scalar_lea.hbm %s10376_s30, 128 }
  0x60   : > { %p10071_p7 = scmp.ne.s32.totalorder %s10376_s30, %s10070_s25  ;;  %p10072_p9 = pneg %p10380_p11 }
  0x61   : > { %s10075_s26 = scalar_lea.hbm %s15114_s0, 256  ;;  %p10076_p1 = scmp.lt.u32.totalorder %s10376_s30, %s15114_s0 }
  0x62   : > { %p10073_p12 = pnand %p10072_p9, %p10071_p7  ;;  %p10077_p2 = scmp.lt.u32.totalorder %s10075_s26, %s10070_s25 }
  0x63   : > { %p10079_p8 = scmp.lt.u32.totalorder %s10070_s25, %s10376_s30 }
  0x64   : > { %p10074_p0 = pneg %p10073_p12  ;;  %p10078_p4 = por %p10077_p2, %p10076_p1 }
  0x66   : > { %p10080_p13 = por %p10079_p8, %p10078_p4 }
  0x68   : > { %p10081_p6 = pnand %p10080_p13, %p10074_p0 }
  0x6a   : > { %10084 = shalt.err (!%p10081_p6)
}
  0x6b   : > { %s10085_s24 = scalar_lea.vmem %s10378_s6, 128  ;;  %s10184_s12 = smov [#allocation3]  }
  0x6c   : > { %p10086_p3 = scmp.ne.s32.totalorder %s10378_s6, %s10085_s24  ;;  %s10090_s20 = sshll.u32 %s10184_s12, 4  ;;  %s10091_s20 = int_to_ptr.vmem [resolvable:$false] %s10090_s20 }
  0x6d   : > { %s10092_s29 = scalar_lea.vmem %s10091_s20, 256  ;;  %p10093_p12 = scmp.lt.s32.totalorder %s10378_s6, %s10091_s20 }
  0x6e   : > { %p10088_p5 = pnand %p10086_p3, %p10072_p9  ;;  %p10094_p1 = scmp.lt.s32.totalorder %s10092_s29, %s10085_s24 }
  0x70   : > { %p10089_p7 = pneg %p10088_p5  ;;  %p10095_p2 = por %p10094_p1, %p10093_p12 }
  0x72   : > { %p10096_p4 = pnand %p10095_p2, %p10089_p7 }
  0x74   : > { %10099 = shalt.err (!%p10096_p4)
}
  0x75   : > { %9912 = dma.hbm_to_vmem [thread:$0]  (!%p10380_p11), %s10376_s30, 128, %s10378_s6, %s195_s28  }
  0x76   : > { %p16013_p0 = scmp.ne.s32.totalorder %s16007_s23, 0 }
  0x78   : > { %215 = sbr.rel (%p16013_p0) target bundleno = 2223 (0x8af), region = 36 }
  0x7f   : > { %s10412_s5 = sand.u32 1, %s10166_s16   ;;  %p16014_p9 = scmp.ne.s32.totalorder %s16005_s21, 0 }
  0x80   : > { %s7891_s25 = sshll.u32 %s10412_s5, 3  ;;  %s218_s9 = scalar_lea.sflag [#allocation4], %s10412_s5 }
  0x81   : > { %s10416_s10 = scalar_lea.vmem [#allocation3], %s7891_s25 }
  0x82   : > { %10145 = dma.done.wait (%p16014_p9), %s218_s9, 128  }
  0x83   : > { %10147 = vsyncadd (%p16014_p9), %s218_s9, 4294967168  ;;  %p16015_p11 = scmp.eq.s32.totalorder %s10243_s19, 0 }
  0x85   : > { %10149 = dma.done.wait (%p16015_p11), [#allocation7], 1280   ;;  %p16016_p8 = pmov %p16015_p11 }
  0x87   : > { %10151 = vsyncadd (%p16016_p8), [#allocation7], 4294966016  ;;  %p16017_p13 = pmov %p16016_p8 }
  0x88   : > { %p16018_p6 = pmov %p16016_p8 }
  0x89   : > { %10153 = dma.done.wait (%p16017_p13), [#allocation10], 32768  }
  0x8a   : > { %10155 = vsyncadd (%p16018_p6), [#allocation10], 4294934528  ;;  %v258_v0 = vld [vmem:[%s10416_s10] sm:$0xff]  ;;  %s10185_s23 = smov 1   ;;  %s10186_s30 = smov 16   ;;  %v10438_v2 = vld [vmem:[#allocation8 + $0x20] sm:$0xff]  ;;  %v278_v5 = vlaneseq }
  0x8b   : > { %362 = vrot.lane.b32.xlu1 %v258_v0, %s10185_s23  ;;  %328 = vrot.lane.b32.xlu0 %v258_v0, %s10186_s30  ;;  %v10433_v1 = vcombine.high %v258_v0, %v258_v0  ;;  %s10187_s21 = smov 17   ;;  %v382_v3 = vmul.f32 %v10438_v2, %v258_v0  ;;  %s10188_s6 = smov 15   ;;  %v10190_v6 = vmov 1.0   ;;  %v15130_v7 = vmov 0.0   ;;  %v10467_v9 = vld [vmem:[#allocation8 + $0x18] sm:$0xff]  ;;  %v10474_v13 = vld [vmem:[#allocation8] sm:$0xff] }
  0x8c   : > { %s10189_s7 = smov 127   ;;  %vm280_vm0 = vcmp.lt.s32.totalorder %v278_v5, 256  ;;  %286 = vst [vmem:[#allocation2 + $0x48] sm:$0xe0] %v15130_v7  ;;  %288 = vst [vmem:[#allocation2 + $0x58] sm:$0xff] %v15130_v7  ;;  %584 = vmatprep.mubr.f32.mxu0 %v15130_v7  ;;  %1588 = vmatprep.mubr.f32.mxu1 %v15130_v7  ;;  %s10192_s28 = smov 112   ;;  %v10472_v12 = vcombine.high %v10467_v9, %v10467_v9  ;;  %v10490_v22 = vcombine.high %v10474_v13, %v10474_v13 }
  0x8d   : > { %16019 = vst [vmem:[#allocation16_spill] sm:$0xff] %v10433_v1  ;;  %v384_v4 = vcombine.high %v382_v3, %v382_v3  ;;  %386 = vst [vmem:[#allocation2 + $0x20] sm:$0xf] %v382_v3  ;;  %s10193_s26 = smov 113   ;;  %s10194_s11 = smov 111   ;;  %v10465_v8 = vand.u32 127, %v278_v5 }
  0x8e   : > { %283 = vst.msk [vmem:[#allocation2 + $0x44] ss:$8 sm:$0x3] %vm280_vm0, %v10190_v6  ;;  %285 = vst [vmem:[#allocation2 + $0x40] sm:$0xe0] %v15130_v7  ;;  %v10476_v14 = vld [vmem:[#allocation8 + $0x8] sm:$0xff] }
  0x8f   : > { %312 = vrot.lane.b32.xlu0 %v258_v0, %s10187_s21  ;;  %364 = vrot.lane.b32.xlu1 %v10433_v1, %s10185_s23  ;;  %387 = vst [vmem:[#allocation2 + $0x28] sm:$0xf] %v384_v4  ;;  %vm366_vm1 = vcmp.lt.s32.totalorder %v10465_v8, 1  ;;  %vm318_vm2 = vcmp.lt.s32.totalorder %v10465_v8, 17  ;;  %vm332_vm3 = vcmp.lt.s32.totalorder %v10465_v8, 16  ;;  %v10484_v19 = vld [vmem:[#allocation8 + $0x10] sm:$0xff]  ;;  %v10494_v23 = vcombine.high %v10476_v14, %v10476_v14 }
  0x90   : > { %vm352_vm4 = vcmp.lt.s32.totalorder %v10465_v8, 15  ;;  %v10499_v28 = vcombine.high %v10484_v19, %v10484_v19  ;;  %v10513_v37 = vld [vmem:[#allocation8 + $0x28] sm:$0xff]  ;;  %vm392_vm5 = vcmp.lt.s32.totalorder %v10465_v8, 127  ;;  %v10526_v47 = vld [vmem:[#allocation8 + $0x38] sm:$0xff]  ;;  %vm426_vm6 = vcmp.lt.s32.totalorder %v10465_v8, 112  ;;  %v10539_v55 = vld [vmem:[#allocation8 + $0x30] sm:$0xff] }
  0x91   : > { %v10524_v46 = vcombine.high %v10513_v37, %v10513_v37  ;;  %v10537_v54 = vcombine.high %v10526_v47, %v10526_v47  ;;  %vm412_vm7 = vcmp.lt.s32.totalorder %v10465_v8, 113  ;;  %v10546_v63 = vld [vmem:[#allocation8 + $0x40] sm:$0xff]  ;;  %v10552_v5 = vcombine.high %v10539_v55, %v10539_v55  ;;  %s7895_s27 = sshll.u32 %s10412_s5, 5  ;;  %s7902_s12 = sshll.u32 %s10243_s19, 9 }
  0x92   : > { %vm446_vm8 = vcmp.lt.s32.totalorder %v10465_v8, 111  ;;  %s14690_s24 = scalar_lea.vmem [#allocation11], %s7895_s27  ;;  %s15068_s9 = scalar_lea.hbm %s15118_s4, %s7902_s12 }
  0x93   : > { %314 = vrot.lane.b32.xlu1 %v10433_v1, %s10187_s21  ;;  %330 = vrot.lane.b32.xlu0 %v10433_v1, %s10186_s30  ;;  %s7782_s20 = sshll.u32 %s14690_s24, 4  ;;  %s15070_s20 = int_to_ptr.vmem [resolvable:$true] %s7782_s20 }
  0x94   : > { %s10100_s19 = scalar_lea.vmem %s15070_s20, 512 }
  0x95   : > { %p10101_p3 = scmp.ne.s32.totalorder %s15070_s20, %s10100_s19 }
  0x97   : > { %350 = vrot.lane.b32.xlu1 %v10433_v1, %s10188_s6  ;;  %348 = vrot.lane.b32.xlu0 %v258_v0, %s10188_s6  ;;  %p10102_p5 = pnand %p10101_p3, %p10363_p10 }
  0x99   : > { %p10103_p7 = pneg %p10102_p5 }
  0x9b   : > { %390 = vrot.lane.b32.xlu1 %v10433_v1, %s10189_s7  ;;  %388 = vrot.lane.b32.xlu0 %v258_v0, %s10189_s7 }
  0x9f   : > { %424 = vrot.lane.b32.xlu1 %v10433_v1, %s10192_s28  ;;  %422 = vrot.lane.b32.xlu0 %v258_v0, %s10192_s28 }
  0xa3   : > { %410 = vrot.lane.b32.xlu1 %v10433_v1, %s10193_s26  ;;  %408 = vrot.lane.b32.xlu0 %v258_v0, %s10193_s26 }
  0xa7   : > { %444 = vrot.lane.b32.xlu1 %v10433_v1, %s10194_s11  ;;  %442 = vrot.lane.b32.xlu0 %v258_v0, %s10194_s11 }
  0xfd   : > { %v363_v10 = vpop.permute.xlu1 %362  ;;  %v329_v11 = vpop.permute.xlu0 %328 }
 0x101   : > { %v313_v15 = vpop.permute.xlu0 %312  ;;  %v365_v16 = vpop.permute.xlu1 %364 }
 0x102   : > { %v367_v17 = vsel %vm366_vm1, %v363_v10, %v365_v16  ;;  %v368_v18 = vsel %vm366_vm1, %v365_v16, %v363_v10 }
 0x103   : > { %v372_v20 = vmul.f32 %v368_v18, %v10467_v9  ;;  %v373_v21 = vmul.f32 %v10472_v12, %v367_v17 }
 0x105   : > { %v376_v24 = vrot.slane %v372_v20, 4  ;;  %v377_v25 = vrot.slane %v373_v21, 4  ;;  %v315_v26 = vpop.permute.xlu1 %314  ;;  %v331_v27 = vpop.permute.xlu0 %330 }
 0x106   : > { %v319_v29 = vsel %vm318_vm2, %v313_v15, %v315_v26  ;;  %v320_v30 = vsel %vm318_vm2, %v315_v26, %v313_v15  ;;  %v333_v31 = vsel %vm332_vm3, %v329_v11, %v331_v27  ;;  %v334_v32 = vsel %vm332_vm3, %v331_v27, %v329_v11 }
 0x107   : > { %380 = vst [vmem:[#allocation2 + $0x10] sm:$0xf0] %v376_v24  ;;  %381 = vst [vmem:[#allocation2 + $0x18] sm:$0xf0] %v377_v25  ;;  %v324_v33 = vmul.f32 %v320_v30, %v10474_v13  ;;  %v325_v34 = vmul.f32 %v10490_v22, %v319_v29  ;;  %v338_v35 = vmul.f32 %v334_v32, %v10476_v14 }
 0x108   : > { %v339_v36 = vmul.f32 %v10494_v23, %v333_v31  ;;  %v10557_v24 = vcombine.high %v10546_v63, %v10546_v63 }
 0x109   : > { %326 = vst [vmem:[#allocation2] sm:$0xf] %v324_v33  ;;  %327 = vst [vmem:[#allocation2 + $0x8] sm:$0xf] %v325_v34  ;;  %v342_v38 = vrot.slane %v338_v35, 4  ;;  %v351_v40 = vpop.permute.xlu1 %350  ;;  %v349_v41 = vpop.permute.xlu0 %348 }
 0x10a   : > { %v343_v39 = vrot.slane %v339_v36, 4  ;;  %v353_v42 = vsel %vm352_vm4, %v349_v41, %v351_v40  ;;  %v354_v43 = vsel %vm352_vm4, %v351_v40, %v349_v41 }
 0x10b   : > { %346 = vst [vmem:[#allocation2] sm:$0xf0] %v342_v38  ;;  %v358_v44 = vmul.f32 %v354_v43, %v10484_v19  ;;  %v359_v45 = vmul.f32 %v10499_v28, %v353_v42 }
 0x10c   : > { %347 = vst [vmem:[#allocation2 + $0x8] sm:$0xf0] %v343_v39 }
 0x10d   : > { %360 = vst [vmem:[#allocation2 + $0x10] sm:$0xf] %v358_v44  ;;  %361 = vst [vmem:[#allocation2 + $0x18] sm:$0xf] %v359_v45  ;;  %v391_v48 = vpop.permute.xlu1 %390  ;;  %v389_v49 = vpop.permute.xlu0 %388 }
 0x10e   : > { %v393_v50 = vsel %vm392_vm5, %v389_v49, %v391_v48  ;;  %v394_v51 = vsel %vm392_vm5, %v391_v48, %v389_v49 }
 0x10f   : > { %v398_v52 = vmul.f32 %v393_v50, %v10513_v37  ;;  %v399_v53 = vmul.f32 %v10524_v46, %v394_v51 }
 0x111   : > { %v402_v56 = vrot.slane %v398_v52, 4  ;;  %v403_v57 = vrot.slane %v399_v53, 4  ;;  %v425_v58 = vpop.permute.xlu1 %424  ;;  %v423_v59 = vpop.permute.xlu0 %422 }
 0x112   : > { %v427_v60 = vsel %vm426_vm6, %v423_v59, %v425_v58  ;;  %v428_v61 = vsel %vm426_vm6, %v425_v58, %v423_v59  ;;  %v456_v0 = vld [vmem:[#allocation2] sm:$0xff] }
 0x113   : > { %v457_v62 = vld [vmem:[#allocation2 + $0x8] sm:$0xff]  ;;  %406 = vst [vmem:[#allocation2 + $0x20] sm:$0xf0] %v402_v56  ;;  %407 = vst [vmem:[#allocation2 + $0x28] sm:$0xf0] %v403_v57  ;;  %v432_v3 = vmul.f32 %v427_v60, %v10526_v47  ;;  %v433_v4 = vmul.f32 %v10537_v54, %v428_v61  ;;  %v490_v15 = vand.u32 4294901760, %v456_v0 }
 0x114   : > { %v488_v6 = vand.u32 4294901760, %v457_v62  ;;  %v459_v10 = vld [vmem:[#allocation2 + $0x18] sm:$0xff]  ;;  %v458_v11 = vld [vmem:[#allocation2 + $0x10] sm:$0xff] }
 0x115   : > { %v436_v16 = vrot.slane %v432_v3, 4  ;;  %v437_v17 = vrot.slane %v433_v4, 4  ;;  %v411_v18 = vpop.permute.xlu1 %410  ;;  %v409_v20 = vpop.permute.xlu0 %408  ;;  %v492_v21 = vand.u32 4294901760, %v459_v10  ;;  %v494_v29 = vand.u32 4294901760, %v458_v11 }
 0x116   : > { %v413_v25 = vsel %vm412_vm7, %v409_v20, %v411_v18  ;;  %v414_v26 = vsel %vm412_vm7, %v411_v18, %v409_v20  ;;  %v10563_v27 = vsub.f32 %v457_v62, %v488_v6  ;;  %v10573_v35 = vsub.f32 %v456_v0, %v490_v15 }
 0x117   : > { %440 = vst [vmem:[#allocation2 + $0x30] sm:$0xf0] %v436_v16  ;;  %441 = vst [vmem:[#allocation2 + $0x38] sm:$0xf0] %v437_v17  ;;  %v418_v30 = vmul.f32 %v413_v25, %v10539_v55  ;;  %v419_v31 = vmul.f32 %v10552_v5, %v414_v26  ;;  %v10567_v32 = vpack.c.bf16 %v492_v21, %v488_v6 }
 0x118   : > { %v10569_v33 = vsub.f32 %v459_v10, %v492_v21  ;;  %v10571_v34 = vpack.c.bf16 %v494_v29, %v490_v15  ;;  %v10575_v36 = vsub.f32 %v458_v11, %v494_v29  ;;  %v598_v49 = vand.u32 4294901760, %v10563_v27 }
 0x119   : > { %420 = vst [vmem:[#allocation2 + $0x30] sm:$0xf] %v418_v30  ;;  %421 = vst [vmem:[#allocation2 + $0x38] sm:$0xf] %v419_v31  ;;  %v445_v38 = vpop.permute.xlu1 %444  ;;  %7904 = vmatprep.subr.bf16.mxu0 %v10567_v32  ;;  %v443_v39 = vpop.permute.xlu0 %442  ;;  %v604_v50 = vand.u32 4294901760, %v10573_v35 }
 0x11a   : > { %v610_v40 = vand.u32 4294901760, %v10569_v33  ;;  %v447_v41 = vsel %vm446_vm8, %v443_v39, %v445_v38  ;;  %v448_v42 = vsel %vm446_vm8, %v445_v38, %v443_v39  ;;  %7906 = vmatpush1.bf16.msra.mxu0 %v10571_v34  ;;  %v461_v45 = vld [vmem:[#allocation2 + $0x28] sm:$0xff]  ;;  %v460_v48 = vld [vmem:[#allocation2 + $0x20] sm:$0xff]  ;;  %v616_v51 = vand.u32 4294901760, %v10575_v36  ;;  %v259_v38 = vld [vmem:[#allocation6] sm:$0xf] }
 0x11b   : > { %v452_v43 = vmul.f32 %v447_v41, %v10546_v63  ;;  %v453_v44 = vmul.f32 %v10557_v24, %v448_v42  ;;  %v496_v53 = vand.u32 4294901760, %v461_v45  ;;  %v498_v56 = vand.u32 4294901760, %v460_v48 }
 0x11c   : > { %v10589_v52 = vpack.c.bf16 %v610_v40, %v598_v49  ;;  %v10591_v57 = vpack.c.bf16 %v616_v51, %v604_v50  ;;  %v15135_v39 = vmov 0.0|0.0   ;;  %v10624_v41 = vand.u32 4294901760, %v259_v38 }
 0x11d   : > { %454 = vst [vmem:[#allocation2 + $0x40] sm:$0xf] %v452_v43  ;;  %455 = vst [vmem:[#allocation2 + $0x48] sm:$0xf] %v453_v44  ;;  %v10593_v62 = vsub.f32 %v461_v45, %v496_v53  ;;  %v10595_v0 = vsub.f32 %v460_v48, %v498_v56  ;;  %v611_v44 = vsub.f32 %v10569_v33, %v610_v40 }
 0x11e   : > { %v10629_v42 = vsub.f32 %v259_v38, %v10624_v41  ;;  %v599_v48 = vsub.f32 %v10563_v27, %v598_v49 }
 0x11f   : > { %v622_v21 = vand.u32 4294901760, %v10593_v62  ;;  %v628_v25 = vand.u32 4294901760, %v10595_v0 }
 0x120   : > { %v463_v58 = vld [vmem:[#allocation2 + $0x38] sm:$0xff]  ;;  %v462_v59 = vld [vmem:[#allocation2 + $0x30] sm:$0xff]  ;;  %v15122_v45 = vand.u32 4294901760, %v10629_v42  ;;  %v600_v49 = vand.u32 4294901760, %v599_v48 }
 0x121   : > { %v500_v60 = vand.u32 4294901760, %v463_v58  ;;  %v502_v61 = vand.u32 4294901760, %v462_v59 }
 0x123   : > { %v10597_v3 = vpack.c.bf16 %v500_v60, %v496_v53  ;;  %v10599_v4 = vsub.f32 %v463_v58, %v500_v60  ;;  %v10601_v6 = vpack.c.bf16 %v502_v61, %v498_v56  ;;  %v10603_v10 = vsub.f32 %v462_v59, %v502_v61 }
 0x124   : > { %v465_v11 = vld [vmem:[#allocation2 + $0x48] sm:$0xff]  ;;  %v464_v15 = vld [vmem:[#allocation2 + $0x40] sm:$0xff]  ;;  %v617_v56 = vsub.f32 %v10575_v36, %v616_v51  ;;  %v612_v58 = vand.u32 4294901760, %v611_v44  ;;  %v588_v59 = vsub.f32 %v10629_v42, %v15122_v45  ;;  %v605_v61 = vsub.f32 %v10573_v35, %v604_v50 }
 0x125   : > { %7908 = vmatprep.subr.bf16.mxu0 %v10597_v3  ;;  %v504_v16 = vand.u32 4294901760, %v465_v11  ;;  %v506_v17 = vand.u32 4294901760, %v464_v15  ;;  %v634_v18 = vand.u32 4294901760, %v10599_v4  ;;  %v640_v20 = vand.u32 4294901760, %v10603_v10 }
 0x126   : > { %7910 = vmatpush1.bf16.msra.mxu0 %v10601_v6  ;;  %v589_v38 = vand.u32 4294901760, %v588_v59  ;;  %v606_v50 = vand.u32 4294901760, %v605_v61  ;;  %v629_v45 = vsub.f32 %v10595_v0, %v628_v25 }
 0x127   : > { %v10612_v26 = vpack.c.bf16 %v15130_v7, %v504_v16  ;;  %v10615_v29 = vpack.c.bf16 %v15130_v7, %v506_v17  ;;  %v10617_v30 = vpack.c.bf16 %v634_v18, %v622_v21  ;;  %v10619_v31 = vpack.c.bf16 %v640_v20, %v628_v25 }
 0x128   : > { %v10633_v43 = vsub.f32 %v465_v11, %v504_v16  ;;  %v10640_v53 = vsub.f32 %v464_v15, %v506_v17  ;;  %v635_v60 = vsub.f32 %v10599_v4, %v634_v18  ;;  %v623_v11 = vsub.f32 %v10593_v62, %v622_v21 }
 0x129   : > { %7912 = vmatprep.subr.bf16.mxu0 %v10612_v26  ;;  %v618_v15 = vand.u32 4294901760, %v617_v56  ;;  %v641_v51 = vsub.f32 %v10603_v10, %v640_v20  ;;  %v7935_v17 = vpack.c.bf16 %v612_v58, %v600_v49 }
 0x12a   : > { %7914 = vmatpush1.bf16.msra.mxu0 %v10615_v29  ;;  %v646_v40 = vand.u32 4294901760, %v10633_v43  ;;  %v652_v16 = vand.u32 4294901760, %v10640_v53  ;;  %v636_v44 = vand.u32 4294901760, %v635_v60  ;;  %v624_v48 = vand.u32 4294901760, %v623_v11 }
 0x12b   : > { %7916 = vmatprep.subr.bf16.mxu0 %v15135_v39  ;;  %v7937_v21 = vpack.c.bf16 %v618_v15, %v606_v50  ;;  %v642_v56 = vand.u32 4294901760, %v641_v51  ;;  %v630_v60 = vand.u32 4294901760, %v629_v45  ;;  %v7967_v45 = vpack.c.bf16 %v10569_v33, %v10563_v27 }
 0x12c   : > { %v647_v18 = vsub.f32 %v10633_v43, %v646_v40  ;;  %v653_v20 = vsub.f32 %v10640_v53, %v652_v16  ;;  %v7939_v58 = vpack.c.bf16 %v636_v44, %v624_v48  ;;  %v7969_v15 = vpack.c.bf16 %v10575_v36, %v10573_v35 }
 0x12d   : > { %v7941_v49 = vpack.c.bf16 %v642_v56, %v630_v60  ;;  %v7971_v51 = vpack.c.bf16 %v10599_v4, %v10593_v62  ;;  %v7975_v27 = vpack.c.bf16 %v15130_v7, %v10633_v43  ;;  %v7977_v33 = vpack.c.bf16 %v15130_v7, %v10640_v53 }
 0x12e   : > { %7918 = vmatpush1.bf16.msra.mxu0 %v15135_v39  ;;  %v648_v59 = vand.u32 4294901760, %v647_v18  ;;  %v654_v61 = vand.u32 4294901760, %v653_v20  ;;  %v16020_v35 = vand.u32 4294901760, %v10629_v42  ;;  %v8039_v36 = vpack.c.bf16 %v15130_v7, %v646_v40 }
 0x12f   : > { %7920 = vmatprep.subr.bf16.mxu0 %v15135_v39  ;;  %v1402_v62 = vcombine.high %v10438_v2, %v10438_v2 }
 0x130   : > { %v7943_v25 = vpack.c.bf16 %v15130_v7, %v648_v59  ;;  %v7945_v11 = vpack.c.bf16 %v15130_v7, %v654_v61 }
 0x132   : > { %7922 = vmatpush1.bf16.msra.mxu0 %v15135_v39 }
 0x133   : > { %7924 = vmatprep.subr.bf16.mxu0 %v15135_v39 }
 0x136   : > { %7926 = vmatpush1.bf16.msra.mxu0 %v15135_v39 }
 0x137   : > { %7928 = vmatprep.subr.bf16.mxu0 %v15135_v39 }
 0x13a   : > { %7930 = vmatpush1.bf16.msra.mxu0 %v15135_v39 }
 0x13b   : > { %7932 = vmatprep.subr.bf16.mxu0 %v15135_v39 }
 0x13e   : > { %7934 = vmatpush1.bf16.msra.mxu0 %v15135_v39 }
 0x13f   : > { %7936 = vmatprep.subr.bf16.mxu0 %v7935_v17  ;;  %v7973_v17 = vpack.c.bf16 %v10603_v10, %v10595_v0 }
 0x141   : > { %590 = vmatmul.mubr.f32.vlgmr.msra.gmra.mrb[0].mxu0 %v589_v38 }
 0x142   : > { %7938 = vmatpush1.bf16.msra.mxu0 %v7937_v21  ;;  %820 = vmatprep.mubr.f32.mxu0 %v15130_v7 }
 0x143   : > { %7940 = vmatprep.subr.bf16.mxu0 %v7939_v58 }
 0x146   : > { %7942 = vmatpush1.bf16.msra.mxu0 %v7941_v49 }
 0x147   : > { %7944 = vmatprep.subr.bf16.mxu0 %v7943_v25 }
 0x14a   : > { %7946 = vmatpush1.bf16.msra.mxu0 %v7945_v11 }
 0x14b   : > { %7948 = vmatprep.subr.bf16.mxu0 %v15135_v39 }
 0x14e   : > { %7950 = vmatpush1.bf16.msra.mxu0 %v15135_v39 }
 0x14f   : > { %7952 = vmatprep.subr.bf16.mxu0 %v15135_v39 }
 0x152   : > { %7954 = vmatpush1.bf16.msra.mxu0 %v15135_v39 }
 0x153   : > { %7956 = vmatprep.subr.bf16.mxu0 %v15135_v39 }
 0x156   : > { %7958 = vmatpush1.bf16.msra.mxu0 %v15135_v39 }
 0x157   : > { %7960 = vmatprep.subr.bf16.mxu0 %v15135_v39 }
 0x15a   : > { %7962 = vmatpush1.bf16.msra.mxu0 %v15135_v39 }
 0x15b   : > { %7964 = vmatprep.subr.bf16.mxu0 %v15135_v39 }
 0x15e   : > { %7966 = vmatpush1.bf16.msra.mxu0 %v15135_v39 }
 0x15f   : > { %7968 = vmatprep.subr.bf16.mxu0 %v7967_v45 }
 0x161   : > { %822 = vmatmul.mubr.f32.vlgmr.msra.gmra.mrb[0].mxu0 %v10624_v41 }
 0x162   : > { %7970 = vmatpush1.bf16.msra.mxu0 %v7969_v15  ;;  %956 = vmatprep.mubr.f32.mxu0 %v15130_v7 }
 0x163   : > { %7972 = vmatprep.subr.bf16.mxu0 %v7971_v51 }
 0x166   : > { %7974 = vmatpush1.bf16.msra.mxu0 %v7973_v17 }
 0x167   : > { %7976 = vmatprep.subr.bf16.mxu0 %v7975_v27 }
 0x16a   : > { %7978 = vmatpush1.bf16.msra.mxu0 %v7977_v33 }
 0x16b   : > { %7980 = vmatprep.subr.bf16.mxu0 %v15135_v39 }
 0x16e   : > { %7982 = vmatpush1.bf16.msra.mxu0 %v15135_v39 }
 0x16f   : > { %7984 = vmatprep.subr.bf16.mxu0 %v15135_v39 }
 0x172   : > { %7986 = vmatpush1.bf16.msra.mxu0 %v15135_v39 }
 0x173   : > { %7988 = vmatprep.subr.bf16.mxu0 %v15135_v39 }
 0x176   : > { %7990 = vmatpush1.bf16.msra.mxu0 %v15135_v39 }
 0x177   : > { %7992 = vmatprep.subr.bf16.mxu0 %v15135_v39 }
 0x17a   : > { %7994 = vmatpush1.bf16.msra.mxu0 %v15135_v39 }
 0x17b   : > { %7996 = vmatprep.subr.bf16.mxu0 %v15135_v39 }
 0x17e   : > { %7998 = vmatpush1.bf16.msra.mxu0 %v15135_v39 }
 0x17f   : > { %8000 = vmatprep.subr.bf16.mxu0 %v10567_v32 }
 0x181   : > { %959 = vmatmul.mubr.f32.vlgmr.msra.gmra.mrb[0].mxu0 %v10629_v42 }
 0x182   : > { %8002 = vmatpush1.bf16.msra.mxu0 %v10571_v34  ;;  %1061 = vmatprep.mubr.f32.mxu0 %v15130_v7 }
 0x183   : > { %8004 = vmatprep.subr.bf16.mxu0 %v10597_v3 }
 0x186   : > { %8006 = vmatpush1.bf16.msra.mxu0 %v10601_v6 }
 0x187   : > { %8008 = vmatprep.subr.bf16.mxu0 %v10612_v26 }
 0x18a   : > { %8010 = vmatpush1.bf16.msra.mxu0 %v10615_v29 }
 0x18b   : > { %8012 = vmatprep.subr.bf16.mxu0 %v15135_v39 }
 0x18e   : > { %8014 = vmatpush1.bf16.msra.mxu0 %v15135_v39 }
 0x18f   : > { %8016 = vmatprep.subr.bf16.mxu0 %v15135_v39 }
 0x192   : > { %8018 = vmatpush1.bf16.msra.mxu0 %v15135_v39 }
 0x193   : > { %8020 = vmatprep.subr.bf16.mxu0 %v15135_v39 }
 0x196   : > { %8022 = vmatpush1.bf16.msra.mxu0 %v15135_v39 }
 0x197   : > { %8024 = vmatprep.subr.bf16.mxu0 %v15135_v39 }
 0x19a   : > { %8026 = vmatpush1.bf16.msra.mxu0 %v15135_v39 }
 0x19b   : > { %8028 = vmatprep.subr.bf16.mxu0 %v15135_v39 }
 0x19e   : > { %8030 = vmatpush1.bf16.msra.mxu0 %v15135_v39 }
 0x19f   : > { %8032 = vmatprep.subr.bf16.mxu0 %v10589_v52  ;;  %v8041_v52 = vpack.c.bf16 %v15130_v7, %v652_v16 }
 0x1a1   : > { %1065 = vmatmul.mubr.f32.vlgmr.msra.gmra.mrb[0].mxu0 %v16020_v35 }
 0x1a2   : > { %8034 = vmatpush1.bf16.msra.mxu0 %v10591_v57  ;;  %1231 = vmatprep.mubr.f32.mxu0 %v15130_v7 }
 0x1a3   : > { %8036 = vmatprep.subr.bf16.mxu0 %v10617_v30 }
 0x1a6   : > { %8038 = vmatpush1.bf16.msra.mxu0 %v10619_v31 }
 0x1a7   : > { %8040 = vmatprep.subr.bf16.mxu0 %v8039_v36 }
 0x1aa   : > { %8042 = vmatpush1.bf16.msra.mxu0 %v8041_v52 }
 0x1ab   : > { %8044 = vmatprep.subr.bf16.mxu0 %v15135_v39 }
 0x1ae   : > { %8046 = vmatpush1.bf16.msra.mxu0 %v15135_v39 }
 0x1af   : > { %8048 = vmatprep.subr.bf16.mxu0 %v15135_v39 }
 0x1b2   : > { %8050 = vmatpush1.bf16.msra.mxu0 %v15135_v39 }
 0x1b3   : > { %8052 = vmatprep.subr.bf16.mxu0 %v15135_v39 }
 0x1b6   : > { %8054 = vmatpush1.bf16.msra.mxu0 %v15135_v39 }
 0x1b7   : > { %8056 = vmatprep.subr.bf16.mxu0 %v15135_v39 }
 0x1ba   : > { %8058 = vmatpush1.bf16.msra.mxu0 %v15135_v39 }
 0x1bb   : > { %8060 = vmatprep.subr.bf16.mxu0 %v15135_v39 }
 0x1be   : > { %8062 = vmatpush1.bf16.msra.mxu0 %v15135_v39 }
 0x1bf   : > { %8064 = vmatprep.subr.bf16.mxu0 %v10567_v32 }
 0x1c1   : > { %1233 = vmatmul.mubr.f32.vlgmr.msra.gmra.mrb[0].mxu0 %v10624_v41 }
 0x1c2   : > { %8066 = vmatpush1.bf16.msra.mxu0 %v10571_v34  ;;  %1335 = vmatprep.mubr.f32.mxu0 %v15130_v7 }
 0x1c3   : > { %8068 = vmatprep.subr.bf16.mxu0 %v10597_v3 }
 0x1c6   : > { %8070 = vmatpush1.bf16.msra.mxu0 %v10601_v6 }
 0x1c7   : > { %8072 = vmatprep.subr.bf16.mxu0 %v10612_v26 }
 0x1ca   : > { %8074 = vmatpush1.bf16.msra.mxu0 %v10615_v29 }
 0x1cb   : > { %8076 = vmatprep.subr.bf16.mxu0 %v15135_v39 }
 0x1ce   : > { %8078 = vmatpush1.bf16.msra.mxu0 %v15135_v39 }
 0x1cf   : > { %8080 = vmatprep.subr.bf16.mxu0 %v15135_v39 }
 0x1d2   : > { %8082 = vmatpush1.bf16.msra.mxu0 %v15135_v39 }
 0x1d3   : > { %8084 = vmatprep.subr.bf16.mxu0 %v15135_v39 }
 0x1d6   : > { %8086 = vmatpush1.bf16.msra.mxu0 %v15135_v39 }
 0x1d7   : > { %8088 = vmatprep.subr.bf16.mxu0 %v15135_v39 }
 0x1da   : > { %8090 = vmatpush1.bf16.msra.mxu0 %v15135_v39 }
 0x1db   : > { %8092 = vmatprep.subr.bf16.mxu0 %v15135_v39 }
 0x1de   : > { %8094 = vmatpush1.bf16.msra.mxu0 %v15135_v39 }
 0x1e1   : > { %1337 = vmatmul.mubr.f32.vlgmr.msra.gmra.mrb[0].mxu0 %v10624_v41 }
 0x2b4   : > { %v1338_v32 = vpop.f32.mrb[0].mxu0 }
 0x2b5   : > { %vm1343_vm9 = vcmp.ge.f32.partialorder %v1338_v32, 0.0  ;;  %v1345_v34 = vmul.f32 0.2, %v1338_v32  ;;  %v1340_v57 = vpop.f32.mrb[1].mxu0 }
 0x2b6   : > { %vm1344_vm10 = vcmp.ge.f32.partialorder %v1340_v57, 0.0  ;;  %v1346_v0 = vmul.f32 0.2, %v1340_v57 }
 0x2b7   : > { %v1347_v3 = vsel %vm1343_vm9, %v1338_v32, %v1345_v34 }
 0x2b8   : > { %v1404_v4 = vmul.f32 %v1347_v3, %v10438_v2  ;;  %v1348_v6 = vsel %vm1344_vm10, %v1340_v57, %v1346_v0  ;;  %1359 = vrot.lane.b32.xlu0 %v1347_v3, %s10186_s30 }
 0x2b9   : > { %v1405_v10 = vmul.f32 %v1402_v62, %v1348_v6  ;;  %1361 = vrot.lane.b32.xlu1 %v1348_v6, %s10186_s30 }
 0x2ba   : > { %1406 = vst [vmem:[#allocation2 + $0x20] sm:$0xf] %v1404_v4 }
 0x2bb   : > { %1407 = vst [vmem:[#allocation2 + $0x28] sm:$0xf] %v1405_v10 }
 0x2bc   : > { %1385 = vrot.lane.b32.xlu0 %v1347_v3, %s10185_s23 }
 0x2bd   : > { %1387 = vrot.lane.b32.xlu1 %v1348_v6, %s10185_s23  ;;  %s10196_s23 = smov [#allocation11]  }
 0x2be   : > { %s10104_s30 = sshll.u32 %s10196_s23, 4  ;;  %s10105_s30 = int_to_ptr.vmem [resolvable:$false] %s10104_s30 }
 0x2bf   : > { %p10107_p12 = scmp.lt.s32.totalorder %s15070_s20, %s10105_s30 }
 0x2c0   : > { %1349 = vrot.lane.b32.xlu0 %v1347_v3, %s10187_s21 }
 0x2c1   : > { %1351 = vrot.lane.b32.xlu1 %v1348_v6, %s10187_s21  ;;  %s10106_s21 = scalar_lea.vmem %s10105_s30, 1024 }
 0x2c2   : > { %p10108_p1 = scmp.lt.s32.totalorder %s10106_s21, %s10100_s19 }
 0x2c4   : > { %1375 = vrot.lane.b32.xlu0 %v1347_v3, %s10188_s6  ;;  %p10109_p2 = por %p10108_p1, %p10107_p12 }
 0x2c5   : > { %1377 = vrot.lane.b32.xlu1 %v1348_v6, %s10188_s6 }
 0x2c6   : > { %p10110_p4 = pnand %p10109_p2, %p10103_p7 }
 0x2c8   : > { %1408 = vrot.lane.b32.xlu0 %v1347_v3, %s10189_s7 }
 0x2c9   : > { %1410 = vrot.lane.b32.xlu1 %v1348_v6, %s10189_s7 }
 0x2cc   : > { %1434 = vrot.lane.b32.xlu0 %v1347_v3, %s10192_s28 }
 0x2cd   : > { %1436 = vrot.lane.b32.xlu1 %v1348_v6, %s10192_s28 }
 0x2d0   : > { %1424 = vrot.lane.b32.xlu0 %v1347_v3, %s10193_s26 }
 0x2d1   : > { %1426 = vrot.lane.b32.xlu1 %v1348_v6, %s10193_s26 }
 0x2d4   : > { %1450 = vrot.lane.b32.xlu0 %v1347_v3, %s10194_s11 }
 0x2d5   : > { %1452 = vrot.lane.b32.xlu1 %v1348_v6, %s10194_s11 }
 0x32a   : > { %v1360_v2 = vpop.permute.xlu0 %1359 }
 0x32b   : > { %v1362_v26 = vpop.permute.xlu1 %1361 }
 0x32c   : > { %v1363_v29 = vsel %vm332_vm3, %v1360_v2, %v1362_v26  ;;  %v1364_v30 = vsel %vm332_vm3, %v1362_v26, %v1360_v2 }
 0x32d   : > { %v1365_v31 = vmul.f32 %v1364_v30, %v10476_v14  ;;  %v1366_v41 = vmul.f32 %v1363_v29, %v10494_v23 }
 0x32e   : > { %v1386_v42 = vpop.permute.xlu0 %1385 }
 0x32f   : > { %v1369_v43 = vrot.slane %v1365_v31, 4  ;;  %v1370_v53 = vrot.slane %v1366_v41, 4  ;;  %v1388_v40 = vpop.permute.xlu1 %1387 }
 0x330   : > { %v1389_v16 = vsel %vm366_vm1, %v1386_v42, %v1388_v40  ;;  %v1390_v38 = vsel %vm366_vm1, %v1388_v40, %v1386_v42 }
 0x331   : > { %1373 = vst [vmem:[#allocation2] sm:$0xf0] %v1369_v43  ;;  %1374 = vst [vmem:[#allocation2 + $0x8] sm:$0xf0] %v1370_v53  ;;  %v1391_v44 = vmul.f32 %v1390_v38, %v10467_v9  ;;  %v1392_v18 = vmul.f32 %v1389_v16, %v10472_v12 }
 0x332   : > { %v1350_v50 = vpop.permute.xlu0 %1349 }
 0x333   : > { %v1395_v14 = vrot.slane %v1391_v44, 4  ;;  %v1396_v48 = vrot.slane %v1392_v18, 4  ;;  %v1352_v23 = vpop.permute.xlu1 %1351 }
 0x334   : > { %v1353_v21 = vsel %vm318_vm2, %v1350_v50, %v1352_v23  ;;  %v1354_v56 = vsel %vm318_vm2, %v1352_v23, %v1350_v50 }
 0x335   : > { %1399 = vst [vmem:[#allocation2 + $0x10] sm:$0xf0] %v1395_v14  ;;  %1400 = vst [vmem:[#allocation2 + $0x18] sm:$0xf0] %v1396_v48  ;;  %v1355_v20 = vmul.f32 %v1354_v56, %v10474_v13  ;;  %v1356_v58 = vmul.f32 %v1353_v21, %v10490_v22 }
 0x336   : > { %v1376_v59 = vpop.permute.xlu0 %1375 }
 0x337   : > { %1357 = vst [vmem:[#allocation2] sm:$0xf] %v1355_v20  ;;  %1358 = vst [vmem:[#allocation2 + $0x8] sm:$0xf] %v1356_v58  ;;  %v1378_v9 = vpop.permute.xlu1 %1377 }
 0x338   : > { %v1379_v12 = vsel %vm352_vm4, %v1376_v59, %v1378_v9  ;;  %v1380_v60 = vsel %vm352_vm4, %v1378_v9, %v1376_v59 }
 0x339   : > { %v1381_v49 = vmul.f32 %v1380_v60, %v10484_v19  ;;  %v1382_v61 = vmul.f32 %v1379_v12, %v10499_v28 }
 0x33a   : > { %v1409_v25 = vpop.permute.xlu0 %1408 }
 0x33b   : > { %1383 = vst [vmem:[#allocation2 + $0x10] sm:$0xf] %v1381_v49  ;;  %1384 = vst [vmem:[#allocation2 + $0x18] sm:$0xf] %v1382_v61  ;;  %v1411_v13 = vpop.permute.xlu1 %1410 }
 0x33c   : > { %v1412_v22 = vsel %vm392_vm5, %v1409_v25, %v1411_v13  ;;  %v1413_v11 = vsel %vm392_vm5, %v1411_v13, %v1409_v25 }
 0x33d   : > { %v1414_v45 = vmul.f32 %v1412_v22, %v10513_v37  ;;  %v1415_v15 = vmul.f32 %v1413_v11, %v10524_v46 }
 0x33e   : > { %v1435_v51 = vpop.permute.xlu0 %1434  ;;  %v1461_v17 = vld [vmem:[#allocation2 + $0x8] sm:$0xff]  ;;  %v1460_v28 = vld [vmem:[#allocation2] sm:$0xff] }
 0x33f   : > { %v1418_v27 = vrot.slane %v1414_v45, 4  ;;  %v1419_v19 = vrot.slane %v1415_v15, 4  ;;  %v1437_v33 = vpop.permute.xlu1 %1436  ;;  %v1492_v52 = vand.u32 4294901760, %v1461_v17  ;;  %v1494_v62 = vand.u32 4294901760, %v1460_v28 }
 0x340   : > { %v1438_v35 = vsel %vm426_vm6, %v1435_v51, %v1437_v33  ;;  %v1439_v36 = vsel %vm426_vm6, %v1437_v33, %v1435_v51 }
 0x341   : > { %1422 = vst [vmem:[#allocation2 + $0x20] sm:$0xf0] %v1418_v27  ;;  %1423 = vst [vmem:[#allocation2 + $0x28] sm:$0xf0] %v1419_v19  ;;  %v1440_v32 = vmul.f32 %v1438_v35, %v10526_v47  ;;  %v1441_v37 = vmul.f32 %v1439_v36, %v10537_v54  ;;  %v10818_v29 = vsub.f32 %v1461_v17, %v1492_v52  ;;  %v10864_v17 = vld [vmem:[#allocation2 + $0x58] sm:$0xff] }
 0x342   : > { %v1425_v46 = vpop.permute.xlu0 %1424  ;;  %v1463_v34 = vld [vmem:[#allocation2 + $0x18] sm:$0xff]  ;;  %v1462_v57 = vld [vmem:[#allocation2 + $0x10] sm:$0xff]  ;;  %v10828_v43 = vsub.f32 %v1460_v28, %v1494_v62  ;;  %v1518_v27 = vand.u32 4294901760, %v10864_v17 }
 0x343   : > { %v1444_v0 = vrot.slane %v1440_v32, 4  ;;  %v1445_v3 = vrot.slane %v1441_v37, 4  ;;  %v1427_v4 = vpop.permute.xlu1 %1426  ;;  %v1496_v6 = vand.u32 4294901760, %v1463_v34  ;;  %v1498_v10 = vand.u32 4294901760, %v1462_v57  ;;  %v260_v37 = vld [vmem:[#allocation6 + $0x4] sm:$0xf] }
 0x344   : > { %v1428_v2 = vsel %vm412_vm7, %v1425_v46, %v1427_v4  ;;  %v1429_v26 = vsel %vm412_vm7, %v1427_v4, %v1425_v46  ;;  %v1602_v38 = vand.u32 4294901760, %v10818_v29  ;;  %v1608_v48 = vand.u32 4294901760, %v10828_v43 }
 0x345   : > { %1448 = vst [vmem:[#allocation2 + $0x30] sm:$0xf0] %v1444_v0  ;;  %1449 = vst [vmem:[#allocation2 + $0x38] sm:$0xf0] %v1445_v3  ;;  %v1430_v47 = vmul.f32 %v1428_v2, %v10539_v55  ;;  %v1431_v54 = vmul.f32 %v1429_v26, %v10552_v5  ;;  %v10822_v30 = vpack.c.bf16 %v1496_v6, %v1492_v52  ;;  %v10884_v46 = vand.u32 4294901760, %v260_v37 }
 0x346   : > { %v10824_v31 = vsub.f32 %v1463_v34, %v1496_v6  ;;  %v1451_v41 = vpop.permute.xlu0 %1450  ;;  %v10826_v42 = vpack.c.bf16 %v1498_v10, %v1494_v62  ;;  %v10830_v53 = vsub.f32 %v1462_v57, %v1498_v10  ;;  %v10881_v32 = vpack.c.bf16 %v1518_v27, %v1518_v27 }
 0x347   : > { %1432 = vst [vmem:[#allocation2 + $0x30] sm:$0xf] %v1430_v47  ;;  %1433 = vst [vmem:[#allocation2 + $0x38] sm:$0xf] %v1431_v54  ;;  %8096 = vmatprep.subr.bf16.mxu1 %v10822_v30  ;;  %v1453_v40 = vpop.permute.xlu1 %1452  ;;  %v10889_v34 = vsub.f32 %v260_v37, %v10884_v46  ;;  %v1603_v3 = vsub.f32 %v10818_v29, %v1602_v38  ;;  %v10909_v54 = vsub.f32 %v10864_v17, %v1518_v27 }
 0x348   : > { %v1614_v55 = vand.u32 4294901760, %v10824_v31  ;;  %v1454_v5 = vsel %vm446_vm8, %v1451_v41, %v1453_v40  ;;  %v1455_v16 = vsel %vm446_vm8, %v1453_v40, %v1451_v41  ;;  %8098 = vmatpush1.bf16.msra.mxu1 %v10826_v42  ;;  %v1465_v50 = vld [vmem:[#allocation2 + $0x28] sm:$0xff]  ;;  %v1464_v14 = vld [vmem:[#allocation2 + $0x20] sm:$0xff]  ;;  %v1620_v23 = vand.u32 4294901760, %v10830_v53 }
 0x349   : > { %v1456_v44 = vmul.f32 %v1454_v5, %v10546_v63  ;;  %v1457_v18 = vmul.f32 %v1455_v16, %v10557_v24  ;;  %v1500_v8 = vand.u32 4294901760, %v1465_v50  ;;  %v1502_v56 = vand.u32 4294901760, %v1464_v14 }
 0x34a   : > { %v10844_v21 = vpack.c.bf16 %v1614_v55, %v1602_v38  ;;  %v10846_v20 = vpack.c.bf16 %v1620_v23, %v1608_v48  ;;  %v1615_v62 = vsub.f32 %v10824_v31, %v1614_v55  ;;  %v15133_v0 = vand.u32 4294901760, %v10889_v34 }
 0x34b   : > { %1458 = vst [vmem:[#allocation2 + $0x40] sm:$0xf] %v1456_v44  ;;  %1459 = vst [vmem:[#allocation2 + $0x48] sm:$0xf] %v1457_v18  ;;  %v10848_v12 = vsub.f32 %v1465_v50, %v1500_v8  ;;  %v10850_v24 = vsub.f32 %v1464_v14, %v1502_v56  ;;  %v1621_v6 = vsub.f32 %v10830_v53, %v1620_v23  ;;  %v1604_v40 = vand.u32 4294901760, %v1603_v3 }
 0x34c   : > { %v1616_v10 = vand.u32 4294901760, %v1615_v62  ;;  %v1592_v2 = vsub.f32 %v10889_v34, %v15133_v0  ;;  %v1609_v41 = vsub.f32 %v10828_v43, %v1608_v48  ;;  %v8159_v37 = vpack.c.bf16 %v10824_v31, %v10818_v29  ;;  %v10944_v29 = vld [vmem:[#allocation9 + $0x58] sm:$0xff] }
 0x34d   : > { %v1626_v19 = vand.u32 4294901760, %v10848_v12  ;;  %v1632_v33 = vand.u32 4294901760, %v10850_v24  ;;  %v1622_v5 = vand.u32 4294901760, %v1621_v6  ;;  %v8161_v62 = vpack.c.bf16 %v10830_v53, %v10828_v43  ;;  %v2356_v6 = vld [vmem:[#allocation9 + $0x8] sm:$0xff]  ;;  %v2363_v43 = vld [vmem:[#allocation9 + $0x40] sm:$0xff] }
 0x34e   : > { %v1467_v58 = vld [vmem:[#allocation2 + $0x38] sm:$0xff]  ;;  %v1466_v59 = vld [vmem:[#allocation2 + $0x30] sm:$0xff]  ;;  %v8127_v44 = vpack.c.bf16 %v1616_v10, %v1604_v40  ;;  %v1593_v18 = vand.u32 4294901760, %v1592_v2  ;;  %v1610_v48 = vand.u32 4294901760, %v1609_v41  ;;  %v2364_v10 = vld [vmem:[#allocation9 + $0x48] sm:$0xff] }
 0x34f   : > { %v1504_v9 = vand.u32 4294901760, %v1467_v58  ;;  %v1506_v63 = vand.u32 4294901760, %v1466_v59  ;;  %v1627_v55 = vsub.f32 %v10848_v12, %v1626_v19  ;;  %v1633_v23 = vsub.f32 %v10850_v24, %v1632_v33  ;;  %v10941_v2 = vld [vmem:[#allocation9 + $0x18] sm:$0xff]  ;;  %v2355_v40 = vld [vmem:[#allocation9] sm:$0xff] }
 0x350   : > { %v2615_v41 = vand.u32 4294901760, %v2364_v10  ;;  %v15128_v31 = vand.u32 4294901760, %v10941_v2 }
 0x351   : > { %v10852_v60 = vpack.c.bf16 %v1504_v9, %v1500_v8  ;;  %v10854_v49 = vsub.f32 %v1467_v58, %v1504_v9  ;;  %v10856_v61 = vpack.c.bf16 %v1506_v63, %v1502_v56  ;;  %v10858_v25 = vsub.f32 %v1466_v59, %v1506_v63 }
 0x352   : > { %v1469_v13 = vld [vmem:[#allocation2 + $0x48] sm:$0xff]  ;;  %v1468_v22 = vld [vmem:[#allocation2 + $0x40] sm:$0xff]  ;;  %v10923_v8 = vand.u32 4294901760, %v10909_v54  ;;  %v1628_v56 = vand.u32 4294901760, %v1627_v55  ;;  %v8129_v58 = vpack.c.bf16 %v1622_v5, %v1610_v48  ;;  %v2617_v55 = vand.u32 4294901760, %v2363_v43  ;;  %v10950_v5 = vld [vmem:[#allocation9 + $0x10] sm:$0xff] }
 0x353   : > { %8100 = vmatprep.subr.bf16.mxu1 %v10852_v60  ;;  %v1508_v11 = vand.u32 4294901760, %v1469_v13  ;;  %v1510_v45 = vand.u32 4294901760, %v1468_v22  ;;  %v1638_v15 = vand.u32 4294901760, %v10854_v49  ;;  %v1644_v51 = vand.u32 4294901760, %v10858_v25 }
 0x354   : > { %8102 = vmatpush1.bf16.msra.mxu1 %v10856_v61  ;;  %v8163_v3 = vpack.c.bf16 %v10854_v49, %v10848_v12  ;;  %v8165_v53 = vpack.c.bf16 %v10858_v25, %v10850_v24  ;;  %v15126_v12 = vand.u32 4294901760, %v10944_v29  ;;  %v10963_v48 = vsub.f32 %v10941_v2, %v15128_v31  ;;  %v2380_v24 = vld [vmem:[#allocation9 + $0xc8] sm:$0xff] }
 0x355   : > { %v10870_v28 = vpack.c.bf16 %v15130_v7, %v1508_v11  ;;  %v10873_v35 = vpack.c.bf16 %v15130_v7, %v1510_v45  ;;  %v10875_v36 = vpack.c.bf16 %v1638_v15, %v1626_v19  ;;  %v10877_v52 = vpack.c.bf16 %v1644_v51, %v1632_v33 }
 0x356   : > { %v10893_v57 = vsub.f32 %v1469_v13, %v1508_v11  ;;  %v10900_v4 = vsub.f32 %v1468_v22, %v1510_v45  ;;  %v1639_v26 = vsub.f32 %v10854_v49, %v1638_v15  ;;  %v1645_v16 = vsub.f32 %v10858_v25, %v1644_v51  ;;  %16024 = vst [vmem:[#allocation20_spill] sm:$0xff] %v10963_v48  ;;  %v10965_v25 = vld [vmem:[#allocation9 + $0x98] sm:$0xff] }
 0x357   : > { %8104 = vmatprep.subr.bf16.mxu1 %v10870_v28  ;;  %v1634_v22 = vand.u32 4294901760, %v1633_v23  ;;  %v1681_v11 = vsub.f32 %v10909_v54, %v10923_v8  ;;  %v2613_v49 = vand.u32 4294901760, %v2355_v40  ;;  %v10967_v23 = vld [vmem:[#allocation9 + $0xd8] sm:$0xff] }
 0x358   : > { %8106 = vmatpush1.bf16.msra.mxu1 %v10873_v35  ;;  %v15132_v47 = vand.u32 4294901760, %v10893_v57  ;;  %v15129_v38 = vand.u32 4294901760, %v10900_v4  ;;  %v1640_v50 = vand.u32 4294901760, %v1639_v26  ;;  %v1646_v59 = vand.u32 4294901760, %v1645_v16  ;;  %v10952_v16 = vld [vmem:[#allocation9 + $0x50] sm:$0xff] }
 0x359   : > { %8108 = vmatprep.subr.bf16.mxu1 %v15135_v39  ;;  %v1682_v27 = vand.u32 4294901760, %v1681_v11  ;;  %v2611_v26 = vand.u32 4294901760, %v2356_v6  ;;  %v15123_v11 = vand.u32 4294901760, %v10952_v16 }
 0x35a   : > { %v1651_v14 = vsub.f32 %v10893_v57, %v15132_v47  ;;  %v1657_v9 = vsub.f32 %v10900_v4, %v15129_v38  ;;  %v8131_v63 = vpack.c.bf16 %v1640_v50, %v1628_v56  ;;  %v8133_v45 = vpack.c.bf16 %v1646_v59, %v1634_v22  ;;  %v2395_v38 = vld [vmem:[#allocation9 + $0x140] sm:$0xff] }
 0x35b   : > { %v8141_v33 = vpack.c.bf16 %v1682_v27, %v1682_v27  ;;  %v10956_v50 = vsub.f32 %v2356_v6, %v2611_v26  ;;  %v8167_v56 = vpack.c.bf16 %v15130_v7, %v10893_v57  ;;  %v10976_v59 = vpack.c.bf16 %v2617_v55, %v2613_v49 }
 0x35c   : > { %8110 = vmatpush1.bf16.msra.mxu1 %v10881_v32  ;;  %v1652_v13 = vand.u32 4294901760, %v1651_v14  ;;  %v1658_v15 = vand.u32 4294901760, %v1657_v9  ;;  %v10958_v14 = vsub.f32 %v2364_v10, %v2615_v41  ;;  %v10978_v9 = vsub.f32 %v2355_v40, %v2613_v49  ;;  %v2396_v40 = vld [vmem:[#allocation9 + $0x148] sm:$0xff] }
 0x35d   : > { %8112 = vmatprep.subr.bf16.mxu1 %v10881_v32  ;;  %16022 = vst [vmem:[#allocation18_spill] sm:$0xff] %v10956_v50  ;;  %16026 = vst [vmem:[#allocation22_spill] sm:$0xff] %v10976_v59  ;;  %v15125_v22 = vand.u32 4294901760, %v10950_v5  ;;  %v15124_v27 = vand.u32 4294901760, %v10965_v25 }
 0x35e   : > { %v8135_v51 = vpack.c.bf16 %v15130_v7, %v1652_v13  ;;  %v8137_v19 = vpack.c.bf16 %v15130_v7, %v1658_v15  ;;  %16023 = vst [vmem:[#allocation19_spill] sm:$0xff] %v10958_v14  ;;  %16027 = vst [vmem:[#allocation23_spill] sm:$0xff] %v10978_v9  ;;  %v10981_v13 = vsub.f32 %v2363_v43, %v2617_v55  ;;  %v2467_v14 = vld [vmem:[#allocation9 + $0x380] sm:$0xff] }
 0x35f   : > { %v8169_v15 = vpack.c.bf16 %v15130_v7, %v10900_v4  ;;  %v11008_v43 = vpack.c.bf16 %v10909_v54, %v10909_v54  ;;  %v11017_v55 = vsub.f32 %v10965_v25, %v15124_v27  ;;  %v11044_v7 = vld [vmem:[#allocation9 + $0x110] sm:$0xff] }
 0x360   : > { %8114 = vmatpush1.bf16.msra.mxu1 %v10881_v32  ;;  %16028 = vst [vmem:[#allocation24_spill] sm:$0xff] %v10981_v13 }
 0x361   : > { %8116 = vmatprep.subr.bf16.mxu1 %v10881_v32  ;;  %16034 = vst [vmem:[#allocation30_spill] sm:$0xff] %v11017_v55 }
 0x364   : > { %8118 = vmatpush1.bf16.msra.mxu1 %v10881_v32 }
 0x365   : > { %8120 = vmatprep.subr.bf16.mxu1 %v10881_v32 }
 0x368   : > { %8122 = vmatpush1.bf16.msra.mxu1 %v10881_v32 }
 0x369   : > { %8124 = vmatprep.subr.bf16.mxu1 %v10881_v32 }
 0x36c   : > { %8126 = vmatpush1.bf16.msra.mxu1 %v10881_v32 }
 0x36d   : > { %8128 = vmatprep.subr.bf16.mxu1 %v8127_v44  ;;  %v2372_v44 = vld [vmem:[#allocation9 + $0x88] sm:$0xff] }
 0x36f   : > { %1594 = vmatmul.mubr.f32.vlgmr.msra.gmra.mrb[0].mxu1 %v1593_v18  ;;  %v10954_v18 = vpack.c.bf16 %v2615_v41, %v2611_v26  ;;  %v11004_v26 = vld [vmem:[#allocation9 + $0xd0] sm:$0xff]  ;;  %v2388_v41 = vld [vmem:[#allocation9 + $0x108] sm:$0xff] }
 0x370   : > { %8130 = vmatpush1.bf16.msra.mxu1 %v8129_v58  ;;  %1824 = vmatprep.mubr.f32.mxu1 %v10864_v17  ;;  %v10974_v58 = vsub.f32 %v10944_v29, %v15126_v12  ;;  %v2627_v27 = vand.u32 4294901760, %v2388_v41 }
 0x371   : > { %8132 = vmatprep.subr.bf16.mxu1 %v8131_v63  ;;  %16021 = vst [vmem:[#allocation17_spill] sm:$0xff] %v10954_v18  ;;  %v2371_v63 = vld [vmem:[#allocation9 + $0x80] sm:$0xff]  ;;  %8288 = vmatprep.subr.bf16.mxu0 %v10954_v18 }
 0x372   : > { %16025 = vst [vmem:[#allocation21_spill] sm:$0xff] %v10974_v58  ;;  %8290 = vmatpush1.bf16.msra.mxu0 %v10976_v59  ;;  %v2621_v10 = vand.u32 4294901760, %v2371_v63 }
 0x374   : > { %8134 = vmatpush1.bf16.msra.mxu1 %v8133_v45  ;;  %v2619_v45 = vand.u32 4294901760, %v2372_v44  ;;  %v11026_v54 = vsub.f32 %v2371_v63, %v2621_v10 }
 0x375   : > { %8136 = vmatprep.subr.bf16.mxu1 %v8135_v51  ;;  %v2623_v51 = vand.u32 4294901760, %v2380_v24 }
 0x376   : > { %v11002_v6 = vsub.f32 %v2372_v44, %v2619_v45  ;;  %v11019_v44 = vld [vmem:[#allocation9 + $0x118] sm:$0xff]  ;;  %16036 = vst [vmem:[#allocation32_spill] sm:$0xff] %v11026_v54 }
 0x377   : > { %v11012_v49 = vsub.f32 %v2380_v24, %v2623_v51  ;;  %v11029_v24 = vld [vmem:[#allocation9 + $0x158] sm:$0xff] }
 0x378   : > { %8138 = vmatpush1.bf16.msra.mxu1 %v8137_v19  ;;  %v15127_v19 = vand.u32 4294901760, %v10967_v23  ;;  %16031 = vst [vmem:[#allocation27_spill] sm:$0xff] %v11002_v6 }
 0x379   : > { %8140 = vmatprep.subr.bf16.mxu1 %v15135_v39  ;;  %16033 = vst [vmem:[#allocation29_spill] sm:$0xff] %v11012_v49 }
 0x37c   : > { %8142 = vmatpush1.bf16.msra.mxu1 %v8141_v33 }
 0x37d   : > { %8144 = vmatprep.subr.bf16.mxu1 %v8141_v33 }
 0x380   : > { %8146 = vmatpush1.bf16.msra.mxu1 %v8141_v33 }
 0x381   : > { %8148 = vmatprep.subr.bf16.mxu1 %v8141_v33 }
 0x384   : > { %8150 = vmatpush1.bf16.msra.mxu1 %v8141_v33 }
 0x385   : > { %8152 = vmatprep.subr.bf16.mxu1 %v8141_v33 }
 0x388   : > { %8154 = vmatpush1.bf16.msra.mxu1 %v8141_v33 }
 0x389   : > { %8156 = vmatprep.subr.bf16.mxu1 %v8141_v33 }
 0x38c   : > { %8158 = vmatpush1.bf16.msra.mxu1 %v8141_v33  ;;  %v2379_v33 = vld [vmem:[#allocation9 + $0xc0] sm:$0xff] }
 0x38d   : > { %8160 = vmatprep.subr.bf16.mxu1 %v8159_v37  ;;  %v10990_v37 = vld [vmem:[#allocation9 + $0x90] sm:$0xff] }
 0x38f   : > { %1826 = vmatmul.mubr.f32.vlgmr.msra.gmra.mrb[0].mxu1 %v10884_v46 }
 0x390   : > { %8162 = vmatpush1.bf16.msra.mxu1 %v8161_v62  ;;  %1960 = vmatprep.mubr.f32.mxu1 %v10864_v17  ;;  %v10995_v62 = vsub.f32 %v10950_v5, %v15125_v22  ;;  %v2387_v22 = vld [vmem:[#allocation9 + $0x100] sm:$0xff] }
 0x391   : > { %8164 = vmatprep.subr.bf16.mxu1 %v8163_v3  ;;  %v11000_v3 = vsub.f32 %v10952_v16, %v15123_v11  ;;  %v2625_v11 = vand.u32 4294901760, %v2379_v33  ;;  %v2629_v59 = vand.u32 4294901760, %v2387_v22 }
 0x392   : > { %16029 = vst [vmem:[#allocation25_spill] sm:$0xff] %v10995_v62 }
 0x393   : > { %16030 = vst [vmem:[#allocation26_spill] sm:$0xff] %v11000_v3  ;;  %v11034_v12 = vpack.c.bf16 %v2625_v11, %v2621_v10  ;;  %v11053_v10 = vsub.f32 %v2388_v41, %v2627_v27  ;;  %v11079_v18 = vsub.f32 %v2387_v22, %v2629_v59 }
 0x394   : > { %8166 = vmatpush1.bf16.msra.mxu1 %v8165_v53  ;;  %v11010_v53 = vpack.c.bf16 %v2623_v51, %v2619_v45  ;;  %v15134_v45 = vand.u32 4294901760, %v10990_v37  ;;  %v15139_v51 = vand.u32 4294901760, %v11004_v26 }
 0x395   : > { %8168 = vmatprep.subr.bf16.mxu1 %v8167_v56  ;;  %v11024_v56 = vsub.f32 %v10967_v23, %v15127_v19  ;;  %16037 = vst [vmem:[#allocation33_spill] sm:$0xff] %v11034_v12  ;;  %v11036_v19 = vsub.f32 %v2379_v33, %v2625_v11  ;;  %16042 = vst [vmem:[#allocation38_spill] sm:$0xff] %v11053_v10  ;;  %v15154_v11 = vand.u32 4294901760, %v11029_v24  ;;  %v11056_v33 = vld [vmem:[#allocation9 + $0x150] sm:$0xff]  ;;  %v2411_v10 = vld [vmem:[#allocation9 + $0x1c0] sm:$0xff] }
 0x396   : > { %16032 = vst [vmem:[#allocation28_spill] sm:$0xff] %v11010_v53  ;;  %8292 = vmatprep.subr.bf16.mxu0 %v11010_v53  ;;  %v11041_v63 = vsub.f32 %v10990_v37, %v15134_v45  ;;  %v11049_v47 = vsub.f32 %v11004_v26, %v15139_v51  ;;  %v2404_v45 = vld [vmem:[#allocation9 + $0x188] sm:$0xff]  ;;  %v16044_v53 = vand.u32 4294901760, %v11019_v44  ;;  %16047 = vst [vmem:[#allocation42_spill] sm:$0xff] %v11079_v18  ;;  %v11094_v18 = vld [vmem:[#allocation9 + $0x1d0] sm:$0xff] }
 0x397   : > { %16035 = vst [vmem:[#allocation31_spill] sm:$0xff] %v11024_v56  ;;  %16038 = vst [vmem:[#allocation34_spill] sm:$0xff] %v11036_v19  ;;  %8294 = vmatpush1.bf16.msra.mxu0 %v11034_v12  ;;  %v11074_v41 = vsub.f32 %v11029_v24, %v15154_v11  ;;  %v2633_v12 = vand.u32 4294901760, %v2395_v38  ;;  %v2635_v1 = vand.u32 4294901760, %v2404_v45  ;;  %v16051_v19 = vand.u32 4294901760, %v11056_v33 }
 0x398   : > { %8170 = vmatpush1.bf16.msra.mxu1 %v8169_v15  ;;  %v2631_v15 = vand.u32 4294901760, %v2396_v40  ;;  %16039 = vst [vmem:[#allocation35_spill] sm:$0xff] %v11041_v63  ;;  %16040 = vst [vmem:[#allocation36_spill] sm:$0xff] %v11049_v47  ;;  %v11065_v51 = vsub.f32 %v11019_v44, %v16044_v53  ;;  %v11082_v47 = vld [vmem:[#allocation9 + $0x190] sm:$0xff]  ;;  %v2420_v53 = vld [vmem:[#allocation9 + $0x208] sm:$0xff] }
 0x399   : > { %8172 = vmatprep.subr.bf16.mxu1 %v15135_v39  ;;  %v2412_v39 = vld [vmem:[#allocation9 + $0x1c8] sm:$0xff]  ;;  %16046 = vst [vmem:[#allocation41_spill] sm:$0xff] %v11074_v41  ;;  %v11086_v63 = vsub.f32 %v2395_v38, %v2633_v12  ;;  %v16061_v56 = vand.u32 4294901760, %v11082_v47 }
 0x39a   : > { %v11051_v0 = vpack.c.bf16 %v2631_v15, %v2627_v27  ;;  %v11060_v31 = vsub.f32 %v2396_v40, %v2631_v15  ;;  %16045 = vst [vmem:[#allocation40_spill] sm:$0xff] %v11065_v51  ;;  %v11067_v27 = vld [vmem:[#allocation9 + $0x198] sm:$0xff]  ;;  %v15159_v40 = vand.u32 4294901760, %v11044_v7  ;;  %v2639_v51 = vand.u32 4294901760, %v2412_v39  ;;  %v2428_v41 = vld [vmem:[#allocation9 + $0x248] sm:$0xff] }
 0x39b   : > { %v11077_v15 = vld [vmem:[#allocation9 + $0x1d8] sm:$0xff]  ;;  %16049 = vst [vmem:[#allocation44_spill] sm:$0xff] %v11086_v63  ;;  %v15166_v22 = vand.u32 4294901760, %v11067_v27  ;;  %v11140_v55 = vsub.f32 %v11082_v47, %v16061_v56 }
 0x39c   : > { %16041 = vst [vmem:[#allocation37_spill] sm:$0xff] %v11051_v0  ;;  %8174 = vmatpush1.bf16.msra.mxu1 %v11008_v43  ;;  %16043 = vst [vmem:[#allocation39_spill] sm:$0xff] %v11060_v31  ;;  %8296 = vmatprep.subr.bf16.mxu0 %v11051_v0  ;;  %v2403_v31 = vld [vmem:[#allocation9 + $0x180] sm:$0xff]  ;;  %v11084_v0 = vpack.c.bf16 %v2633_v12, %v2629_v59  ;;  %v11091_v11 = vsub.f32 %v11044_v7, %v15159_v40  ;;  %v15173_v40 = vand.u32 4294901760, %v11077_v15 }
 0x39d   : > { %8176 = vmatprep.subr.bf16.mxu1 %v11008_v43  ;;  %v11100_v59 = vsub.f32 %v11056_v33, %v16051_v19  ;;  %v11102_v38 = vpack.c.bf16 %v2639_v51, %v2635_v1  ;;  %v11104_v12 = vsub.f32 %v2404_v45, %v2635_v1  ;;  %v11106_v63 = vsub.f32 %v2412_v39, %v2639_v51  ;;  %v11132_v1 = vld [vmem:[#allocation9 + $0x210] sm:$0xff] }
 0x39e   : > { %16048 = vst [vmem:[#allocation43_spill] sm:$0xff] %v11084_v0  ;;  %16050 = vst [vmem:[#allocation45_spill] sm:$0xff] %v11091_v11  ;;  %8298 = vmatpush1.bf16.msra.mxu0 %v11084_v0  ;;  %v11114_v11 = vsub.f32 %v11067_v27, %v15166_v22  ;;  %v2637_v54 = vand.u32 4294901760, %v2403_v31  ;;  %v2641_v19 = vand.u32 4294901760, %v2411_v10  ;;  %v2643_v45 = vand.u32 4294901760, %v2420_v53  ;;  %v11121_v0 = vld [vmem:[#allocation9 + $0x258] sm:$0xff] }
 0x39f   : > { %16052 = vst [vmem:[#allocation46_spill] sm:$0xff] %v11100_v59  ;;  %16053 = vst [vmem:[#allocation47_spill] sm:$0xff] %v11102_v38  ;;  %8300 = vmatprep.subr.bf16.mxu0 %v11102_v38  ;;  %v2647_v51 = vand.u32 4294901760, %v2428_v41  ;;  %v2419_v38 = vld [vmem:[#allocation9 + $0x200] sm:$0xff]  ;;  %v16074_v3 = vand.u32 4294901760, %v11132_v1 }
 0x3a0   : > { %8178 = vmatpush1.bf16.msra.mxu1 %v11008_v43  ;;  %16054 = vst [vmem:[#allocation48_spill] sm:$0xff] %v11104_v12  ;;  %16055 = vst [vmem:[#allocation49_spill] sm:$0xff] %v11106_v63  ;;  %v11119_v63 = vld [vmem:[#allocation9 + $0x218] sm:$0xff]  ;;  %v11126_v12 = vsub.f32 %v11077_v15, %v15173_v40  ;;  %v11128_v22 = vpack.c.bf16 %v2641_v19, %v2637_v54  ;;  %v2427_v59 = vld [vmem:[#allocation9 + $0x240] sm:$0xff]  ;;  %v11135_v39 = vsub.f32 %v2411_v10, %v2641_v19 }
 0x3a1   : > { %8180 = vmatprep.subr.bf16.mxu1 %v11008_v43  ;;  %16056 = vst [vmem:[#allocation50_spill] sm:$0xff] %v11114_v11  ;;  %v11130_v11 = vsub.f32 %v2403_v31, %v2637_v54  ;;  %16062 = vst [vmem:[#allocation55_spill] sm:$0xff] %v11140_v55  ;;  %v16063_v40 = vand.u32 4294901760, %v11094_v18  ;;  %v11147_v31 = vld [vmem:[#allocation9 + $0x250] sm:$0xff]  ;;  %v2436_v54 = vld [vmem:[#allocation9 + $0x288] sm:$0xff]  ;;  %v11151_v10 = vpack.c.bf16 %v2647_v51, %v2643_v45  ;;  %v15186_v56 = vand.u32 4294901760, %v11119_v63 }
 0x3a2   : > { %16057 = vst [vmem:[#allocation51_spill] sm:$0xff] %v11126_v12  ;;  %16058 = vst [vmem:[#allocation52_spill] sm:$0xff] %v11128_v22  ;;  %8302 = vmatpush1.bf16.msra.mxu0 %v11128_v22  ;;  %v11153_v19 = vsub.f32 %v2420_v53, %v2643_v45  ;;  %v15191_v55 = vand.u32 4294901760, %v11121_v0  ;;  %v2651_v45 = vand.u32 4294901760, %v2436_v54  ;;  %v11181_v53 = vld [vmem:[#allocation9 + $0x290] sm:$0xff]  ;;  %v11189_v62 = vsub.f32 %v11132_v1, %v16074_v3 }
 0x3a3   : > { %16059 = vst [vmem:[#allocation53_spill] sm:$0xff] %v11130_v11  ;;  %16060 = vst [vmem:[#allocation54_spill] sm:$0xff] %v11135_v39  ;;  %v11145_v12 = vsub.f32 %v11094_v18, %v16063_v40  ;;  %v2444_v11 = vld [vmem:[#allocation9 + $0x2c8] sm:$0xff]  ;;  %v11155_v39 = vsub.f32 %v2428_v41, %v2647_v51  ;;  %v2645_v40 = vand.u32 4294901760, %v2419_v38  ;;  %8304 = vmatprep.subr.bf16.mxu0 %v11151_v10  ;;  %v11167_v51 = vld [vmem:[#allocation9 + $0x298] sm:$0xff] }
 0x3a4   : > { %8182 = vmatpush1.bf16.msra.mxu1 %v11008_v43  ;;  %16065 = vst [vmem:[#allocation57_spill] sm:$0xff] %v11151_v10  ;;  %16066 = vst [vmem:[#allocation58_spill] sm:$0xff] %v11153_v19  ;;  %v11164_v22 = vsub.f32 %v11119_v63, %v15186_v56  ;;  %v2655_v41 = vand.u32 4294901760, %v2444_v11  ;;  %v11175_v49 = vsub.f32 %v11121_v0, %v15191_v55  ;;  %v2435_v56 = vld [vmem:[#allocation9 + $0x280] sm:$0xff]  ;;  %v16076_v55 = vand.u32 4294901760, %v11147_v31 }
 0x3a5   : > { %16064 = vst [vmem:[#allocation56_spill] sm:$0xff] %v11145_v12  ;;  %8184 = vmatprep.subr.bf16.mxu1 %v11008_v43  ;;  %16067 = vst [vmem:[#allocation59_spill] sm:$0xff] %v11155_v39  ;;  %v2649_v12 = vand.u32 4294901760, %v2427_v59  ;;  %v11169_v39 = vld [vmem:[#allocation9 + $0x2d8] sm:$0xff]  ;;  %v11179_v19 = vsub.f32 %v2419_v38, %v2645_v40  ;;  %v11196_v38 = vld [vmem:[#allocation9 + $0x2d0] sm:$0xff]  ;;  %v15203_v3 = vand.u32 4294901760, %v11167_v51 }
 0x3a6   : > { %16068 = vst [vmem:[#allocation60_spill] sm:$0xff] %v11164_v22  ;;  %16069 = vst [vmem:[#allocation61_spill] sm:$0xff] %v11175_v49  ;;  %v2443_v22 = vld [vmem:[#allocation9 + $0x2c0] sm:$0xff]  ;;  %v11194_v49 = vsub.f32 %v11147_v31, %v16076_v55  ;;  %v11199_v13 = vpack.c.bf16 %v2655_v41, %v2651_v45  ;;  %v16085_v55 = vand.u32 4294901760, %v11169_v39  ;;  %v16093_v48 = vand.u32 4294901760, %v11196_v38 }
 0x3a7   : > { %v11177_v10 = vpack.c.bf16 %v2649_v12, %v2645_v40  ;;  %16071 = vst [vmem:[#allocation63_spill] sm:$0xff] %v11179_v19  ;;  %16072 = vst [vmem:[#allocation64_spill] sm:$0xff] %v11181_v53  ;;  %v11184_v6 = vsub.f32 %v2427_v59, %v2649_v12  ;;  %v2452_v40 = vld [vmem:[#allocation9 + $0x308] sm:$0xff]  ;;  %v11201_v59 = vsub.f32 %v2436_v54, %v2651_v45  ;;  %v2657_v9 = vand.u32 4294901760, %v2443_v22 }
 0x3a8   : > { %8186 = vmatpush1.bf16.msra.mxu1 %v11008_v43  ;;  %16075 = vst [vmem:[#allocation66_spill] sm:$0xff] %v11189_v62  ;;  %16077 = vst [vmem:[#allocation67_spill] sm:$0xff] %v11194_v49  ;;  %v2460_v19 = vld [vmem:[#allocation9 + $0x348] sm:$0xff]  ;;  %v11203_v12 = vsub.f32 %v2444_v11, %v2655_v41  ;;  %v2659_v54 = vand.u32 4294901760, %v2452_v40  ;;  %v11216_v41 = vld [vmem:[#allocation9 + $0x318] sm:$0xff]  ;;  %v16091_v49 = vand.u32 4294901760, %v11181_v53 }
 0x3a9   : > { %16070 = vst [vmem:[#allocation62_spill] sm:$0xff] %v11177_v10  ;;  %8188 = vmatprep.subr.bf16.mxu1 %v11008_v43  ;;  %16073 = vst [vmem:[#allocation65_spill] sm:$0xff] %v11184_v6  ;;  %8306 = vmatpush1.bf16.msra.mxu0 %v11177_v10  ;;  %v2653_v6 = vand.u32 4294901760, %v2435_v56  ;;  %v11213_v10 = vsub.f32 %v11167_v51, %v15203_v3  ;;  %v2663_v45 = vand.u32 4294901760, %v2460_v19  ;;  %v11218_v62 = vld [vmem:[#allocation9 + $0x358] sm:$0xff]  ;;  %v2451_v3 = vld [vmem:[#allocation9 + $0x300] sm:$0xff] }
 0x3aa   : > { %16078 = vst [vmem:[#allocation68_spill] sm:$0xff] %v11196_v38  ;;  %16079 = vst [vmem:[#allocation69_spill] sm:$0xff] %v11199_v13  ;;  %8308 = vmatprep.subr.bf16.mxu0 %v11199_v13  ;;  %v11230_v11 = vld [vmem:[#allocation9 + $0x310] sm:$0xff]  ;;  %v11237_v58 = vsub.f32 %v11181_v53, %v16091_v49  ;;  %v15221_v49 = vand.u32 4294901760, %v11216_v41 }
 0x3ab   : > { %16080 = vst [vmem:[#allocation70_spill] sm:$0xff] %v11201_v59  ;;  %16081 = vst [vmem:[#allocation71_spill] sm:$0xff] %v11203_v12  ;;  %v11226_v13 = vpack.c.bf16 %v2657_v9, %v2653_v6  ;;  %v11228_v12 = vsub.f32 %v2435_v56, %v2653_v6  ;;  %v11232_v59 = vsub.f32 %v2443_v22, %v2657_v9  ;;  %v2468_v6 = vld [vmem:[#allocation9 + $0x388] sm:$0xff]  ;;  %v16108_v50 = vand.u32 4294901760, %v11230_v11 }
 0x3ac   : > { %8190 = vmatpush1.bf16.msra.mxu1 %v11008_v43  ;;  %16082 = vst [vmem:[#allocation72_spill] sm:$0xff] %v11213_v10  ;;  %16083 = vst [vmem:[#allocation73_spill] sm:$0xff] %v11216_v41  ;;  %v11224_v43 = vsub.f32 %v11169_v39, %v16085_v55  ;;  %v2459_v10 = vld [vmem:[#allocation9 + $0x340] sm:$0xff]  ;;  %v11242_v55 = vsub.f32 %v11196_v38, %v16093_v48  ;;  %v2476_v56 = vld [vmem:[#allocation9 + $0x3c8] sm:$0xff]  ;;  %v11248_v9 = vpack.c.bf16 %v2663_v45, %v2659_v54 }
 0x3ad   : > { %16084 = vst [vmem:[#allocation74_spill] sm:$0xff] %v11218_v62  ;;  %8192 = vmatprep.subr.bf16.mxu1 %v10822_v30  ;;  %16087 = vst [vmem:[#allocation76_spill] sm:$0xff] %v11226_v13  ;;  %8310 = vmatpush1.bf16.msra.mxu0 %v11226_v13  ;;  %v11250_v22 = vsub.f32 %v2452_v40, %v2659_v54  ;;  %v2667_v54 = vand.u32 4294901760, %v2468_v6  ;;  %v11267_v13 = vld [vmem:[#allocation9 + $0x398] sm:$0xff] }
 0x3ae   : > { %16086 = vst [vmem:[#allocation75_spill] sm:$0xff] %v11224_v43  ;;  %16088 = vst [vmem:[#allocation77_spill] sm:$0xff] %v11228_v12  ;;  %v11244_v43 = vld [vmem:[#allocation9 + $0x350] sm:$0xff]  ;;  %8312 = vmatprep.subr.bf16.mxu0 %v11248_v9  ;;  %v11269_v48 = vld [vmem:[#allocation9 + $0x3d8] sm:$0xff] }
 0x3af   : > { %16089 = vst [vmem:[#allocation78_spill] sm:$0xff] %v11230_v11  ;;  %16090 = vst [vmem:[#allocation79_spill] sm:$0xff] %v11232_v59  ;;  %1963 = vmatmul.mubr.f32.vlgmr.msra.gmra.mrb[0].mxu1 %v10889_v34  ;;  %v11252_v59 = vsub.f32 %v2460_v19, %v2663_v45  ;;  %v11264_v19 = vsub.f32 %v11216_v41, %v15221_v49  ;;  %v2671_v45 = vand.u32 4294901760, %v2476_v56  ;;  %v2475_v49 = vld [vmem:[#allocation9 + $0x3c0] sm:$0xff]  ;;  %v16110_v38 = vand.u32 4294901760, %v11244_v43 }
 0x3b0   : > { %16092 = vst [vmem:[#allocation80_spill] sm:$0xff] %v11237_v58  ;;  %16094 = vst [vmem:[#allocation81_spill] sm:$0xff] %v11242_v55  ;;  %8194 = vmatpush1.bf16.msra.mxu1 %v10826_v42  ;;  %2065 = vmatprep.mubr.f32.mxu1 %v10864_v17  ;;  %v2661_v55 = vand.u32 4294901760, %v2451_v3  ;;  %v2665_v58 = vand.u32 4294901760, %v2459_v10  ;;  %v11287_v41 = vsub.f32 %v11230_v11, %v16108_v50  ;;  %v15238_v50 = vand.u32 4294901760, %v11267_v13 }
 0x3b1   : > { %16095 = vst [vmem:[#allocation82_spill] sm:$0xff] %v11244_v43  ;;  %16096 = vst [vmem:[#allocation83_spill] sm:$0xff] %v11248_v9  ;;  %8196 = vmatprep.subr.bf16.mxu1 %v10852_v60 }
 0x3b2   : > { %16097 = vst [vmem:[#allocation84_spill] sm:$0xff] %v11250_v22  ;;  %16098 = vst [vmem:[#allocation85_spill] sm:$0xff] %v11252_v59  ;;  %v16102_v59 = vand.u32 4294901760, %v11218_v62  ;;  %v11276_v22 = vpack.c.bf16 %v2665_v58, %v2661_v55  ;;  %v11278_v9 = vsub.f32 %v2451_v3, %v2661_v55  ;;  %v11282_v40 = vsub.f32 %v2459_v10, %v2665_v58  ;;  %v2484_v3 = vld [vmem:[#allocation9 + $0x408] sm:$0xff] }
 0x3b3   : > { %16099 = vst [vmem:[#allocation86_spill] sm:$0xff] %v11264_v19  ;;  %16100 = vst [vmem:[#allocation87_spill] sm:$0xff] %v11267_v13  ;;  %v11280_v19 = vld [vmem:[#allocation9 + $0x390] sm:$0xff]  ;;  %v2492_v55 = vld [vmem:[#allocation9 + $0x448] sm:$0xff]  ;;  %v11298_v58 = vpack.c.bf16 %v2671_v45, %v2667_v54  ;;  %v11300_v10 = vsub.f32 %v2468_v6, %v2667_v54 }
 0x3b4   : > { %16101 = vst [vmem:[#allocation88_spill] sm:$0xff] %v11269_v48  ;;  %v11274_v12 = vsub.f32 %v11218_v62, %v16102_v59  ;;  %16104 = vst [vmem:[#allocation90_spill] sm:$0xff] %v11276_v22  ;;  %v11292_v59 = vsub.f32 %v11244_v43, %v16110_v38  ;;  %8198 = vmatpush1.bf16.msra.mxu1 %v10856_v61  ;;  %8314 = vmatpush1.bf16.msra.mxu0 %v11276_v22  ;;  %v15242_v38 = vand.u32 4294901760, %v11269_v48  ;;  %v2483_v43 = vld [vmem:[#allocation9 + $0x400] sm:$0xff] }
 0x3b5   : > { %16105 = vst [vmem:[#allocation91_spill] sm:$0xff] %v11278_v9  ;;  %16106 = vst [vmem:[#allocation92_spill] sm:$0xff] %v11280_v19  ;;  %8200 = vmatprep.subr.bf16.mxu1 %v10870_v28  ;;  %8316 = vmatprep.subr.bf16.mxu0 %v11298_v58  ;;  %v11312_v22 = vsub.f32 %v11267_v13, %v15238_v50  ;;  %v2679_v54 = vand.u32 4294901760, %v2492_v55  ;;  %v2491_v50 = vld [vmem:[#allocation9 + $0x440] sm:$0xff]  ;;  %v16124_v13 = vand.u32 4294901760, %v11280_v19 }
 0x3b6   : > { %16103 = vst [vmem:[#allocation89_spill] sm:$0xff] %v11274_v12  ;;  %16107 = vst [vmem:[#allocation93_spill] sm:$0xff] %v11282_v40  ;;  %v11294_v12 = vld [vmem:[#allocation9 + $0x3d0] sm:$0xff]  ;;  %v11302_v40 = vsub.f32 %v2476_v56, %v2671_v45  ;;  %v2675_v56 = vand.u32 4294901760, %v2484_v3  ;;  %v11315_v45 = vld [vmem:[#allocation9 + $0x418] sm:$0xff] }
 0x3b7   : > { %16109 = vst [vmem:[#allocation94_spill] sm:$0xff] %v11287_v41  ;;  %16111 = vst [vmem:[#allocation95_spill] sm:$0xff] %v11292_v59  ;;  %v2669_v59 = vand.u32 4294901760, %v2467_v14  ;;  %v2673_v41 = vand.u32 4294901760, %v2475_v49  ;;  %v11336_v11 = vsub.f32 %v11280_v19, %v16124_v13  ;;  %v15256_v13 = vand.u32 4294901760, %v11315_v45 }
 0x3b8   : > { %16112 = vst [vmem:[#allocation96_spill] sm:$0xff] %v11294_v12  ;;  %16113 = vst [vmem:[#allocation97_spill] sm:$0xff] %v11298_v58  ;;  %8202 = vmatpush1.bf16.msra.mxu1 %v10873_v35 }
 0x3b9   : > { %16114 = vst [vmem:[#allocation98_spill] sm:$0xff] %v11300_v10  ;;  %16115 = vst [vmem:[#allocation99_spill] sm:$0xff] %v11302_v40  ;;  %v11317_v40 = vld [vmem:[#allocation9 + $0x458] sm:$0xff]  ;;  %v11322_v10 = vsub.f32 %v11269_v48, %v15242_v38  ;;  %v11324_v9 = vpack.c.bf16 %v2673_v41, %v2669_v59  ;;  %v11326_v58 = vsub.f32 %v2467_v14, %v2669_v59  ;;  %v16126_v38 = vand.u32 4294901760, %v11294_v12  ;;  %v11343_v14 = vld [vmem:[#allocation9 + $0x450] sm:$0xff] }
 0x3ba   : > { %16116 = vst [vmem:[#allocation100_spill] sm:$0xff] %v11312_v22  ;;  %16117 = vst [vmem:[#allocation101_spill] sm:$0xff] %v11315_v45  ;;  %v11328_v22 = vld [vmem:[#allocation9 + $0x410] sm:$0xff]  ;;  %v11331_v6 = vsub.f32 %v2475_v49, %v2673_v41  ;;  %v2500_v59 = vld [vmem:[#allocation9 + $0x488] sm:$0xff]  ;;  %v16129_v48 = vmov 0.0|0.0   ;;  %v11347_v41 = vpack.c.bf16 %v2679_v54, %v2675_v56  ;;  %v11349_v49 = vsub.f32 %v2484_v3, %v2675_v56 }
 0x3bb   : > { %16118 = vst [vmem:[#allocation102_spill] sm:$0xff] %v11317_v40  ;;  %16119 = vst [vmem:[#allocation103_spill] sm:$0xff] %v11322_v10  ;;  %v11341_v10 = vsub.f32 %v11294_v12, %v16126_v38  ;;  %8204 = vmatprep.subr.bf16.mxu1 %v16129_v48  ;;  %8318 = vmatpush1.bf16.msra.mxu0 %v11324_v9  ;;  %v2677_v38 = vand.u32 4294901760, %v2483_v43  ;;  %v2683_v56 = vand.u32 4294901760, %v2500_v59  ;;  %v11377_v3 = vld [vmem:[#allocation9 + $0x490] sm:$0xff]  ;;  %v16140_v19 = vand.u32 4294901760, %v11328_v22 }
 0x3bc   : > { %16120 = vst [vmem:[#allocation104_spill] sm:$0xff] %v11324_v9  ;;  %16121 = vst [vmem:[#allocation105_spill] sm:$0xff] %v11326_v58  ;;  %v2508_v58 = vld [vmem:[#allocation9 + $0x4c8] sm:$0xff]  ;;  %8320 = vmatprep.subr.bf16.mxu0 %v11347_v41  ;;  %v11360_v9 = vsub.f32 %v11315_v45, %v15256_v13  ;;  %8206 = vmatpush1.bf16.msra.mxu1 %v10881_v32  ;;  %v2499_v13 = vld [vmem:[#allocation9 + $0x480] sm:$0xff] }
 0x3bd   : > { %16122 = vst [vmem:[#allocation106_spill] sm:$0xff] %v11328_v22  ;;  %16123 = vst [vmem:[#allocation107_spill] sm:$0xff] %v11331_v6  ;;  %v11351_v6 = vsub.f32 %v2492_v55, %v2679_v54  ;;  %v2687_v55 = vand.u32 4294901760, %v2508_v58  ;;  %v11363_v54 = vld [vmem:[#allocation9 + $0x498] sm:$0xff]  ;;  %8208 = vmatprep.subr.bf16.mxu1 %v10881_v32  ;;  %v11385_v62 = vsub.f32 %v11328_v22, %v16140_v19 }
 0x3be   : > { %16125 = vst [vmem:[#allocation108_spill] sm:$0xff] %v11336_v11  ;;  %16127 = vst [vmem:[#allocation109_spill] sm:$0xff] %v11341_v10  ;;  %v15261_v11 = vand.u32 4294901760, %v11317_v40  ;;  %v2681_v10 = vand.u32 4294901760, %v2491_v50  ;;  %v15274_v19 = vand.u32 4294901760, %v11363_v54 }
 0x3bf   : > { %16128 = vst [vmem:[#allocation110_spill] sm:$0xff] %v11343_v14  ;;  %16130 = vst [vmem:[#allocation111_spill] sm:$0xff] %v11347_v41 }
 0x3c0   : > { %16131 = vst [vmem:[#allocation112_spill] sm:$0xff] %v11349_v49  ;;  %16132 = vst [vmem:[#allocation113_spill] sm:$0xff] %v11351_v6  ;;  %v11365_v6 = vld [vmem:[#allocation9 + $0x4d8] sm:$0xff]  ;;  %v11371_v12 = vsub.f32 %v11317_v40, %v15261_v11  ;;  %v11373_v41 = vpack.c.bf16 %v2681_v10, %v2677_v38  ;;  %v11375_v49 = vsub.f32 %v2483_v43, %v2677_v38  ;;  %v16142_v11 = vand.u32 4294901760, %v11343_v14  ;;  %v11392_v43 = vld [vmem:[#allocation9 + $0x4d0] sm:$0xff] }
 0x3c1   : > { %16133 = vst [vmem:[#allocation114_spill] sm:$0xff] %v11360_v9  ;;  %16134 = vst [vmem:[#allocation115_spill] sm:$0xff] %v11363_v54  ;;  %v2507_v9 = vld [vmem:[#allocation9 + $0x4c0] sm:$0xff]  ;;  %v11380_v45 = vsub.f32 %v2491_v50, %v2681_v10  ;;  %v2516_v38 = vld [vmem:[#allocation9 + $0x508] sm:$0xff]  ;;  %v11395_v40 = vpack.c.bf16 %v2687_v55, %v2683_v56  ;;  %v11397_v10 = vsub.f32 %v2500_v59, %v2683_v56  ;;  %8210 = vmatpush1.bf16.msra.mxu1 %v10881_v32 }
 0x3c2   : > { %16135 = vst [vmem:[#allocation116_spill] sm:$0xff] %v11371_v12  ;;  %16136 = vst [vmem:[#allocation117_spill] sm:$0xff] %v11373_v41  ;;  %v11390_v12 = vsub.f32 %v11343_v14, %v16142_v11  ;;  %8322 = vmatpush1.bf16.msra.mxu0 %v11373_v41  ;;  %v11399_v50 = vsub.f32 %v2508_v58, %v2687_v55  ;;  %v2689_v22 = vand.u32 4294901760, %v2507_v9  ;;  %v2691_v59 = vand.u32 4294901760, %v2516_v38  ;;  %v11412_v55 = vld [vmem:[#allocation9 + $0x518] sm:$0xff]  ;;  %v11426_v58 = vld [vmem:[#allocation9 + $0x510] sm:$0xff] }
 0x3c3   : > { %16137 = vst [vmem:[#allocation118_spill] sm:$0xff] %v11375_v49  ;;  %16138 = vst [vmem:[#allocation119_spill] sm:$0xff] %v11377_v3  ;;  %v2524_v49 = vld [vmem:[#allocation9 + $0x548] sm:$0xff]  ;;  %8324 = vmatprep.subr.bf16.mxu0 %v11395_v40  ;;  %v11409_v41 = vsub.f32 %v11363_v54, %v15274_v19  ;;  %8212 = vmatprep.subr.bf16.mxu1 %v10881_v32  ;;  %v16150_v11 = vand.u32 4294901760, %v11365_v6  ;;  %v2515_v19 = vld [vmem:[#allocation9 + $0x500] sm:$0xff]  ;;  %v16155_v54 = vand.u32 4294901760, %v11377_v3 }
 0x3c4   : > { %16139 = vst [vmem:[#allocation120_spill] sm:$0xff] %v11380_v45  ;;  %16141 = vst [vmem:[#allocation121_spill] sm:$0xff] %v11385_v62  ;;  %v2685_v45 = vand.u32 4294901760, %v2499_v13  ;;  %v2695_v56 = vand.u32 4294901760, %v2524_v49  ;;  %v11414_v62 = vld [vmem:[#allocation9 + $0x558] sm:$0xff]  ;;  %v16157_v53 = vand.u32 4294901760, %v11392_v43 }
 0x3c5   : > { %16143 = vst [vmem:[#allocation122_spill] sm:$0xff] %v11390_v12  ;;  %16144 = vst [vmem:[#allocation123_spill] sm:$0xff] %v11392_v43  ;;  %v11428_v12 = vsub.f32 %v2507_v9, %v2689_v22  ;;  %v11433_v14 = vsub.f32 %v11377_v3, %v16155_v54  ;;  %v11445_v9 = vsub.f32 %v2516_v38, %v2691_v59  ;;  %v15292_v54 = vand.u32 4294901760, %v11412_v55 }
 0x3c6   : > { %16145 = vst [vmem:[#allocation124_spill] sm:$0xff] %v11395_v40  ;;  %16146 = vst [vmem:[#allocation125_spill] sm:$0xff] %v11397_v10  ;;  %v11422_v40 = vpack.c.bf16 %v2689_v22, %v2685_v45  ;;  %v11424_v10 = vsub.f32 %v2499_v13, %v2685_v45  ;;  %v2532_v45 = vld [vmem:[#allocation9 + $0x588] sm:$0xff]  ;;  %v11447_v22 = vsub.f32 %v2524_v49, %v2695_v56  ;;  %8214 = vmatpush1.bf16.msra.mxu1 %v10881_v32 }
 0x3c7   : > { %16147 = vst [vmem:[#allocation126_spill] sm:$0xff] %v11399_v50  ;;  %16148 = vst [vmem:[#allocation127_spill] sm:$0xff] %v11409_v41  ;;  %v11420_v50 = vsub.f32 %v11365_v6, %v16150_v11  ;;  %v2523_v41 = vld [vmem:[#allocation9 + $0x540] sm:$0xff]  ;;  %v11438_v11 = vsub.f32 %v11392_v43, %v16157_v53  ;;  %v2540_v13 = vld [vmem:[#allocation9 + $0x5c8] sm:$0xff]  ;;  %v2693_v53 = vand.u32 4294901760, %v2515_v19  ;;  %8216 = vmatprep.subr.bf16.mxu1 %v10881_v32  ;;  %v16167_v49 = vand.u32 4294901760, %v11426_v58 }
 0x3c8   : > { %16149 = vst [vmem:[#allocation128_spill] sm:$0xff] %v11412_v55  ;;  %16152 = vst [vmem:[#allocation130_spill] sm:$0xff] %v11422_v40  ;;  %8326 = vmatpush1.bf16.msra.mxu0 %v11422_v40  ;;  %v11458_v38 = vsub.f32 %v11412_v55, %v15292_v54  ;;  %v11461_v40 = vld [vmem:[#allocation9 + $0x598] sm:$0xff]  ;;  %v2531_v43 = vld [vmem:[#allocation9 + $0x580] sm:$0xff] }
 0x3c9   : > { %16151 = vst [vmem:[#allocation129_spill] sm:$0xff] %v11420_v50  ;;  %16153 = vst [vmem:[#allocation131_spill] sm:$0xff] %v11424_v10  ;;  %v11440_v50 = vld [vmem:[#allocation9 + $0x550] sm:$0xff]  ;;  %v11443_v10 = vpack.c.bf16 %v2695_v56, %v2691_v59  ;;  %v2699_v59 = vand.u32 4294901760, %v2532_v45  ;;  %v2703_v56 = vand.u32 4294901760, %v2540_v13  ;;  %v2539_v54 = vld [vmem:[#allocation9 + $0x5c0] sm:$0xff]  ;;  %v11479_v55 = vsub.f32 %v11426_v58, %v16167_v49 }
 0x3ca   : > { %16154 = vst [vmem:[#allocation132_spill] sm:$0xff] %v11428_v12  ;;  %16156 = vst [vmem:[#allocation133_spill] sm:$0xff] %v11433_v14  ;;  %v15296_v14 = vand.u32 4294901760, %v11414_v62  ;;  %v16169_v3 = vand.u32 4294901760, %v11440_v50  ;;  %8218 = vmatpush1.bf16.msra.mxu1 %v10881_v32  ;;  %v15305_v49 = vand.u32 4294901760, %v11461_v40 }
 0x3cb   : > { %16158 = vst [vmem:[#allocation134_spill] sm:$0xff] %v11438_v11  ;;  %16159 = vst [vmem:[#allocation135_spill] sm:$0xff] %v11443_v10  ;;  %v2697_v11 = vand.u32 4294901760, %v2523_v41  ;;  %8328 = vmatprep.subr.bf16.mxu0 %v11443_v10  ;;  %v11472_v10 = vld [vmem:[#allocation9 + $0x5d8] sm:$0xff]  ;;  %8220 = vmatprep.subr.bf16.mxu1 %v10881_v32 }
 0x3cc   : > { %16160 = vst [vmem:[#allocation136_spill] sm:$0xff] %v11445_v9  ;;  %16161 = vst [vmem:[#allocation137_spill] sm:$0xff] %v11447_v22  ;;  %v11466_v22 = vsub.f32 %v11414_v62, %v15296_v14  ;;  %v11470_v9 = vsub.f32 %v2515_v19, %v2693_v53  ;;  %v11484_v14 = vsub.f32 %v11440_v50, %v16169_v3  ;;  %v11488_v19 = vld [vmem:[#allocation9 + $0x5d0] sm:$0xff]  ;;  %v3987_v3 = vand.u32 4294901760, %v11472_v10 }
 0x3cd   : > { %16162 = vst [vmem:[#allocation138_spill] sm:$0xff] %v11458_v38  ;;  %v11468_v12 = vpack.c.bf16 %v2697_v11, %v2693_v53  ;;  %v11474_v38 = vsub.f32 %v2523_v41, %v2697_v11  ;;  %16168 = vst [vmem:[#allocation143_spill] sm:$0xff] %v11479_v55  ;;  %v11492_v41 = vpack.c.bf16 %v2703_v56, %v2699_v59  ;;  %v2705_v55 = vand.u32 4294901760, %v2539_v54 }
 0x3ce   : > { %16163 = vst [vmem:[#allocation139_spill] sm:$0xff] %v11466_v22  ;;  %16165 = vst [vmem:[#allocation141_spill] sm:$0xff] %v11470_v9  ;;  %v11486_v22 = vld [vmem:[#allocation9 + $0x590] sm:$0xff]  ;;  %v11494_v11 = vsub.f32 %v2532_v45, %v2699_v59  ;;  %v11496_v53 = vsub.f32 %v2540_v13, %v2703_v56  ;;  %v15307_v13 = vand.u32 4294901760, %v11488_v19  ;;  %v11512_v59 = vsub.f32 %v11472_v10, %v3987_v3  ;;  %v2558_v10 = vld [vmem:[#allocation9 + $0x658] sm:$0xff] }
 0x3cf   : > { %16164 = vst [vmem:[#allocation140_spill] sm:$0xff] %v11468_v12  ;;  %16166 = vst [vmem:[#allocation142_spill] sm:$0xff] %v11474_v38  ;;  %8330 = vmatpush1.bf16.msra.mxu0 %v11468_v12  ;;  %v11505_v12 = vsub.f32 %v11461_v40, %v15305_v49  ;;  %v3985_v45 = vand.u32 4294901760, %v11486_v22  ;;  %8222 = vmatpush1.bf16.msra.mxu1 %v10881_v32 }
 0x3d0   : > { %16170 = vst [vmem:[#allocation144_spill] sm:$0xff] %v11484_v14  ;;  %16171 = vst [vmem:[#allocation145_spill] sm:$0xff] %v11492_v41  ;;  %v2701_v14 = vand.u32 4294901760, %v2531_v43  ;;  %8332 = vmatprep.subr.bf16.mxu0 %v11492_v41  ;;  %v11519_v41 = vsub.f32 %v2539_v54, %v2705_v55  ;;  %8224 = vmatprep.subr.bf16.mxu1 %v10844_v21  ;;  %v16184_v21 = vand.u32 4294901760, %v10900_v4  ;;  %v16197_v4 = vand.u32 4294901760, %v11019_v44 }
 0x3d1   : > { %16172 = vst [vmem:[#allocation146_spill] sm:$0xff] %v11494_v11  ;;  %16173 = vst [vmem:[#allocation147_spill] sm:$0xff] %v11496_v53  ;;  %v11524_v49 = vsub.f32 %v11486_v22, %v3985_v45 }
 0x3d2   : > { %16174 = vst [vmem:[#allocation148_spill] sm:$0xff] %v11505_v12  ;;  %16175 = vst [vmem:[#allocation149_spill] sm:$0xff] %v11512_v59  ;;  %v11514_v56 = vpack.c.bf16 %v2705_v55, %v2701_v14  ;;  %v11516_v53 = vsub.f32 %v2531_v43, %v2701_v14  ;;  %v11529_v12 = vsub.f32 %v11488_v19, %v15307_v13  ;;  %v16181_v14 = vand.u32 4294901760, %v10889_v34 }
 0x3d3   : > { %16178 = vst [vmem:[#allocation152_spill] sm:$0xff] %v11519_v41  ;;  %16179 = vst [vmem:[#allocation153_spill] sm:$0xff] %v11524_v49  ;;  %v16182_v43 = vand.u32 4294901760, %v10893_v57  ;;  %v16183_v55 = vmov 0.0   ;;  %v8237_v34 = vpack.c.bf16 %v10923_v8, %v10923_v8  ;;  %v16198_v8 = vand.u32 4294901760, %v11029_v24 }
 0x3d4   : > { %16176 = vst [vmem:[#allocation150_spill] sm:$0xff] %v11514_v56  ;;  %16177 = vst [vmem:[#allocation151_spill] sm:$0xff] %v11516_v53  ;;  %8334 = vmatpush1.bf16.msra.mxu0 %v11514_v56  ;;  %2069 = vmatmul.mubr.f32.vlgmr.msra.gmra.mrb[0].mxu1 %v16181_v14  ;;  %v8233_v13 = vpack.c.bf16 %v16183_v55, %v16184_v21  ;;  %v16210_v24 = vand.u32 4294901760, %v11121_v0  ;;  %v16218_v0 = vld [vmem:[#allocation64_spill] sm:$0xff]  ;;  %v2565_v56 = vld [vmem:[#allocation9 + $0x690] sm:$0xff] }
 0x3d5   : > { %16180 = vst [vmem:[#allocation154_spill] sm:$0xff] %v11529_v12  ;;  %8226 = vmatpush1.bf16.msra.mxu1 %v10846_v20  ;;  %2235 = vmatprep.mubr.f32.mxu1 %v10864_v17  ;;  %v8231_v54 = vpack.c.bf16 %v16183_v55, %v16182_v43  ;;  %v16220_v14 = vld [vmem:[#allocation68_spill] sm:$0xff] }
 0x3d6   : > { %8228 = vmatprep.subr.bf16.mxu1 %v10875_v36  ;;  %v16221_v43 = vand.u32 4294901760, %v16220_v14 }
 0x3d9   : > { %8230 = vmatpush1.bf16.msra.mxu1 %v10877_v52  ;;  %v16194_v52 = vand.u32 4294901760, %v10990_v37  ;;  %v16206_v37 = vand.u32 4294901760, %v11082_v47  ;;  %v16215_v47 = vand.u32 4294901760, %v11167_v51 }
 0x3da   : > { %8232 = vmatprep.subr.bf16.mxu1 %v8231_v54  ;;  %v16225_v54 = vld [vmem:[#allocation74_spill] sm:$0xff] }
 0x3db   : > { %v16226_v21 = vand.u32 4294901760, %v16225_v54 }
 0x3dd   : > { %8234 = vmatpush1.bf16.msra.mxu1 %v8233_v13 }
 0x3de   : > { %8236 = vmatprep.subr.bf16.mxu1 %v16129_v48 }
 0x3e1   : > { %8238 = vmatpush1.bf16.msra.mxu1 %v8237_v34 }
 0x3e2   : > { %8240 = vmatprep.subr.bf16.mxu1 %v8237_v34 }
 0x3e5   : > { %8242 = vmatpush1.bf16.msra.mxu1 %v8237_v34 }
 0x3e6   : > { %8244 = vmatprep.subr.bf16.mxu1 %v8237_v34 }
 0x3e9   : > { %8246 = vmatpush1.bf16.msra.mxu1 %v8237_v34 }
 0x3ea   : > { %8248 = vmatprep.subr.bf16.mxu1 %v8237_v34 }
 0x3ed   : > { %8250 = vmatpush1.bf16.msra.mxu1 %v8237_v34 }
 0x3ee   : > { %8252 = vmatprep.subr.bf16.mxu1 %v8237_v34 }
 0x3f1   : > { %8254 = vmatpush1.bf16.msra.mxu1 %v8237_v34 }
 0x3f2   : > { %8256 = vmatprep.subr.bf16.mxu1 %v10822_v30  ;;  %v16185_v30 = vand.u32 4294901760, %v10941_v2  ;;  %v11598_v2 = vpack.c.bf16 %v16198_v8, %v16197_v4  ;;  %v16238_v4 = vld [vmem:[#allocation92_spill] sm:$0xff] }
 0x3f3   : > { %v16239_v8 = vand.u32 4294901760, %v16238_v4  ;;  %v16269_v4 = vand.u32 4294901760, %v11461_v40 }
 0x3f4   : > { %2237 = vmatmul.mubr.f32.vlgmr.msra.gmra.mrb[0].mxu1 %v10884_v46  ;;  %16199 = vst [vmem:[#allocation159_spill] sm:$0xff] %v11598_v2 }
 0x3f5   : > { %8258 = vmatpush1.bf16.msra.mxu1 %v10826_v42  ;;  %2339 = vmatprep.mubr.f32.mxu1 %v10864_v17  ;;  %v16186_v42 = vand.u32 4294901760, %v10944_v29  ;;  %v16201_v29 = vand.u32 4294901760, %v11056_v33 }
 0x3f6   : > { %8260 = vmatprep.subr.bf16.mxu1 %v10852_v60  ;;  %v16188_v60 = vand.u32 4294901760, %v10950_v5 }
 0x3f7   : > { %v11569_v20 = vpack.c.bf16 %v16186_v42, %v16185_v30  ;;  %v16230_v30 = vld [vmem:[#allocation82_spill] sm:$0xff] }
 0x3f8   : > { %v16231_v42 = vand.u32 4294901760, %v16230_v30  ;;  %v16262_v30 = vld [vmem:[#allocation128_spill] sm:$0xff] }
 0x3f9   : > { %8262 = vmatpush1.bf16.msra.mxu1 %v10856_v61  ;;  %16187 = vst [vmem:[#allocation155_spill] sm:$0xff] %v11569_v20  ;;  %v16189_v61 = vand.u32 4294901760, %v10952_v16  ;;  %v16203_v16 = vand.u32 4294901760, %v11067_v27  ;;  %v16212_v27 = vand.u32 4294901760, %v11132_v1  ;;  %v16223_v1 = vld [vmem:[#allocation73_spill] sm:$0xff] }
 0x3fa   : > { %8264 = vmatprep.subr.bf16.mxu1 %v10870_v28  ;;  %v16191_v28 = vand.u32 4294901760, %v10965_v25  ;;  %v16204_v25 = vand.u32 4294901760, %v11077_v15  ;;  %v16213_v15 = vand.u32 4294901760, %v11147_v31  ;;  %v16224_v31 = vand.u32 4294901760, %v16223_v1 }
 0x3fb   : > { %v11576_v17 = vpack.c.bf16 %v16189_v61, %v16188_v60  ;;  %v16233_v61 = vld [vmem:[#allocation87_spill] sm:$0xff] }
 0x3fc   : > { %v11654_v34 = vpack.c.bf16 %v16226_v21, %v16224_v31  ;;  %v16257_v31 = vld [vmem:[#allocation119_spill] sm:$0xff] }
 0x3fd   : > { %8266 = vmatpush1.bf16.msra.mxu1 %v10873_v35  ;;  %16190 = vst [vmem:[#allocation156_spill] sm:$0xff] %v11576_v17  ;;  %v16192_v35 = vand.u32 4294901760, %v10967_v23  ;;  %v11612_v23 = vpack.c.bf16 %v16204_v25, %v16203_v16  ;;  %v16243_v25 = vld [vmem:[#allocation101_spill] sm:$0xff]  ;;  %v16258_v54 = vand.u32 4294901760, %v16257_v31  ;;  %v16259_v21 = vld [vmem:[#allocation123_spill] sm:$0xff] }
 0x3fe   : > { %8268 = vmatprep.subr.bf16.mxu1 %v16129_v48  ;;  %v11633_v48 = vpack.c.bf16 %v16213_v15, %v16212_v27  ;;  %16227 = vst [vmem:[#allocation68_spill] sm:$0xff] %v11654_v34  ;;  %v16248_v27 = vld [vmem:[#allocation106_spill] sm:$0xff]  ;;  %v2572_v31 = vld [vmem:[#allocation9 + $0x6c8] sm:$0xff] }
 0x3ff   : > { %v11583_v36 = vpack.c.bf16 %v16192_v35, %v16191_v28  ;;  %16205 = vst [vmem:[#allocation161_spill] sm:$0xff] %v11612_v23  ;;  %v16234_v28 = vand.u32 4294901760, %v16233_v61  ;;  %v16235_v35 = vld [vmem:[#allocation88_spill] sm:$0xff]  ;;  %v16249_v15 = vand.u32 4294901760, %v16248_v27  ;;  %v16264_v61 = vand.u32 4294901760, %v11414_v62 }
 0x400   : > { %16214 = vst [vmem:[#allocation164_spill] sm:$0xff] %v11633_v48  ;;  %v16271_v62 = vand.u32 4294901760, %v11488_v19  ;;  %v2557_v19 = vld [vmem:[#allocation9 + $0x650] sm:$0xff] }
 0x401   : > { %8270 = vmatpush1.bf16.msra.mxu1 %v10881_v32  ;;  %16193 = vst [vmem:[#allocation157_spill] sm:$0xff] %v11583_v36 }
 0x402   : > { %8272 = vmatprep.subr.bf16.mxu1 %v10881_v32 }
 0x405   : > { %8274 = vmatpush1.bf16.msra.mxu1 %v10881_v32 }
 0x406   : > { %8276 = vmatprep.subr.bf16.mxu1 %v10881_v32 }
 0x409   : > { %8278 = vmatpush1.bf16.msra.mxu1 %v10881_v32 }
 0x40a   : > { %8280 = vmatprep.subr.bf16.mxu1 %v10881_v32 }
 0x40d   : > { %8282 = vmatpush1.bf16.msra.mxu1 %v10881_v32 }
 0x40e   : > { %8284 = vmatprep.subr.bf16.mxu1 %v10881_v32 }
 0x411   : > { %8286 = vmatpush1.bf16.msra.mxu1 %v10881_v32  ;;  %v16195_v32 = vand.u32 4294901760, %v11004_v26  ;;  %v16207_v26 = vand.u32 4294901760, %v11094_v18  ;;  %v16216_v18 = vand.u32 4294901760, %v11169_v39  ;;  %v16228_v39 = vld [vmem:[#allocation78_spill] sm:$0xff] }
 0x412   : > { %8672 = vmatprep.subr.bf16.mxu1 %v11569_v20  ;;  %v16229_v51 = vand.u32 4294901760, %v16228_v39  ;;  %v16260_v39 = vand.u32 4294901760, %v16259_v21  ;;  %v16332_v20 = vld [vmem:[#allocation31_spill] sm:$0xff] }
 0x413   : > { %v11591_v57 = vpack.c.bf16 %v16195_v32, %v16194_v52  ;;  %v11619_v44 = vpack.c.bf16 %v16207_v26, %v16206_v37  ;;  %v11640_v13 = vpack.c.bf16 %v16216_v18, %v16215_v47  ;;  %v16236_v52 = vand.u32 4294901760, %v16235_v35  ;;  %v16245_v26 = vld [vmem:[#allocation102_spill] sm:$0xff] }
 0x414   : > { %2341 = vmatmul.mubr.f32.vlgmr.msra.gmra.mrb[0].mxu1 %v10884_v46  ;;  %v16200_v46 = vand.u32 4294901760, %v11044_v7  ;;  %v16209_v7 = vand.u32 4294901760, %v11119_v63  ;;  %v16219_v63 = vand.u32 4294901760, %v16218_v0  ;;  %v11661_v60 = vpack.c.bf16 %v16231_v42, %v16229_v51  ;;  %v16250_v47 = vld [vmem:[#allocation110_spill] sm:$0xff] }
 0x415   : > { %8674 = vmatpush1.bf16.msra.mxu1 %v11576_v17  ;;  %16196 = vst [vmem:[#allocation158_spill] sm:$0xff] %v11591_v57  ;;  %16208 = vst [vmem:[#allocation162_spill] sm:$0xff] %v11619_v44  ;;  %v11668_v32 = vpack.c.bf16 %v16236_v52, %v16234_v28  ;;  %v16244_v37 = vand.u32 4294901760, %v16243_v25  ;;  %v16251_v18 = vand.u32 4294901760, %v16250_v47  ;;  %v11703_v51 = vpack.c.bf16 %v16260_v39, %v16258_v54  ;;  %v2566_v54 = vld [vmem:[#allocation9 + $0x698] sm:$0xff]  ;;  %v16341_v17 = vld [vmem:[#allocation42_spill] sm:$0xff] }
 0x416   : > { %8676 = vmatprep.subr.bf16.mxu1 %v11583_v36  ;;  %v11605_v5 = vpack.c.bf16 %v16201_v29, %v16200_v46  ;;  %v11626_v33 = vpack.c.bf16 %v16210_v24, %v16209_v7  ;;  %16217 = vst [vmem:[#allocation165_spill] sm:$0xff] %v11640_v13  ;;  %v11647_v55 = vpack.c.bf16 %v16221_v43, %v16219_v63  ;;  %16232 = vst [vmem:[#allocation73_spill] sm:$0xff] %v11661_v60  ;;  %v16240_v46 = vld [vmem:[#allocation96_spill] sm:$0xff]  ;;  %v16253_v63 = vld [vmem:[#allocation115_spill] sm:$0xff] }
 0x417   : > { %16237 = vst [vmem:[#allocation74_spill] sm:$0xff] %v11668_v32  ;;  %v16241_v29 = vand.u32 4294901760, %v16240_v46  ;;  %v16246_v7 = vand.u32 4294901760, %v16245_v26  ;;  %v11689_v0 = vpack.c.bf16 %v16251_v18, %v16249_v15  ;;  %v16254_v14 = vand.u32 4294901760, %v16253_v63  ;;  %16261 = vst [vmem:[#allocation92_spill] sm:$0xff] %v11703_v51  ;;  %v2555_v26 = vld [vmem:[#allocation9 + $0x640] sm:$0xff] }
 0x418   : > { %16202 = vst [vmem:[#allocation160_spill] sm:$0xff] %v11605_v5  ;;  %16211 = vst [vmem:[#allocation163_spill] sm:$0xff] %v11626_v33  ;;  %v16255_v43 = vand.u32 4294901760, %v11365_v6  ;;  %v16263_v42 = vand.u32 4294901760, %v16262_v30  ;;  %v16266_v6 = vand.u32 4294901760, %v11426_v58  ;;  %v16267_v35 = vand.u32 4294901760, %v11440_v50 }
 0x419   : > { %8678 = vmatpush1.bf16.msra.mxu1 %v11591_v57  ;;  %16222 = vst [vmem:[#allocation64_spill] sm:$0xff] %v11647_v55  ;;  %v11675_v16 = vpack.c.bf16 %v16241_v29, %v16239_v8  ;;  %v11682_v24 = vpack.c.bf16 %v16246_v7, %v16244_v37  ;;  %16252 = vst [vmem:[#allocation87_spill] sm:$0xff] %v11689_v0  ;;  %v11724_v8 = vpack.c.bf16 %v3987_v3, %v16269_v4  ;;  %v2548_v50 = vld [vmem:[#allocation9 + $0x608] sm:$0xff]  ;;  %v2550_v29 = vld [vmem:[#allocation9 + $0x618] sm:$0xff] }
 0x41a   : > { %8680 = vmatprep.subr.bf16.mxu1 %v11598_v2  ;;  %v11696_v1 = vpack.c.bf16 %v16255_v43, %v16254_v14  ;;  %v11710_v28 = vpack.c.bf16 %v16264_v61, %v16263_v42  ;;  %v11717_v52 = vpack.c.bf16 %v16267_v35, %v16266_v6  ;;  %v11731_v46 = vpack.c.bf16 %v16271_v62, %v3985_v45  ;;  %v2556_v58 = vld [vmem:[#allocation9 + $0x648] sm:$0xff]  ;;  %v2547_v37 = vld [vmem:[#allocation9 + $0x600] sm:$0xff]  ;;  %v2549_v15 = vld [vmem:[#allocation9 + $0x610] sm:$0xff] }
 0x41b   : > { %16242 = vst [vmem:[#allocation78_spill] sm:$0xff] %v11675_v16  ;;  %16247 = vst [vmem:[#allocation82_spill] sm:$0xff] %v11682_v24  ;;  %v2707_v40 = vand.u32 4294901760, %v2548_v50  ;;  %v2711_v25 = vand.u32 4294901760, %v2556_v58  ;;  %v3991_v3 = vand.u32 4294901760, %v2550_v29  ;;  %v3995_v7 = vand.u32 4294901760, %v2558_v10 }
 0x41c   : > { %16256 = vst [vmem:[#allocation88_spill] sm:$0xff] %v11696_v1  ;;  %16265 = vst [vmem:[#allocation96_spill] sm:$0xff] %v11710_v28  ;;  %v2709_v27 = vand.u32 4294901760, %v2547_v37  ;;  %v2713_v22 = vand.u32 4294901760, %v2555_v26  ;;  %v3993_v47 = vand.u32 4294901760, %v2549_v15  ;;  %v3997_v18 = vand.u32 4294901760, %v2557_v19 }
 0x41d   : > { %8682 = vmatpush1.bf16.msra.mxu1 %v11605_v5  ;;  %16268 = vst [vmem:[#allocation101_spill] sm:$0xff] %v11717_v52  ;;  %16270 = vst [vmem:[#allocation102_spill] sm:$0xff] %v11724_v8  ;;  %v11735_v45 = vpack.c.bf16 %v2711_v25, %v2707_v40  ;;  %v11737_v63 = vpack.c.bf16 %v3995_v7, %v3991_v3  ;;  %v2564_v43 = vld [vmem:[#allocation9 + $0x688] sm:$0xff]  ;;  %v2719_v30 = vand.u32 4294901760, %v2572_v31  ;;  %v2574_v42 = vld [vmem:[#allocation9 + $0x6d8] sm:$0xff]  ;;  %v3999_v61 = vand.u32 4294901760, %v2566_v54 }
 0x41e   : > { %8684 = vmatprep.subr.bf16.mxu1 %v11612_v23  ;;  %16272 = vst [vmem:[#allocation106_spill] sm:$0xff] %v11731_v46  ;;  %v11739_v14 = vpack.c.bf16 %v2713_v22, %v2709_v27  ;;  %v11742_v21 = vpack.c.bf16 %v3997_v18, %v3993_v47  ;;  %v2715_v39 = vand.u32 4294901760, %v2564_v43  ;;  %v2563_v6 = vld [vmem:[#allocation9 + $0x680] sm:$0xff]  ;;  %v4003_v4 = vand.u32 4294901760, %v2574_v42  ;;  %v16325_v5 = vld [vmem:[#allocation23_spill] sm:$0xff]  ;;  %v16327_v36 = vld [vmem:[#allocation25_spill] sm:$0xff] }
 0x41f   : > { %16273 = vst [vmem:[#allocation110_spill] sm:$0xff] %v11735_v45  ;;  %16274 = vst [vmem:[#allocation115_spill] sm:$0xff] %v11737_v63  ;;  %8336 = vmatprep.subr.bf16.mxu0 %v11735_v45  ;;  %v2571_v35 = vld [vmem:[#allocation9 + $0x6c0] sm:$0xff]  ;;  %v2717_v62 = vand.u32 4294901760, %v2563_v6 }
 0x420   : > { %16275 = vst [vmem:[#allocation119_spill] sm:$0xff] %v11739_v14  ;;  %16276 = vst [vmem:[#allocation123_spill] sm:$0xff] %v11742_v21  ;;  %8338 = vmatpush1.bf16.msra.mxu0 %v11739_v14  ;;  %v11747_v45 = vpack.c.bf16 %v2719_v30, %v2715_v39  ;;  %v11757_v14 = vsub.f32 %v2550_v29, %v3991_v3  ;;  %v11771_v29 = vsub.f32 %v2564_v43, %v2715_v39  ;;  %v16326_v2 = vld [vmem:[#allocation24_spill] sm:$0xff] }
 0x421   : > { %8686 = vmatpush1.bf16.msra.mxu1 %v11619_v44  ;;  %v11777_v3 = vsub.f32 %v2574_v42, %v4003_v4  ;;  %v15395_v57 = vand.u32 4294901760, %v16326_v2 }
 0x422   : > { %8688 = vmatprep.subr.bf16.mxu1 %v11626_v33  ;;  %16277 = vst [vmem:[#allocation128_spill] sm:$0xff] %v11747_v45  ;;  %16282 = vst [vmem:[#allocation170_spill] sm:$0xff] %v11757_v14  ;;  %8340 = vmatprep.subr.bf16.mxu0 %v11747_v45 }
 0x423   : > { %16288 = vst [vmem:[#allocation176_spill] sm:$0xff] %v11771_v29  ;;  %16291 = vst [vmem:[#allocation179_spill] sm:$0xff] %v11777_v3 }
 0x425   : > { %8690 = vmatpush1.bf16.msra.mxu1 %v11633_v48 }
 0x426   : > { %8692 = vmatprep.subr.bf16.mxu1 %v11640_v13 }
 0x429   : > { %8694 = vmatpush1.bf16.msra.mxu1 %v11647_v55  ;;  %v2603_v55 = vld [vmem:[#allocation9 + $0x7c0] sm:$0xff] }
 0x42a   : > { %8696 = vmatprep.subr.bf16.mxu1 %v11654_v34  ;;  %v11768_v34 = vsub.f32 %v2557_v19, %v3997_v18 }
 0x42c   : > { %16287 = vst [vmem:[#allocation175_spill] sm:$0xff] %v11768_v34 }
 0x42d   : > { %8698 = vmatpush1.bf16.msra.mxu1 %v11661_v60  ;;  %v11766_v60 = vsub.f32 %v2549_v15, %v3993_v47 }
 0x42e   : > { %8700 = vmatprep.subr.bf16.mxu1 %v11668_v32  ;;  %v11764_v32 = vsub.f32 %v2555_v26, %v2713_v22  ;;  %v2587_v26 = vld [vmem:[#allocation9 + $0x740] sm:$0xff] }
 0x42f   : > { %16286 = vst [vmem:[#allocation174_spill] sm:$0xff] %v11766_v60  ;;  %v2729_v42 = vand.u32 4294901760, %v2587_v26 }
 0x430   : > { %16285 = vst [vmem:[#allocation173_spill] sm:$0xff] %v11764_v32 }
 0x431   : > { %8702 = vmatpush1.bf16.msra.mxu1 %v11675_v16  ;;  %v2580_v16 = vld [vmem:[#allocation9 + $0x708] sm:$0xff] }
 0x432   : > { %8704 = vmatprep.subr.bf16.mxu1 %v11682_v24  ;;  %v11759_v24 = vsub.f32 %v2558_v10, %v3995_v7  ;;  %v11775_v10 = vsub.f32 %v2566_v54, %v3999_v61  ;;  %v2581_v7 = vld [vmem:[#allocation9 + $0x710] sm:$0xff]  ;;  %v2723_v18 = vand.u32 4294901760, %v2580_v16 }
 0x433   : > { %v2589_v54 = vld [vmem:[#allocation9 + $0x750] sm:$0xff] }
 0x434   : > { %16283 = vst [vmem:[#allocation171_spill] sm:$0xff] %v11759_v24  ;;  %16290 = vst [vmem:[#allocation178_spill] sm:$0xff] %v11775_v10 }
 0x435   : > { %8706 = vmatpush1.bf16.msra.mxu1 %v11689_v0  ;;  %v11753_v0 = vsub.f32 %v2548_v50, %v2707_v40  ;;  %v2588_v50 = vld [vmem:[#allocation9 + $0x748] sm:$0xff]  ;;  %v2590_v40 = vld [vmem:[#allocation9 + $0x758] sm:$0xff] }
 0x436   : > { %8708 = vmatprep.subr.bf16.mxu1 %v11696_v1  ;;  %v2727_v43 = vand.u32 4294901760, %v2588_v50  ;;  %v4011_v39 = vand.u32 4294901760, %v2590_v40 }
 0x437   : > { %16280 = vst [vmem:[#allocation168_spill] sm:$0xff] %v11753_v0 }
 0x439   : > { %8710 = vmatpush1.bf16.msra.mxu1 %v11703_v51  ;;  %v4001_v51 = vand.u32 4294901760, %v2565_v56 }
 0x43a   : > { %8712 = vmatprep.subr.bf16.mxu1 %v11710_v28 }
 0x43b   : > { %v11786_v19 = vsub.f32 %v2565_v56, %v4001_v51  ;;  %v11795_v56 = vsub.f32 %v2588_v50, %v2727_v43  ;;  %v4013_v50 = vand.u32 4294901760, %v2589_v54 }
 0x43d   : > { %8714 = vmatpush1.bf16.msra.mxu1 %v11717_v52  ;;  %v11749_v52 = vpack.c.bf16 %v4003_v4, %v3999_v61  ;;  %16295 = vst [vmem:[#allocation183_spill] sm:$0xff] %v11786_v19  ;;  %v4009_v61 = vand.u32 4294901760, %v2581_v7  ;;  %v2604_v4 = vld [vmem:[#allocation9 + $0x7c8] sm:$0xff]  ;;  %16299 = vst [vmem:[#allocation187_spill] sm:$0xff] %v11795_v56 }
 0x43e   : > { %8716 = vmatprep.subr.bf16.mxu1 %v11724_v8  ;;  %v2573_v8 = vld [vmem:[#allocation9 + $0x6d0] sm:$0xff] }
 0x43f   : > { %16278 = vst [vmem:[#allocation166_spill] sm:$0xff] %v11749_v52  ;;  %v4005_v1 = vand.u32 4294901760, %v2573_v8  ;;  %v11814_v13 = vpack.c.bf16 %v4013_v50, %v4009_v61 }
 0x441   : > { %8718 = vmatpush1.bf16.msra.mxu1 %v11731_v46  ;;  %v2721_v46 = vand.u32 4294901760, %v2571_v35  ;;  %v11784_v15 = vpack.c.bf16 %v4005_v1, %v4001_v51  ;;  %v11788_v47 = vsub.f32 %v2573_v8, %v4005_v1  ;;  %v2598_v51 = vld [vmem:[#allocation9 + $0x798] sm:$0xff]  ;;  %16307 = vst [vmem:[#allocation195_spill] sm:$0xff] %v11814_v13 }
 0x442   : > { %8720 = vmatprep.subr.bf16.mxu1 %v11737_v63  ;;  %v11755_v63 = vsub.f32 %v2556_v58, %v2711_v25  ;;  %v2582_v58 = vld [vmem:[#allocation9 + $0x718] sm:$0xff]  ;;  %v11773_v25 = vsub.f32 %v2572_v31, %v2719_v30 }
 0x443   : > { %v11751_v28 = vpack.c.bf16 %v2721_v46, %v2717_v62  ;;  %v11782_v22 = vsub.f32 %v2571_v35, %v2721_v46  ;;  %16294 = vst [vmem:[#allocation182_spill] sm:$0xff] %v11784_v15  ;;  %16296 = vst [vmem:[#allocation184_spill] sm:$0xff] %v11788_v47  ;;  %v4007_v31 = vand.u32 4294901760, %v2582_v58  ;;  %v11791_v46 = vpack.c.bf16 %v2727_v43, %v2723_v18  ;;  %v2606_v8 = vld [vmem:[#allocation9 + $0x7d8] sm:$0xff] }
 0x444   : > { %16281 = vst [vmem:[#allocation169_spill] sm:$0xff] %v11755_v63  ;;  %16289 = vst [vmem:[#allocation177_spill] sm:$0xff] %v11773_v25  ;;  %v11793_v35 = vsub.f32 %v2580_v16, %v2723_v18  ;;  %v11808_v16 = vsub.f32 %v2587_v26, %v2729_v42  ;;  %v11810_v18 = vsub.f32 %v2581_v7, %v4009_v61  ;;  %v2735_v43 = vand.u32 4294901760, %v2604_v4 }
 0x445   : > { %8722 = vmatpush1.bf16.msra.mxu1 %v11742_v21  ;;  %16279 = vst [vmem:[#allocation167_spill] sm:$0xff] %v11751_v28  ;;  %v11762_v21 = vsub.f32 %v2547_v37, %v2709_v27  ;;  %8342 = vmatpush1.bf16.msra.mxu0 %v11751_v28  ;;  %v2579_v37 = vld [vmem:[#allocation9 + $0x700] sm:$0xff]  ;;  %v11780_v27 = vsub.f32 %v2563_v6, %v2717_v62  ;;  %16293 = vst [vmem:[#allocation181_spill] sm:$0xff] %v11782_v22  ;;  %v2596_v6 = vld [vmem:[#allocation9 + $0x788] sm:$0xff]  ;;  %v2737_v26 = vand.u32 4294901760, %v2603_v55 }
 0x446   : > { %8724 = vmatprep.subr.bf16.mxu1 %v11749_v52  ;;  %v2725_v30 = vand.u32 4294901760, %v2579_v37  ;;  %16297 = vst [vmem:[#allocation185_spill] sm:$0xff] %v11791_v46  ;;  %16298 = vst [vmem:[#allocation186_spill] sm:$0xff] %v11793_v35  ;;  %v11797_v1 = vsub.f32 %v2582_v58, %v4007_v31  ;;  %v2595_v62 = vld [vmem:[#allocation9 + $0x780] sm:$0xff]  ;;  %v11799_v28 = vpack.c.bf16 %v4011_v39, %v4007_v31  ;;  %8344 = vmatprep.subr.bf16.mxu0 %v11791_v46  ;;  %v2605_v46 = vld [vmem:[#allocation9 + $0x7d0] sm:$0xff] }
 0x447   : > { %16284 = vst [vmem:[#allocation172_spill] sm:$0xff] %v11762_v21  ;;  %16292 = vst [vmem:[#allocation180_spill] sm:$0xff] %v11780_v27  ;;  %v2731_v58 = vand.u32 4294901760, %v2596_v6  ;;  %v4019_v31 = vand.u32 4294901760, %v2606_v8  ;;  %v11822_v48 = vsub.f32 %v2604_v4, %v2735_v43 }
 0x448   : > { %16300 = vst [vmem:[#allocation188_spill] sm:$0xff] %v11797_v1  ;;  %16301 = vst [vmem:[#allocation189_spill] sm:$0xff] %v11799_v28  ;;  %v11803_v52 = vpack.c.bf16 %v2729_v42, %v2725_v30  ;;  %v11805_v45 = vsub.f32 %v2579_v37, %v2725_v30  ;;  %v11816_v37 = vsub.f32 %v2589_v54, %v4013_v50  ;;  %v2597_v42 = vld [vmem:[#allocation9 + $0x790] sm:$0xff]  ;;  %v4021_v50 = vand.u32 4294901760, %v2605_v46 }
 0x449   : > { %8726 = vmatpush1.bf16.msra.mxu1 %v11784_v15  ;;  %v11801_v15 = vsub.f32 %v2590_v40, %v4011_v39  ;;  %16305 = vst [vmem:[#allocation193_spill] sm:$0xff] %v11808_v16  ;;  %16306 = vst [vmem:[#allocation194_spill] sm:$0xff] %v11810_v18  ;;  %v4015_v40 = vand.u32 4294901760, %v2598_v51  ;;  %v2733_v39 = vand.u32 4294901760, %v2595_v62  ;;  %v11818_v30 = vsub.f32 %v2596_v6, %v2731_v58 }
 0x44a   : > { %16303 = vst [vmem:[#allocation191_spill] sm:$0xff] %v11803_v52  ;;  %16304 = vst [vmem:[#allocation192_spill] sm:$0xff] %v11805_v45  ;;  %8728 = vmatprep.subr.bf16.mxu1 %v11799_v28  ;;  %8346 = vmatpush1.bf16.msra.mxu0 %v11803_v52  ;;  %v11820_v7 = vpack.c.bf16 %v2735_v43, %v2731_v58  ;;  %v11829_v33 = vsub.f32 %v2606_v8, %v4019_v31  ;;  %v4017_v4 = vand.u32 4294901760, %v2597_v42  ;;  %v16318_v58 = vld [vmem:[#allocation18_spill] sm:$0xff]  ;;  %v16320_v8 = vld [vmem:[#allocation20_spill] sm:$0xff] }
 0x44b   : > { %16302 = vst [vmem:[#allocation190_spill] sm:$0xff] %v11801_v15  ;;  %16308 = vst [vmem:[#allocation196_spill] sm:$0xff] %v11816_v37  ;;  %v11824_v28 = vpack.c.bf16 %v4019_v31, %v4015_v40  ;;  %v11826_v52 = vsub.f32 %v2598_v51, %v4015_v40  ;;  %v11831_v61 = vpack.c.bf16 %v2737_v26, %v2733_v39  ;;  %v15376_v43 = vand.u32 4294901760, %v16318_v58  ;;  %v16319_v51 = vld [vmem:[#allocation19_spill] sm:$0xff] }
 0x44c   : > { %16309 = vst [vmem:[#allocation197_spill] sm:$0xff] %v11818_v30  ;;  %16310 = vst [vmem:[#allocation198_spill] sm:$0xff] %v11820_v7  ;;  %v11833_v54 = vsub.f32 %v2595_v62, %v2733_v39  ;;  %v11835_v6 = vsub.f32 %v2603_v55, %v2737_v26  ;;  %8348 = vmatprep.subr.bf16.mxu0 %v11820_v7  ;;  %v15379_v40 = vand.u32 4294901760, %v16319_v51  ;;  %v15384_v31 = vand.u32 4294901760, %v16320_v8 }
 0x44d   : > { %16311 = vst [vmem:[#allocation199_spill] sm:$0xff] %v11822_v48  ;;  %16312 = vst [vmem:[#allocation200_spill] sm:$0xff] %v11824_v28  ;;  %8730 = vmatpush1.bf16.msra.mxu1 %v11814_v13  ;;  %v16321_v13 = vld [vmem:[#allocation21_spill] sm:$0xff]  ;;  %v11844_v62 = vpack.c.bf16 %v4021_v50, %v4017_v4  ;;  %v11846_v55 = vsub.f32 %v2597_v42, %v4017_v4  ;;  %v11848_v39 = vsub.f32 %v2605_v46, %v4021_v50 }
 0x44e   : > { %16313 = vst [vmem:[#allocation201_spill] sm:$0xff] %v11826_v52  ;;  %16314 = vst [vmem:[#allocation202_spill] sm:$0xff] %v11829_v33  ;;  %8732 = vmatprep.subr.bf16.mxu1 %v11824_v28  ;;  %8350 = vmatpush1.bf16.msra.mxu0 %v11831_v61  ;;  %v15387_v44 = vand.u32 4294901760, %v16321_v13  ;;  %v2759_v26 = vsub.f32 %v16318_v58, %v15376_v43  ;;  %v2771_v28 = vsub.f32 %v16319_v51, %v15379_v40  ;;  %v16344_v33 = vld [vmem:[#allocation44_spill] sm:$0xff] }
 0x44f   : > { %16315 = vst [vmem:[#allocation203_spill] sm:$0xff] %v11831_v61  ;;  %16316 = vst [vmem:[#allocation204_spill] sm:$0xff] %v11833_v54  ;;  %v4043_v61 = vsub.f32 %v16320_v8, %v15384_v31  ;;  %v15388_v40 = vand.u32 4294901760, %v16325_v5  ;;  %v16335_v8 = vld [vmem:[#allocation35_spill] sm:$0xff] }
 0x450   : > { %16317 = vst [vmem:[#allocation205_spill] sm:$0xff] %v11835_v6  ;;  %16322 = vst [vmem:[#allocation206_spill] sm:$0xff] %v11844_v62  ;;  %v4055_v7 = vsub.f32 %v16321_v13, %v15387_v44  ;;  %v2760_v46 = vand.u32 4294901760, %v2759_v26  ;;  %v2772_v42 = vand.u32 4294901760, %v2771_v28  ;;  %v15401_v44 = vand.u32 4294901760, %v16327_v36 }
 0x451   : > { %16323 = vst [vmem:[#allocation207_spill] sm:$0xff] %v11846_v55  ;;  %16324 = vst [vmem:[#allocation208_spill] sm:$0xff] %v11848_v39  ;;  %8734 = vmatpush1.bf16.msra.mxu1 %v11844_v62  ;;  %v4044_v4 = vand.u32 4294901760, %v4043_v61  ;;  %v2765_v31 = vsub.f32 %v16325_v5, %v15388_v40  ;;  %v2777_v28 = vsub.f32 %v16326_v2, %v15395_v57  ;;  %v16328_v61 = vld [vmem:[#allocation26_spill] sm:$0xff]  ;;  %v16333_v2 = vld [vmem:[#allocation32_spill] sm:$0xff]  ;;  %v16346_v55 = vand.u32 4294901760, %v16332_v20 }
 0x452   : > { %v4056_v50 = vand.u32 4294901760, %v4055_v7  ;;  %v8351_v23 = vpack.c.bf16 %v2772_v42, %v2760_v46  ;;  %v15405_v7 = vand.u32 4294901760, %v16328_v61  ;;  %v16329_v42 = vld [vmem:[#allocation27_spill] sm:$0xff]  ;;  %v16331_v62 = vld [vmem:[#allocation30_spill] sm:$0xff]  ;;  %v16340_v40 = vld [vmem:[#allocation41_spill] sm:$0xff] }
 0x453   : > { %v2766_v26 = vand.u32 4294901760, %v2765_v31  ;;  %v16334_v31 = vld [vmem:[#allocation34_spill] sm:$0xff]  ;;  %v16338_v39 = vld [vmem:[#allocation39_spill] sm:$0xff]  ;;  %v16342_v5 = vand.u32 4294901760, %v16329_v42  ;;  %v4079_v6 = vsub.f32 %v16332_v20, %v16346_v55 }
 0x454   : > { %v8735_v43 = vpack.c.bf16 %v4056_v50, %v4044_v4  ;;  %8352 = vmatprep.subr.bf16.mxu0 %v8351_v23  ;;  %v4049_v23 = vsub.f32 %v16327_v36, %v15401_v44  ;;  %v4061_v46 = vsub.f32 %v16328_v61, %v15405_v7  ;;  %v16330_v50 = vld [vmem:[#allocation29_spill] sm:$0xff]  ;;  %v16336_v44 = vld [vmem:[#allocation36_spill] sm:$0xff]  ;;  %v16337_v36 = vld [vmem:[#allocation38_spill] sm:$0xff]  ;;  %v16345_v7 = vand.u32 4294901760, %v16331_v62 }
 0x455   : > { %v16339_v4 = vld [vmem:[#allocation40_spill] sm:$0xff]  ;;  %v2783_v13 = vsub.f32 %v16329_v42, %v16342_v5  ;;  %v16343_v51 = vand.u32 4294901760, %v16330_v50  ;;  %v16348_v5 = vand.u32 4294901760, %v16334_v31  ;;  %v16352_v20 = vand.u32 4294901760, %v16338_v39 }
 0x456   : > { %8736 = vmatprep.subr.bf16.mxu1 %v8735_v43  ;;  %v2778_v43 = vand.u32 4294901760, %v2777_v28  ;;  %v4050_v61 = vand.u32 4294901760, %v4049_v23  ;;  %v4062_v57 = vand.u32 4294901760, %v4061_v46  ;;  %v4067_v23 = vsub.f32 %v16331_v62, %v16345_v7 }
 0x457   : > { %v2795_v28 = vsub.f32 %v16330_v50, %v16343_v51  ;;  %v16347_v46 = vand.u32 4294901760, %v16333_v2  ;;  %v2801_v42 = vsub.f32 %v16334_v31, %v16348_v5  ;;  %v16349_v51 = vand.u32 4294901760, %v16335_v8 }
 0x458   : > { %v16350_v50 = vand.u32 4294901760, %v16336_v44  ;;  %v16351_v62 = vand.u32 4294901760, %v16337_v36  ;;  %v16354_v31 = vand.u32 4294901760, %v16340_v40  ;;  %v2784_v48 = vand.u32 4294901760, %v2783_v13 }
 0x459   : > { %v2789_v54 = vsub.f32 %v16333_v2, %v16347_v46  ;;  %v4073_v58 = vsub.f32 %v16335_v8, %v16349_v51  ;;  %v2819_v46 = vsub.f32 %v16338_v39, %v16352_v20  ;;  %v16353_v2 = vand.u32 4294901760, %v16339_v4  ;;  %v16358_v39 = vld [vmem:[#allocation46_spill] sm:$0xff] }
 0x45a   : > { %v4085_v7 = vsub.f32 %v16336_v44, %v16350_v50  ;;  %v2807_v55 = vsub.f32 %v16337_v36, %v16351_v62  ;;  %v4103_v51 = vsub.f32 %v16340_v40, %v16354_v31  ;;  %v16355_v8 = vand.u32 4294901760, %v16341_v17  ;;  %v16356_v44 = vld [vmem:[#allocation45_spill] sm:$0xff] }
 0x45b   : > { %v4091_v5 = vsub.f32 %v16339_v4, %v16353_v2  ;;  %v15432_v52 = vand.u32 4294901760, %v16356_v44  ;;  %v2796_v62 = vand.u32 4294901760, %v2795_v28  ;;  %v16357_v36 = vand.u32 4294901760, %v16344_v33 }
 0x45c   : > { %v2813_v50 = vsub.f32 %v16341_v17, %v16355_v8  ;;  %v15433_v30 = vand.u32 4294901760, %v16358_v39  ;;  %v4068_v37 = vand.u32 4294901760, %v4067_v23  ;;  %v4080_v2 = vand.u32 4294901760, %v4079_v6 }
 0x45d   : > { %v2825_v20 = vsub.f32 %v16344_v33, %v16357_v36  ;;  %v2790_v4 = vand.u32 4294901760, %v2789_v54  ;;  %v2802_v18 = vand.u32 4294901760, %v2801_v42  ;;  %v4074_v16 = vand.u32 4294901760, %v4073_v58  ;;  %v16359_v54 = vld [vmem:[#allocation48_spill] sm:$0xff]  ;;  %v16360_v58 = vld [vmem:[#allocation49_spill] sm:$0xff]  ;;  %v16383_v33 = vld [vmem:[#allocation66_spill] sm:$0xff] }
 0x45e   : > { %v4086_v31 = vand.u32 4294901760, %v4085_v7  ;;  %v2808_v40 = vand.u32 4294901760, %v2807_v55  ;;  %v2820_v45 = vand.u32 4294901760, %v2819_v46  ;;  %v4092_v15 = vand.u32 4294901760, %v4091_v5  ;;  %v16363_v55 = vld [vmem:[#allocation50_spill] sm:$0xff] }
 0x45f   : > { %v4104_v8 = vand.u32 4294901760, %v4103_v51  ;;  %v2814_v17 = vand.u32 4294901760, %v2813_v50  ;;  %v11940_v13 = vsub.f32 %v16356_v44, %v15432_v52  ;;  %v2826_v28 = vand.u32 4294901760, %v2825_v20  ;;  %v16367_v20 = vld [vmem:[#allocation51_spill] sm:$0xff] }
 0x460   : > { %v11945_v36 = vsub.f32 %v16358_v39, %v15433_v30  ;;  %v15435_v42 = vand.u32 4294901760, %v16360_v58  ;;  %v11949_v23 = vpack.c.bf16 %v2778_v43, %v2766_v26  ;;  %v11951_v7 = vpack.c.bf16 %v4062_v57, %v4050_v61 }
 0x461   : > { %v15437_v46 = vand.u32 4294901760, %v16363_v55  ;;  %v11954_v5 = vpack.c.bf16 %v2796_v62, %v2784_v48  ;;  %v11956_v51 = vpack.c.bf16 %v4080_v2, %v4068_v37  ;;  %v11958_v50 = vpack.c.bf16 %v2802_v18, %v2790_v4  ;;  %v16376_v2 = vld [vmem:[#allocation56_spill] sm:$0xff] }
 0x462   : > { %16361 = vst [vmem:[#allocation209_spill] sm:$0xff] %v11949_v23  ;;  %16362 = vst [vmem:[#allocation210_spill] sm:$0xff] %v11951_v7  ;;  %v15442_v52 = vand.u32 4294901760, %v16367_v20  ;;  %v11961_v30 = vpack.c.bf16 %v4086_v31, %v4074_v16  ;;  %v11963_v39 = vpack.c.bf16 %v2820_v45, %v2808_v40  ;;  %v11965_v6 = vpack.c.bf16 %v4104_v8, %v4092_v15  ;;  %v16373_v15 = vld [vmem:[#allocation53_spill] sm:$0xff]  ;;  %v16374_v40 = vld [vmem:[#allocation54_spill] sm:$0xff] }
 0x463   : > { %16364 = vst [vmem:[#allocation211_spill] sm:$0xff] %v11954_v5  ;;  %16365 = vst [vmem:[#allocation212_spill] sm:$0xff] %v11956_v51  ;;  %v4098_v26 = vand.u32 4294901760, %v11940_v13  ;;  %v11968_v57 = vpack.c.bf16 %v2826_v28, %v2814_v17  ;;  %v4110_v61 = vand.u32 4294901760, %v11945_v36  ;;  %v16372_v48 = vand.u32 4294901760, %v16359_v54  ;;  %v16375_v17 = vld [vmem:[#allocation55_spill] sm:$0xff] }
 0x464   : > { %16366 = vst [vmem:[#allocation213_spill] sm:$0xff] %v11958_v50  ;;  %16368 = vst [vmem:[#allocation214_spill] sm:$0xff] %v11961_v30  ;;  %v2843_v18 = vsub.f32 %v16360_v58, %v15435_v42  ;;  %v4115_v45 = vsub.f32 %v16363_v55, %v15437_v46  ;;  %v4127_v62 = vsub.f32 %v16367_v20, %v15442_v52  ;;  %v16377_v8 = vld [vmem:[#allocation58_spill] sm:$0xff]  ;;  %v16378_v28 = vld [vmem:[#allocation59_spill] sm:$0xff]  ;;  %v16385_v31 = vand.u32 4294901760, %v16373_v15 }
 0x465   : > { %16369 = vst [vmem:[#allocation215_spill] sm:$0xff] %v11963_v39  ;;  %16370 = vst [vmem:[#allocation216_spill] sm:$0xff] %v11965_v6  ;;  %v2831_v37 = vsub.f32 %v16359_v54, %v16372_v48  ;;  %v16379_v48 = vld [vmem:[#allocation60_spill] sm:$0xff]  ;;  %v16380_v58 = vld [vmem:[#allocation61_spill] sm:$0xff]  ;;  %v16386_v36 = vand.u32 4294901760, %v16374_v40  ;;  %v16387_v46 = vand.u32 4294901760, %v16375_v17 }
 0x466   : > { %16371 = vst [vmem:[#allocation217_spill] sm:$0xff] %v11968_v57  ;;  %v16381_v55 = vld [vmem:[#allocation63_spill] sm:$0xff]  ;;  %v16382_v54 = vld [vmem:[#allocation65_spill] sm:$0xff]  ;;  %v2844_v4 = vand.u32 4294901760, %v2843_v18  ;;  %v4116_v20 = vand.u32 4294901760, %v4115_v45  ;;  %v2837_v13 = vsub.f32 %v16373_v15, %v16385_v31  ;;  %v4128_v43 = vand.u32 4294901760, %v4127_v62 }
 0x467   : > { %v2832_v44 = vand.u32 4294901760, %v2831_v37  ;;  %v16384_v6 = vld [vmem:[#allocation67_spill] sm:$0xff]  ;;  %v2849_v42 = vsub.f32 %v16374_v40, %v16386_v36  ;;  %v4121_v16 = vsub.f32 %v16375_v17, %v16387_v46  ;;  %v16388_v37 = vand.u32 4294901760, %v16376_v2 }
 0x468   : > { %v16389_v52 = vand.u32 4294901760, %v16377_v8  ;;  %v16390_v57 = vand.u32 4294901760, %v16378_v28  ;;  %v16391_v15 = vand.u32 4294901760, %v16379_v48  ;;  %v16392_v40 = vand.u32 4294901760, %v16380_v58  ;;  %v16398_v39 = vld [vmem:[#allocation71_spill] sm:$0xff] }
 0x469   : > { %v4133_v18 = vsub.f32 %v16376_v2, %v16388_v37  ;;  %v16393_v62 = vand.u32 4294901760, %v16381_v55  ;;  %v16394_v2 = vand.u32 4294901760, %v16382_v54  ;;  %v2850_v30 = vand.u32 4294901760, %v2849_v42 }
 0x46a   : > { %v2855_v45 = vsub.f32 %v16377_v8, %v16389_v52  ;;  %v2867_v31 = vsub.f32 %v16378_v28, %v16390_v57  ;;  %v4139_v36 = vsub.f32 %v16379_v48, %v16391_v15  ;;  %v4151_v46 = vsub.f32 %v16380_v58, %v16392_v40  ;;  %v16397_v48 = vld [vmem:[#allocation70_spill] sm:$0xff] }
 0x46b   : > { %v2861_v37 = vsub.f32 %v16381_v55, %v16393_v62  ;;  %v2873_v52 = vsub.f32 %v16382_v54, %v16394_v2  ;;  %v16395_v8 = vand.u32 4294901760, %v16383_v33  ;;  %v16396_v28 = vand.u32 4294901760, %v16384_v6  ;;  %v16399_v62 = vld [vmem:[#allocation72_spill] sm:$0xff]  ;;  %v16400_v54 = vld [vmem:[#allocation75_spill] sm:$0xff] }
 0x46c   : > { %v15460_v17 = vand.u32 4294901760, %v16397_v48  ;;  %v2838_v58 = vand.u32 4294901760, %v2837_v13  ;;  %v4122_v50 = vand.u32 4294901760, %v4121_v16  ;;  %v15457_v55 = vand.u32 4294901760, %v16399_v62 }
 0x46d   : > { %v4145_v57 = vsub.f32 %v16383_v33, %v16395_v8  ;;  %v4157_v15 = vsub.f32 %v16384_v6, %v16396_v28  ;;  %v4134_v51 = vand.u32 4294901760, %v4133_v18  ;;  %v2856_v5 = vand.u32 4294901760, %v2855_v45  ;;  %v16424_v6 = vld [vmem:[#allocation139_spill] sm:$0xff] }
 0x46e   : > { %v2868_v2 = vand.u32 4294901760, %v2867_v31  ;;  %v15458_v7 = vand.u32 4294901760, %v16400_v54  ;;  %v4140_v23 = vand.u32 4294901760, %v4139_v36  ;;  %v4152_v8 = vand.u32 4294901760, %v4151_v46  ;;  %v16404_v31 = vld [vmem:[#allocation77_spill] sm:$0xff] }
 0x46f   : > { %v2862_v33 = vand.u32 4294901760, %v2861_v37  ;;  %v2874_v1 = vand.u32 4294901760, %v2873_v52  ;;  %v4146_v56 = vand.u32 4294901760, %v4145_v57  ;;  %v4158_v28 = vand.u32 4294901760, %v4157_v15 }
 0x470   : > { %v2879_v40 = vsub.f32 %v16397_v48, %v15460_v17  ;;  %v16401_v42 = vand.u32 4294901760, %v16398_v39  ;;  %v12041_v13 = vpack.c.bf16 %v4110_v61, %v4098_v26  ;;  %v12043_v18 = vpack.c.bf16 %v2844_v4, %v2832_v44  ;;  %v16407_v26 = vld [vmem:[#allocation79_spill] sm:$0xff] }
 0x471   : > { %v12048_v45 = vsub.f32 %v16399_v62, %v15457_v55  ;;  %v15459_v36 = vand.u32 4294901760, %v16404_v31  ;;  %v12051_v46 = vpack.c.bf16 %v4128_v43, %v4116_v20  ;;  %v12053_v37 = vpack.c.bf16 %v2850_v30, %v2838_v58  ;;  %v16413_v58 = vld [vmem:[#allocation131_spill] sm:$0xff] }
 0x472   : > { %v2891_v16 = vsub.f32 %v16398_v39, %v16401_v42  ;;  %16402 = vst [vmem:[#allocation218_spill] sm:$0xff] %v12041_v13  ;;  %16403 = vst [vmem:[#allocation219_spill] sm:$0xff] %v12043_v18  ;;  %v12058_v52 = vsub.f32 %v16400_v54, %v15458_v7  ;;  %v15462_v61 = vand.u32 4294901760, %v16407_v26  ;;  %v12061_v44 = vpack.c.bf16 %v4134_v51, %v4122_v50  ;;  %v16414_v51 = vld [vmem:[#allocation80_spill] sm:$0xff] }
 0x473   : > { %16405 = vst [vmem:[#allocation220_spill] sm:$0xff] %v12051_v46  ;;  %16406 = vst [vmem:[#allocation221_spill] sm:$0xff] %v12053_v37  ;;  %v12063_v4 = vpack.c.bf16 %v2868_v2, %v2856_v5  ;;  %v12065_v57 = vpack.c.bf16 %v4152_v8, %v4140_v23  ;;  %v12067_v15 = vpack.c.bf16 %v2874_v1, %v2862_v33  ;;  %v2880_v20 = vand.u32 4294901760, %v2879_v40  ;;  %v16415_v50 = vld [vmem:[#allocation132_spill] sm:$0xff]  ;;  %v16416_v40 = vld [vmem:[#allocation133_spill] sm:$0xff] }
 0x474   : > { %16408 = vst [vmem:[#allocation222_spill] sm:$0xff] %v12061_v44  ;;  %v12069_v42 = vpack.c.bf16 %v4158_v28, %v4146_v56  ;;  %v2892_v30 = vand.u32 4294901760, %v2891_v16  ;;  %v15464_v43 = vand.u32 4294901760, %v16413_v58  ;;  %v12076_v7 = vsub.f32 %v16404_v31, %v15459_v36  ;;  %v16417_v8 = vld [vmem:[#allocation81_spill] sm:$0xff]  ;;  %v16418_v36 = vld [vmem:[#allocation134_spill] sm:$0xff]  ;;  %v16419_v33 = vld [vmem:[#allocation136_spill] sm:$0xff] }
 0x475   : > { %16409 = vst [vmem:[#allocation223_spill] sm:$0xff] %v12063_v4  ;;  %16410 = vst [vmem:[#allocation224_spill] sm:$0xff] %v12065_v57  ;;  %v15467_v23 = vand.u32 4294901760, %v16415_v50  ;;  %v12084_v56 = vsub.f32 %v16407_v26, %v15462_v61  ;;  %v15470_v2 = vand.u32 4294901760, %v16416_v40  ;;  %v15472_v17 = vand.u32 4294901760, %v16418_v36  ;;  %v16420_v5 = vld [vmem:[#allocation84_spill] sm:$0xff] }
 0x476   : > { %16411 = vst [vmem:[#allocation225_spill] sm:$0xff] %v12067_v15  ;;  %16412 = vst [vmem:[#allocation226_spill] sm:$0xff] %v12069_v42  ;;  %v2981_v1 = vsub.f32 %v16413_v58, %v15464_v43  ;;  %v15473_v55 = vand.u32 4294901760, %v16419_v33  ;;  %v16421_v43 = vld [vmem:[#allocation137_spill] sm:$0xff]  ;;  %v12101_v62 = vpack.c.bf16 %v2892_v30, %v2880_v20  ;;  %v16423_v31 = vld [vmem:[#allocation138_spill] sm:$0xff]  ;;  %v15476_v42 = vand.u32 4294901760, %v16424_v6 }
 0x477   : > { %v2993_v16 = vsub.f32 %v16415_v50, %v15467_v23  ;;  %v4265_v26 = vsub.f32 %v16416_v40, %v15470_v2  ;;  %v15474_v54 = vand.u32 4294901760, %v16421_v43  ;;  %v4277_v23 = vsub.f32 %v16418_v36, %v15472_v17 }
 0x478   : > { %v2982_v61 = vand.u32 4294901760, %v2981_v1  ;;  %16422 = vst [vmem:[#allocation131_spill] sm:$0xff] %v12101_v62  ;;  %v2999_v39 = vsub.f32 %v16419_v33, %v15473_v55  ;;  %v15475_v2 = vand.u32 4294901760, %v16423_v31  ;;  %v15477_v62 = vand.u32 4294901760, %v11470_v9 }
 0x479   : > { %v2994_v28 = vand.u32 4294901760, %v2993_v16  ;;  %v4266_v48 = vand.u32 4294901760, %v4265_v26  ;;  %v3011_v1 = vsub.f32 %v16421_v43, %v15474_v54  ;;  %v4278_v30 = vand.u32 4294901760, %v4277_v23 }
 0x47a   : > { %v3000_v16 = vand.u32 4294901760, %v2999_v39  ;;  %v4283_v55 = vsub.f32 %v16423_v31, %v15475_v2  ;;  %v4295_v26 = vsub.f32 %v16424_v6, %v15476_v42  ;;  %v15478_v54 = vand.u32 4294901760, %v11474_v38  ;;  %v16427_v39 = vld [vmem:[#allocation143_spill] sm:$0xff]  ;;  %v16546_v40 = vld [vmem:[#allocation221_spill] sm:$0xff] }
 0x47b   : > { %v12114_v20 = vpack.c.bf16 %v2994_v28, %v2982_v61  ;;  %v3012_v17 = vand.u32 4294901760, %v3011_v1  ;;  %v12124_v15 = vpack.c.bf16 %v4278_v30, %v4266_v48  ;;  %v3005_v61 = vsub.f32 %v11470_v9, %v15477_v62  ;;  %v16428_v28 = vld [vmem:[#allocation144_spill] sm:$0xff] }
 0x47c   : > { %v15479_v23 = vand.u32 4294901760, %v16427_v39  ;;  %v15481_v1 = vand.u32 4294901760, %v16428_v28  ;;  %v4284_v57 = vand.u32 4294901760, %v4283_v55  ;;  %v4296_v2 = vand.u32 4294901760, %v4295_v26  ;;  %v16431_v55 = vld [vmem:[#allocation147_spill] sm:$0xff]  ;;  %v16432_v26 = vld [vmem:[#allocation148_spill] sm:$0xff] }
 0x47d   : > { %16425 = vst [vmem:[#allocation132_spill] sm:$0xff] %v12114_v20  ;;  %16426 = vst [vmem:[#allocation227_spill] sm:$0xff] %v12124_v15  ;;  %v12131_v20 = vpack.c.bf16 %v3012_v17, %v3000_v16  ;;  %v3017_v42 = vsub.f32 %v11474_v38, %v15478_v54  ;;  %v3006_v4 = vand.u32 4294901760, %v3005_v61  ;;  %v15480_v62 = vand.u32 4294901760, %v11494_v11 }
 0x47e   : > { %v4289_v48 = vsub.f32 %v16427_v39, %v15479_v23  ;;  %v4301_v30 = vsub.f32 %v16428_v28, %v15481_v1  ;;  %v12143_v15 = vpack.c.bf16 %v4296_v2, %v4284_v57  ;;  %v15482_v16 = vand.u32 4294901760, %v16431_v55 }
 0x47f   : > { %16429 = vst [vmem:[#allocation228_spill] sm:$0xff] %v12131_v20  ;;  %v3018_v17 = vand.u32 4294901760, %v3017_v42  ;;  %v15483_v20 = vand.u32 4294901760, %v16432_v26  ;;  %v3023_v61 = vsub.f32 %v11494_v11, %v15480_v62  ;;  %v15484_v23 = vand.u32 4294901760, %v11512_v59 }
 0x480   : > { %16430 = vst [vmem:[#allocation229_spill] sm:$0xff] %v12143_v15  ;;  %v4290_v44 = vand.u32 4294901760, %v4289_v48  ;;  %v4302_v54 = vand.u32 4294901760, %v4301_v30  ;;  %v3035_v57 = vsub.f32 %v16431_v55, %v15482_v16  ;;  %v15485_v2 = vand.u32 4294901760, %v11516_v53 }
 0x481   : > { %v12151_v37 = vpack.c.bf16 %v3018_v17, %v3006_v4  ;;  %v4307_v42 = vsub.f32 %v16432_v26, %v15483_v20  ;;  %v3024_v30 = vand.u32 4294901760, %v3023_v61  ;;  %v4319_v62 = vsub.f32 %v11512_v59, %v15484_v23 }
 0x482   : > { %v12160_v48 = vpack.c.bf16 %v4302_v54, %v4290_v44  ;;  %v15486_v4 = vand.u32 4294901760, %v11519_v41  ;;  %v3036_v17 = vand.u32 4294901760, %v3035_v57  ;;  %v3029_v16 = vsub.f32 %v11516_v53, %v15485_v2 }
 0x483   : > { %16433 = vst [vmem:[#allocation230_spill] sm:$0xff] %v12151_v37  ;;  %v4308_v1 = vand.u32 4294901760, %v4307_v42  ;;  %v15487_v37 = vand.u32 4294901760, %v11524_v49  ;;  %v4320_v20 = vand.u32 4294901760, %v4319_v62  ;;  %v15488_v44 = vand.u32 4294901760, %v11529_v12 }
 0x484   : > { %16434 = vst [vmem:[#allocation231_spill] sm:$0xff] %v12160_v48  ;;  %v3041_v54 = vsub.f32 %v11519_v41, %v15486_v4  ;;  %v15489_v61 = vand.u32 4294901760, %v11753_v0  ;;  %v12175_v23 = vpack.c.bf16 %v3036_v17, %v3024_v30  ;;  %v3030_v48 = vand.u32 4294901760, %v3029_v16 }
 0x485   : > { %v4313_v57 = vsub.f32 %v11524_v49, %v15487_v37  ;;  %v15490_v42 = vand.u32 4294901760, %v11755_v63  ;;  %v12181_v2 = vpack.c.bf16 %v4320_v20, %v4308_v1  ;;  %v4325_v4 = vsub.f32 %v11529_v12, %v15488_v44 }
 0x486   : > { %16435 = vst [vmem:[#allocation232_spill] sm:$0xff] %v12175_v23  ;;  %v3042_v62 = vand.u32 4294901760, %v3041_v54  ;;  %v3047_v15 = vsub.f32 %v11753_v0, %v15489_v61  ;;  %v15491_v17 = vand.u32 4294901760, %v11757_v14  ;;  %v15492_v37 = vand.u32 4294901760, %v11759_v24  ;;  %v16547_v0 = vld [vmem:[#allocation222_spill] sm:$0xff] }
 0x487   : > { %16436 = vst [vmem:[#allocation233_spill] sm:$0xff] %v12181_v2  ;;  %v4314_v30 = vand.u32 4294901760, %v4313_v57  ;;  %v3059_v16 = vsub.f32 %v11755_v63, %v15490_v42  ;;  %v4326_v1 = vand.u32 4294901760, %v4325_v4  ;;  %v15493_v2 = vand.u32 4294901760, %v11762_v21 }
 0x488   : > { %v12194_v20 = vpack.c.bf16 %v3042_v62, %v3030_v48  ;;  %v3048_v54 = vand.u32 4294901760, %v3047_v15  ;;  %v4331_v61 = vsub.f32 %v11757_v14, %v15491_v17  ;;  %v4343_v57 = vsub.f32 %v11759_v24, %v15492_v37 }
 0x489   : > { %v3060_v44 = vand.u32 4294901760, %v3059_v16  ;;  %v15494_v42 = vand.u32 4294901760, %v11764_v32  ;;  %v12204_v23 = vpack.c.bf16 %v4326_v1, %v4314_v30  ;;  %v3053_v48 = vsub.f32 %v11762_v21, %v15493_v2 }
 0x48a   : > { %16437 = vst [vmem:[#allocation234_spill] sm:$0xff] %v12194_v20  ;;  %v15495_v15 = vand.u32 4294901760, %v11766_v60  ;;  %v15497_v4 = vand.u32 4294901760, %v11768_v34  ;;  %v4332_v16 = vand.u32 4294901760, %v4331_v61  ;;  %v4344_v17 = vand.u32 4294901760, %v4343_v57 }
 0x48b   : > { %16438 = vst [vmem:[#allocation235_spill] sm:$0xff] %v12204_v23  ;;  %v12211_v62 = vpack.c.bf16 %v3060_v44, %v3048_v54  ;;  %v3065_v37 = vsub.f32 %v11764_v32, %v15494_v42  ;;  %v3054_v20 = vand.u32 4294901760, %v3053_v48  ;;  %v15496_v2 = vand.u32 4294901760, %v11771_v29 }
 0x48c   : > { %v4337_v30 = vsub.f32 %v11766_v60, %v15495_v15  ;;  %v4349_v1 = vsub.f32 %v11768_v34, %v15497_v4  ;;  %v12223_v23 = vpack.c.bf16 %v4344_v17, %v4332_v16  ;;  %v15498_v61 = vand.u32 4294901760, %v11773_v25  ;;  %v16529_v34 = vld [vmem:[#allocation219_spill] sm:$0xff]  ;;  %v16548_v60 = vld [vmem:[#allocation116_spill] sm:$0xff] }
 0x48d   : > { %16439 = vst [vmem:[#allocation236_spill] sm:$0xff] %v12211_v62  ;;  %v3066_v44 = vand.u32 4294901760, %v3065_v37  ;;  %v15499_v54 = vand.u32 4294901760, %v11775_v10  ;;  %v3071_v48 = vsub.f32 %v11771_v29, %v15496_v2  ;;  %v15500_v15 = vand.u32 4294901760, %v11777_v3 }
 0x48e   : > { %16440 = vst [vmem:[#allocation237_spill] sm:$0xff] %v12223_v23  ;;  %v4338_v57 = vand.u32 4294901760, %v4337_v30  ;;  %v4350_v42 = vand.u32 4294901760, %v4349_v1  ;;  %v3083_v17 = vsub.f32 %v11773_v25, %v15498_v61  ;;  %v15501_v16 = vand.u32 4294901760, %v11780_v27  ;;  %v16545_v25 = vld [vmem:[#allocation114_spill] sm:$0xff] }
 0x48f   : > { %v12231_v62 = vpack.c.bf16 %v3066_v44, %v3054_v20  ;;  %v4355_v37 = vsub.f32 %v11775_v10, %v15499_v54  ;;  %v3072_v1 = vand.u32 4294901760, %v3071_v48  ;;  %v4367_v2 = vsub.f32 %v11777_v3, %v15500_v15 }
 0x490   : > { %v12240_v30 = vpack.c.bf16 %v4350_v42, %v4338_v57  ;;  %v15502_v20 = vand.u32 4294901760, %v11782_v22  ;;  %v3084_v44 = vand.u32 4294901760, %v3083_v17  ;;  %v3077_v61 = vsub.f32 %v11780_v27, %v15501_v16  ;;  %v16464_v27 = vld [vmem:[#allocation204_spill] sm:$0xff] }
 0x491   : > { %16441 = vst [vmem:[#allocation238_spill] sm:$0xff] %v12231_v62  ;;  %v4356_v4 = vand.u32 4294901760, %v4355_v37  ;;  %v15503_v62 = vand.u32 4294901760, %v11786_v19  ;;  %v4368_v54 = vand.u32 4294901760, %v4367_v2  ;;  %v15506_v57 = vand.u32 4294901760, %v11788_v47  ;;  %v16444_v37 = vld [vmem:[#allocation187_spill] sm:$0xff] }
 0x492   : > { %16442 = vst [vmem:[#allocation239_spill] sm:$0xff] %v12240_v30  ;;  %v3089_v42 = vsub.f32 %v11782_v22, %v15502_v20  ;;  %v15507_v48 = vand.u32 4294901760, %v11793_v35  ;;  %v12255_v15 = vpack.c.bf16 %v3084_v44, %v3072_v1  ;;  %v3078_v30 = vand.u32 4294901760, %v3077_v61  ;;  %v16446_v44 = vld [vmem:[#allocation188_spill] sm:$0xff] }
 0x493   : > { %v4361_v17 = vsub.f32 %v11786_v19, %v15503_v62  ;;  %v15508_v16 = vand.u32 4294901760, %v16444_v37  ;;  %v12261_v23 = vpack.c.bf16 %v4368_v54, %v4356_v4  ;;  %v4373_v20 = vsub.f32 %v11788_v47, %v15506_v57 }
 0x494   : > { %16443 = vst [vmem:[#allocation240_spill] sm:$0xff] %v12255_v15  ;;  %v3090_v2 = vand.u32 4294901760, %v3089_v42  ;;  %v3095_v46 = vsub.f32 %v11793_v35, %v15507_v48  ;;  %v15514_v62 = vand.u32 4294901760, %v16446_v44  ;;  %v16447_v15 = vld [vmem:[#allocation190_spill] sm:$0xff]  ;;  %v15599_v29 = vand.u32 4294901760, %v16545_v25 }
 0x495   : > { %16445 = vst [vmem:[#allocation241_spill] sm:$0xff] %v12261_v23  ;;  %v4362_v1 = vand.u32 4294901760, %v4361_v17  ;;  %v3107_v61 = vsub.f32 %v16444_v37, %v15508_v16  ;;  %v15515_v18 = vand.u32 4294901760, %v16447_v15  ;;  %v4374_v54 = vand.u32 4294901760, %v4373_v20  ;;  %v16449_v23 = vld [vmem:[#allocation192_spill] sm:$0xff]  ;;  %v16450_v16 = vld [vmem:[#allocation193_spill] sm:$0xff] }
 0x496   : > { %v12274_v4 = vpack.c.bf16 %v3090_v2, %v3078_v30  ;;  %v3096_v42 = vand.u32 4294901760, %v3095_v46  ;;  %v15517_v19 = vand.u32 4294901760, %v16449_v23  ;;  %v4379_v48 = vsub.f32 %v16446_v44, %v15514_v62  ;;  %v16452_v46 = vld [vmem:[#allocation194_spill] sm:$0xff]  ;;  %v16453_v2 = vld [vmem:[#allocation196_spill] sm:$0xff] }
 0x497   : > { %v3108_v57 = vand.u32 4294901760, %v3107_v61  ;;  %v4391_v17 = vsub.f32 %v16447_v15, %v15515_v18  ;;  %v15520_v37 = vand.u32 4294901760, %v16450_v16  ;;  %v12284_v35 = vpack.c.bf16 %v4374_v54, %v4362_v1 }
 0x498   : > { %16448 = vst [vmem:[#allocation242_spill] sm:$0xff] %v12274_v4  ;;  %v3101_v30 = vsub.f32 %v16449_v23, %v15517_v19  ;;  %v15521_v20 = vand.u32 4294901760, %v16452_v46  ;;  %v15524_v61 = vand.u32 4294901760, %v16453_v2  ;;  %v4380_v47 = vand.u32 4294901760, %v4379_v48  ;;  %v16455_v19 = vld [vmem:[#allocation197_spill] sm:$0xff]  ;;  %v16457_v48 = vld [vmem:[#allocation199_spill] sm:$0xff] }
 0x499   : > { %16451 = vst [vmem:[#allocation243_spill] sm:$0xff] %v12284_v35  ;;  %v12291_v4 = vpack.c.bf16 %v3108_v57, %v3096_v42  ;;  %v4392_v62 = vand.u32 4294901760, %v4391_v17  ;;  %v3113_v18 = vsub.f32 %v16450_v16, %v15520_v37  ;;  %v15526_v35 = vand.u32 4294901760, %v16455_v19  ;;  %v16458_v17 = vld [vmem:[#allocation201_spill] sm:$0xff] }
 0x49a   : > { %v3102_v15 = vand.u32 4294901760, %v3101_v30  ;;  %v4385_v1 = vsub.f32 %v16452_v46, %v15521_v20  ;;  %v4397_v54 = vsub.f32 %v16453_v2, %v15524_v61  ;;  %v15532_v42 = vand.u32 4294901760, %v16457_v48  ;;  %v16459_v46 = vld [vmem:[#allocation202_spill] sm:$0xff] }
 0x49b   : > { %16454 = vst [vmem:[#allocation244_spill] sm:$0xff] %v12291_v4  ;;  %v12303_v23 = vpack.c.bf16 %v4392_v62, %v4380_v47  ;;  %v3114_v57 = vand.u32 4294901760, %v3113_v18  ;;  %v3119_v20 = vsub.f32 %v16455_v19, %v15526_v35  ;;  %v16462_v35 = vand.u32 4294901760, %v16458_v17 }
 0x49c   : > { %v4386_v37 = vand.u32 4294901760, %v4385_v1  ;;  %v4398_v30 = vand.u32 4294901760, %v4397_v54  ;;  %v3131_v18 = vsub.f32 %v16457_v48, %v15532_v42  ;;  %v16463_v19 = vand.u32 4294901760, %v16459_v46  ;;  %v16465_v48 = vld [vmem:[#allocation205_spill] sm:$0xff] }
 0x49d   : > { %16456 = vst [vmem:[#allocation245_spill] sm:$0xff] %v12303_v23  ;;  %v12311_v47 = vpack.c.bf16 %v3114_v57, %v3102_v15  ;;  %v3120_v54 = vand.u32 4294901760, %v3119_v20  ;;  %v4403_v16 = vsub.f32 %v16458_v17, %v16462_v35  ;;  %v9985_v57 = vld [vmem:[%s10416_s10] sm:$0xff]  ;;  %v15534_v42 = vand.u32 4294901760, %v16464_v27  ;;  %s7768_s10 = scalar_lea.sflag [#allocation5], %s10412_s5 }
 0x49e   : > { %v12316_v1 = vpack.c.bf16 %v4398_v30, %v4386_v37  ;;  %v3132_v23 = vand.u32 4294901760, %v3131_v18  ;;  %v4415_v15 = vsub.f32 %v16459_v46, %v16463_v19  ;;  %v15535_v13 = vand.u32 4294901760, %v16465_v48  ;;  %v16466_v37 = vld [vmem:[#allocation16_spill] sm:$0xff]  ;;  %v16549_v46 = vld [vmem:[#allocation223_spill] sm:$0xff] }
 0x49f   : > { %16460 = vst [vmem:[#allocation246_spill] sm:$0xff] %v12311_v47  ;;  %v3125_v35 = vsub.f32 %v16464_v27, %v15534_v42  ;;  %v16486_v27 = vld [vmem:[#allocation93_spill] sm:$0xff]  ;;  %v15604_v17 = vand.u32 4294901760, %v16548_v60 }
 0x4a0   : > { %16461 = vst [vmem:[#allocation247_spill] sm:$0xff] %v12316_v1  ;;  %v12328_v20 = vpack.c.bf16 %v3132_v23, %v3120_v54  ;;  %v3137_v19 = vsub.f32 %v16465_v48, %v15535_v13  ;;  %v16484_v1 = vld [vmem:[#allocation89_spill] sm:$0xff]  ;;  %v16485_v48 = vld [vmem:[#allocation91_spill] sm:$0xff] }
 0x4a2   : > { %16467 = vst [vmem:[#allocation16_spill] sm:$0xff] %v12328_v20  ;;  %v16475_v20 = vand.u32 4294901760, %v16414_v51 }
 0x4e7   : > { %v2342_v44 = vpop.f32.mrb[0].mxu1 }
 0x4e8   : > { %vm2347_vm11 = vcmp.ge.f32.partialorder %v2342_v44, 0.0  ;;  %v2349_v61 = vmul.f32 0.2, %v2342_v44  ;;  %v2344_v2 = vpop.f32.mrb[1].mxu1 }
 0x4e9   : > { %vm2348_vm12 = vcmp.ge.f32.partialorder %v2344_v2, 0.0  ;;  %v2350_v62 = vmul.f32 0.2, %v2344_v2 }
 0x4ea   : > { %v2351_v4 = vsel %vm2347_vm11, %v2342_v44, %v2349_v61  ;;  %v4404_v44 = vand.u32 4294901760, %v4403_v16  ;;  %v4416_v61 = vand.u32 4294901760, %v4415_v15  ;;  %v16472_v16 = vld [vmem:[#allocation208_spill] sm:$0xff] }
 0x4eb   : > { %v2353_v47 = vadd.f32 %v9985_v57, %v2351_v4  ;;  %v2352_v22 = vsel %vm2348_vm12, %v2344_v2, %v2350_v62  ;;  %v16469_v4 = vld [vmem:[#allocation207_spill] sm:$0xff]  ;;  %v15541_v54 = vand.u32 4294901760, %v16472_v16  ;;  %v3126_v57 = vand.u32 4294901760, %v3125_v35 }
 0x4ec   : > { %v2354_v30 = vadd.f32 %v2352_v22, %v16466_v37  ;;  %v15536_v2 = vand.u32 4294901760, %v16469_v4  ;;  %v2886_v22 = vand.u32 4294901760, %v12076_v7  ;;  %v12342_v23 = vpack.c.bf16 %v4416_v61, %v4404_v44  ;;  %v16476_v44 = vld [vmem:[#allocation85_spill] sm:$0xff]  ;;  %v16483_v61 = vld [vmem:[#allocation86_spill] sm:$0xff] }
 0x4ed   : > { %v12330_v18 = vand.u32 4294901760, %v2353_v47  ;;  %v3138_v37 = vand.u32 4294901760, %v3137_v19  ;;  %v12357_v7 = vsub.f32 %v16414_v51, %v16475_v20  ;;  %v16478_v19 = vand.u32 4294901760, %v12048_v45 }
 0x4ee   : > { %v12339_v62 = vand.u32 4294901760, %v2354_v30  ;;  %16471 = vst [vmem:[#allocation250_spill] sm:$0xff] %v12342_v23  ;;  %v4409_v42 = vsub.f32 %v16469_v4, %v15536_v2  ;;  %v16479_v2 = vand.u32 4294901760, %v12058_v52  ;;  %v16490_v4 = vand.u32 4294901760, %v16417_v8 }
 0x4ef   : > { %16468 = vst [vmem:[#allocation248_spill] sm:$0xff] %v12330_v18  ;;  %v12346_v15 = vsub.f32 %v2353_v47, %v12330_v18  ;;  %v4421_v47 = vsub.f32 %v16472_v16, %v15541_v54  ;;  %v12372_v18 = vpack.c.bf16 %v3138_v37, %v3126_v57  ;;  %v16488_v57 = vld [vmem:[#allocation95_spill] sm:$0xff]  ;;  %v16491_v52 = vand.u32 4294901760, %v16420_v5 }
 0x4f0   : > { %16470 = vst [vmem:[#allocation249_spill] sm:$0xff] %v12339_v62  ;;  %v12352_v13 = vsub.f32 %v2354_v30, %v12339_v62  ;;  %v12370_v30 = vpack.c.bf16 %v16479_v2, %v16478_v19  ;;  %v4410_v23 = vand.u32 4294901760, %v4409_v42  ;;  %v16487_v2 = vld [vmem:[#allocation94_spill] sm:$0xff]  ;;  %v16492_v45 = vand.u32 4294901760, %v16476_v44 }
 0x4f1   : > { %16473 = vst [vmem:[#allocation251_spill] sm:$0xff] %v12346_v15  ;;  %v12364_v35 = vand.u32 4294901760, %v12346_v15  ;;  %16481 = vst [vmem:[#allocation255_spill] sm:$0xff] %v12372_v18  ;;  %v4422_v54 = vand.u32 4294901760, %v4421_v47  ;;  %v16489_v18 = vld [vmem:[#allocation98_spill] sm:$0xff]  ;;  %v2898_v47 = vand.u32 4294901760, %v12084_v56  ;;  %v12399_v19 = vsub.f32 %v16420_v5, %v16491_v52 }
 0x4f2   : > { %16474 = vst [vmem:[#allocation252_spill] sm:$0xff] %v12352_v13  ;;  %16480 = vst [vmem:[#allocation254_spill] sm:$0xff] %v12370_v30  ;;  %v12375_v20 = vand.u32 4294901760, %v12352_v13  ;;  %v12404_v37 = vsub.f32 %v16476_v44, %v16492_v45  ;;  %v16498_v5 = vand.u32 4294901760, %v16485_v48 }
 0x4f3   : > { %16477 = vst [vmem:[#allocation253_spill] sm:$0xff] %v12364_v35  ;;  %v2748_v16 = vsub.f32 %v12346_v15, %v12364_v35  ;;  %v12388_v51 = vpack.c.bf16 %v4422_v54, %v4410_v23  ;;  %v12394_v35 = vsub.f32 %v16417_v8, %v16490_v4  ;;  %v16494_v23 = vand.u32 4294901760, %v16483_v61  ;;  %v16506_v8 = vld [vmem:[#allocation209_spill] sm:$0xff] }
 0x4f4   : > { %16482 = vst [vmem:[#allocation256_spill] sm:$0xff] %v12375_v20  ;;  %v2742_v42 = vsub.f32 %v12352_v13, %v12375_v20  ;;  %v16495_v4 = vand.u32 4294901760, %v16484_v1  ;;  %v16496_v20 = vld [vmem:[#allocation99_spill] sm:$0xff]  ;;  %v12424_v45 = vsub.f32 %v16485_v48, %v16498_v5  ;;  %v16502_v5 = vand.u32 4294901760, %v16489_v18 }
 0x4f5   : > { %v12411_v56 = vsub.f32 %v16483_v61, %v16494_v23  ;;  %v12419_v15 = vand.u32 4294901760, %v2748_v16  ;;  %v16500_v23 = vand.u32 4294901760, %v16487_v2  ;;  %v16501_v16 = vand.u32 4294901760, %v16488_v57  ;;  %v16504_v48 = vld [vmem:[#allocation103_spill] sm:$0xff] }
 0x4f6   : > { %v12406_v30 = vand.u32 4294901760, %v2742_v42  ;;  %v12416_v54 = vsub.f32 %v16484_v1, %v16495_v4  ;;  %v16499_v42 = vand.u32 4294901760, %v16486_v27  ;;  %v12446_v52 = vsub.f32 %v16489_v18, %v16502_v5  ;;  %v16507_v5 = vld [vmem:[#allocation210_spill] sm:$0xff] }
 0x4f7   : > { %16497 = vst [vmem:[#allocation99_spill] sm:$0xff] %v12419_v15  ;;  %v12434_v61 = vsub.f32 %v16487_v2, %v16500_v23  ;;  %v12441_v4 = vsub.f32 %v16488_v57, %v16501_v16  ;;  %v12452_v23 = vpack.c.bf16 %v2898_v47, %v2886_v22  ;;  %v4182_v16 = vand.u32 4294901760, %v12394_v35  ;;  %v16505_v57 = vld [vmem:[#allocation105_spill] sm:$0xff]  ;;  %v16510_v47 = vld [vmem:[#allocation212_spill] sm:$0xff] }
 0x4f8   : > { %16493 = vst [vmem:[#allocation257_spill] sm:$0xff] %v12406_v30  ;;  %v12429_v44 = vsub.f32 %v16486_v27, %v16499_v42  ;;  %2744 = vmatprep.mubr.f32.mxu0 %v12406_v30  ;;  %4028 = vmatprep.mubr.f32.mxu1 %v12406_v30  ;;  %v16503_v42 = vld [vmem:[#allocation100_spill] sm:$0xff]  ;;  %v4170_v30 = vand.u32 4294901760, %v12357_v7  ;;  %v2904_v27 = vand.u32 4294901760, %v12399_v19  ;;  %v2916_v1 = vand.u32 4294901760, %v12404_v37  ;;  %v16509_v37 = vld [vmem:[#allocation211_spill] sm:$0xff] }
 0x4f9   : > { %2750 = vmatmul.mubr.f32.vlgmr.msra.gmra.mrb[2].mxu0 %v12419_v15  ;;  %4034 = vmatmul.mubr.f32.vlgmr.msra.gmra.mrb[2].mxu1 %v12419_v15  ;;  %v4188_v18 = vand.u32 4294901760, %v12411_v56  ;;  %v16508_v15 = vand.u32 4294901760, %v16496_v20  ;;  %v4200_v7 = vand.u32 4294901760, %v12416_v54  ;;  %v4194_v19 = vand.u32 4294901760, %v12434_v61 }
 0x4fa   : > { %8354 = vmatpush1.bf16.msra.mxu0 %v16506_v8  ;;  %8738 = vmatpush1.bf16.msra.mxu1 %v16507_v5  ;;  %v2910_v8 = vand.u32 4294901760, %v12424_v45  ;;  %v2922_v35 = vand.u32 4294901760, %v12429_v44  ;;  %v4206_v56 = vand.u32 4294901760, %v12441_v4  ;;  %v16511_v5 = vand.u32 4294901760, %v16503_v42  ;;  %v16519_v4 = vld [vmem:[#allocation108_spill] sm:$0xff] }
 0x4fb   : > { %v12465_v22 = vsub.f32 %v16496_v20, %v16508_v15  ;;  %3141 = vmatprep.mubr.f32.mxu0 %v12339_v62  ;;  %4425 = vmatprep.mubr.f32.mxu1 %v12339_v62  ;;  %v2928_v15 = vand.u32 4294901760, %v12446_v52  ;;  %v16512_v54 = vand.u32 4294901760, %v16504_v48  ;;  %v16513_v44 = vand.u32 4294901760, %v16505_v57  ;;  %v16516_v62 = vld [vmem:[#allocation214_spill] sm:$0xff]  ;;  %v16518_v52 = vld [vmem:[#allocation216_spill] sm:$0xff] }
 0x4fc   : > { %8356 = vmatprep.subr.bf16.mxu0 %v16509_v37  ;;  %8740 = vmatprep.subr.bf16.mxu1 %v16510_v47  ;;  %v12480_v2 = vsub.f32 %v16503_v42, %v16511_v5  ;;  %v16514_v37 = vld [vmem:[#allocation107_spill] sm:$0xff]  ;;  %v16515_v5 = vld [vmem:[#allocation213_spill] sm:$0xff]  ;;  %v16521_v47 = vld [vmem:[#allocation218_spill] sm:$0xff]  ;;  %v8757_v49 = vpack.c.bf16 %v4182_v16, %v4170_v30  ;;  %v8759_v24 = vpack.c.bf16 %v4200_v7, %v4188_v18  ;;  %v16552_v18 = vand.u32 4294901760, %v16519_v4 }
 0x4fd   : > { %v12485_v45 = vsub.f32 %v16504_v48, %v16512_v54  ;;  %v12490_v61 = vsub.f32 %v16505_v57, %v16513_v44  ;;  %v2940_v54 = vand.u32 4294901760, %v12465_v22  ;;  %v16517_v57 = vld [vmem:[#allocation215_spill] sm:$0xff]  ;;  %v16520_v48 = vld [vmem:[#allocation217_spill] sm:$0xff]  ;;  %v16531_v44 = vld [vmem:[#allocation112_spill] sm:$0xff]  ;;  %v8761_v21 = vpack.c.bf16 %v4206_v56, %v4194_v19 }
 0x4fe   : > { %8358 = vmatpush1.bf16.msra.mxu0 %v16515_v5  ;;  %8742 = vmatpush1.bf16.msra.mxu1 %v16516_v62  ;;  %v16530_v5 = vld [vmem:[#allocation220_spill] sm:$0xff]  ;;  %v16551_v30 = vand.u32 4294901760, %v16514_v37  ;;  %v4217_v16 = vsub.f32 %v16519_v4, %v16552_v18  ;;  %v4235_v19 = vsub.f32 %v16545_v25, %v15599_v29  ;;  %v16555_v56 = vld [vmem:[#allocation118_spill] sm:$0xff]  ;;  %v16559_v18 = vld [vmem:[#allocation121_spill] sm:$0xff] }
 0x4ff   : > { %8360 = vmatprep.subr.bf16.mxu0 %v16517_v57  ;;  %8744 = vmatprep.subr.bf16.mxu1 %v16518_v52  ;;  %v16522_v57 = vld [vmem:[#allocation109_spill] sm:$0xff]  ;;  %v8377_v52 = vpack.c.bf16 %v2922_v35, %v2910_v8  ;;  %v8379_v62 = vpack.c.bf16 %v2940_v54, %v2928_v15  ;;  %v16554_v8 = vand.u32 4294901760, %v16531_v44  ;;  %v16563_v29 = vld [vmem:[#allocation254_spill] sm:$0xff] }
 0x500   : > { %v16553_v7 = vand.u32 4294901760, %v16522_v57  ;;  %v16557_v54 = vld [vmem:[#allocation225_spill] sm:$0xff]  ;;  %v4218_v53 = vand.u32 4294901760, %v4217_v16  ;;  %v4236_v26 = vand.u32 4294901760, %v4235_v19 }
 0x501   : > { %v16561_v22 = vld [vmem:[#allocation125_spill] sm:$0xff] }
 0x502   : > { %8362 = vmatpush1.bf16.msra.mxu0 %v16520_v48  ;;  %8746 = vmatpush1.bf16.msra.mxu1 %v16521_v47  ;;  %v8375_v47 = vpack.c.bf16 %v2916_v1, %v2904_v27  ;;  %v16544_v48 = vld [vmem:[#allocation113_spill] sm:$0xff]  ;;  %v4212_v27 = vand.u32 4294901760, %v12480_v2  ;;  %v4224_v1 = vand.u32 4294901760, %v12485_v45  ;;  %v2951_v2 = vsub.f32 %v16531_v44, %v16554_v8  ;;  %v16556_v45 = vld [vmem:[#allocation120_spill] sm:$0xff]  ;;  %v16560_v8 = vld [vmem:[#allocation122_spill] sm:$0xff] }
 0x503   : > { %8364 = vmatprep.subr.bf16.mxu0 %v16529_v34  ;;  %8748 = vmatprep.subr.bf16.mxu1 %v16530_v5  ;;  %v15598_v3 = vand.u32 4294901760, %v16544_v48  ;;  %v16550_v5 = vld [vmem:[#allocation224_spill] sm:$0xff]  ;;  %v16562_v34 = vld [vmem:[#allocation131_spill] sm:$0xff]  ;;  %v16570_v16 = vand.u32 4294901760, %v16560_v8 }
 0x504   : > { %v8763_v15 = vpack.c.bf16 %v4224_v1, %v4212_v27  ;;  %v2952_v41 = vand.u32 4294901760, %v2951_v2  ;;  %v16569_v1 = vand.u32 4294901760, %v16559_v18  ;;  %v16571_v2 = vand.u32 4294901760, %v16561_v22 }
 0x505   : > { %v2963_v35 = vsub.f32 %v16544_v48, %v15598_v3  ;;  %v16567_v3 = vand.u32 4294901760, %v16555_v56 }
 0x506   : > { %8366 = vmatpush1.bf16.msra.mxu0 %v16546_v40  ;;  %8750 = vmatpush1.bf16.msra.mxu1 %v16547_v0  ;;  %v2945_v40 = vsub.f32 %v16514_v37, %v16551_v30  ;;  %v2934_v0 = vand.u32 4294901760, %v12490_v61  ;;  %v4247_v30 = vsub.f32 %v16548_v60, %v15604_v17  ;;  %v16564_v61 = vld [vmem:[#allocation126_spill] sm:$0xff] }
 0x507   : > { %8368 = vmatprep.subr.bf16.mxu0 %v16549_v46  ;;  %8752 = vmatprep.subr.bf16.mxu1 %v16550_v5  ;;  %v4229_v46 = vsub.f32 %v16522_v57, %v16553_v7  ;;  %v16558_v5 = vld [vmem:[#allocation226_spill] sm:$0xff]  ;;  %v15608_v32 = vand.u32 4294901760, %v16564_v61  ;;  %v2964_v7 = vand.u32 4294901760, %v2963_v35  ;;  %v2957_v10 = vsub.f32 %v16555_v56, %v16567_v3 }
 0x508   : > { %v2946_v12 = vand.u32 4294901760, %v2945_v40  ;;  %v4248_v27 = vand.u32 4294901760, %v4247_v30  ;;  %v4241_v40 = vsub.f32 %v16559_v18, %v16569_v1  ;;  %v2975_v3 = vsub.f32 %v16561_v22, %v16571_v2 }
 0x509   : > { %v4230_v17 = vand.u32 4294901760, %v4229_v46  ;;  %v4253_v46 = vsub.f32 %v16560_v8, %v16570_v16  ;;  %v2958_v1 = vand.u32 4294901760, %v2957_v10  ;;  %v16574_v10 = vld [vmem:[#allocation228_spill] sm:$0xff] }
 0x50a   : > { %8370 = vmatpush1.bf16.msra.mxu0 %v16557_v54  ;;  %8754 = vmatpush1.bf16.msra.mxu1 %v16558_v5  ;;  %v16565_v54 = vld [vmem:[#allocation127_spill] sm:$0xff]  ;;  %v16566_v5 = vld [vmem:[#allocation129_spill] sm:$0xff]  ;;  %v8381_v19 = vpack.c.bf16 %v2946_v12, %v2934_v0  ;;  %v4242_v16 = vand.u32 4294901760, %v4241_v40  ;;  %v16590_v40 = vld [vmem:[#allocation244_spill] sm:$0xff] }
 0x50b   : > { %8372 = vmatprep.subr.bf16.mxu0 %v16562_v34  ;;  %8756 = vmatprep.subr.bf16.mxu1 %v16563_v29  ;;  %v15613_v63 = vand.u32 4294901760, %v16565_v54  ;;  %v15615_v14 = vand.u32 4294901760, %v16566_v5  ;;  %v16568_v34 = vand.u32 4294901760, %v16556_v45  ;;  %v8765_v30 = vpack.c.bf16 %v4230_v17, %v4218_v53  ;;  %v16572_v53 = vld [vmem:[#allocation132_spill] sm:$0xff]  ;;  %v16576_v17 = vld [vmem:[#allocation230_spill] sm:$0xff]  ;;  %v16585_v0 = vld [vmem:[#allocation239_spill] sm:$0xff] }
 0x50c   : > { %v4254_v2 = vand.u32 4294901760, %v4253_v46  ;;  %v16591_v46 = vld [vmem:[#allocation245_spill] sm:$0xff] }
 0x50d   : > { %v2969_v29 = vsub.f32 %v16556_v45, %v16568_v34  ;;  %v4271_v35 = vsub.f32 %v16566_v5, %v15615_v14  ;;  %v8383_v34 = vpack.c.bf16 %v2964_v7, %v2952_v41  ;;  %v16587_v7 = vld [vmem:[#allocation241_spill] sm:$0xff] }
 0x50e   : > { %8374 = vmatpush1.bf16.msra.mxu0 %v12452_v23  ;;  %8758 = vmatpush1.bf16.msra.mxu1 %v8757_v49  ;;  %v2987_v23 = vsub.f32 %v16564_v61, %v15608_v32  ;;  %v4259_v49 = vsub.f32 %v16565_v54, %v15613_v63  ;;  %v2976_v32 = vand.u32 4294901760, %v2975_v3  ;;  %v8769_v14 = vpack.c.bf16 %v4254_v2, %v4242_v16  ;;  %v16592_v3 = vld [vmem:[#allocation246_spill] sm:$0xff]  ;;  %v16600_v16 = vld [vmem:[#allocation255_spill] sm:$0xff] }
 0x50f   : > { %8376 = vmatprep.subr.bf16.mxu0 %v8375_v47  ;;  %8760 = vmatprep.subr.bf16.mxu1 %v8759_v24  ;;  %v8767_v47 = vpack.c.bf16 %v4248_v27, %v4236_v26  ;;  %v2970_v24 = vand.u32 4294901760, %v2969_v29  ;;  %v4272_v63 = vand.u32 4294901760, %v4271_v35  ;;  %v16575_v26 = vld [vmem:[#allocation229_spill] sm:$0xff]  ;;  %v16588_v29 = vld [vmem:[#allocation242_spill] sm:$0xff]  ;;  %v16589_v27 = vld [vmem:[#allocation243_spill] sm:$0xff] }
 0x510   : > { %v2988_v59 = vand.u32 4294901760, %v2987_v23  ;;  %v4260_v11 = vand.u32 4294901760, %v4259_v49  ;;  %v16593_v23 = vld [vmem:[#allocation247_spill] sm:$0xff]  ;;  %v16594_v49 = vld [vmem:[#allocation16_spill] sm:$0xff]  ;;  %v16595_v35 = vld [vmem:[#allocation250_spill] sm:$0xff] }
 0x511   : > { %v8385_v55 = vpack.c.bf16 %v2970_v24, %v2958_v1  ;;  %v16598_v1 = vld [vmem:[#allocation20_spill] sm:$0xff]  ;;  %v16601_v2 = vld [vmem:[#allocation23_spill] sm:$0xff] }
 0x512   : > { %8378 = vmatpush1.bf16.msra.mxu0 %v8377_v52  ;;  %8762 = vmatpush1.bf16.msra.mxu1 %v8761_v21  ;;  %v8387_v12 = vpack.c.bf16 %v2988_v59, %v2976_v32  ;;  %v8771_v41 = vpack.c.bf16 %v4272_v63, %v4260_v11  ;;  %v16573_v21 = vld [vmem:[#allocation227_spill] sm:$0xff]  ;;  %v16578_v52 = vld [vmem:[#allocation232_spill] sm:$0xff]  ;;  %v16579_v59 = vld [vmem:[#allocation233_spill] sm:$0xff] }
 0x513   : > { %8380 = vmatprep.subr.bf16.mxu0 %v8379_v62  ;;  %8764 = vmatprep.subr.bf16.mxu1 %v8763_v15  ;;  %v16577_v62 = vld [vmem:[#allocation231_spill] sm:$0xff]  ;;  %v16580_v11 = vld [vmem:[#allocation234_spill] sm:$0xff]  ;;  %v16582_v63 = vld [vmem:[#allocation236_spill] sm:$0xff] }
 0x514   : > { %v16581_v32 = vld [vmem:[#allocation235_spill] sm:$0xff]  ;;  %v16586_v15 = vld [vmem:[#allocation240_spill] sm:$0xff] }
 0x516   : > { %8382 = vmatpush1.bf16.msra.mxu0 %v8381_v19  ;;  %8766 = vmatpush1.bf16.msra.mxu1 %v8765_v30  ;;  %v16596_v19 = vld [vmem:[#allocation18_spill] sm:$0xff]  ;;  %v16597_v30 = vld [vmem:[#allocation19_spill] sm:$0xff] }
 0x517   : > { %8384 = vmatprep.subr.bf16.mxu0 %v8383_v34  ;;  %8768 = vmatprep.subr.bf16.mxu1 %v8767_v47  ;;  %v8415_v34 = vpack.c.bf16 %v16597_v30, %v16596_v19  ;;  %v16599_v47 = vld [vmem:[#allocation21_spill] sm:$0xff] }
 0x518   : > { %v8799_v24 = vpack.c.bf16 %v16599_v47, %v16598_v1 }
 0x51a   : > { %8386 = vmatpush1.bf16.msra.mxu0 %v8385_v55  ;;  %8770 = vmatpush1.bf16.msra.mxu1 %v8769_v14  ;;  %v16583_v14 = vld [vmem:[#allocation237_spill] sm:$0xff]  ;;  %v16584_v55 = vld [vmem:[#allocation238_spill] sm:$0xff] }
 0x51b   : > { %8388 = vmatprep.subr.bf16.mxu0 %v8387_v12  ;;  %8772 = vmatprep.subr.bf16.mxu1 %v8771_v41  ;;  %v16602_v12 = vld [vmem:[#allocation24_spill] sm:$0xff] }
 0x51c   : > { %v8417_v41 = vpack.c.bf16 %v16602_v12, %v16601_v2 }
 0x51e   : > { %8390 = vmatpush1.bf16.msra.mxu0 %v16572_v53  ;;  %8774 = vmatpush1.bf16.msra.mxu1 %v16573_v21  ;;  %v16603_v53 = vld [vmem:[#allocation25_spill] sm:$0xff]  ;;  %v16604_v21 = vld [vmem:[#allocation26_spill] sm:$0xff] }
 0x51f   : > { %8392 = vmatprep.subr.bf16.mxu0 %v16574_v10  ;;  %8776 = vmatprep.subr.bf16.mxu1 %v16575_v26  ;;  %v8801_v10 = vpack.c.bf16 %v16604_v21, %v16603_v53  ;;  %v16605_v26 = vld [vmem:[#allocation27_spill] sm:$0xff] }
 0x522   : > { %8394 = vmatpush1.bf16.msra.mxu0 %v16576_v17  ;;  %8778 = vmatpush1.bf16.msra.mxu1 %v16577_v62  ;;  %v16606_v17 = vld [vmem:[#allocation29_spill] sm:$0xff] }
 0x523   : > { %8396 = vmatprep.subr.bf16.mxu0 %v16578_v52  ;;  %8780 = vmatprep.subr.bf16.mxu1 %v16579_v59  ;;  %v8419_v62 = vpack.c.bf16 %v16606_v17, %v16605_v26  ;;  %v16607_v52 = vld [vmem:[#allocation30_spill] sm:$0xff]  ;;  %v16608_v59 = vld [vmem:[#allocation31_spill] sm:$0xff] }
 0x526   : > { %8398 = vmatpush1.bf16.msra.mxu0 %v16580_v11  ;;  %8782 = vmatpush1.bf16.msra.mxu1 %v16581_v32  ;;  %v8803_v11 = vpack.c.bf16 %v16608_v59, %v16607_v52  ;;  %v16609_v32 = vld [vmem:[#allocation248_spill] sm:$0xff] }
 0x527   : > { %8400 = vmatprep.subr.bf16.mxu0 %v16582_v63  ;;  %8784 = vmatprep.subr.bf16.mxu1 %v16583_v14  ;;  %v16611_v63 = vld [vmem:[#allocation34_spill] sm:$0xff] }
 0x52a   : > { %8402 = vmatpush1.bf16.msra.mxu0 %v16584_v55  ;;  %8786 = vmatpush1.bf16.msra.mxu1 %v16585_v0  ;;  %v16612_v55 = vld [vmem:[#allocation35_spill] sm:$0xff]  ;;  %v16613_v0 = vld [vmem:[#allocation36_spill] sm:$0xff] }
 0x52b   : > { %8404 = vmatprep.subr.bf16.mxu0 %v16586_v15  ;;  %8788 = vmatprep.subr.bf16.mxu1 %v16587_v7  ;;  %v8805_v15 = vpack.c.bf16 %v16613_v0, %v16612_v55  ;;  %v16614_v7 = vld [vmem:[#allocation38_spill] sm:$0xff] }
 0x52e   : > { %8406 = vmatpush1.bf16.msra.mxu0 %v16588_v29  ;;  %8790 = vmatpush1.bf16.msra.mxu1 %v16589_v27  ;;  %v16615_v29 = vld [vmem:[#allocation39_spill] sm:$0xff] }
 0x52f   : > { %8408 = vmatprep.subr.bf16.mxu0 %v16590_v40  ;;  %8792 = vmatprep.subr.bf16.mxu1 %v16591_v46  ;;  %v8423_v27 = vpack.c.bf16 %v16615_v29, %v16614_v7  ;;  %v16616_v40 = vld [vmem:[#allocation40_spill] sm:$0xff]  ;;  %v16617_v46 = vld [vmem:[#allocation41_spill] sm:$0xff]  ;;  %v16625_v29 = vld [vmem:[#allocation51_spill] sm:$0xff] }
 0x530   : > { %v16627_v7 = vld [vmem:[#allocation54_spill] sm:$0xff] }
 0x532   : > { %8410 = vmatpush1.bf16.msra.mxu0 %v16592_v3  ;;  %8794 = vmatpush1.bf16.msra.mxu1 %v16593_v23  ;;  %v8807_v3 = vpack.c.bf16 %v16617_v46, %v16616_v40  ;;  %v16618_v23 = vld [vmem:[#allocation42_spill] sm:$0xff] }
 0x533   : > { %8412 = vmatprep.subr.bf16.mxu0 %v16594_v49  ;;  %8796 = vmatprep.subr.bf16.mxu1 %v16595_v35  ;;  %v16619_v49 = vld [vmem:[#allocation44_spill] sm:$0xff] }
 0x534   : > { %v8425_v35 = vpack.c.bf16 %v16619_v49, %v16618_v23  ;;  %v16629_v49 = vld [vmem:[#allocation56_spill] sm:$0xff]  ;;  %v16631_v23 = vld [vmem:[#allocation59_spill] sm:$0xff] }
 0x536   : > { %8414 = vmatpush1.bf16.msra.mxu0 %v16600_v16  ;;  %8798 = vmatpush1.bf16.msra.mxu1 %v12388_v51  ;;  %v16610_v51 = vld [vmem:[#allocation32_spill] sm:$0xff] }
 0x537   : > { %8416 = vmatprep.subr.bf16.mxu0 %v8415_v34  ;;  %8800 = vmatprep.subr.bf16.mxu1 %v8799_v24  ;;  %v8421_v14 = vpack.c.bf16 %v16611_v63, %v16610_v51  ;;  %v16620_v34 = vld [vmem:[#allocation45_spill] sm:$0xff]  ;;  %v16621_v24 = vld [vmem:[#allocation46_spill] sm:$0xff] }
 0x538   : > { %v8809_v16 = vpack.c.bf16 %v16621_v24, %v16620_v34  ;;  %v16632_v24 = vld [vmem:[#allocation60_spill] sm:$0xff]  ;;  %v16633_v34 = vld [vmem:[#allocation61_spill] sm:$0xff] }
 0x539   : > { %3143 = vmatmul.mubr.f32.vlgmr.msra.gmra.mrb[2].mxu0 %v16609_v32  ;;  %4427 = vmatmul.mubr.f32.vlgmr.msra.gmra.mrb[2].mxu1 %v16609_v32  ;;  %v16624_v32 = vld [vmem:[#allocation50_spill] sm:$0xff] }
 0x53a   : > { %8418 = vmatpush1.bf16.msra.mxu0 %v8417_v41  ;;  %3343 = vmatprep.mubr.f32.mxu0 %v12352_v13  ;;  %v16622_v41 = vld [vmem:[#allocation48_spill] sm:$0xff] }
 0x53b   : > { %8802 = vmatpush1.bf16.msra.mxu1 %v8801_v10  ;;  %4627 = vmatprep.mubr.f32.mxu1 %v12352_v13  ;;  %v16623_v10 = vld [vmem:[#allocation49_spill] sm:$0xff] }
 0x53c   : > { %8420 = vmatprep.subr.bf16.mxu0 %v8419_v62  ;;  %8804 = vmatprep.subr.bf16.mxu1 %v8803_v11  ;;  %v8427_v13 = vpack.c.bf16 %v16623_v10, %v16622_v41  ;;  %v8811_v62 = vpack.c.bf16 %v16625_v29, %v16624_v32  ;;  %v16626_v11 = vld [vmem:[#allocation53_spill] sm:$0xff]  ;;  %v8815_v10 = vpack.c.bf16 %v16633_v34, %v16632_v24 }
 0x53d   : > { %v8429_v46 = vpack.c.bf16 %v16627_v7, %v16626_v11  ;;  %v16635_v41 = vld [vmem:[#allocation65_spill] sm:$0xff]  ;;  %v16637_v7 = vld [vmem:[#allocation67_spill] sm:$0xff] }
 0x53e   : > { %8422 = vmatpush1.bf16.msra.mxu0 %v8421_v14  ;;  %v16628_v14 = vld [vmem:[#allocation55_spill] sm:$0xff] }
 0x53f   : > { %8806 = vmatpush1.bf16.msra.mxu1 %v8805_v15  ;;  %8424 = vmatprep.subr.bf16.mxu0 %v8423_v27  ;;  %v8813_v15 = vpack.c.bf16 %v16629_v49, %v16628_v14  ;;  %v16630_v27 = vld [vmem:[#allocation58_spill] sm:$0xff]  ;;  %v16639_v11 = vld [vmem:[#allocation71_spill] sm:$0xff]  ;;  %v16640_v49 = vld [vmem:[#allocation72_spill] sm:$0xff] }
 0x540   : > { %8808 = vmatprep.subr.bf16.mxu1 %v8807_v3  ;;  %v8431_v40 = vpack.c.bf16 %v16631_v23, %v16630_v27  ;;  %v16634_v3 = vld [vmem:[#allocation63_spill] sm:$0xff] }
 0x541   : > { %v8433_v29 = vpack.c.bf16 %v16635_v41, %v16634_v3  ;;  %v16641_v14 = vld [vmem:[#allocation75_spill] sm:$0xff]  ;;  %v16645_v41 = vld [vmem:[#allocation81_spill] sm:$0xff] }
 0x542   : > { %8426 = vmatpush1.bf16.msra.mxu0 %v8425_v35  ;;  %v16636_v35 = vld [vmem:[#allocation66_spill] sm:$0xff]  ;;  %v8819_v23 = vpack.c.bf16 %v16641_v14, %v16640_v49  ;;  %v16643_v27 = vld [vmem:[#allocation79_spill] sm:$0xff]  ;;  %v16647_v3 = vld [vmem:[#allocation85_spill] sm:$0xff] }
 0x543   : > { %8810 = vmatpush1.bf16.msra.mxu1 %v8809_v16  ;;  %8428 = vmatprep.subr.bf16.mxu0 %v8427_v13  ;;  %v8817_v16 = vpack.c.bf16 %v16637_v7, %v16636_v35  ;;  %v16638_v13 = vld [vmem:[#allocation70_spill] sm:$0xff]  ;;  %v16649_v35 = vld [vmem:[#allocation89_spill] sm:$0xff] }
 0x544   : > { %8812 = vmatprep.subr.bf16.mxu1 %v8811_v62  ;;  %v8435_v32 = vpack.c.bf16 %v16639_v11, %v16638_v13  ;;  %v16642_v62 = vld [vmem:[#allocation77_spill] sm:$0xff]  ;;  %v16648_v7 = vld [vmem:[#allocation86_spill] sm:$0xff] }
 0x545   : > { %v8437_v34 = vpack.c.bf16 %v16643_v27, %v16642_v62  ;;  %v8823_v11 = vpack.c.bf16 %v16649_v35, %v16648_v7  ;;  %v16651_v13 = vld [vmem:[#allocation93_spill] sm:$0xff]  ;;  %v16653_v27 = vld [vmem:[#allocation95_spill] sm:$0xff] }
 0x546   : > { %8430 = vmatpush1.bf16.msra.mxu0 %v8429_v46  ;;  %v16644_v46 = vld [vmem:[#allocation80_spill] sm:$0xff] }
 0x547   : > { %8814 = vmatpush1.bf16.msra.mxu1 %v8813_v15  ;;  %8432 = vmatprep.subr.bf16.mxu0 %v8431_v40  ;;  %v8821_v15 = vpack.c.bf16 %v16645_v41, %v16644_v46  ;;  %v16646_v40 = vld [vmem:[#allocation84_spill] sm:$0xff]  ;;  %v16655_v41 = vld [vmem:[#allocation103_spill] sm:$0xff] }
 0x548   : > { %8816 = vmatprep.subr.bf16.mxu1 %v8815_v10  ;;  %v8439_v24 = vpack.c.bf16 %v16647_v3, %v16646_v40  ;;  %v16650_v10 = vld [vmem:[#allocation91_spill] sm:$0xff]  ;;  %v8827_v3 = vpack.c.bf16 %v16655_v41, %v16503_v42 }
 0x549   : > { %v8441_v14 = vpack.c.bf16 %v16651_v13, %v16650_v10 }
 0x54a   : > { %8434 = vmatpush1.bf16.msra.mxu0 %v8433_v29  ;;  %v16652_v29 = vld [vmem:[#allocation94_spill] sm:$0xff] }
 0x54b   : > { %8818 = vmatpush1.bf16.msra.mxu1 %v8817_v16  ;;  %8436 = vmatprep.subr.bf16.mxu0 %v8435_v32  ;;  %v8825_v16 = vpack.c.bf16 %v16653_v27, %v16652_v29  ;;  %v16654_v32 = vld [vmem:[#allocation98_spill] sm:$0xff] }
 0x54c   : > { %8820 = vmatprep.subr.bf16.mxu1 %v8819_v23  ;;  %v8443_v62 = vpack.c.bf16 %v16496_v20, %v16654_v32  ;;  %v16656_v23 = vld [vmem:[#allocation105_spill] sm:$0xff] }
 0x54d   : > { %v8445_v35 = vpack.c.bf16 %v16514_v37, %v16656_v23 }
 0x54e   : > { %8438 = vmatpush1.bf16.msra.mxu0 %v8437_v34  ;;  %v8829_v34 = vpack.c.bf16 %v16522_v57, %v16519_v4 }
 0x54f   : > { %8822 = vmatpush1.bf16.msra.mxu1 %v8821_v15  ;;  %8440 = vmatprep.subr.bf16.mxu0 %v8439_v24  ;;  %v8447_v24 = vpack.c.bf16 %v16544_v48, %v16531_v44  ;;  %v8831_v15 = vpack.c.bf16 %v16548_v60, %v16545_v25 }
 0x550   : > { %8824 = vmatprep.subr.bf16.mxu1 %v8823_v11  ;;  %v8449_v11 = vpack.c.bf16 %v16556_v45, %v16555_v56 }
 0x552   : > { %8442 = vmatpush1.bf16.msra.mxu0 %v8441_v14  ;;  %v8833_v14 = vpack.c.bf16 %v16560_v8, %v16559_v18 }
 0x553   : > { %8826 = vmatpush1.bf16.msra.mxu1 %v8825_v16  ;;  %8444 = vmatprep.subr.bf16.mxu0 %v8443_v62  ;;  %v8451_v62 = vpack.c.bf16 %v16564_v61, %v16561_v22  ;;  %v8835_v16 = vpack.c.bf16 %v16566_v5, %v16565_v54 }
 0x554   : > { %8828 = vmatprep.subr.bf16.mxu1 %v8827_v3  ;;  %v16657_v3 = vpack.c.bf16 %v16415_v50, %v16413_v58 }
 0x556   : > { %8446 = vmatpush1.bf16.msra.mxu0 %v8445_v35  ;;  %v16658_v35 = vld [vmem:[#allocation133_spill] sm:$0xff] }
 0x557   : > { %8830 = vmatpush1.bf16.msra.mxu1 %v8829_v34  ;;  %8448 = vmatprep.subr.bf16.mxu0 %v8447_v24  ;;  %v16659_v34 = vpack.c.bf16 %v16418_v36, %v16658_v35  ;;  %v16660_v24 = vpack.c.bf16 %v16421_v43, %v16419_v33  ;;  %v16668_v36 = vld [vmem:[#allocation148_spill] sm:$0xff]  ;;  %v16671_v33 = vld [vmem:[#allocation151_spill] sm:$0xff] }
 0x558   : > { %8832 = vmatprep.subr.bf16.mxu1 %v8831_v15  ;;  %v16661_v15 = vpack.c.bf16 %v16424_v6, %v16423_v31  ;;  %v16674_v31 = vld [vmem:[#allocation153_spill] sm:$0xff] }
 0x55a   : > { %8450 = vmatpush1.bf16.msra.mxu0 %v8449_v11  ;;  %v16662_v11 = vpack.c.bf16 %v11474_v38, %v11470_v9  ;;  %v16677_v9 = vld [vmem:[#allocation168_spill] sm:$0xff] }
 0x55b   : > { %8834 = vmatpush1.bf16.msra.mxu1 %v8833_v14  ;;  %8452 = vmatprep.subr.bf16.mxu0 %v8451_v62  ;;  %v16663_v14 = vpack.c.bf16 %v16428_v28, %v16427_v39  ;;  %v16664_v62 = vld [vmem:[#allocation147_spill] sm:$0xff]  ;;  %v16680_v39 = vld [vmem:[#allocation170_spill] sm:$0xff] }
 0x55c   : > { %8836 = vmatprep.subr.bf16.mxu1 %v8835_v16  ;;  %v16665_v16 = vld [vmem:[#allocation146_spill] sm:$0xff] }
 0x55e   : > { %8454 = vmatpush1.bf16.msra.mxu0 %v16657_v3  ;;  %v16666_v3 = vpack.c.bf16 %v16664_v62, %v16665_v16  ;;  %v16683_v16 = vld [vmem:[#allocation172_spill] sm:$0xff] }
 0x55f   : > { %8838 = vmatpush1.bf16.msra.mxu1 %v16659_v34  ;;  %8456 = vmatprep.subr.bf16.mxu0 %v16660_v24  ;;  %v16667_v34 = vld [vmem:[#allocation149_spill] sm:$0xff]  ;;  %v16670_v24 = vld [vmem:[#allocation152_spill] sm:$0xff] }
 0x560   : > { %8840 = vmatprep.subr.bf16.mxu1 %v16661_v15  ;;  %v16669_v43 = vpack.c.bf16 %v16667_v34, %v16668_v36  ;;  %v16672_v6 = vpack.c.bf16 %v16670_v24, %v16671_v33  ;;  %v16673_v15 = vld [vmem:[#allocation154_spill] sm:$0xff]  ;;  %v16689_v33 = vld [vmem:[#allocation176_spill] sm:$0xff] }
 0x561   : > { %v16675_v38 = vpack.c.bf16 %v16673_v15, %v16674_v31  ;;  %v16686_v36 = vld [vmem:[#allocation174_spill] sm:$0xff] }
 0x562   : > { %8458 = vmatpush1.bf16.msra.mxu0 %v16662_v11  ;;  %v16676_v11 = vld [vmem:[#allocation169_spill] sm:$0xff]  ;;  %v16692_v31 = vld [vmem:[#allocation178_spill] sm:$0xff] }
 0x563   : > { %8842 = vmatpush1.bf16.msra.mxu1 %v16663_v14  ;;  %8460 = vmatprep.subr.bf16.mxu0 %v16666_v3  ;;  %v16678_v28 = vpack.c.bf16 %v16676_v11, %v16677_v9  ;;  %v16679_v14 = vld [vmem:[#allocation171_spill] sm:$0xff]  ;;  %v16682_v3 = vld [vmem:[#allocation173_spill] sm:$0xff]  ;;  %v16695_v9 = vld [vmem:[#allocation180_spill] sm:$0xff] }
 0x564   : > { %8844 = vmatprep.subr.bf16.mxu1 %v16669_v43  ;;  %v16681_v62 = vpack.c.bf16 %v16679_v14, %v16680_v39  ;;  %v16684_v34 = vpack.c.bf16 %v16682_v3, %v16683_v16  ;;  %v16685_v43 = vld [vmem:[#allocation175_spill] sm:$0xff]  ;;  %v16701_v16 = vld [vmem:[#allocation186_spill] sm:$0xff] }
 0x565   : > { %v16687_v24 = vpack.c.bf16 %v16685_v43, %v16686_v36  ;;  %v16698_v39 = vld [vmem:[#allocation183_spill] sm:$0xff]  ;;  %v16704_v36 = vld [vmem:[#allocation188_spill] sm:$0xff] }
 0x566   : > { %8462 = vmatpush1.bf16.msra.mxu0 %v16672_v6  ;;  %v16688_v6 = vld [vmem:[#allocation177_spill] sm:$0xff] }
 0x567   : > { %8846 = vmatpush1.bf16.msra.mxu1 %v16675_v38  ;;  %8464 = vmatprep.subr.bf16.mxu0 %v16678_v28  ;;  %v16690_v15 = vpack.c.bf16 %v16688_v6, %v16689_v33  ;;  %v16691_v38 = vld [vmem:[#allocation179_spill] sm:$0xff]  ;;  %v16694_v28 = vld [vmem:[#allocation181_spill] sm:$0xff]  ;;  %v16707_v33 = vld [vmem:[#allocation192_spill] sm:$0xff] }
 0x568   : > { %8848 = vmatprep.subr.bf16.mxu1 %v16681_v62  ;;  %v16693_v11 = vpack.c.bf16 %v16691_v38, %v16692_v31  ;;  %v16696_v14 = vpack.c.bf16 %v16694_v28, %v16695_v9  ;;  %v16697_v62 = vld [vmem:[#allocation184_spill] sm:$0xff]  ;;  %v16710_v31 = vld [vmem:[#allocation194_spill] sm:$0xff]  ;;  %v16713_v9 = vld [vmem:[#allocation197_spill] sm:$0xff] }
 0x569   : > { %v16699_v3 = vpack.c.bf16 %v16697_v62, %v16698_v39  ;;  %v16716_v39 = vld [vmem:[#allocation201_spill] sm:$0xff] }
 0x56a   : > { %8466 = vmatpush1.bf16.msra.mxu0 %v16684_v34  ;;  %v16700_v34 = vld [vmem:[#allocation187_spill] sm:$0xff] }
 0x56b   : > { %8850 = vmatpush1.bf16.msra.mxu1 %v16687_v24  ;;  %8468 = vmatprep.subr.bf16.mxu0 %v16690_v15  ;;  %v16702_v43 = vpack.c.bf16 %v16700_v34, %v16701_v16  ;;  %v16703_v24 = vld [vmem:[#allocation190_spill] sm:$0xff]  ;;  %v16706_v15 = vld [vmem:[#allocation193_spill] sm:$0xff]  ;;  %v16719_v16 = vld [vmem:[#allocation204_spill] sm:$0xff] }
 0x56c   : > { %8852 = vmatprep.subr.bf16.mxu1 %v16693_v11  ;;  %v16705_v6 = vpack.c.bf16 %v16703_v24, %v16704_v36  ;;  %v16708_v38 = vpack.c.bf16 %v16706_v15, %v16707_v33  ;;  %v16709_v11 = vld [vmem:[#allocation196_spill] sm:$0xff]  ;;  %v16722_v36 = vld [vmem:[#allocation207_spill] sm:$0xff] }
 0x56d   : > { %v16711_v28 = vpack.c.bf16 %v16709_v11, %v16710_v31  ;;  %v16725_v11 = vld [vmem:[#allocation155_spill] sm:$0xff] }
 0x56e   : > { %8470 = vmatpush1.bf16.msra.mxu0 %v16696_v14  ;;  %v16712_v14 = vld [vmem:[#allocation199_spill] sm:$0xff] }
 0x56f   : > { %8854 = vmatpush1.bf16.msra.mxu1 %v16699_v3  ;;  %8472 = vmatprep.subr.bf16.mxu0 %v16702_v43  ;;  %v16714_v62 = vpack.c.bf16 %v16712_v14, %v16713_v9  ;;  %v16715_v3 = vld [vmem:[#allocation202_spill] sm:$0xff]  ;;  %v16718_v43 = vld [vmem:[#allocation205_spill] sm:$0xff] }
 0x570   : > { %8856 = vmatprep.subr.bf16.mxu1 %v16705_v6  ;;  %v16717_v34 = vpack.c.bf16 %v16715_v3, %v16716_v39  ;;  %v16720_v24 = vpack.c.bf16 %v16718_v43, %v16719_v16  ;;  %v16721_v6 = vld [vmem:[#allocation208_spill] sm:$0xff]  ;;  %v16738_v43 = vld [vmem:[#allocation47_spill] sm:$0xff] }
 0x571   : > { %v16723_v15 = vpack.c.bf16 %v16721_v6, %v16722_v36  ;;  %v16728_v3 = vld [vmem:[#allocation256_spill] sm:$0xff]  ;;  %v16731_v6 = vld [vmem:[#allocation157_spill] sm:$0xff]  ;;  %v16735_v36 = vld [vmem:[#allocation159_spill] sm:$0xff] }
 0x572   : > { %8474 = vmatpush1.bf16.msra.mxu0 %v16708_v38  ;;  %v16724_v38 = vld [vmem:[#allocation17_spill] sm:$0xff]  ;;  %v16792_v16 = vld [vmem:[#allocation203_spill] sm:$0xff] }
 0x573   : > { %8858 = vmatpush1.bf16.msra.mxu1 %v16711_v28  ;;  %8476 = vmatprep.subr.bf16.mxu0 %v16714_v62  ;;  %v16726_v28 = vld [vmem:[#allocation251_spill] sm:$0xff]  ;;  %v16727_v62 = vld [vmem:[#allocation22_spill] sm:$0xff] }
 0x574   : > { %8860 = vmatprep.subr.bf16.mxu1 %v16717_v34  ;;  %v16729_v34 = vld [vmem:[#allocation156_spill] sm:$0xff] }
 0x576   : > { %8478 = vmatpush1.bf16.msra.mxu0 %v16720_v24  ;;  %v16730_v24 = vld [vmem:[#allocation28_spill] sm:$0xff] }
 0x577   : > { %8862 = vmatpush1.bf16.msra.mxu1 %v16723_v15  ;;  %8480 = vmatprep.subr.bf16.mxu0 %v16724_v38  ;;  %v16732_v15 = vld [vmem:[#allocation33_spill] sm:$0xff]  ;;  %v16733_v38 = vld [vmem:[#allocation158_spill] sm:$0xff] }
 0x578   : > { %8864 = vmatprep.subr.bf16.mxu1 %v16725_v11  ;;  %v16734_v11 = vld [vmem:[#allocation37_spill] sm:$0xff] }
 0x579   : > { %3346 = vmatmul.mubr.f32.vlgmr.msra.gmra.mrb[2].mxu0 %v16726_v28 }
 0x57a   : > { %4630 = vmatmul.mubr.f32.vlgmr.msra.gmra.mrb[2].mxu1 %v16726_v28  ;;  %8482 = vmatpush1.bf16.msra.mxu0 %v16727_v62  ;;  %v16736_v28 = vld [vmem:[#allocation43_spill] sm:$0xff]  ;;  %v16737_v62 = vld [vmem:[#allocation160_spill] sm:$0xff] }
 0x57b   : > { %3483 = vmatprep.mubr.f32.mxu0 %v16728_v3  ;;  %8866 = vmatpush1.bf16.msra.mxu1 %v16729_v34  ;;  %v16739_v34 = vld [vmem:[#allocation161_spill] sm:$0xff] }
 0x57c   : > { %4767 = vmatprep.mubr.f32.mxu1 %v16728_v3  ;;  %8484 = vmatprep.subr.bf16.mxu0 %v16730_v24  ;;  %v16740_v3 = vld [vmem:[#allocation52_spill] sm:$0xff]  ;;  %v16741_v24 = vld [vmem:[#allocation162_spill] sm:$0xff] }
 0x57d   : > { %8868 = vmatprep.subr.bf16.mxu1 %v16731_v6  ;;  %v16742_v6 = vld [vmem:[#allocation57_spill] sm:$0xff] }
 0x57e   : > { %8486 = vmatpush1.bf16.msra.mxu0 %v16732_v15  ;;  %v16743_v15 = vld [vmem:[#allocation163_spill] sm:$0xff] }
 0x57f   : > { %8870 = vmatpush1.bf16.msra.mxu1 %v16733_v38  ;;  %8488 = vmatprep.subr.bf16.mxu0 %v16734_v11  ;;  %v16744_v38 = vld [vmem:[#allocation62_spill] sm:$0xff]  ;;  %v16745_v11 = vld [vmem:[#allocation164_spill] sm:$0xff] }
 0x580   : > { %8872 = vmatprep.subr.bf16.mxu1 %v16735_v36  ;;  %v16746_v36 = vld [vmem:[#allocation69_spill] sm:$0xff] }
 0x582   : > { %8490 = vmatpush1.bf16.msra.mxu0 %v16736_v28  ;;  %v16747_v28 = vld [vmem:[#allocation165_spill] sm:$0xff] }
 0x583   : > { %8874 = vmatpush1.bf16.msra.mxu1 %v16737_v62  ;;  %8492 = vmatprep.subr.bf16.mxu0 %v16738_v43  ;;  %v16748_v62 = vld [vmem:[#allocation76_spill] sm:$0xff] }
 0x584   : > { %8876 = vmatprep.subr.bf16.mxu1 %v16739_v34  ;;  %v16749_v43 = vld [vmem:[#allocation64_spill] sm:$0xff]  ;;  %v16750_v34 = vld [vmem:[#allocation83_spill] sm:$0xff] }
 0x586   : > { %8494 = vmatpush1.bf16.msra.mxu0 %v16740_v3  ;;  %v16751_v3 = vld [vmem:[#allocation68_spill] sm:$0xff] }
 0x587   : > { %8878 = vmatpush1.bf16.msra.mxu1 %v16741_v24  ;;  %8496 = vmatprep.subr.bf16.mxu0 %v16742_v6  ;;  %v16752_v24 = vld [vmem:[#allocation90_spill] sm:$0xff]  ;;  %v16753_v6 = vld [vmem:[#allocation73_spill] sm:$0xff] }
 0x588   : > { %8880 = vmatprep.subr.bf16.mxu1 %v16743_v15  ;;  %v16754_v15 = vld [vmem:[#allocation97_spill] sm:$0xff] }
 0x58a   : > { %8498 = vmatpush1.bf16.msra.mxu0 %v16744_v38  ;;  %v16755_v38 = vld [vmem:[#allocation74_spill] sm:$0xff] }
 0x58b   : > { %8882 = vmatpush1.bf16.msra.mxu1 %v16745_v11  ;;  %8500 = vmatprep.subr.bf16.mxu0 %v16746_v36  ;;  %v16756_v11 = vld [vmem:[#allocation104_spill] sm:$0xff]  ;;  %v16757_v36 = vld [vmem:[#allocation78_spill] sm:$0xff] }
 0x58c   : > { %8884 = vmatprep.subr.bf16.mxu1 %v16747_v28  ;;  %v16758_v28 = vld [vmem:[#allocation111_spill] sm:$0xff] }
 0x58e   : > { %8502 = vmatpush1.bf16.msra.mxu0 %v16748_v62  ;;  %v16759_v62 = vld [vmem:[#allocation82_spill] sm:$0xff] }
 0x58f   : > { %8886 = vmatpush1.bf16.msra.mxu1 %v16749_v43  ;;  %8504 = vmatprep.subr.bf16.mxu0 %v16750_v34  ;;  %v16760_v43 = vld [vmem:[#allocation117_spill] sm:$0xff]  ;;  %v16761_v34 = vld [vmem:[#allocation87_spill] sm:$0xff] }
 0x590   : > { %8888 = vmatprep.subr.bf16.mxu1 %v16751_v3  ;;  %v16762_v3 = vld [vmem:[#allocation124_spill] sm:$0xff] }
 0x592   : > { %8506 = vmatpush1.bf16.msra.mxu0 %v16752_v24  ;;  %v16763_v24 = vld [vmem:[#allocation88_spill] sm:$0xff] }
 0x593   : > { %8890 = vmatpush1.bf16.msra.mxu1 %v16753_v6  ;;  %8508 = vmatprep.subr.bf16.mxu0 %v16754_v15  ;;  %v16764_v6 = vld [vmem:[#allocation130_spill] sm:$0xff]  ;;  %v16765_v15 = vld [vmem:[#allocation92_spill] sm:$0xff] }
 0x594   : > { %8892 = vmatprep.subr.bf16.mxu1 %v16755_v38  ;;  %v16766_v38 = vld [vmem:[#allocation135_spill] sm:$0xff] }
 0x596   : > { %8510 = vmatpush1.bf16.msra.mxu0 %v16756_v11  ;;  %v16767_v11 = vld [vmem:[#allocation96_spill] sm:$0xff] }
 0x597   : > { %8894 = vmatpush1.bf16.msra.mxu1 %v16757_v36  ;;  %8512 = vmatprep.subr.bf16.mxu0 %v16758_v28  ;;  %v16768_v36 = vld [vmem:[#allocation140_spill] sm:$0xff]  ;;  %v16769_v28 = vld [vmem:[#allocation101_spill] sm:$0xff] }
 0x598   : > { %8896 = vmatprep.subr.bf16.mxu1 %v16759_v62  ;;  %v16770_v62 = vld [vmem:[#allocation145_spill] sm:$0xff] }
 0x59a   : > { %8514 = vmatpush1.bf16.msra.mxu0 %v16760_v43  ;;  %v16771_v43 = vld [vmem:[#allocation102_spill] sm:$0xff] }
 0x59b   : > { %8898 = vmatpush1.bf16.msra.mxu1 %v16761_v34  ;;  %8516 = vmatprep.subr.bf16.mxu0 %v16762_v3  ;;  %v16772_v34 = vld [vmem:[#allocation150_spill] sm:$0xff] }
 0x59c   : > { %8900 = vmatprep.subr.bf16.mxu1 %v16763_v24  ;;  %v16773_v3 = vld [vmem:[#allocation106_spill] sm:$0xff] }
 0x59d   : > { %v16774_v24 = vld [vmem:[#allocation110_spill] sm:$0xff] }
 0x59e   : > { %8518 = vmatpush1.bf16.msra.mxu0 %v16764_v6  ;;  %v16775_v6 = vld [vmem:[#allocation115_spill] sm:$0xff] }
 0x59f   : > { %8902 = vmatpush1.bf16.msra.mxu1 %v16765_v15  ;;  %8520 = vmatprep.subr.bf16.mxu0 %v16766_v38  ;;  %v16776_v15 = vld [vmem:[#allocation119_spill] sm:$0xff] }
 0x5a0   : > { %8904 = vmatprep.subr.bf16.mxu1 %v16767_v11  ;;  %v16777_v38 = vld [vmem:[#allocation123_spill] sm:$0xff]  ;;  %v16778_v11 = vld [vmem:[#allocation128_spill] sm:$0xff] }
 0x5a2   : > { %8522 = vmatpush1.bf16.msra.mxu0 %v16768_v36  ;;  %v16779_v36 = vld [vmem:[#allocation166_spill] sm:$0xff] }
 0x5a3   : > { %8906 = vmatpush1.bf16.msra.mxu1 %v16769_v28  ;;  %8524 = vmatprep.subr.bf16.mxu0 %v16770_v62  ;;  %v16780_v28 = vld [vmem:[#allocation167_spill] sm:$0xff]  ;;  %v16781_v62 = vld [vmem:[#allocation182_spill] sm:$0xff] }
 0x5a4   : > { %8908 = vmatprep.subr.bf16.mxu1 %v16771_v43  ;;  %v16782_v43 = vld [vmem:[#allocation185_spill] sm:$0xff] }
 0x5a6   : > { %8526 = vmatpush1.bf16.msra.mxu0 %v16772_v34  ;;  %v16783_v34 = vld [vmem:[#allocation189_spill] sm:$0xff] }
 0x5a7   : > { %8910 = vmatpush1.bf16.msra.mxu1 %v16773_v3  ;;  %8528 = vmatprep.subr.bf16.mxu0 %v16774_v24  ;;  %v16784_v3 = vld [vmem:[#allocation191_spill] sm:$0xff] }
 0x5a8   : > { %8912 = vmatprep.subr.bf16.mxu1 %v16775_v6  ;;  %v16785_v24 = vld [vmem:[#allocation195_spill] sm:$0xff]  ;;  %v16786_v6 = vld [vmem:[#allocation198_spill] sm:$0xff] }
 0x5aa   : > { %8530 = vmatpush1.bf16.msra.mxu0 %v16776_v15 }
 0x5ab   : > { %8914 = vmatpush1.bf16.msra.mxu1 %v16777_v38  ;;  %8532 = vmatprep.subr.bf16.mxu0 %v16778_v11  ;;  %v16787_v38 = vand.u32 4294901760, %v16596_v19  ;;  %v16788_v11 = vand.u32 4294901760, %v16597_v30  ;;  %v16796_v19 = vand.u32 4294901760, %v16603_v53  ;;  %v16797_v30 = vand.u32 4294901760, %v16604_v21 }
 0x5ac   : > { %8916 = vmatprep.subr.bf16.mxu1 %v16779_v36  ;;  %v16789_v36 = vld [vmem:[#allocation200_spill] sm:$0xff]  ;;  %v16803_v53 = vand.u32 4294901760, %v16610_v51  ;;  %v16804_v21 = vand.u32 4294901760, %v16611_v63  ;;  %v16814_v63 = vld [vmem:[#allocation41_spill] sm:$0xff] }
 0x5ad   : > { %v8543_v15 = vpack.c.bf16 %v16788_v11, %v16787_v38  ;;  %v8929_v11 = vpack.c.bf16 %v16797_v30, %v16796_v19  ;;  %v16812_v51 = vld [vmem:[#allocation40_spill] sm:$0xff] }
 0x5ae   : > { %8534 = vmatpush1.bf16.msra.mxu0 %v16780_v28  ;;  %v16790_v28 = vand.u32 4294901760, %v16598_v1  ;;  %v16798_v1 = vand.u32 4294901760, %v16605_v26  ;;  %v16806_v26 = vand.u32 4294901760, %v16612_v55 }
 0x5af   : > { %8918 = vmatpush1.bf16.msra.mxu1 %v16781_v62  ;;  %8536 = vmatprep.subr.bf16.mxu0 %v16782_v43  ;;  %v16791_v62 = vand.u32 4294901760, %v16599_v47  ;;  %v16799_v47 = vand.u32 4294901760, %v16606_v17  ;;  %v16807_v17 = vand.u32 4294901760, %v16613_v0 }
 0x5b0   : > { %8920 = vmatprep.subr.bf16.mxu1 %v16783_v34 }
 0x5b1   : > { %v8927_v43 = vpack.c.bf16 %v16791_v62, %v16790_v28  ;;  %v8547_v38 = vpack.c.bf16 %v16799_v47, %v16798_v1  ;;  %v16800_v28 = vld [vmem:[#allocation253_spill] sm:$0xff]  ;;  %v16815_v1 = vand.u32 4294901760, %v16814_v63 }
 0x5b2   : > { %8538 = vmatpush1.bf16.msra.mxu0 %v16784_v3  ;;  %v16793_v3 = vand.u32 4294901760, %v16601_v2  ;;  %v16801_v2 = vand.u32 4294901760, %v16607_v52  ;;  %v16805_v62 = vld [vmem:[#allocation249_spill] sm:$0xff]  ;;  %v16808_v52 = vld [vmem:[#allocation38_spill] sm:$0xff] }
 0x5b3   : > { %8922 = vmatpush1.bf16.msra.mxu1 %v16785_v24  ;;  %8540 = vmatprep.subr.bf16.mxu0 %v16786_v6  ;;  %v16794_v24 = vand.u32 4294901760, %v16602_v12  ;;  %v16795_v6 = vld [vmem:[#allocation206_spill] sm:$0xff]  ;;  %v16802_v12 = vand.u32 4294901760, %v16608_v59  ;;  %v16810_v59 = vld [vmem:[#allocation39_spill] sm:$0xff] }
 0x5b4   : > { %8924 = vmatprep.subr.bf16.mxu1 %v16789_v36  ;;  %v16811_v19 = vand.u32 4294901760, %v16810_v59  ;;  %v16826_v59 = vld [vmem:[#allocation49_spill] sm:$0xff] }
 0x5b5   : > { %v8545_v34 = vpack.c.bf16 %v16794_v24, %v16793_v3  ;;  %v8931_v3 = vpack.c.bf16 %v16802_v12, %v16801_v2  ;;  %v8933_v24 = vpack.c.bf16 %v16807_v17, %v16806_v26  ;;  %v16818_v2 = vld [vmem:[#allocation44_spill] sm:$0xff]  ;;  %v16822_v26 = vld [vmem:[#allocation46_spill] sm:$0xff] }
 0x5b6   : > { %8542 = vmatpush1.bf16.msra.mxu0 %v16792_v16  ;;  %v16819_v0 = vand.u32 4294901760, %v16818_v2  ;;  %v16823_v17 = vand.u32 4294901760, %v16822_v26 }
 0x5b7   : > { %8926 = vmatpush1.bf16.msra.mxu1 %v16795_v6  ;;  %8544 = vmatprep.subr.bf16.mxu0 %v8543_v15  ;;  %v16809_v15 = vand.u32 4294901760, %v16808_v52 }
 0x5b8   : > { %8928 = vmatprep.subr.bf16.mxu1 %v8927_v43  ;;  %v8549_v43 = vpack.c.bf16 %v16804_v21, %v16803_v53  ;;  %v16820_v53 = vld [vmem:[#allocation45_spill] sm:$0xff] }
 0x5b9   : > { %3487 = vmatmul.mubr.f32.vlgmr.msra.gmra.mrb[2].mxu0 %v16800_v28  ;;  %v8551_v30 = vpack.c.bf16 %v16811_v19, %v16809_v15  ;;  %v16821_v21 = vand.u32 4294901760, %v16820_v53  ;;  %v16827_v19 = vand.u32 4294901760, %v16826_v59 }
 0x5ba   : > { %4771 = vmatmul.mubr.f32.vlgmr.msra.gmra.mrb[2].mxu1 %v16800_v28  ;;  %8546 = vmatpush1.bf16.msra.mxu0 %v8545_v34  ;;  %v16813_v34 = vand.u32 4294901760, %v16812_v51  ;;  %v2409_v28 = vld [vmem:[#allocation9 + $0x1b0] sm:$0xff] }
 0x5bb   : > { %3750 = vmatprep.mubr.f32.mxu0 %v16805_v62  ;;  %8930 = vmatpush1.bf16.msra.mxu1 %v8929_v11  ;;  %v16816_v11 = vld [vmem:[#allocation42_spill] sm:$0xff]  ;;  %v8937_v52 = vpack.c.bf16 %v16823_v17, %v16821_v21  ;;  %v16838_v21 = vld [vmem:[#allocation56_spill] sm:$0xff] }
 0x5bc   : > { %5034 = vmatprep.mubr.f32.mxu1 %v16805_v62  ;;  %8548 = vmatprep.subr.bf16.mxu0 %v8547_v38  ;;  %v8935_v47 = vpack.c.bf16 %v16815_v1, %v16813_v34  ;;  %v16817_v55 = vand.u32 4294901760, %v16816_v11  ;;  %v16824_v38 = vld [vmem:[#allocation48_spill] sm:$0xff]  ;;  %v16830_v34 = vld [vmem:[#allocation51_spill] sm:$0xff]  ;;  %v16832_v11 = vld [vmem:[#allocation53_spill] sm:$0xff]  ;;  %v16839_v26 = vand.u32 4294901760, %v16838_v21 }
 0x5bd   : > { %8932 = vmatprep.subr.bf16.mxu1 %v8931_v3  ;;  %v16825_v15 = vand.u32 4294901760, %v16824_v38  ;;  %v16828_v3 = vld [vmem:[#allocation50_spill] sm:$0xff]  ;;  %v16831_v63 = vand.u32 4294901760, %v16830_v34 }
 0x5be   : > { %8550 = vmatpush1.bf16.msra.mxu0 %v8549_v43  ;;  %v8553_v12 = vpack.c.bf16 %v16819_v0, %v16817_v55  ;;  %v16829_v43 = vand.u32 4294901760, %v16828_v3  ;;  %v16836_v0 = vld [vmem:[#allocation55_spill] sm:$0xff]  ;;  %v16840_v38 = vld [vmem:[#allocation58_spill] sm:$0xff]  ;;  %v16844_v3 = vld [vmem:[#allocation60_spill] sm:$0xff] }
 0x5bf   : > { %8934 = vmatpush1.bf16.msra.mxu1 %v8933_v24  ;;  %8552 = vmatprep.subr.bf16.mxu0 %v8551_v30  ;;  %v8555_v51 = vpack.c.bf16 %v16827_v19, %v16825_v15  ;;  %v16833_v24 = vand.u32 4294901760, %v16832_v11  ;;  %v16834_v30 = vld [vmem:[#allocation54_spill] sm:$0xff]  ;;  %v16837_v53 = vand.u32 4294901760, %v16836_v0  ;;  %v16842_v15 = vld [vmem:[#allocation59_spill] sm:$0xff] }
 0x5c0   : > { %8936 = vmatprep.subr.bf16.mxu1 %v8935_v47  ;;  %v8939_v1 = vpack.c.bf16 %v16831_v63, %v16829_v43  ;;  %v16835_v55 = vand.u32 4294901760, %v16834_v30  ;;  %v16841_v47 = vand.u32 4294901760, %v16840_v38  ;;  %v16843_v59 = vand.u32 4294901760, %v16842_v15  ;;  %v16846_v43 = vld [vmem:[#allocation61_spill] sm:$0xff]  ;;  %v16848_v11 = vld [vmem:[#allocation63_spill] sm:$0xff]  ;;  %v16856_v38 = vld [vmem:[#allocation70_spill] sm:$0xff] }
 0x5c1   : > { %v8941_v17 = vpack.c.bf16 %v16839_v26, %v16837_v53  ;;  %v16847_v34 = vand.u32 4294901760, %v16846_v43  ;;  %v16854_v53 = vld [vmem:[#allocation67_spill] sm:$0xff] }
 0x5c2   : > { %8554 = vmatpush1.bf16.msra.mxu0 %v8553_v12  ;;  %v8557_v2 = vpack.c.bf16 %v16835_v55, %v16833_v24  ;;  %v8559_v19 = vpack.c.bf16 %v16843_v59, %v16841_v47  ;;  %v16845_v12 = vand.u32 4294901760, %v16844_v3  ;;  %v16852_v55 = vld [vmem:[#allocation66_spill] sm:$0xff]  ;;  %v16855_v21 = vand.u32 4294901760, %v16854_v53  ;;  %v16858_v47 = vld [vmem:[#allocation71_spill] sm:$0xff]  ;;  %v16871_v53 = vld [vmem:[#allocation85_spill] sm:$0xff] }
 0x5c3   : > { %8938 = vmatpush1.bf16.msra.mxu1 %v8937_v52  ;;  %8556 = vmatprep.subr.bf16.mxu0 %v8555_v51  ;;  %v16849_v52 = vand.u32 4294901760, %v16848_v11  ;;  %v16850_v51 = vld [vmem:[#allocation65_spill] sm:$0xff]  ;;  %v16853_v0 = vand.u32 4294901760, %v16852_v55  ;;  %v16859_v15 = vand.u32 4294901760, %v16858_v47  ;;  %v16861_v3 = vld [vmem:[#allocation75_spill] sm:$0xff] }
 0x5c4   : > { %8940 = vmatprep.subr.bf16.mxu1 %v8939_v1  ;;  %v8943_v63 = vpack.c.bf16 %v16847_v34, %v16845_v12  ;;  %v16851_v24 = vand.u32 4294901760, %v16850_v51  ;;  %v16857_v1 = vand.u32 4294901760, %v16856_v38  ;;  %v16862_v12 = vand.u32 4294901760, %v16861_v3  ;;  %v16863_v34 = vld [vmem:[#allocation77_spill] sm:$0xff] }
 0x5c5   : > { %v8945_v26 = vpack.c.bf16 %v16855_v21, %v16853_v0  ;;  %v16867_v51 = vand.u32 4294901760, %v16644_v46  ;;  %v16874_v38 = vld [vmem:[#allocation89_spill] sm:$0xff]  ;;  %v16880_v3 = vand.u32 4294901760, %v16654_v32  ;;  %v16887_v32 = vand.u32 4294901760, %v16522_v57 }
 0x5c6   : > { %8558 = vmatpush1.bf16.msra.mxu0 %v8557_v2  ;;  %v8561_v30 = vpack.c.bf16 %v16851_v24, %v16849_v52  ;;  %v8563_v59 = vpack.c.bf16 %v16859_v15, %v16857_v1  ;;  %v16860_v2 = vand.u32 4294901760, %v16640_v49  ;;  %v16868_v24 = vld [vmem:[#allocation81_spill] sm:$0xff]  ;;  %v16872_v49 = vand.u32 4294901760, %v16871_v53 }
 0x5c7   : > { %8942 = vmatpush1.bf16.msra.mxu1 %v8941_v17  ;;  %8560 = vmatprep.subr.bf16.mxu0 %v8559_v19  ;;  %v16864_v17 = vand.u32 4294901760, %v16863_v34  ;;  %v16865_v19 = vld [vmem:[#allocation79_spill] sm:$0xff]  ;;  %v16869_v55 = vand.u32 4294901760, %v16868_v24  ;;  %v16875_v1 = vand.u32 4294901760, %v16874_v38  ;;  %v16877_v15 = vand.u32 4294901760, %v16651_v13 }
 0x5c8   : > { %8944 = vmatprep.subr.bf16.mxu1 %v8943_v63  ;;  %v8947_v43 = vpack.c.bf16 %v16862_v12, %v16860_v2  ;;  %v16866_v11 = vand.u32 4294901760, %v16865_v19  ;;  %v16870_v63 = vand.u32 4294901760, %v16646_v40  ;;  %v16879_v40 = vand.u32 4294901760, %v16653_v27 }
 0x5c9   : > { %v8949_v0 = vpack.c.bf16 %v16869_v55, %v16867_v51  ;;  %v16884_v13 = vand.u32 4294901760, %v16656_v23  ;;  %v16886_v27 = vand.u32 4294901760, %v16519_v4  ;;  %v16888_v19 = vand.u32 4294901760, %v16531_v44 }
 0x5ca   : > { %8562 = vmatpush1.bf16.msra.mxu0 %v8561_v30  ;;  %v8565_v52 = vpack.c.bf16 %v16866_v11, %v16864_v17  ;;  %v8567_v21 = vpack.c.bf16 %v16872_v49, %v16870_v63  ;;  %v16873_v30 = vand.u32 4294901760, %v16648_v7  ;;  %v16881_v7 = vand.u32 4294901760, %v16496_v20  ;;  %v16905_v49 = vld [vmem:[#allocation136_spill] sm:$0xff] }
 0x5cb   : > { %8946 = vmatpush1.bf16.msra.mxu1 %v8945_v26  ;;  %8564 = vmatprep.subr.bf16.mxu0 %v8563_v59  ;;  %v16876_v26 = vand.u32 4294901760, %v16650_v10  ;;  %v16878_v59 = vand.u32 4294901760, %v16652_v29  ;;  %v16883_v10 = vand.u32 4294901760, %v16655_v41  ;;  %v16885_v17 = vand.u32 4294901760, %v16514_v37 }
 0x5cc   : > { %8948 = vmatprep.subr.bf16.mxu1 %v8947_v43  ;;  %v8951_v47 = vpack.c.bf16 %v16875_v1, %v16873_v30  ;;  %v8571_v12 = vpack.c.bf16 %v16881_v7, %v16880_v3  ;;  %v16882_v43 = vand.u32 4294901760, %v16503_v42  ;;  %v8957_v20 = vpack.c.bf16 %v16887_v32, %v16886_v27  ;;  %v16907_v30 = vld [vmem:[#allocation137_spill] sm:$0xff]  ;;  %v16919_v3 = vld [vmem:[#allocation144_spill] sm:$0xff] }
 0x5cd   : > { %v8569_v46 = vpack.c.bf16 %v16877_v15, %v16876_v26  ;;  %v8953_v2 = vpack.c.bf16 %v16879_v40, %v16878_v59  ;;  %v8573_v29 = vpack.c.bf16 %v16885_v17, %v16884_v13  ;;  %v16889_v42 = vand.u32 4294901760, %v16544_v48  ;;  %v16917_v40 = vld [vmem:[#allocation143_spill] sm:$0xff]  ;;  %v16927_v32 = vld [vmem:[#allocation149_spill] sm:$0xff] }
 0x5ce   : > { %8566 = vmatpush1.bf16.msra.mxu0 %v8565_v52  ;;  %v8955_v34 = vpack.c.bf16 %v16883_v10, %v16882_v43  ;;  %v16890_v41 = vand.u32 4294901760, %v16545_v25  ;;  %v16891_v23 = vand.u32 4294901760, %v16548_v60  ;;  %v16892_v37 = vand.u32 4294901760, %v16555_v56  ;;  %v16921_v43 = vld [vmem:[#allocation146_spill] sm:$0xff] }
 0x5cf   : > { %8950 = vmatpush1.bf16.msra.mxu1 %v8949_v0  ;;  %8568 = vmatprep.subr.bf16.mxu0 %v8567_v21  ;;  %v8575_v11 = vpack.c.bf16 %v16889_v42, %v16888_v19  ;;  %v16893_v51 = vand.u32 4294901760, %v16556_v45  ;;  %v16894_v57 = vand.u32 4294901760, %v16559_v18  ;;  %v16895_v44 = vand.u32 4294901760, %v16560_v8  ;;  %v16929_v42 = vld [vmem:[#allocation151_spill] sm:$0xff] }
 0x5d0   : > { %8952 = vmatprep.subr.bf16.mxu1 %v8951_v47  ;;  %v8959_v52 = vpack.c.bf16 %v16891_v23, %v16890_v41  ;;  %v16896_v24 = vand.u32 4294901760, %v16561_v22  ;;  %v16897_v25 = vand.u32 4294901760, %v16564_v61  ;;  %v16898_v60 = vand.u32 4294901760, %v16565_v54  ;;  %v16903_v22 = vld [vmem:[#allocation134_spill] sm:$0xff]  ;;  %v16911_v47 = vld [vmem:[#allocation139_spill] sm:$0xff]  ;;  %v16931_v41 = vld [vmem:[#allocation152_spill] sm:$0xff] }
 0x5d1   : > { %v8577_v4 = vpack.c.bf16 %v16893_v51, %v16892_v37  ;;  %v8961_v48 = vpack.c.bf16 %v16895_v44, %v16894_v57  ;;  %v16899_v56 = vand.u32 4294901760, %v16566_v5  ;;  %v16900_v45 = vand.u32 4294901760, %v16413_v58  ;;  %v16909_v5 = vld [vmem:[#allocation138_spill] sm:$0xff]  ;;  %v16933_v37 = vld [vmem:[#allocation153_spill] sm:$0xff] }
 0x5d2   : > { %8570 = vmatpush1.bf16.msra.mxu0 %v8569_v46  ;;  %v8579_v55 = vpack.c.bf16 %v16897_v25, %v16896_v24  ;;  %v16901_v63 = vand.u32 4294901760, %v16415_v50  ;;  %v16902_v8 = vand.u32 4294901760, %v16658_v35  ;;  %v16904_v53 = vand.u32 4294901760, %v16903_v22  ;;  %v16913_v50 = vld [vmem:[#allocation141_spill] sm:$0xff]  ;;  %v16915_v46 = vld [vmem:[#allocation142_spill] sm:$0xff]  ;;  %v16937_v25 = vld [vmem:[#allocation168_spill] sm:$0xff] }
 0x5d3   : > { %8954 = vmatpush1.bf16.msra.mxu1 %v8953_v2  ;;  %8572 = vmatprep.subr.bf16.mxu0 %v8571_v12  ;;  %v8963_v0 = vpack.c.bf16 %v16899_v56, %v16898_v60  ;;  %v16906_v21 = vand.u32 4294901760, %v16905_v49  ;;  %v16908_v54 = vand.u32 4294901760, %v16907_v30  ;;  %v16910_v1 = vand.u32 4294901760, %v16909_v5  ;;  %v2368_v24 = vld [vmem:[#allocation9 + $0x68] sm:$0xff]  ;;  %v16951_v5 = vld [vmem:[#allocation175_spill] sm:$0xff] }
 0x5d4   : > { %8956 = vmatprep.subr.bf16.mxu1 %v8955_v34  ;;  %v8581_v18 = vpack.c.bf16 %v16901_v63, %v16900_v45  ;;  %v8965_v61 = vpack.c.bf16 %v16904_v53, %v16902_v8  ;;  %v16912_v58 = vand.u32 4294901760, %v16911_v47  ;;  %v16914_v15 = vand.u32 4294901760, %v16913_v50  ;;  %v16923_v34 = vld [vmem:[#allocation147_spill] sm:$0xff]  ;;  %v16939_v60 = vld [vmem:[#allocation169_spill] sm:$0xff]  ;;  %v16941_v45 = vld [vmem:[#allocation170_spill] sm:$0xff] }
 0x5d5   : > { %v8583_v38 = vpack.c.bf16 %v16908_v54, %v16906_v21  ;;  %v16916_v59 = vand.u32 4294901760, %v16915_v46  ;;  %v16918_v2 = vand.u32 4294901760, %v16917_v40  ;;  %v16920_v7 = vand.u32 4294901760, %v16919_v3  ;;  %v16945_v53 = vld [vmem:[#allocation172_spill] sm:$0xff]  ;;  %v16947_v49 = vld [vmem:[#allocation173_spill] sm:$0xff]  ;;  %v16949_v54 = vld [vmem:[#allocation174_spill] sm:$0xff] }
 0x5d6   : > { %8574 = vmatpush1.bf16.msra.mxu0 %v8573_v29  ;;  %v8967_v26 = vpack.c.bf16 %v16912_v58, %v16910_v1  ;;  %v16922_v10 = vand.u32 4294901760, %v16921_v43  ;;  %v16924_v13 = vand.u32 4294901760, %v16923_v34  ;;  %v16925_v29 = vld [vmem:[#allocation148_spill] sm:$0xff]  ;;  %v16932_v23 = vand.u32 4294901760, %v16931_v41  ;;  %v2362_v58 = vld [vmem:[#allocation9 + $0x38] sm:$0xff]  ;;  %v16955_v46 = vld [vmem:[#allocation177_spill] sm:$0xff] }
 0x5d7   : > { %8958 = vmatpush1.bf16.msra.mxu1 %v8957_v20  ;;  %8576 = vmatprep.subr.bf16.mxu0 %v8575_v11  ;;  %v8585_v35 = vpack.c.bf16 %v16916_v59, %v16914_v15  ;;  %v8969_v12 = vpack.c.bf16 %v16920_v7, %v16918_v2  ;;  %v16926_v27 = vand.u32 4294901760, %v16925_v29  ;;  %v16928_v20 = vand.u32 4294901760, %v16927_v32  ;;  %v16953_v50 = vld [vmem:[#allocation176_spill] sm:$0xff]  ;;  %v16957_v40 = vld [vmem:[#allocation178_spill] sm:$0xff]  ;;  %v16959_v3 = vld [vmem:[#allocation179_spill] sm:$0xff] }
 0x5d8   : > { %8960 = vmatprep.subr.bf16.mxu1 %v8959_v52  ;;  %v8587_v17 = vpack.c.bf16 %v16924_v13, %v16922_v10  ;;  %v16930_v11 = vand.u32 4294901760, %v16929_v42  ;;  %v16934_v51 = vand.u32 4294901760, %v16933_v37  ;;  %v16940_v56 = vand.u32 4294901760, %v16939_v60  ;;  %v16961_v10 = vld [vmem:[#allocation180_spill] sm:$0xff]  ;;  %v16963_v13 = vld [vmem:[#allocation181_spill] sm:$0xff]  ;;  %v2361_v60 = vld [vmem:[#allocation9 + $0x30] sm:$0xff] }
 0x5d9   : > { %v8971_v19 = vpack.c.bf16 %v16928_v20, %v16926_v27  ;;  %v16942_v63 = vand.u32 4294901760, %v16941_v45  ;;  %v16948_v21 = vand.u32 4294901760, %v16947_v49  ;;  %v16952_v1 = vand.u32 4294901760, %v16951_v5  ;;  %v2359_v32 = vld [vmem:[#allocation9 + $0x20] sm:$0xff] }
 0x5da   : > { %8578 = vmatpush1.bf16.msra.mxu0 %v8577_v4  ;;  %v8589_v52 = vpack.c.bf16 %v16932_v23, %v16930_v11  ;;  %v16935_v4 = vld [vmem:[#allocation154_spill] sm:$0xff]  ;;  %v16954_v15 = vand.u32 4294901760, %v16953_v50  ;;  %v16956_v59 = vand.u32 4294901760, %v16955_v46  ;;  %v16958_v2 = vand.u32 4294901760, %v16957_v40  ;;  %v2367_v20 = vld [vmem:[#allocation9 + $0x60] sm:$0xff] }
 0x5db   : > { %8962 = vmatpush1.bf16.msra.mxu1 %v8961_v48  ;;  %8580 = vmatprep.subr.bf16.mxu0 %v8579_v55  ;;  %v16936_v57 = vand.u32 4294901760, %v16935_v4  ;;  %v2360_v48 = vld [vmem:[#allocation9 + $0x28] sm:$0xff]  ;;  %v16938_v55 = vand.u32 4294901760, %v16937_v25  ;;  %v16960_v7 = vand.u32 4294901760, %v16959_v3  ;;  %v16962_v34 = vand.u32 4294901760, %v16961_v10  ;;  %v16967_v42 = vld [vmem:[#allocation184_spill] sm:$0xff] }
 0x5dc   : > { %8964 = vmatprep.subr.bf16.mxu1 %v8963_v0  ;;  %v16964_v29 = vand.u32 4294901760, %v16963_v13  ;;  %v16968_v11 = vand.u32 4294901760, %v16967_v42  ;;  %v16969_v23 = vld [vmem:[#allocation186_spill] sm:$0xff]  ;;  %v5179_v25 = vand.u32 4294901760, %v2360_v48  ;;  %v16973_v45 = vld [vmem:[#allocation188_spill] sm:$0xff]  ;;  %v16980_v5 = vand.u32 4294901760, %v16710_v31 }
 0x5dd   : > { %v8973_v44 = vpack.c.bf16 %v16936_v57, %v16934_v51  ;;  %v8591_v0 = vpack.c.bf16 %v16940_v56, %v16938_v55  ;;  %v8979_v43 = vpack.c.bf16 %v16960_v7, %v16958_v2  ;;  %v16970_v37 = vand.u32 4294901760, %v16969_v23  ;;  %v16971_v51 = vld [vmem:[#allocation187_spill] sm:$0xff]  ;;  %v2369_v56 = vld [vmem:[#allocation9 + $0x70] sm:$0xff]  ;;  %v2376_v3 = vld [vmem:[#allocation9 + $0xa8] sm:$0xff] }
 0x5de   : > { %8582 = vmatpush1.bf16.msra.mxu0 %v8581_v18  ;;  %v16943_v18 = vld [vmem:[#allocation171_spill] sm:$0xff]  ;;  %v13101_v27 = vpack.c.bf16 %v16964_v29, %v16962_v34  ;;  %v16972_v4 = vand.u32 4294901760, %v16971_v51  ;;  %v5183_v55 = vand.u32 4294901760, %v2368_v24  ;;  %v16983_v46 = vand.u32 4294901760, %v16713_v9  ;;  %v2384_v7 = vld [vmem:[#allocation9 + $0xe8] sm:$0xff]  ;;  %v16986_v10 = vld [vmem:[#allocation202_spill] sm:$0xff] }
 0x5df   : > { %8966 = vmatpush1.bf16.msra.mxu1 %v8965_v61  ;;  %8584 = vmatprep.subr.bf16.mxu0 %v8583_v38  ;;  %v16944_v8 = vand.u32 4294901760, %v16943_v18  ;;  %v16946_v61 = vand.u32 4294901760, %v16945_v53  ;;  %v16950_v38 = vand.u32 4294901760, %v16949_v54  ;;  %v16975_v18 = vld [vmem:[#allocation190_spill] sm:$0xff]  ;;  %v16977_v53 = vand.u32 4294901760, %v16707_v33  ;;  %v16988_v13 = vld [vmem:[#allocation204_spill] sm:$0xff] }
 0x5e0   : > { %8968 = vmatprep.subr.bf16.mxu1 %v8967_v26  ;;  %v2370_v26 = vld [vmem:[#allocation9 + $0x78] sm:$0xff]  ;;  %v13113_v57 = vpack.c.bf16 %v16972_v4, %v16970_v37  ;;  %v6463_v54 = vand.u32 4294901760, %v2362_v58  ;;  %v5181_v33 = vand.u32 4294901760, %v2359_v32  ;;  %v5185_v2 = vand.u32 4294901760, %v2367_v20 }
 0x5e1   : > { %v8975_v22 = vpack.c.bf16 %v16944_v8, %v16942_v63  ;;  %v8593_v30 = vpack.c.bf16 %v16948_v21, %v16946_v61  ;;  %v8977_v47 = vpack.c.bf16 %v16952_v1, %v16950_v38  ;;  %v16974_v63 = vand.u32 4294901760, %v16973_v45  ;;  %v16978_v61 = vld [vmem:[#allocation193_spill] sm:$0xff]  ;;  %v16981_v1 = vld [vmem:[#allocation196_spill] sm:$0xff]  ;;  %v2386_v23 = vld [vmem:[#allocation9 + $0xf8] sm:$0xff] }
 0x5e2   : > { %8586 = vmatpush1.bf16.msra.mxu0 %v8585_v35  ;;  %v8595_v35 = vpack.c.bf16 %v16956_v59, %v16954_v15  ;;  %v16979_v49 = vand.u32 4294901760, %v16978_v61  ;;  %v6467_v38 = vand.u32 4294901760, %v2370_v26  ;;  %v16982_v50 = vand.u32 4294901760, %v16981_v1  ;;  %v16992_v37 = vld [vmem:[#allocation207_spill] sm:$0xff] }
 0x5e3   : > { %8970 = vmatpush1.bf16.msra.mxu1 %v8969_v12  ;;  %8588 = vmatprep.subr.bf16.mxu0 %v8587_v17  ;;  %v16965_v12 = vld [vmem:[#allocation183_spill] sm:$0xff]  ;;  %v16984_v59 = vand.u32 4294901760, %v16712_v14  ;;  %v16987_v31 = vand.u32 4294901760, %v16986_v10  ;;  %v16989_v29 = vand.u32 4294901760, %v16988_v13  ;;  %v6465_v14 = vand.u32 4294901760, %v2361_v60 }
 0x5e4   : > { %8972 = vmatprep.subr.bf16.mxu1 %v8971_v19  ;;  %v16966_v17 = vand.u32 4294901760, %v16965_v12  ;;  %v16976_v19 = vand.u32 4294901760, %v16975_v18  ;;  %v13125_v21 = vpack.c.bf16 %v16979_v49, %v16977_v53  ;;  %v13131_v15 = vpack.c.bf16 %v16982_v50, %v16980_v5  ;;  %v16990_v12 = vld [vmem:[#allocation205_spill] sm:$0xff]  ;;  %v2375_v49 = vld [vmem:[#allocation9 + $0xa0] sm:$0xff]  ;;  %v2394_v10 = vld [vmem:[#allocation9 + $0x138] sm:$0xff] }
 0x5e5   : > { %v13137_v40 = vpack.c.bf16 %v16984_v59, %v16983_v46  ;;  %v16991_v9 = vand.u32 4294901760, %v16990_v12  ;;  %v6469_v42 = vand.u32 4294901760, %v2369_v56  ;;  %v13157_v4 = vpack.c.bf16 %v5183_v55, %v5179_v25  ;;  %v2377_v59 = vld [vmem:[#allocation9 + $0xb0] sm:$0xff] }
 0x5e6   : > { %v13107_v41 = vpack.c.bf16 %v16968_v11, %v16966_v17  ;;  %v13119_v8 = vpack.c.bf16 %v16976_v19, %v16974_v63  ;;  %8590 = vmatpush1.bf16.msra.mxu0 %v8589_v52  ;;  %v16985_v52 = vand.u32 4294901760, %v16716_v39  ;;  %v2378_v11 = vld [vmem:[#allocation9 + $0xb8] sm:$0xff]  ;;  %v13159_v45 = vsub.f32 %v2360_v48, %v5179_v25  ;;  %v2385_v48 = vld [vmem:[#allocation9 + $0xf0] sm:$0xff] }
 0x5e7   : > { %8974 = vmatpush1.bf16.msra.mxu1 %v8973_v44  ;;  %8592 = vmatprep.subr.bf16.mxu0 %v8591_v0  ;;  %v13149_v17 = vpack.c.bf16 %v16991_v9, %v16989_v29  ;;  %v16993_v44 = vand.u32 4294901760, %v16992_v37  ;;  %v16994_v0 = vld [vmem:[#allocation208_spill] sm:$0xff]  ;;  %16996 = vst [vmem:[#allocation100_spill] sm:$0xff] %v13157_v4  ;;  %v13161_v63 = vsub.f32 %v2368_v24, %v5183_v55  ;;  %v5187_v53 = vand.u32 4294901760, %v2376_v3  ;;  %v2392_v55 = vld [vmem:[#allocation9 + $0x128] sm:$0xff] }
 0x5e8   : > { %v13143_v34 = vpack.c.bf16 %v16987_v31, %v16985_v52  ;;  %8976 = vmatprep.subr.bf16.mxu1 %v8975_v22  ;;  %v16995_v51 = vand.u32 4294901760, %v16994_v0  ;;  %16997 = vst [vmem:[#allocation209_spill] sm:$0xff] %v13159_v45  ;;  %v13163_v18 = vpack.c.bf16 %v6467_v38, %v6463_v54  ;;  %v13165_v19 = vsub.f32 %v2362_v58, %v6463_v54  ;;  %v2383_v22 = vld [vmem:[#allocation9 + $0xe0] sm:$0xff]  ;;  %v2400_v54 = vld [vmem:[#allocation9 + $0x168] sm:$0xff]  ;;  %v2402_v31 = vld [vmem:[#allocation9 + $0x178] sm:$0xff] }
 0x5e9   : > { %16998 = vst [vmem:[#allocation210_spill] sm:$0xff] %v13161_v63  ;;  %v5191_v61 = vand.u32 4294901760, %v2384_v7  ;;  %v13167_v5 = vsub.f32 %v2370_v26, %v6467_v38  ;;  %v13169_v1 = vpack.c.bf16 %v5185_v2, %v5181_v33  ;;  %v6471_v50 = vand.u32 4294901760, %v2378_v11 }
 0x5ea   : > { %v13155_v39 = vpack.c.bf16 %v16995_v51, %v16993_v44  ;;  %16999 = vst [vmem:[#allocation211_spill] sm:$0xff] %v13163_v18  ;;  %17000 = vst [vmem:[#allocation212_spill] sm:$0xff] %v13165_v19  ;;  %8594 = vmatpush1.bf16.msra.mxu0 %v8593_v30  ;;  %v6475_v46 = vand.u32 4294901760, %v2386_v23  ;;  %v13171_v24 = vsub.f32 %v2359_v32, %v5181_v33  ;;  %v5189_v38 = vand.u32 4294901760, %v2375_v49 }
 0x5eb   : > { %17001 = vst [vmem:[#allocation107_spill] sm:$0xff] %v13167_v5  ;;  %17002 = vst [vmem:[#allocation213_spill] sm:$0xff] %v13169_v1  ;;  %8978 = vmatpush1.bf16.msra.mxu1 %v8977_v47  ;;  %8596 = vmatprep.subr.bf16.mxu0 %v8595_v35  ;;  %v13173_v25 = vsub.f32 %v2367_v20, %v5185_v2  ;;  %v13175_v58 = vpack.c.bf16 %v6469_v42, %v6465_v14  ;;  %v5193_v52 = vand.u32 4294901760, %v2383_v22  ;;  %v2399_v2 = vld [vmem:[#allocation9 + $0x160] sm:$0xff] }
 0x5ec   : > { %17003 = vst [vmem:[#allocation214_spill] sm:$0xff] %v13171_v24  ;;  %8980 = vmatprep.subr.bf16.mxu1 %v8979_v43  ;;  %v13177_v30 = vsub.f32 %v2361_v60, %v6465_v14  ;;  %v13179_v26 = vsub.f32 %v2369_v56, %v6469_v42  ;;  %v13181_v13 = vpack.c.bf16 %v5191_v61, %v5187_v53  ;;  %v6473_v35 = vand.u32 4294901760, %v2377_v59  ;;  %v2391_v56 = vld [vmem:[#allocation9 + $0x120] sm:$0xff]  ;;  %v2393_v14 = vld [vmem:[#allocation9 + $0x130] sm:$0xff] }
 0x5ed   : > { %17004 = vst [vmem:[#allocation215_spill] sm:$0xff] %v13173_v25  ;;  %17005 = vst [vmem:[#allocation216_spill] sm:$0xff] %v13175_v58  ;;  %v13183_v47 = vsub.f32 %v2376_v3, %v5187_v53  ;;  %v6477_v32 = vand.u32 4294901760, %v2385_v48  ;;  %v13186_v20 = vsub.f32 %v2384_v7, %v5191_v61  ;;  %v13188_v33 = vpack.c.bf16 %v6475_v46, %v6471_v50  ;;  %v2410_v53 = vld [vmem:[#allocation9 + $0x1b8] sm:$0xff] }
 0x5ee   : > { %17006 = vst [vmem:[#allocation108_spill] sm:$0xff] %v13177_v30  ;;  %17007 = vst [vmem:[#allocation217_spill] sm:$0xff] %v13179_v26  ;;  %8598 = vmatpush1.bf16.msra.mxu0 %v13101_v27  ;;  %v5195_v43 = vand.u32 4294901760, %v2392_v55  ;;  %v5199_v60 = vand.u32 4294901760, %v2400_v54  ;;  %v13192_v29 = vsub.f32 %v2378_v11, %v6471_v50  ;;  %v13194_v3 = vsub.f32 %v2386_v23, %v6475_v46  ;;  %v2401_v27 = vld [vmem:[#allocation9 + $0x170] sm:$0xff]  ;;  %v2418_v61 = vld [vmem:[#allocation9 + $0x1f8] sm:$0xff] }
 0x5ef   : > { %17008 = vst [vmem:[#allocation218_spill] sm:$0xff] %v13181_v13  ;;  %17009 = vst [vmem:[#allocation109_spill] sm:$0xff] %v13183_v47  ;;  %8982 = vmatpush1.bf16.msra.mxu1 %v13107_v41  ;;  %8600 = vmatprep.subr.bf16.mxu0 %v13113_v57  ;;  %v6479_v12 = vand.u32 4294901760, %v2394_v10  ;;  %v6483_v9 = vand.u32 4294901760, %v2402_v31  ;;  %v13197_v7 = vpack.c.bf16 %v5193_v52, %v5189_v38  ;;  %v2408_v41 = vld [vmem:[#allocation9 + $0x1a8] sm:$0xff]  ;;  %v5197_v0 = vand.u32 4294901760, %v2391_v56 }
 0x5f0   : > { %17010 = vst [vmem:[#allocation219_spill] sm:$0xff] %v13186_v20  ;;  %17011 = vst [vmem:[#allocation220_spill] sm:$0xff] %v13188_v33  ;;  %8984 = vmatprep.subr.bf16.mxu1 %v13119_v8  ;;  %v13199_v42 = vsub.f32 %v2375_v49, %v5189_v38  ;;  %v13201_v37 = vsub.f32 %v2383_v22, %v5193_v52  ;;  %v13203_v44 = vsub.f32 %v2377_v59, %v6473_v35  ;;  %v2416_v57 = vld [vmem:[#allocation9 + $0x1e8] sm:$0xff]  ;;  %v2407_v46 = vld [vmem:[#allocation9 + $0x1a0] sm:$0xff] }
 0x5f1   : > { %17012 = vst [vmem:[#allocation112_spill] sm:$0xff] %v13192_v29  ;;  %17013 = vst [vmem:[#allocation113_spill] sm:$0xff] %v13194_v3  ;;  %v13205_v11 = vpack.c.bf16 %v6477_v32, %v6473_v35  ;;  %v13207_v23 = vsub.f32 %v2385_v48, %v6477_v32  ;;  %v5201_v51 = vand.u32 4294901760, %v2399_v2  ;;  %v13210_v8 = vpack.c.bf16 %v5199_v60, %v5195_v43  ;;  %v2415_v35 = vld [vmem:[#allocation9 + $0x1e0] sm:$0xff] }
 0x5f2   : > { %17014 = vst [vmem:[#allocation114_spill] sm:$0xff] %v13197_v7  ;;  %17015 = vst [vmem:[#allocation221_spill] sm:$0xff] %v13199_v42  ;;  %8602 = vmatpush1.bf16.msra.mxu0 %v13125_v21  ;;  %v13212_v49 = vsub.f32 %v2392_v55, %v5195_v43  ;;  %v6481_v22 = vand.u32 4294901760, %v2393_v14  ;;  %v6485_v50 = vand.u32 4294901760, %v2401_v27  ;;  %v13216_v59 = vsub.f32 %v2400_v54, %v5199_v60 }
 0x5f3   : > { %17016 = vst [vmem:[#allocation222_spill] sm:$0xff] %v13201_v37  ;;  %17017 = vst [vmem:[#allocation116_spill] sm:$0xff] %v13203_v44  ;;  %8986 = vmatpush1.bf16.msra.mxu1 %v13131_v15  ;;  %8604 = vmatprep.subr.bf16.mxu0 %v13137_v40  ;;  %v13218_v48 = vpack.c.bf16 %v6483_v9, %v6479_v12  ;;  %v5203_v38 = vand.u32 4294901760, %v2408_v41  ;;  %v5207_v52 = vand.u32 4294901760, %v2416_v57  ;;  %v6487_v32 = vand.u32 4294901760, %v2410_v53 }
 0x5f4   : > { %17018 = vst [vmem:[#allocation223_spill] sm:$0xff] %v13205_v11  ;;  %17019 = vst [vmem:[#allocation224_spill] sm:$0xff] %v13207_v23  ;;  %8988 = vmatprep.subr.bf16.mxu1 %v13143_v34  ;;  %v13221_v21 = vsub.f32 %v2394_v10, %v6479_v12  ;;  %v13223_v55 = vsub.f32 %v2402_v31, %v6483_v9  ;;  %v6491_v43 = vand.u32 4294901760, %v2418_v61  ;;  %v5205_v60 = vand.u32 4294901760, %v2407_v46  ;;  %v2426_v9 = vld [vmem:[#allocation9 + $0x238] sm:$0xff] }
 0x5f5   : > { %17020 = vst [vmem:[#allocation118_spill] sm:$0xff] %v13210_v8  ;;  %17021 = vst [vmem:[#allocation120_spill] sm:$0xff] %v13212_v49  ;;  %v2417_v49 = vld [vmem:[#allocation9 + $0x1f0] sm:$0xff]  ;;  %v13225_v15 = vpack.c.bf16 %v5201_v51, %v5197_v0  ;;  %v13227_v40 = vsub.f32 %v2391_v56, %v5197_v0  ;;  %v13229_v54 = vsub.f32 %v2399_v2, %v5201_v51  ;;  %v5209_v12 = vand.u32 4294901760, %v2415_v35  ;;  %v17032_v56 = vld [vmem:[#allocation17_spill] sm:$0xff] }
 0x5f6   : > { %17022 = vst [vmem:[#allocation225_spill] sm:$0xff] %v13216_v59  ;;  %17023 = vst [vmem:[#allocation226_spill] sm:$0xff] %v13218_v48  ;;  %v2424_v59 = vld [vmem:[#allocation9 + $0x228] sm:$0xff]  ;;  %8606 = vmatpush1.bf16.msra.mxu0 %v13149_v17  ;;  %v13232_v34 = vpack.c.bf16 %v6485_v50, %v6481_v22  ;;  %v13234_v10 = vsub.f32 %v2393_v14, %v6481_v22  ;;  %v13236_v31 = vsub.f32 %v2401_v27, %v6485_v50  ;;  %v17035_v17 = vld [vmem:[#allocation155_spill] sm:$0xff] }
 0x5f7   : > { %17024 = vst [vmem:[#allocation121_spill] sm:$0xff] %v13221_v21  ;;  %17025 = vst [vmem:[#allocation122_spill] sm:$0xff] %v13223_v55  ;;  %v2432_v48 = vld [vmem:[#allocation9 + $0x268] sm:$0xff]  ;;  %v2434_v55 = vld [vmem:[#allocation9 + $0x278] sm:$0xff]  ;;  %8990 = vmatpush1.bf16.msra.mxu1 %v13155_v39  ;;  %8608 = vmatprep.subr.bf16.mxu0 %v17032_v56  ;;  %v13240_v2 = vpack.c.bf16 %v5207_v52, %v5203_v38  ;;  %v13242_v0 = vsub.f32 %v2408_v41, %v5203_v38  ;;  %v6489_v51 = vand.u32 4294901760, %v2409_v28 }
 0x5f8   : > { %17026 = vst [vmem:[#allocation125_spill] sm:$0xff] %v13225_v15  ;;  %17027 = vst [vmem:[#allocation131_spill] sm:$0xff] %v13227_v40  ;;  %8992 = vmatprep.subr.bf16.mxu1 %v17035_v17  ;;  %v13245_v40 = vsub.f32 %v2416_v57, %v5207_v52  ;;  %v13247_v14 = vpack.c.bf16 %v6491_v43, %v6487_v32  ;;  %v5211_v27 = vand.u32 4294901760, %v2424_v59  ;;  %v5215_v22 = vand.u32 4294901760, %v2432_v48  ;;  %v2423_v50 = vld [vmem:[#allocation9 + $0x220] sm:$0xff]  ;;  %v2433_v21 = vld [vmem:[#allocation9 + $0x270] sm:$0xff] }
 0x5f9   : > { %17028 = vst [vmem:[#allocation254_spill] sm:$0xff] %v13229_v54  ;;  %17029 = vst [vmem:[#allocation126_spill] sm:$0xff] %v13232_v34  ;;  %v6493_v54 = vand.u32 4294901760, %v2417_v49  ;;  %v13250_v39 = vsub.f32 %v2410_v53, %v6487_v32  ;;  %v13252_v56 = vsub.f32 %v2418_v61, %v6491_v43  ;;  %v6495_v41 = vand.u32 4294901760, %v2426_v9  ;;  %v17041_v57 = vld [vmem:[#allocation22_spill] sm:$0xff]  ;;  %v17045_v53 = vld [vmem:[#allocation156_spill] sm:$0xff] }
 0x5fa   : > { %17030 = vst [vmem:[#allocation127_spill] sm:$0xff] %v13234_v10  ;;  %17031 = vst [vmem:[#allocation129_spill] sm:$0xff] %v13236_v31  ;;  %v2431_v31 = vld [vmem:[#allocation9 + $0x260] sm:$0xff]  ;;  %v6499_v38 = vand.u32 4294901760, %v2434_v55  ;;  %v13256_v52 = vpack.c.bf16 %v5209_v12, %v5205_v60  ;;  %v13258_v17 = vsub.f32 %v2407_v46, %v5205_v60  ;;  %v13266_v32 = vsub.f32 %v2409_v28, %v6489_v51  ;;  %v2449_v34 = vld [vmem:[#allocation9 + $0x2f0] sm:$0xff] }
 0x5fb   : > { %17033 = vst [vmem:[#allocation132_spill] sm:$0xff] %v13240_v2  ;;  %17034 = vst [vmem:[#allocation227_spill] sm:$0xff] %v13242_v0  ;;  %v17038_v10 = vld [vmem:[#allocation248_spill] sm:$0xff]  ;;  %v2425_v0 = vld [vmem:[#allocation9 + $0x230] sm:$0xff]  ;;  %v13264_v61 = vpack.c.bf16 %v6493_v54, %v6489_v51  ;;  %v5213_v43 = vand.u32 4294901760, %v2423_v50  ;;  %v13272_v60 = vpack.c.bf16 %v5215_v22, %v5211_v27  ;;  %v13277_v28 = vsub.f32 %v2432_v48, %v5215_v22 }
 0x5fc   : > { %17036 = vst [vmem:[#allocation228_spill] sm:$0xff] %v13245_v40  ;;  %17037 = vst [vmem:[#allocation229_spill] sm:$0xff] %v13247_v14  ;;  %3752 = vmatmul.mubr.f32.vlgmr.msra.gmra.mrb[2].mxu0 %v17038_v10  ;;  %5036 = vmatmul.mubr.f32.vlgmr.msra.gmra.mrb[2].mxu1 %v17038_v10  ;;  %v13260_v40 = vsub.f32 %v2415_v35, %v5209_v12  ;;  %v2440_v14 = vld [vmem:[#allocation9 + $0x2a8] sm:$0xff]  ;;  %v2442_v2 = vld [vmem:[#allocation9 + $0x2b8] sm:$0xff]  ;;  %v13270_v35 = vsub.f32 %v2417_v49, %v6493_v54  ;;  %v6497_v12 = vand.u32 4294901760, %v2425_v0 }
 0x5fd   : > { %17039 = vst [vmem:[#allocation230_spill] sm:$0xff] %v13250_v39  ;;  %17040 = vst [vmem:[#allocation231_spill] sm:$0xff] %v13252_v56  ;;  %8610 = vmatpush1.bf16.msra.mxu0 %v17041_v57  ;;  %3887 = vmatprep.mubr.f32.mxu0 %v16805_v62  ;;  %v5217_v56 = vand.u32 4294901760, %v2431_v31  ;;  %v2448_v39 = vld [vmem:[#allocation9 + $0x2e8] sm:$0xff]  ;;  %v2450_v57 = vld [vmem:[#allocation9 + $0x2f8] sm:$0xff]  ;;  %v13279_v51 = vpack.c.bf16 %v6499_v38, %v6495_v41  ;;  %v5219_v49 = vand.u32 4294901760, %v2440_v14 }
 0x5fe   : > { %17042 = vst [vmem:[#allocation232_spill] sm:$0xff] %v13256_v52  ;;  %17043 = vst [vmem:[#allocation233_spill] sm:$0xff] %v13258_v17  ;;  %8994 = vmatpush1.bf16.msra.mxu1 %v17045_v53  ;;  %5171 = vmatprep.mubr.f32.mxu1 %v16805_v62  ;;  %v17048_v46 = vld [vmem:[#allocation28_spill] sm:$0xff]  ;;  %v17051_v53 = vld [vmem:[#allocation157_spill] sm:$0xff]  ;;  %v13275_v17 = vsub.f32 %v2424_v59, %v5211_v27  ;;  %v5223_v54 = vand.u32 4294901760, %v2448_v39  ;;  %v13286_v48 = vsub.f32 %v2434_v55, %v6499_v38 }
 0x5ff   : > { %17044 = vst [vmem:[#allocation234_spill] sm:$0xff] %v13260_v40  ;;  %17046 = vst [vmem:[#allocation235_spill] sm:$0xff] %v13264_v61  ;;  %8612 = vmatprep.subr.bf16.mxu0 %v17048_v46  ;;  %v6501_v40 = vand.u32 4294901760, %v2433_v21  ;;  %8996 = vmatprep.subr.bf16.mxu1 %v17051_v53  ;;  %v2439_v61 = vld [vmem:[#allocation9 + $0x2a0] sm:$0xff]  ;;  %v17056_v52 = vld [vmem:[#allocation33_spill] sm:$0xff]  ;;  %v6503_v46 = vand.u32 4294901760, %v2442_v2  ;;  %v13288_v27 = vpack.c.bf16 %v5217_v56, %v5213_v43 }
 0x600   : > { %17047 = vst [vmem:[#allocation236_spill] sm:$0xff] %v13266_v32  ;;  %17049 = vst [vmem:[#allocation237_spill] sm:$0xff] %v13270_v35  ;;  %v13281_v32 = vsub.f32 %v2426_v9, %v6495_v41  ;;  %v2447_v62 = vld [vmem:[#allocation9 + $0x2e0] sm:$0xff]  ;;  %v6507_v35 = vand.u32 4294901760, %v2450_v57  ;;  %v17057_v15 = vld [vmem:[#allocation158_spill] sm:$0xff]  ;;  %v13290_v9 = vsub.f32 %v2423_v50, %v5213_v43  ;;  %v13293_v41 = vsub.f32 %v2431_v31, %v5217_v56 }
 0x601   : > { %17050 = vst [vmem:[#allocation238_spill] sm:$0xff] %v13272_v60  ;;  %17052 = vst [vmem:[#allocation239_spill] sm:$0xff] %v13275_v17  ;;  %8614 = vmatpush1.bf16.msra.mxu0 %v17056_v52  ;;  %v2441_v60 = vld [vmem:[#allocation9 + $0x2b0] sm:$0xff]  ;;  %v17058_v59 = vld [vmem:[#allocation37_spill] sm:$0xff]  ;;  %v13295_v52 = vpack.c.bf16 %v6501_v40, %v6497_v12  ;;  %v5221_v53 = vand.u32 4294901760, %v2439_v61  ;;  %v6509_v38 = vand.u32 4294901760, %v2449_v34  ;;  %v13302_v43 = vpack.c.bf16 %v5223_v54, %v5219_v49 }
 0x602   : > { %17053 = vst [vmem:[#allocation240_spill] sm:$0xff] %v13277_v28  ;;  %17054 = vst [vmem:[#allocation241_spill] sm:$0xff] %v13279_v51  ;;  %8998 = vmatpush1.bf16.msra.mxu1 %v17057_v15  ;;  %8616 = vmatprep.subr.bf16.mxu0 %v17058_v59  ;;  %v17062_v22 = vld [vmem:[#allocation159_spill] sm:$0xff]  ;;  %v2456_v28 = vld [vmem:[#allocation9 + $0x328] sm:$0xff]  ;;  %v13297_v51 = vsub.f32 %v2425_v0, %v6497_v12  ;;  %v13299_v15 = vsub.f32 %v2433_v21, %v6501_v40  ;;  %v6505_v55 = vand.u32 4294901760, %v2441_v60 }
 0x603   : > { %17055 = vst [vmem:[#allocation242_spill] sm:$0xff] %v13281_v32  ;;  %17059 = vst [vmem:[#allocation243_spill] sm:$0xff] %v13286_v48  ;;  %9000 = vmatprep.subr.bf16.mxu1 %v17062_v22  ;;  %v5225_v32 = vand.u32 4294901760, %v2447_v62  ;;  %v2464_v17 = vld [vmem:[#allocation9 + $0x368] sm:$0xff]  ;;  %v2458_v59 = vld [vmem:[#allocation9 + $0x338] sm:$0xff]  ;;  %v13304_v31 = vsub.f32 %v2440_v14, %v5219_v49  ;;  %v13306_v56 = vsub.f32 %v2448_v39, %v5223_v54 }
 0x604   : > { %17060 = vst [vmem:[#allocation244_spill] sm:$0xff] %v13288_v27  ;;  %17061 = vst [vmem:[#allocation245_spill] sm:$0xff] %v13290_v9  ;;  %v2466_v48 = vld [vmem:[#allocation9 + $0x378] sm:$0xff]  ;;  %v13308_v22 = vpack.c.bf16 %v6507_v35, %v6503_v46  ;;  %v2463_v9 = vld [vmem:[#allocation9 + $0x360] sm:$0xff]  ;;  %v13312_v40 = vsub.f32 %v2442_v2, %v6503_v46  ;;  %v13314_v12 = vsub.f32 %v2450_v57, %v6507_v35  ;;  %v6511_v54 = vand.u32 4294901760, %v2458_v59 }
 0x605   : > { %17063 = vst [vmem:[#allocation246_spill] sm:$0xff] %v13293_v41  ;;  %17064 = vst [vmem:[#allocation247_spill] sm:$0xff] %v13295_v52  ;;  %v17067_v50 = vld [vmem:[#allocation43_spill] sm:$0xff]  ;;  %v2455_v41 = vld [vmem:[#allocation9 + $0x320] sm:$0xff]  ;;  %v13317_v39 = vpack.c.bf16 %v5225_v32, %v5221_v53  ;;  %v13319_v49 = vsub.f32 %v2439_v61, %v5221_v53  ;;  %v5233_v46 = vand.u32 4294901760, %v2463_v9 }
 0x606   : > { %17065 = vst [vmem:[#allocation16_spill] sm:$0xff] %v13297_v51  ;;  %17066 = vst [vmem:[#allocation250_spill] sm:$0xff] %v13299_v15  ;;  %8618 = vmatpush1.bf16.msra.mxu0 %v17067_v50  ;;  %v17072_v0 = vld [vmem:[#allocation160_spill] sm:$0xff]  ;;  %v17073_v21 = vld [vmem:[#allocation47_spill] sm:$0xff]  ;;  %v5227_v15 = vand.u32 4294901760, %v2456_v28  ;;  %v5231_v50 = vand.u32 4294901760, %v2464_v17 }
 0x607   : > { %17068 = vst [vmem:[#allocation18_spill] sm:$0xff] %v13302_v43  ;;  %17069 = vst [vmem:[#allocation19_spill] sm:$0xff] %v13304_v31  ;;  %9002 = vmatpush1.bf16.msra.mxu1 %v17072_v0  ;;  %8620 = vmatprep.subr.bf16.mxu0 %v17073_v21  ;;  %v2457_v51 = vld [vmem:[#allocation9 + $0x330] sm:$0xff]  ;;  %v17076_v14 = vld [vmem:[#allocation161_spill] sm:$0xff]  ;;  %v13321_v31 = vsub.f32 %v2447_v62, %v5225_v32  ;;  %v13323_v0 = vpack.c.bf16 %v6509_v38, %v6505_v55  ;;  %v5229_v2 = vand.u32 4294901760, %v2455_v41 }
 0x608   : > { %17070 = vst [vmem:[#allocation20_spill] sm:$0xff] %v13306_v56  ;;  %17071 = vst [vmem:[#allocation21_spill] sm:$0xff] %v13308_v22  ;;  %v2465_v43 = vld [vmem:[#allocation9 + $0x370] sm:$0xff]  ;;  %9004 = vmatprep.subr.bf16.mxu1 %v17076_v14  ;;  %v6515_v56 = vand.u32 4294901760, %v2466_v48  ;;  %v2472_v57 = vld [vmem:[#allocation9 + $0x3a8] sm:$0xff]  ;;  %v6513_v14 = vand.u32 4294901760, %v2457_v51  ;;  %v13332_v32 = vpack.c.bf16 %v5231_v50, %v5227_v15 }
 0x609   : > { %17074 = vst [vmem:[#allocation255_spill] sm:$0xff] %v13312_v40  ;;  %17075 = vst [vmem:[#allocation23_spill] sm:$0xff] %v13314_v12  ;;  %v2480_v35 = vld [vmem:[#allocation9 + $0x3e8] sm:$0xff]  ;;  %v17081_v21 = vld [vmem:[#allocation52_spill] sm:$0xff]  ;;  %v13326_v12 = vsub.f32 %v2441_v60, %v6505_v55  ;;  %v13328_v40 = vsub.f32 %v2449_v34, %v6509_v38  ;;  %v13341_v34 = vsub.f32 %v2458_v59, %v6511_v54  ;;  %v5235_v55 = vand.u32 4294901760, %v2472_v57 }
 0x60a   : > { %17077 = vst [vmem:[#allocation24_spill] sm:$0xff] %v13317_v39  ;;  %17078 = vst [vmem:[#allocation25_spill] sm:$0xff] %v13319_v49  ;;  %8622 = vmatpush1.bf16.msra.mxu0 %v17081_v21  ;;  %v6517_v39 = vand.u32 4294901760, %v2465_v43  ;;  %v2474_v61 = vld [vmem:[#allocation9 + $0x3b8] sm:$0xff]  ;;  %v17084_v49 = vld [vmem:[#allocation162_spill] sm:$0xff]  ;;  %v13339_v60 = vpack.c.bf16 %v6515_v56, %v6511_v54  ;;  %v5239_v38 = vand.u32 4294901760, %v2480_v35  ;;  %v13354_v54 = vsub.f32 %v2457_v51, %v6513_v14 }
 0x60b   : > { %17079 = vst [vmem:[#allocation26_spill] sm:$0xff] %v13321_v31  ;;  %17080 = vst [vmem:[#allocation27_spill] sm:$0xff] %v13323_v0  ;;  %v2482_v53 = vld [vmem:[#allocation9 + $0x3f8] sm:$0xff]  ;;  %9006 = vmatpush1.bf16.msra.mxu1 %v17084_v49  ;;  %v17085_v62 = vld [vmem:[#allocation57_spill] sm:$0xff]  ;;  %v13334_v31 = vsub.f32 %v2456_v28, %v5227_v15  ;;  %v13336_v0 = vsub.f32 %v2464_v17, %v5231_v50  ;;  %v13345_v49 = vpack.c.bf16 %v5233_v46, %v5229_v2 }
 0x60c   : > { %17082 = vst [vmem:[#allocation29_spill] sm:$0xff] %v13326_v12  ;;  %17083 = vst [vmem:[#allocation30_spill] sm:$0xff] %v13328_v40  ;;  %8624 = vmatprep.subr.bf16.mxu0 %v17085_v62  ;;  %v17089_v22 = vld [vmem:[#allocation163_spill] sm:$0xff]  ;;  %v2471_v21 = vld [vmem:[#allocation9 + $0x3a0] sm:$0xff]  ;;  %v13343_v12 = vsub.f32 %v2466_v48, %v6515_v56  ;;  %v6519_v62 = vand.u32 4294901760, %v2474_v61  ;;  %v13348_v50 = vsub.f32 %v2455_v41, %v5229_v2 }
 0x60d   : > { %17086 = vst [vmem:[#allocation31_spill] sm:$0xff] %v13332_v32  ;;  %17087 = vst [vmem:[#allocation32_spill] sm:$0xff] %v13334_v31  ;;  %9008 = vmatprep.subr.bf16.mxu1 %v17089_v22  ;;  %v2479_v40 = vld [vmem:[#allocation9 + $0x3e0] sm:$0xff]  ;;  %v6523_v32 = vand.u32 4294901760, %v2482_v53  ;;  %v2473_v28 = vld [vmem:[#allocation9 + $0x3b0] sm:$0xff]  ;;  %v13350_v22 = vsub.f32 %v2463_v9, %v5233_v46  ;;  %v13352_v59 = vpack.c.bf16 %v6517_v39, %v6513_v14 }
 0x60e   : > { %17088 = vst [vmem:[#allocation34_spill] sm:$0xff] %v13336_v0  ;;  %17090 = vst [vmem:[#allocation35_spill] sm:$0xff] %v13339_v60  ;;  %v2481_v15 = vld [vmem:[#allocation9 + $0x3f0] sm:$0xff]  ;;  %v2496_v0 = vld [vmem:[#allocation9 + $0x468] sm:$0xff]  ;;  %v13360_v31 = vsub.f32 %v2472_v57, %v5235_v55  ;;  %v13363_v46 = vpack.c.bf16 %v5239_v38, %v5235_v55  ;;  %v13365_v51 = vsub.f32 %v2480_v35, %v5239_v38  ;;  %v6521_v14 = vand.u32 4294901760, %v2473_v28 }
 0x60f   : > { %17091 = vst [vmem:[#allocation36_spill] sm:$0xff] %v13341_v34  ;;  %17092 = vst [vmem:[#allocation72_spill] sm:$0xff] %v13343_v12  ;;  %v17094_v17 = vld [vmem:[#allocation62_spill] sm:$0xff]  ;;  %v2488_v34 = vld [vmem:[#allocation9 + $0x428] sm:$0xff]  ;;  %v13358_v12 = vsub.f32 %v2465_v43, %v6517_v39  ;;  %v13369_v43 = vsub.f32 %v2474_v61, %v6519_v62  ;;  %v5247_v57 = vand.u32 4294901760, %v2496_v0 }
 0x610   : > { %17093 = vst [vmem:[#allocation80_spill] sm:$0xff] %v13345_v49  ;;  %8626 = vmatpush1.bf16.msra.mxu0 %v17094_v17  ;;  %17095 = vst [vmem:[#allocation84_spill] sm:$0xff] %v13348_v50  ;;  %v17099_v48 = vld [vmem:[#allocation164_spill] sm:$0xff]  ;;  %v17100_v56 = vld [vmem:[#allocation69_spill] sm:$0xff]  ;;  %v5237_v49 = vand.u32 4294901760, %v2471_v21  ;;  %v5241_v17 = vand.u32 4294901760, %v2479_v40  ;;  %v13367_v50 = vpack.c.bf16 %v6523_v32, %v6519_v62 }
 0x611   : > { %17096 = vst [vmem:[#allocation86_spill] sm:$0xff] %v13350_v22  ;;  %17097 = vst [vmem:[#allocation91_spill] sm:$0xff] %v13352_v59  ;;  %9010 = vmatpush1.bf16.msra.mxu1 %v17099_v48  ;;  %8628 = vmatprep.subr.bf16.mxu0 %v17100_v56  ;;  %v2490_v41 = vld [vmem:[#allocation9 + $0x438] sm:$0xff]  ;;  %v17103_v9 = vld [vmem:[#allocation165_spill] sm:$0xff]  ;;  %v5243_v39 = vand.u32 4294901760, %v2488_v34  ;;  %v13372_v59 = vsub.f32 %v2482_v53, %v6523_v32  ;;  %v13385_v53 = vsub.f32 %v2473_v28, %v6521_v14 }
 0x612   : > { %17098 = vst [vmem:[#allocation93_spill] sm:$0xff] %v13354_v54  ;;  %17101 = vst [vmem:[#allocation94_spill] sm:$0xff] %v13358_v12  ;;  %v2498_v2 = vld [vmem:[#allocation9 + $0x478] sm:$0xff]  ;;  %9012 = vmatprep.subr.bf16.mxu1 %v17103_v9  ;;  %v6525_v54 = vand.u32 4294901760, %v2481_v15  ;;  %v2487_v22 = vld [vmem:[#allocation9 + $0x420] sm:$0xff]  ;;  %v13374_v55 = vsub.f32 %v2471_v21, %v5237_v49  ;;  %v6527_v35 = vand.u32 4294901760, %v2490_v41  ;;  %v13380_v61 = vsub.f32 %v2479_v40, %v5241_v17 }
 0x613   : > { %17102 = vst [vmem:[#allocation95_spill] sm:$0xff] %v13360_v31  ;;  %17104 = vst [vmem:[#allocation98_spill] sm:$0xff] %v13363_v46  ;;  %v2495_v48 = vld [vmem:[#allocation9 + $0x460] sm:$0xff]  ;;  %v2489_v56 = vld [vmem:[#allocation9 + $0x430] sm:$0xff]  ;;  %v6531_v38 = vand.u32 4294901760, %v2498_v2  ;;  %v13378_v46 = vpack.c.bf16 %v5241_v17, %v5237_v49  ;;  %v5245_v62 = vand.u32 4294901760, %v2487_v22  ;;  %v13389_v49 = vpack.c.bf16 %v5247_v57, %v5243_v39 }
 0x614   : > { %17105 = vst [vmem:[#allocation103_spill] sm:$0xff] %v13365_v51  ;;  %17106 = vst [vmem:[#allocation105_spill] sm:$0xff] %v13367_v50  ;;  %v2497_v31 = vld [vmem:[#allocation9 + $0x470] sm:$0xff]  ;;  %v17108_v12 = vld [vmem:[#allocation76_spill] sm:$0xff]  ;;  %v6529_v32 = vand.u32 4294901760, %v2489_v56  ;;  %v13391_v40 = vsub.f32 %v2488_v34, %v5243_v39  ;;  %v13393_v17 = vsub.f32 %v2496_v0, %v5247_v57 }
 0x615   : > { %17107 = vst [vmem:[#allocation133_spill] sm:$0xff] %v13369_v43  ;;  %8630 = vmatpush1.bf16.msra.mxu0 %v17108_v12  ;;  %17109 = vst [vmem:[#allocation192_spill] sm:$0xff] %v13372_v59  ;;  %v17111_v9 = vld [vmem:[#allocation64_spill] sm:$0xff]  ;;  %v17112_v51 = vld [vmem:[#allocation83_spill] sm:$0xff]  ;;  %v5249_v43 = vand.u32 4294901760, %v2495_v48  ;;  %v13383_v12 = vpack.c.bf16 %v6525_v54, %v6521_v14  ;;  %v6533_v21 = vand.u32 4294901760, %v2497_v31  ;;  %v13387_v59 = vsub.f32 %v2481_v15, %v6525_v54 }
 0x616   : > { %17110 = vst [vmem:[#allocation194_spill] sm:$0xff] %v13374_v55  ;;  %9014 = vmatpush1.bf16.msra.mxu1 %v17111_v9  ;;  %8632 = vmatprep.subr.bf16.mxu0 %v17112_v51  ;;  %17113 = vst [vmem:[#allocation199_spill] sm:$0xff] %v13378_v46  ;;  %v2504_v50 = vld [vmem:[#allocation9 + $0x4a8] sm:$0xff]  ;;  %v17115_v52 = vld [vmem:[#allocation68_spill] sm:$0xff]  ;;  %v13402_v34 = vsub.f32 %v2498_v2, %v6531_v38 }
 0x617   : > { %17114 = vst [vmem:[#allocation197_spill] sm:$0xff] %v13380_v61  ;;  %v2512_v60 = vld [vmem:[#allocation9 + $0x4e8] sm:$0xff]  ;;  %9016 = vmatprep.subr.bf16.mxu1 %v17115_v52  ;;  %17116 = vst [vmem:[#allocation201_spill] sm:$0xff] %v13383_v12  ;;  %v2506_v55 = vld [vmem:[#allocation9 + $0x4b8] sm:$0xff]  ;;  %v13396_v52 = vpack.c.bf16 %v6531_v38, %v6527_v35  ;;  %v13398_v12 = vsub.f32 %v2490_v41, %v6527_v35  ;;  %v5251_v28 = vand.u32 4294901760, %v2504_v50 }
 0x618   : > { %17117 = vst [vmem:[#allocation200_spill] sm:$0xff] %v13385_v53  ;;  %v2514_v9 = vld [vmem:[#allocation9 + $0x4f8] sm:$0xff]  ;;  %17118 = vst [vmem:[#allocation203_spill] sm:$0xff] %v13387_v59  ;;  %v2503_v51 = vld [vmem:[#allocation9 + $0x4a0] sm:$0xff]  ;;  %v5255_v14 = vand.u32 4294901760, %v2512_v60  ;;  %v13404_v0 = vpack.c.bf16 %v5249_v43, %v5245_v62  ;;  %v6535_v39 = vand.u32 4294901760, %v2506_v55  ;;  %v13409_v41 = vsub.f32 %v2495_v48, %v5249_v43 }
 0x619   : > { %17119 = vst [vmem:[#allocation206_spill] sm:$0xff] %v13389_v49  ;;  %17120 = vst [vmem:[#allocation38_spill] sm:$0xff] %v13391_v40  ;;  %v17122_v61 = vld [vmem:[#allocation90_spill] sm:$0xff]  ;;  %v2511_v53 = vld [vmem:[#allocation9 + $0x4e0] sm:$0xff]  ;;  %v6539_v57 = vand.u32 4294901760, %v2514_v9  ;;  %v13411_v35 = vpack.c.bf16 %v6533_v21, %v6529_v32  ;;  %v5253_v59 = vand.u32 4294901760, %v2503_v51  ;;  %v13416_v49 = vsub.f32 %v2497_v31, %v6533_v21 }
 0x61a   : > { %17121 = vst [vmem:[#allocation39_spill] sm:$0xff] %v13393_v17  ;;  %8634 = vmatpush1.bf16.msra.mxu0 %v17122_v61  ;;  %17123 = vst [vmem:[#allocation40_spill] sm:$0xff] %v13396_v52  ;;  %v2505_v46 = vld [vmem:[#allocation9 + $0x4b0] sm:$0xff]  ;;  %v17125_v15 = vld [vmem:[#allocation73_spill] sm:$0xff]  ;;  %v13407_v17 = vsub.f32 %v2487_v22, %v5245_v62  ;;  %v13418_v22 = vpack.c.bf16 %v5255_v14, %v5251_v28  ;;  %v13420_v48 = vsub.f32 %v2504_v50, %v5251_v28 }
 0x61b   : > { %17124 = vst [vmem:[#allocation41_spill] sm:$0xff] %v13398_v12  ;;  %v2513_v27 = vld [vmem:[#allocation9 + $0x4f0] sm:$0xff]  ;;  %9018 = vmatpush1.bf16.msra.mxu1 %v17125_v15  ;;  %v17126_v54 = vld [vmem:[#allocation97_spill] sm:$0xff]  ;;  %17127 = vst [vmem:[#allocation42_spill] sm:$0xff] %v13402_v34  ;;  %v13413_v12 = vsub.f32 %v2489_v56, %v6529_v32  ;;  %v6537_v2 = vand.u32 4294901760, %v2505_v46  ;;  %v13422_v43 = vsub.f32 %v2512_v60, %v5255_v14 }
 0x61c   : > { %8636 = vmatprep.subr.bf16.mxu0 %v17126_v54  ;;  %17128 = vst [vmem:[#allocation44_spill] sm:$0xff] %v13404_v0  ;;  %v17129_v61 = vld [vmem:[#allocation74_spill] sm:$0xff]  ;;  %17130 = vst [vmem:[#allocation45_spill] sm:$0xff] %v13407_v17  ;;  %v2520_v40 = vld [vmem:[#allocation9 + $0x528] sm:$0xff]  ;;  %v5257_v54 = vand.u32 4294901760, %v2511_v53  ;;  %v6541_v38 = vand.u32 4294901760, %v2513_v27  ;;  %v13426_v32 = vpack.c.bf16 %v6539_v57, %v6535_v39  ;;  %v13431_v21 = vsub.f32 %v2514_v9, %v6539_v57 }
 0x61d   : > { %9020 = vmatprep.subr.bf16.mxu1 %v17129_v61  ;;  %17131 = vst [vmem:[#allocation46_spill] sm:$0xff] %v13409_v41  ;;  %17132 = vst [vmem:[#allocation48_spill] sm:$0xff] %v13411_v35  ;;  %v2528_v15 = vld [vmem:[#allocation9 + $0x568] sm:$0xff]  ;;  %v2522_v34 = vld [vmem:[#allocation9 + $0x538] sm:$0xff]  ;;  %v13428_v61 = vsub.f32 %v2506_v55, %v6535_v39  ;;  %v13433_v50 = vsub.f32 %v2503_v51, %v5253_v59  ;;  %v13441_v39 = vsub.f32 %v2505_v46, %v6537_v2 }
 0x61e   : > { %17133 = vst [vmem:[#allocation49_spill] sm:$0xff] %v13413_v12  ;;  %v2530_v0 = vld [vmem:[#allocation9 + $0x578] sm:$0xff]  ;;  %v17134_v52 = vld [vmem:[#allocation104_spill] sm:$0xff]  ;;  %17135 = vst [vmem:[#allocation50_spill] sm:$0xff] %v13416_v49  ;;  %v5259_v12 = vand.u32 4294901760, %v2520_v40  ;;  %v5263_v41 = vand.u32 4294901760, %v2528_v15  ;;  %v13439_v55 = vpack.c.bf16 %v6541_v38, %v6537_v2  ;;  %v13444_v9 = vsub.f32 %v2513_v27, %v6541_v38 }
 0x61f   : > { %8638 = vmatpush1.bf16.msra.mxu0 %v17134_v52  ;;  %17136 = vst [vmem:[#allocation51_spill] sm:$0xff] %v13418_v22  ;;  %17137 = vst [vmem:[#allocation53_spill] sm:$0xff] %v13420_v48  ;;  %v17139_v56 = vld [vmem:[#allocation78_spill] sm:$0xff]  ;;  %v17140_v62 = vld [vmem:[#allocation111_spill] sm:$0xff]  ;;  %v6543_v60 = vand.u32 4294901760, %v2522_v34  ;;  %v6547_v28 = vand.u32 4294901760, %v2530_v0 }
 0x620   : > { %17138 = vst [vmem:[#allocation54_spill] sm:$0xff] %v13422_v43  ;;  %9022 = vmatpush1.bf16.msra.mxu1 %v17139_v56  ;;  %8640 = vmatprep.subr.bf16.mxu0 %v17140_v62  ;;  %17141 = vst [vmem:[#allocation55_spill] sm:$0xff] %v13426_v32  ;;  %v2519_v17 = vld [vmem:[#allocation9 + $0x520] sm:$0xff]  ;;  %v17143_v31 = vld [vmem:[#allocation82_spill] sm:$0xff]  ;;  %v13435_v43 = vpack.c.bf16 %v5257_v54, %v5253_v59  ;;  %v13437_v62 = vsub.f32 %v2511_v53, %v5257_v54 }
 0x621   : > { %17142 = vst [vmem:[#allocation56_spill] sm:$0xff] %v13428_v61  ;;  %v2527_v52 = vld [vmem:[#allocation9 + $0x560] sm:$0xff]  ;;  %9024 = vmatprep.subr.bf16.mxu1 %v17143_v31  ;;  %17144 = vst [vmem:[#allocation58_spill] sm:$0xff] %v13431_v21  ;;  %v2521_v14 = vld [vmem:[#allocation9 + $0x530] sm:$0xff]  ;;  %v13446_v51 = vsub.f32 %v2520_v40, %v5259_v12  ;;  %v5261_v57 = vand.u32 4294901760, %v2519_v17  ;;  %v13450_v54 = vpack.c.bf16 %v5263_v41, %v5259_v12 }
 0x622   : > { %17145 = vst [vmem:[#allocation59_spill] sm:$0xff] %v13433_v50  ;;  %v2529_v56 = vld [vmem:[#allocation9 + $0x570] sm:$0xff]  ;;  %17146 = vst [vmem:[#allocation60_spill] sm:$0xff] %v13435_v43  ;;  %v2536_v61 = vld [vmem:[#allocation9 + $0x5a8] sm:$0xff]  ;;  %v5265_v31 = vand.u32 4294901760, %v2527_v52  ;;  %v13452_v46 = vsub.f32 %v2528_v15, %v5263_v41  ;;  %v6545_v2 = vand.u32 4294901760, %v2521_v14  ;;  %v13455_v40 = vpack.c.bf16 %v6547_v28, %v6543_v60 }
 0x623   : > { %17147 = vst [vmem:[#allocation61_spill] sm:$0xff] %v13437_v62  ;;  %17148 = vst [vmem:[#allocation63_spill] sm:$0xff] %v13439_v55  ;;  %v2544_v48 = vld [vmem:[#allocation9 + $0x5e8] sm:$0xff]  ;;  %v2538_v50 = vld [vmem:[#allocation9 + $0x5b8] sm:$0xff]  ;;  %v13457_v38 = vsub.f32 %v2522_v34, %v6543_v60  ;;  %v13459_v43 = vsub.f32 %v2530_v0, %v6547_v28  ;;  %v13461_v12 = vsub.f32 %v2519_v17, %v5261_v57 }
 0x624   : > { %17149 = vst [vmem:[#allocation65_spill] sm:$0xff] %v13441_v39  ;;  %v17150_v49 = vld [vmem:[#allocation117_spill] sm:$0xff]  ;;  %17151 = vst [vmem:[#allocation66_spill] sm:$0xff] %v13444_v9  ;;  %v2546_v21 = vld [vmem:[#allocation9 + $0x5f8] sm:$0xff]  ;;  %v6549_v39 = vand.u32 4294901760, %v2529_v56  ;;  %v5271_v9 = vand.u32 4294901760, %v2544_v48  ;;  %v13472_v17 = vsub.f32 %v2521_v14, %v6545_v2 }
 0x625   : > { %8642 = vmatpush1.bf16.msra.mxu0 %v17150_v49  ;;  %17152 = vst [vmem:[#allocation67_spill] sm:$0xff] %v13446_v51  ;;  %v17153_v59 = vld [vmem:[#allocation87_spill] sm:$0xff]  ;;  %v17154_v53 = vld [vmem:[#allocation124_spill] sm:$0xff]  ;;  %17155 = vst [vmem:[#allocation70_spill] sm:$0xff] %v13450_v54  ;;  %v5267_v51 = vand.u32 4294901760, %v2536_v61  ;;  %v6551_v41 = vand.u32 4294901760, %v2538_v50  ;;  %v13466_v54 = vsub.f32 %v2527_v52, %v5265_v31 }
 0x626   : > { %9026 = vmatpush1.bf16.msra.mxu1 %v17153_v59  ;;  %8644 = vmatprep.subr.bf16.mxu0 %v17154_v53  ;;  %17156 = vst [vmem:[#allocation71_spill] sm:$0xff] %v13452_v46  ;;  %v2535_v62 = vld [vmem:[#allocation9 + $0x5a0] sm:$0xff]  ;;  %17158 = vst [vmem:[#allocation75_spill] sm:$0xff] %v13455_v40  ;;  %v2537_v55 = vld [vmem:[#allocation9 + $0x5b0] sm:$0xff]  ;;  %v6555_v15 = vand.u32 4294901760, %v2546_v21  ;;  %v13464_v46 = vpack.c.bf16 %v5265_v31, %v5261_v57  ;;  %v13470_v0 = vpack.c.bf16 %v6549_v39, %v6545_v2 }
 0x627   : > { %v2543_v49 = vld [vmem:[#allocation9 + $0x5e0] sm:$0xff]  ;;  %17159 = vst [vmem:[#allocation77_spill] sm:$0xff] %v13457_v38  ;;  %v2545_v59 = vld [vmem:[#allocation9 + $0x5f0] sm:$0xff]  ;;  %17160 = vst [vmem:[#allocation79_spill] sm:$0xff] %v13459_v43  ;;  %v6553_v28 = vand.u32 4294901760, %v2537_v55  ;;  %v13475_v52 = vsub.f32 %v2529_v56, %v6549_v39  ;;  %v13477_v31 = vpack.c.bf16 %v5271_v9, %v5267_v51 }
 0x628   : > { %v17157_v27 = vld [vmem:[#allocation88_spill] sm:$0xff]  ;;  %17161 = vst [vmem:[#allocation81_spill] sm:$0xff] %v13461_v12  ;;  %v17162_v53 = vld [vmem:[#allocation130_spill] sm:$0xff]  ;;  %17163 = vst [vmem:[#allocation85_spill] sm:$0xff] %v13464_v46  ;;  %v5273_v40 = vand.u32 4294901760, %v2543_v49  ;;  %v6557_v12 = vand.u32 4294901760, %v2545_v59  ;;  %v13481_v46 = vsub.f32 %v2544_v48, %v5271_v9  ;;  %v13488_v56 = vsub.f32 %v2546_v21, %v6555_v15 }
 0x629   : > { %9028 = vmatprep.subr.bf16.mxu1 %v17157_v27  ;;  %8646 = vmatpush1.bf16.msra.mxu0 %v17162_v53  ;;  %17164 = vst [vmem:[#allocation89_spill] sm:$0xff] %v13466_v54  ;;  %v5269_v27 = vand.u32 4294901760, %v2535_v62  ;;  %v2552_v34 = vld [vmem:[#allocation9 + $0x628] sm:$0xff]  ;;  %v17165_v38 = vld [vmem:[#allocation92_spill] sm:$0xff]  ;;  %v17166_v32 = vld [vmem:[#allocation135_spill] sm:$0xff]  ;;  %v13479_v54 = vsub.f32 %v2536_v61, %v5267_v51 }
 0x62a   : > { %v2560_v60 = vld [vmem:[#allocation9 + $0x668] sm:$0xff]  ;;  %9030 = vmatpush1.bf16.msra.mxu1 %v17165_v38  ;;  %8648 = vmatprep.subr.bf16.mxu0 %v17166_v32  ;;  %17167 = vst [vmem:[#allocation134_spill] sm:$0xff] %v13470_v0  ;;  %17168 = vst [vmem:[#allocation136_spill] sm:$0xff] %v13472_v17  ;;  %v2554_v43 = vld [vmem:[#allocation9 + $0x638] sm:$0xff]  ;;  %v13483_v32 = vpack.c.bf16 %v6555_v15, %v6551_v41  ;;  %v13485_v0 = vsub.f32 %v2538_v50, %v6551_v41  ;;  %v5275_v14 = vand.u32 4294901760, %v2552_v34 }
 0x62b   : > { %v2562_v53 = vld [vmem:[#allocation9 + $0x678] sm:$0xff]  ;;  %v17169_v57 = vld [vmem:[#allocation96_spill] sm:$0xff]  ;;  %17170 = vst [vmem:[#allocation137_spill] sm:$0xff] %v13475_v52  ;;  %17171 = vst [vmem:[#allocation138_spill] sm:$0xff] %v13477_v31  ;;  %v5279_v2 = vand.u32 4294901760, %v2560_v60  ;;  %v13490_v39 = vpack.c.bf16 %v5273_v40, %v5269_v27  ;;  %v6559_v61 = vand.u32 4294901760, %v2554_v43  ;;  %v13496_v50 = vsub.f32 %v2543_v49, %v5273_v40 }
 0x62c   : > { %9032 = vmatprep.subr.bf16.mxu1 %v17169_v57  ;;  %17172 = vst [vmem:[#allocation139_spill] sm:$0xff] %v13479_v54  ;;  %17173 = vst [vmem:[#allocation141_spill] sm:$0xff] %v13481_v46  ;;  %v2551_v38 = vld [vmem:[#allocation9 + $0x620] sm:$0xff]  ;;  %v2553_v22 = vld [vmem:[#allocation9 + $0x630] sm:$0xff]  ;;  %v6563_v51 = vand.u32 4294901760, %v2562_v53  ;;  %v13494_v57 = vsub.f32 %v2535_v62, %v5269_v27  ;;  %v13498_v41 = vpack.c.bf16 %v6557_v12, %v6553_v28 }
 0x62d   : > { %17174 = vst [vmem:[#allocation142_spill] sm:$0xff] %v13483_v32  ;;  %17175 = vst [vmem:[#allocation143_spill] sm:$0xff] %v13485_v0  ;;  %v2559_v17 = vld [vmem:[#allocation9 + $0x660] sm:$0xff]  ;;  %v2561_v35 = vld [vmem:[#allocation9 + $0x670] sm:$0xff]  ;;  %v6561_v15 = vand.u32 4294901760, %v2553_v22  ;;  %v13501_v32 = vsub.f32 %v2537_v55, %v6553_v28  ;;  %v13505_v62 = vpack.c.bf16 %v5279_v2, %v5275_v14  ;;  %v13507_v49 = vsub.f32 %v2552_v34, %v5275_v14 }
 0x62e   : > { %v17176_v8 = vld [vmem:[#allocation140_spill] sm:$0xff]  ;;  %17177 = vst [vmem:[#allocation144_spill] sm:$0xff] %v13488_v56  ;;  %17178 = vst [vmem:[#allocation146_spill] sm:$0xff] %v13490_v39  ;;  %v17179_v48 = vld [vmem:[#allocation101_spill] sm:$0xff]  ;;  %v5281_v21 = vand.u32 4294901760, %v2559_v17  ;;  %v6565_v56 = vand.u32 4294901760, %v2561_v35  ;;  %v13510_v27 = vsub.f32 %v2560_v60, %v5279_v2 }
 0x62f   : > { %8650 = vmatpush1.bf16.msra.mxu0 %v17176_v8  ;;  %9034 = vmatpush1.bf16.msra.mxu1 %v17179_v48  ;;  %v17180_v9 = vld [vmem:[#allocation145_spill] sm:$0xff]  ;;  %17181 = vst [vmem:[#allocation147_spill] sm:$0xff] %v13494_v57  ;;  %17182 = vst [vmem:[#allocation148_spill] sm:$0xff] %v13496_v50  ;;  %v17184_v54 = vld [vmem:[#allocation102_spill] sm:$0xff]  ;;  %v5277_v8 = vand.u32 4294901760, %v2551_v38  ;;  %v13503_v48 = vsub.f32 %v2545_v59, %v6557_v12  ;;  %v13516_v59 = vsub.f32 %v2554_v43, %v6559_v61 }
 0x630   : > { %8652 = vmatprep.subr.bf16.mxu0 %v17180_v9  ;;  %17183 = vst [vmem:[#allocation149_spill] sm:$0xff] %v13498_v41  ;;  %v2568_v0 = vld [vmem:[#allocation9 + $0x6a8] sm:$0xff]  ;;  %9036 = vmatprep.subr.bf16.mxu1 %v17184_v54  ;;  %v2570_v52 = vld [vmem:[#allocation9 + $0x6b8] sm:$0xff]  ;;  %17185 = vst [vmem:[#allocation151_spill] sm:$0xff] %v13501_v32  ;;  %v13512_v9 = vpack.c.bf16 %v6563_v51, %v6559_v61  ;;  %v13518_v12 = vsub.f32 %v2562_v53, %v6563_v51 }
 0x631   : > { %v2576_v46 = vld [vmem:[#allocation9 + $0x6e8] sm:$0xff]  ;;  %v2578_v39 = vld [vmem:[#allocation9 + $0x6f8] sm:$0xff]  ;;  %17186 = vst [vmem:[#allocation152_spill] sm:$0xff] %v13503_v48  ;;  %17187 = vst [vmem:[#allocation153_spill] sm:$0xff] %v13505_v62  ;;  %v5283_v54 = vand.u32 4294901760, %v2568_v0  ;;  %v6567_v34 = vand.u32 4294901760, %v2570_v52  ;;  %v13521_v2 = vpack.c.bf16 %v5281_v21, %v5277_v8  ;;  %v13527_v48 = vpack.c.bf16 %v6565_v56, %v6561_v15 }
 0x632   : > { %17188 = vst [vmem:[#allocation154_spill] sm:$0xff] %v13507_v49  ;;  %v17189_v40 = vld [vmem:[#allocation150_spill] sm:$0xff]  ;;  %17190 = vst [vmem:[#allocation168_spill] sm:$0xff] %v13510_v27  ;;  %v5287_v50 = vand.u32 4294901760, %v2576_v46  ;;  %v2567_v57 = vld [vmem:[#allocation9 + $0x6a0] sm:$0xff]  ;;  %v6571_v28 = vand.u32 4294901760, %v2578_v39  ;;  %v13523_v27 = vsub.f32 %v2551_v38, %v5277_v8  ;;  %v13525_v49 = vsub.f32 %v2559_v17, %v5281_v21 }
 0x633   : > { %8654 = vmatpush1.bf16.msra.mxu0 %v17189_v40  ;;  %17191 = vst [vmem:[#allocation169_spill] sm:$0xff] %v13512_v9  ;;  %v2575_v41 = vld [vmem:[#allocation9 + $0x6e0] sm:$0xff]  ;;  %v17192_v31 = vld [vmem:[#allocation106_spill] sm:$0xff]  ;;  %17194 = vst [vmem:[#allocation170_spill] sm:$0xff] %v13516_v59  ;;  %v13529_v43 = vsub.f32 %v2553_v22, %v6561_v15  ;;  %v13531_v53 = vsub.f32 %v2561_v35, %v6565_v56  ;;  %v5285_v61 = vand.u32 4294901760, %v2567_v57 }
 0x634   : > { %9038 = vmatpush1.bf16.msra.mxu1 %v17192_v31  ;;  %v17193_v55 = vld [vmem:[#allocation110_spill] sm:$0xff]  ;;  %17195 = vst [vmem:[#allocation171_spill] sm:$0xff] %v13518_v12  ;;  %v17196_v60 = vld [vmem:[#allocation115_spill] sm:$0xff]  ;;  %17197 = vst [vmem:[#allocation172_spill] sm:$0xff] %v13521_v2  ;;  %v5289_v51 = vand.u32 4294901760, %v2575_v41  ;;  %v13536_v38 = vsub.f32 %v2568_v0, %v5283_v54  ;;  %v13540_v22 = vsub.f32 %v2576_v46, %v5287_v50 }
 0x635   : > { %8656 = vmatprep.subr.bf16.mxu0 %v17193_v55  ;;  %v2569_v14 = vld [vmem:[#allocation9 + $0x6b0] sm:$0xff]  ;;  %9040 = vmatprep.subr.bf16.mxu1 %v17196_v60  ;;  %17198 = vst [vmem:[#allocation173_spill] sm:$0xff] %v13523_v27  ;;  %17199 = vst [vmem:[#allocation174_spill] sm:$0xff] %v13525_v49  ;;  %v2584_v31 = vld [vmem:[#allocation9 + $0x728] sm:$0xff]  ;;  %v13534_v60 = vpack.c.bf16 %v5287_v50, %v5283_v54  ;;  %v13542_v35 = vpack.c.bf16 %v6571_v28, %v6567_v34 }
 0x636   : > { %v2577_v40 = vld [vmem:[#allocation9 + $0x6f0] sm:$0xff]  ;;  %17200 = vst [vmem:[#allocation175_spill] sm:$0xff] %v13527_v48  ;;  %v2592_v55 = vld [vmem:[#allocation9 + $0x768] sm:$0xff]  ;;  %17201 = vst [vmem:[#allocation176_spill] sm:$0xff] %v13529_v43  ;;  %v6569_v17 = vand.u32 4294901760, %v2569_v14  ;;  %v5291_v56 = vand.u32 4294901760, %v2584_v31  ;;  %v13547_v0 = vsub.f32 %v2578_v39, %v6571_v28  ;;  %v13549_v48 = vpack.c.bf16 %v5289_v51, %v5285_v61 }
 0x637   : > { %17202 = vst [vmem:[#allocation177_spill] sm:$0xff] %v13531_v53  ;;  %v2586_v12 = vld [vmem:[#allocation9 + $0x738] sm:$0xff]  ;;  %17204 = vst [vmem:[#allocation178_spill] sm:$0xff] %v13534_v60  ;;  %v6573_v8 = vand.u32 4294901760, %v2577_v40  ;;  %v17207_v49 = vld [vmem:[#allocation128_spill] sm:$0xff]  ;;  %v5295_v15 = vand.u32 4294901760, %v2592_v55  ;;  %v13551_v46 = vsub.f32 %v2567_v57, %v5285_v61  ;;  %v13553_v50 = vsub.f32 %v2575_v41, %v5289_v51 }
 0x638   : > { %v2594_v59 = vld [vmem:[#allocation9 + $0x778] sm:$0xff]  ;;  %17205 = vst [vmem:[#allocation179_spill] sm:$0xff] %v13536_v38  ;;  %17208 = vst [vmem:[#allocation180_spill] sm:$0xff] %v13540_v22  ;;  %v2583_v53 = vld [vmem:[#allocation9 + $0x720] sm:$0xff]  ;;  %v6575_v54 = vand.u32 4294901760, %v2586_v12 }
 0x639   : > { %v17203_v32 = vld [vmem:[#allocation119_spill] sm:$0xff]  ;;  %17209 = vst [vmem:[#allocation181_spill] sm:$0xff] %v13542_v35  ;;  %v2591_v43 = vld [vmem:[#allocation9 + $0x760] sm:$0xff]  ;;  %v17210_v27 = vld [vmem:[#allocation166_spill] sm:$0xff]  ;;  %v6579_v38 = vand.u32 4294901760, %v2594_v59  ;;  %v5293_v39 = vand.u32 4294901760, %v2583_v53  ;;  %v13564_v41 = vpack.c.bf16 %v5295_v15, %v5291_v56 }
 0x63a   : > { %8658 = vmatpush1.bf16.msra.mxu0 %v17203_v32  ;;  %v17206_v21 = vld [vmem:[#allocation123_spill] sm:$0xff]  ;;  %v13545_v32 = vsub.f32 %v2570_v52, %v6567_v34  ;;  %17212 = vst [vmem:[#allocation184_spill] sm:$0xff] %v13547_v0  ;;  %v2585_v60 = vld [vmem:[#allocation9 + $0x730] sm:$0xff]  ;;  %17213 = vst [vmem:[#allocation186_spill] sm:$0xff] %v13549_v48  ;;  %v13560_v52 = vsub.f32 %v2577_v40, %v6573_v8  ;;  %v5297_v34 = vand.u32 4294901760, %v2591_v43 }
 0x63b   : > { %9042 = vmatpush1.bf16.msra.mxu1 %v17206_v21  ;;  %8660 = vmatprep.subr.bf16.mxu0 %v17207_v49  ;;  %v2593_v21 = vld [vmem:[#allocation9 + $0x770] sm:$0xff]  ;;  %17214 = vst [vmem:[#allocation187_spill] sm:$0xff] %v13551_v46  ;;  %17215 = vst [vmem:[#allocation188_spill] sm:$0xff] %v13553_v50  ;;  %v13555_v49 = vsub.f32 %v2569_v14, %v6569_v17  ;;  %v2600_v22 = vld [vmem:[#allocation9 + $0x7a8] sm:$0xff]  ;;  %v13566_v14 = vsub.f32 %v2584_v31, %v5291_v56  ;;  %v6577_v61 = vand.u32 4294901760, %v2585_v60 }
 0x63c   : > { %9044 = vmatprep.subr.bf16.mxu1 %v17210_v27  ;;  %17211 = vst [vmem:[#allocation183_spill] sm:$0xff] %v13545_v32  ;;  %v17217_v35 = vld [vmem:[#allocation167_spill] sm:$0xff]  ;;  %v13558_v27 = vpack.c.bf16 %v6573_v8, %v6569_v17  ;;  %17219 = vst [vmem:[#allocation196_spill] sm:$0xff] %v13560_v52  ;;  %v2608_v28 = vld [vmem:[#allocation9 + $0x7e8] sm:$0xff]  ;;  %v6581_v51 = vand.u32 4294901760, %v2593_v21  ;;  %v13569_v40 = vsub.f32 %v2592_v55, %v5295_v15 }
 0x63d   : > { %17216 = vst [vmem:[#allocation190_spill] sm:$0xff] %v13555_v49  ;;  %v2602_v0 = vld [vmem:[#allocation9 + $0x7b8] sm:$0xff]  ;;  %v17220_v2 = vld [vmem:[#allocation182_spill] sm:$0xff]  ;;  %v17221_v57 = vld [vmem:[#allocation185_spill] sm:$0xff]  ;;  %v13571_v8 = vpack.c.bf16 %v6579_v38, %v6575_v54  ;;  %v13573_v52 = vsub.f32 %v2586_v12, %v6575_v54  ;;  %v13575_v50 = vsub.f32 %v2594_v59, %v6579_v38  ;;  %v13586_v59 = vsub.f32 %v2591_v43, %v5297_v34 }
 0x63e   : > { %8662 = vmatpush1.bf16.msra.mxu0 %v17217_v35  ;;  %17218 = vst [vmem:[#allocation193_spill] sm:$0xff] %v13558_v27  ;;  %v2610_v32 = vld [vmem:[#allocation9 + $0x7f8] sm:$0xff]  ;;  %17222 = vst [vmem:[#allocation202_spill] sm:$0xff] %v13564_v41  ;;  %v2599_v35 = vld [vmem:[#allocation9 + $0x7a0] sm:$0xff]  ;;  %v6583_v46 = vand.u32 4294901760, %v2602_v0  ;;  %v13580_v27 = vpack.c.bf16 %v5297_v34, %v5293_v39  ;;  %v13588_v38 = vpack.c.bf16 %v6581_v51, %v6577_v61 }
 0x63f   : > { %9046 = vmatpush1.bf16.msra.mxu1 %v17220_v2  ;;  %8664 = vmatprep.subr.bf16.mxu0 %v17221_v57  ;;  %17223 = vst [vmem:[#allocation204_spill] sm:$0xff] %v13566_v14  ;;  %v2607_v17 = vld [vmem:[#allocation9 + $0x7e0] sm:$0xff]  ;;  %v17224_v49 = vld [vmem:[#allocation189_spill] sm:$0xff]  ;;  %17225 = vst [vmem:[#allocation205_spill] sm:$0xff] %v13569_v40  ;;  %v5299_v2 = vand.u32 4294901760, %v2600_v22  ;;  %v5303_v57 = vand.u32 4294901760, %v2608_v28  ;;  %v13590_v54 = vsub.f32 %v2585_v60, %v6577_v61 }
 0x640   : > { %9048 = vmatprep.subr.bf16.mxu1 %v17224_v49  ;;  %17226 = vst [vmem:[#allocation207_spill] sm:$0xff] %v13571_v8  ;;  %17227 = vst [vmem:[#allocation208_spill] sm:$0xff] %v13575_v50  ;;  %v6587_v41 = vand.u32 4294901760, %v2610_v32  ;;  %v2601_v31 = vld [vmem:[#allocation9 + $0x7b0] sm:$0xff]  ;;  %v17228_v14 = vld [vmem:[#allocation191_spill] sm:$0xff]  ;;  %v13582_v49 = vsub.f32 %v2583_v53, %v5293_v39  ;;  %v5301_v55 = vand.u32 4294901760, %v2599_v35  ;;  %v13607_v60 = vsub.f32 %v2602_v0, %v6583_v46 }
 0x641   : > { %v13577_v56 = vld [vmem:[#allocation9 + $0x7f0] sm:$0xff]  ;;  %17229 = vst [vmem:[#allocation17_spill] sm:$0xff] %v13580_v27  ;;  %v5305_v15 = vand.u32 4294901760, %v2607_v17  ;;  %v17231_v40 = vld [vmem:[#allocation195_spill] sm:$0xff]  ;;  %17233 = vst [vmem:[#allocation22_spill] sm:$0xff] %v13588_v38  ;;  %v15779_v50 = vand.u32 4294901760, %v13159_v45  ;;  %v13602_v43 = vsub.f32 %v2608_v28, %v5303_v57 }
 0x642   : > { %8666 = vmatpush1.bf16.msra.mxu0 %v17228_v14  ;;  %17230 = vst [vmem:[#allocation155_spill] sm:$0xff] %v13582_v49  ;;  %v17232_v12 = vld [vmem:[#allocation198_spill] sm:$0xff]  ;;  %v13594_v14 = vsub.f32 %v2593_v21, %v6581_v51  ;;  %v6585_v53 = vand.u32 4294901760, %v2601_v31  ;;  %v15780_v39 = vand.u32 4294901760, %v13577_v56  ;;  %v15778_v49 = vand.u32 4294901760, %v13161_v63  ;;  %17239 = vst [vmem:[#allocation37_spill] sm:$0xff] %v13607_v60 }
 0x643   : > { %9050 = vmatpush1.bf16.msra.mxu1 %v17231_v40  ;;  %8668 = vmatprep.subr.bf16.mxu0 %v17232_v12  ;;  %v13598_v40 = vpack.c.bf16 %v5303_v57, %v5299_v2  ;;  %v13600_v12 = vsub.f32 %v2600_v22, %v5299_v2  ;;  %17237 = vst [vmem:[#allocation33_spill] sm:$0xff] %v13602_v43  ;;  %v15781_v61 = vand.u32 4294901760, %v13165_v19  ;;  %v15784_v51 = vand.u32 4294901760, %v13173_v25  ;;  %v17367_v60 = vld [vmem:[#allocation134_spill] sm:$0xff] }
 0x644   : > { %9052 = vmatprep.subr.bf16.mxu1 %v16789_v36  ;;  %17234 = vst [vmem:[#allocation156_spill] sm:$0xff] %v13594_v14  ;;  %v13604_v34 = vpack.c.bf16 %v6587_v41, %v6583_v46  ;;  %v13609_v36 = vsub.f32 %v2610_v32, %v6587_v41  ;;  %v13611_v21 = vpack.c.bf16 %v5305_v15, %v5301_v55  ;;  %v15782_v32 = vand.u32 4294901760, %v13167_v5 }
 0x645   : > { %17235 = vst [vmem:[#allocation28_spill] sm:$0xff] %v13598_v40  ;;  %17236 = vst [vmem:[#allocation157_spill] sm:$0xff] %v13600_v12  ;;  %v13616_v22 = vsub.f32 %v2599_v35, %v5301_v55  ;;  %v13618_v28 = vsub.f32 %v2607_v17, %v5305_v15  ;;  %v13629_v0 = vpack.c.bf16 %v15780_v39, %v6585_v53  ;;  %v15783_v41 = vand.u32 4294901760, %v13171_v24 }
 0x646   : > { %17238 = vst [vmem:[#allocation158_spill] sm:$0xff] %v13604_v34  ;;  %8670 = vmatpush1.bf16.msra.mxu0 %v16792_v16  ;;  %17240 = vst [vmem:[#allocation159_spill] sm:$0xff] %v13609_v36  ;;  %v13623_v16 = vsub.f32 %v13159_v45, %v15779_v50  ;;  %v13636_v46 = vsub.f32 %v13161_v63, %v15778_v49  ;;  %v15785_v35 = vand.u32 4294901760, %v13177_v30  ;;  %v15786_v17 = vand.u32 4294901760, %v13179_v26  ;;  %v17309_v45 = vld [vmem:[#allocation245_spill] sm:$0xff] }
 0x647   : > { %17241 = vst [vmem:[#allocation43_spill] sm:$0xff] %v13611_v21  ;;  %9054 = vmatpush1.bf16.msra.mxu1 %v16795_v6  ;;  %9056 = vmatprep.subr.bf16.mxu0 %v13157_v4  ;;  %17242 = vst [vmem:[#allocation160_spill] sm:$0xff] %v13616_v22  ;;  %v13631_v6 = vsub.f32 %v2601_v31, %v6585_v53  ;;  %v15789_v2 = vand.u32 4294901760, %v13183_v47  ;;  %v15794_v57 = vand.u32 4294901760, %v13186_v20  ;;  %v17246_v53 = vld [vmem:[#allocation257_spill] sm:$0xff] }
 0x648   : > { %17243 = vst [vmem:[#allocation47_spill] sm:$0xff] %v13618_v28  ;;  %9440 = vmatprep.subr.bf16.mxu1 %v13163_v18  ;;  %17244 = vst [vmem:[#allocation161_spill] sm:$0xff] %v13629_v0  ;;  %v5328_v49 = vand.u32 4294901760, %v13623_v16  ;;  %v6611_v50 = vsub.f32 %v13165_v19, %v15781_v61  ;;  %v6623_v39 = vsub.f32 %v13167_v5, %v15782_v32  ;;  %v5340_v15 = vand.u32 4294901760, %v13636_v46  ;;  %v17253_v18 = vld [vmem:[#allocation226_spill] sm:$0xff]  ;;  %v17305_v5 = vld [vmem:[#allocation243_spill] sm:$0xff] }
 0x649   : > { %17245 = vst [vmem:[#allocation52_spill] sm:$0xff] %v13631_v6  ;;  %3889 = vmatmul.mubr.f32.vlgmr.msra.gmra.mrb[2].mxu0 %v17038_v10  ;;  %v5333_v16 = vsub.f32 %v13171_v24, %v15783_v41  ;;  %v5345_v32 = vsub.f32 %v13173_v25, %v15784_v51  ;;  %v6629_v46 = vsub.f32 %v13179_v26, %v15786_v17  ;;  %v17247_v51 = vand.u32 4294901760, %v13192_v29  ;;  %v17288_v26 = vld [vmem:[#allocation21_spill] sm:$0xff]  ;;  %v17300_v24 = vld [vmem:[#allocation27_spill] sm:$0xff]  ;;  %v17313_v28 = vld [vmem:[#allocation98_spill] sm:$0xff] }
 0x64a   : > { %5173 = vmatmul.mubr.f32.vlgmr.msra.gmra.mrb[2].mxu1 %v17038_v10  ;;  %9058 = vmatpush1.bf16.msra.mxu0 %v13169_v1  ;;  %v5351_v41 = vsub.f32 %v13183_v47, %v15789_v2  ;;  %v5363_v61 = vsub.f32 %v13186_v20, %v15794_v57  ;;  %v17249_v17 = vand.u32 4294901760, %v13199_v42  ;;  %v17250_v2 = vld [vmem:[#allocation118_spill] sm:$0xff]  ;;  %v17251_v57 = vand.u32 4294901760, %v13201_v37  ;;  %v17252_v1 = vld [vmem:[#allocation120_spill] sm:$0xff]  ;;  %v17312_v6 = vld [vmem:[#allocation91_spill] sm:$0xff] }
 0x64b   : > { %5312 = vmatprep.mubr.f32.mxu0 %v17246_v53  ;;  %9442 = vmatpush1.bf16.msra.mxu1 %v13175_v58  ;;  %v6635_v55 = vsub.f32 %v13192_v29, %v17247_v51  ;;  %v5334_v4 = vand.u32 4294901760, %v5333_v16  ;;  %v6630_v29 = vand.u32 4294901760, %v6629_v46  ;;  %v17258_v20 = vld [vmem:[#allocation126_spill] sm:$0xff]  ;;  %v17259_v47 = vld [vmem:[#allocation132_spill] sm:$0xff]  ;;  %v17365_v36 = vld [vmem:[#allocation93_spill] sm:$0xff] }
 0x64c   : > { %6596 = vmatprep.mubr.f32.mxu1 %v17246_v53  ;;  %9060 = vmatprep.subr.bf16.mxu0 %v13181_v13  ;;  %v6617_v53 = vsub.f32 %v13177_v30, %v15785_v35  ;;  %v17248_v35 = vand.u32 4294901760, %v13194_v3  ;;  %v6624_v13 = vand.u32 4294901760, %v6623_v39  ;;  %v5369_v58 = vsub.f32 %v13201_v37, %v17251_v57  ;;  %v17257_v57 = vld [vmem:[#allocation125_spill] sm:$0xff]  ;;  %v17262_v46 = vld [vmem:[#allocation122_spill] sm:$0xff]  ;;  %v17292_v30 = vld [vmem:[#allocation240_spill] sm:$0xff] }
 0x64d   : > { %9444 = vmatprep.subr.bf16.mxu1 %v13188_v33  ;;  %v5357_v33 = vsub.f32 %v13199_v42, %v17249_v17  ;;  %v17255_v17 = vand.u32 4294901760, %v13207_v23  ;;  %v5346_v39 = vand.u32 4294901760, %v5345_v32  ;;  %v5352_v10 = vand.u32 4294901760, %v5351_v41  ;;  %v17261_v32 = vld [vmem:[#allocation121_spill] sm:$0xff] }
 0x64e   : > { %9062 = vmatpush1.bf16.msra.mxu0 %v13197_v7  ;;  %v6647_v31 = vsub.f32 %v13194_v3, %v17248_v35  ;;  %v6612_v7 = vand.u32 4294901760, %v6611_v50  ;;  %v17254_v35 = vand.u32 4294901760, %v13203_v44  ;;  %v6618_v42 = vand.u32 4294901760, %v6617_v53  ;;  %v17263_v50 = vld [vmem:[#allocation229_spill] sm:$0xff]  ;;  %v17267_v53 = vld [vmem:[#allocation131_spill] sm:$0xff] }
 0x64f   : > { %9446 = vmatpush1.bf16.msra.mxu1 %v13205_v11  ;;  %9064 = vmatprep.subr.bf16.mxu0 %v17250_v2  ;;  %v6653_v11 = vsub.f32 %v13207_v23, %v17255_v17  ;;  %v17256_v2 = vld [vmem:[#allocation225_spill] sm:$0xff]  ;;  %v5364_v51 = vand.u32 4294901760, %v5363_v61  ;;  %v6636_v37 = vand.u32 4294901760, %v6635_v55  ;;  %v5358_v16 = vand.u32 4294901760, %v5357_v33 }
 0x650   : > { %9448 = vmatprep.subr.bf16.mxu1 %v17253_v18  ;;  %v6641_v3 = vsub.f32 %v13203_v44, %v17254_v35  ;;  %v6648_v18 = vand.u32 4294901760, %v6647_v31  ;;  %v5370_v35 = vand.u32 4294901760, %v5369_v58  ;;  %v17260_v44 = vand.u32 4294901760, %v17252_v1 }
 0x651   : > { %v17264_v61 = vand.u32 4294901760, %v13577_v56  ;;  %v6654_v55 = vand.u32 4294901760, %v6653_v11  ;;  %v17266_v58 = vand.u32 4294901760, %v17256_v2  ;;  %v15824_v41 = vand.u32 4294901760, %v17267_v53 }
 0x652   : > { %9066 = vmatpush1.bf16.msra.mxu0 %v17257_v57  ;;  %v13714_v17 = vsub.f32 %v17252_v1, %v17260_v44  ;;  %v6642_v31 = vand.u32 4294901760, %v6641_v3  ;;  %v13729_v44 = vpack.c.bf16 %v5340_v15, %v5328_v49  ;;  %v17268_v57 = vld [vmem:[#allocation254_spill] sm:$0xff]  ;;  %v17269_v1 = vld [vmem:[#allocation232_spill] sm:$0xff]  ;;  %v13736_v23 = vpack.c.bf16 %v5346_v39, %v5334_v4  ;;  %v17276_v39 = vld [vmem:[#allocation129_spill] sm:$0xff] }
 0x653   : > { %9450 = vmatpush1.bf16.msra.mxu1 %v17258_v20  ;;  %9068 = vmatprep.subr.bf16.mxu0 %v17259_v47  ;;  %v13722_v33 = vsub.f32 %v13577_v56, %v17264_v61  ;;  %v13727_v47 = vsub.f32 %v17256_v2, %v17266_v58  ;;  %v13731_v20 = vpack.c.bf16 %v6624_v13, %v6612_v7  ;;  %v17270_v61 = vld [vmem:[#allocation235_spill] sm:$0xff]  ;;  %v17271_v49 = vld [vmem:[#allocation238_spill] sm:$0xff]  ;;  %v17272_v15 = vand.u32 4294901760, %v17261_v32  ;;  %v17287_v2 = vld [vmem:[#allocation237_spill] sm:$0xff] }
 0x654   : > { %9452 = vmatprep.subr.bf16.mxu1 %v17263_v50  ;;  %v15827_v50 = vand.u32 4294901760, %v17268_v57  ;;  %v13738_v56 = vpack.c.bf16 %v6630_v29, %v6618_v42  ;;  %v13740_v3 = vpack.c.bf16 %v5364_v51, %v5352_v10  ;;  %v13742_v11 = vpack.c.bf16 %v6648_v18, %v6636_v37  ;;  %v17274_v18 = vld [vmem:[#allocation241_spill] sm:$0xff]  ;;  %v17275_v10 = vld [vmem:[#allocation127_spill] sm:$0xff]  ;;  %v17280_v37 = vld [vmem:[#allocation230_spill] sm:$0xff] }
 0x655   : > { %17265 = vst [vmem:[#allocation162_spill] sm:$0xff] %v13722_v33  ;;  %v13746_v13 = vpack.c.bf16 %v5370_v35, %v5358_v16  ;;  %v13752_v58 = vsub.f32 %v17261_v32, %v17272_v15  ;;  %v17273_v4 = vand.u32 4294901760, %v17262_v46  ;;  %v13760_v42 = vpack.c.bf16 %v6654_v55, %v6642_v31  ;;  %v17278_v31 = vld [vmem:[#allocation228_spill] sm:$0xff]  ;;  %v17285_v32 = vld [vmem:[#allocation18_spill] sm:$0xff] }
 0x656   : > { %9070 = vmatpush1.bf16.msra.mxu0 %v17269_v1  ;;  %v13768_v35 = vsub.f32 %v17267_v53, %v15824_v41  ;;  %v13773_v15 = vsub.f32 %v17268_v57, %v15827_v50  ;;  %v17284_v53 = vld [vmem:[#allocation247_spill] sm:$0xff]  ;;  %v17286_v57 = vld [vmem:[#allocation236_spill] sm:$0xff]  ;;  %v17289_v16 = vand.u32 4294901760, %v17275_v10  ;;  %v17290_v41 = vand.u32 4294901760, %v17276_v39 }
 0x657   : > { %9454 = vmatpush1.bf16.msra.mxu1 %v17270_v61  ;;  %9072 = vmatprep.subr.bf16.mxu0 %v17271_v49  ;;  %v13757_v29 = vsub.f32 %v17262_v46, %v17273_v4  ;;  %v17277_v4 = vld [vmem:[#allocation227_spill] sm:$0xff]  ;;  %v17282_v61 = vld [vmem:[#allocation233_spill] sm:$0xff]  ;;  %v17283_v46 = vld [vmem:[#allocation234_spill] sm:$0xff]  ;;  %v6660_v50 = vand.u32 4294901760, %v13752_v58  ;;  %v17294_v25 = vand.u32 4294901760, %v17278_v31 }
 0x658   : > { %9456 = vmatprep.subr.bf16.mxu1 %v17274_v18  ;;  %v17279_v18 = vld [vmem:[#allocation244_spill] sm:$0xff]  ;;  %v17281_v49 = vld [vmem:[#allocation231_spill] sm:$0xff]  ;;  %v6665_v1 = vsub.f32 %v17275_v10, %v17289_v16  ;;  %v6677_v51 = vsub.f32 %v17276_v39, %v17290_v41  ;;  %v5394_v55 = vand.u32 4294901760, %v13773_v15  ;;  %v17296_v41 = vand.u32 4294901760, %v17280_v37 }
 0x659   : > { %v6672_v7 = vand.u32 4294901760, %v13757_v29  ;;  %v5382_v29 = vand.u32 4294901760, %v13768_v35  ;;  %v5411_v16 = vsub.f32 %v17278_v31, %v17294_v25  ;;  %v17295_v10 = vld [vmem:[#allocation24_spill] sm:$0xff]  ;;  %v17297_v58 = vand.u32 4294901760, %v17281_v49  ;;  %v17301_v25 = vld [vmem:[#allocation31_spill] sm:$0xff] }
 0x65a   : > { %9074 = vmatpush1.bf16.msra.mxu0 %v17279_v18  ;;  %v17293_v18 = vand.u32 4294901760, %v17277_v4  ;;  %v17298_v15 = vand.u32 4294901760, %v17282_v61  ;;  %v6666_v19 = vand.u32 4294901760, %v6665_v1  ;;  %v17311_v33 = vld [vmem:[#allocation80_spill] sm:$0xff] }
 0x65b   : > { %9458 = vmatpush1.bf16.msra.mxu1 %v17284_v53  ;;  %9076 = vmatprep.subr.bf16.mxu0 %v17285_v32  ;;  %v17291_v53 = vld [vmem:[#allocation239_spill] sm:$0xff]  ;;  %v6683_v32 = vsub.f32 %v17280_v37, %v17296_v41  ;;  %v6695_v35 = vsub.f32 %v17281_v49, %v17297_v58  ;;  %v17303_v37 = vand.u32 4294901760, %v17287_v2  ;;  %v17304_v49 = vld [vmem:[#allocation242_spill] sm:$0xff]  ;;  %v5412_v63 = vand.u32 4294901760, %v5411_v16 }
 0x65c   : > { %9460 = vmatprep.subr.bf16.mxu1 %v17288_v26  ;;  %v5399_v26 = vsub.f32 %v17277_v4, %v17293_v18  ;;  %v5405_v39 = vsub.f32 %v17282_v61, %v17298_v15  ;;  %v17299_v18 = vand.u32 4294901760, %v17283_v46  ;;  %v17306_v61 = vld [vmem:[#allocation35_spill] sm:$0xff]  ;;  %v17315_v16 = vand.u32 4294901760, %v17305_v5 }
 0x65d   : > { %v6701_v58 = vsub.f32 %v17287_v2, %v17303_v37  ;;  %v17310_v2 = vld [vmem:[#allocation246_spill] sm:$0xff]  ;;  %v6684_v15 = vand.u32 4294901760, %v6683_v32  ;;  %v17316_v37 = vld [vmem:[#allocation105_spill] sm:$0xff] }
 0x65e   : > { %9078 = vmatpush1.bf16.msra.mxu0 %v17295_v10  ;;  %v5417_v4 = vsub.f32 %v17283_v46, %v17299_v18  ;;  %v17302_v10 = vand.u32 4294901760, %v17286_v57  ;;  %v6678_v18 = vand.u32 4294901760, %v6677_v51  ;;  %v17308_v46 = vand.u32 4294901760, %v17292_v30 }
 0x65f   : > { %9462 = vmatpush1.bf16.msra.mxu1 %v17300_v24  ;;  %9080 = vmatprep.subr.bf16.mxu0 %v17301_v25  ;;  %v17307_v24 = vand.u32 4294901760, %v17291_v53  ;;  %v5406_v1 = vand.u32 4294901760, %v5405_v39  ;;  %v6719_v31 = vsub.f32 %v17305_v5, %v17315_v16  ;;  %v17317_v39 = vld [vmem:[#allocation16_spill] sm:$0xff]  ;;  %v17342_v5 = vld [vmem:[#allocation55_spill] sm:$0xff] }
 0x660   : > { %v6689_v41 = vsub.f32 %v17286_v57, %v17302_v10  ;;  %9464 = vmatprep.subr.bf16.mxu1 %v17306_v61  ;;  %v5435_v10 = vsub.f32 %v17292_v30, %v17308_v46  ;;  %v5400_v57 = vand.u32 4294901760, %v5399_v26  ;;  %v6696_v61 = vand.u32 4294901760, %v6695_v35 }
 0x661   : > { %v5423_v25 = vsub.f32 %v17291_v53, %v17307_v24  ;;  %v5418_v51 = vand.u32 4294901760, %v5417_v4  ;;  %v6702_v53 = vand.u32 4294901760, %v6701_v58  ;;  %v17314_v46 = vand.u32 4294901760, %v17304_v49 }
 0x662   : > { %9082 = vmatpush1.bf16.msra.mxu0 %v17311_v33  ;;  %v6690_v24 = vand.u32 4294901760, %v6689_v41  ;;  %v5436_v35 = vand.u32 4294901760, %v5435_v10  ;;  %v17318_v33 = vld [vmem:[#allocation250_spill] sm:$0xff]  ;;  %v17320_v41 = vand.u32 4294901760, %v13727_v47  ;;  %v13855_v30 = vpack.c.bf16 %v6672_v7, %v6660_v50  ;;  %v17323_v10 = vld [vmem:[#allocation199_spill] sm:$0xff] }
 0x663   : > { %9466 = vmatpush1.bf16.msra.mxu1 %v17312_v6  ;;  %9084 = vmatprep.subr.bf16.mxu0 %v17313_v28  ;;  %v6707_v26 = vsub.f32 %v17304_v49, %v17314_v46  ;;  %v5424_v32 = vand.u32 4294901760, %v5423_v25  ;;  %v17319_v28 = vand.u32 4294901760, %v13714_v17  ;;  %v17321_v46 = vand.u32 4294901760, %v17309_v45  ;;  %v17325_v50 = vld [vmem:[#allocation206_spill] sm:$0xff]  ;;  %v17344_v49 = vld [vmem:[#allocation36_spill] sm:$0xff] }
 0x664   : > { %9468 = vmatprep.subr.bf16.mxu1 %v17316_v37  ;;  %v17322_v37 = vand.u32 4294901760, %v17310_v2  ;;  %v13864_v4 = vpack.c.bf16 %v5394_v55, %v5382_v29  ;;  %v13866_v6 = vpack.c.bf16 %v6678_v18, %v6666_v19  ;;  %v13868_v17 = vpack.c.bf16 %v5412_v63, %v5400_v57  ;;  %v17329_v29 = vld [vmem:[#allocation19_spill] sm:$0xff] }
 0x665   : > { %v13853_v58 = vpack.c.bf16 %v17320_v41, %v17319_v28  ;;  %v5429_v16 = vsub.f32 %v17309_v45, %v17321_v46  ;;  %v13870_v47 = vpack.c.bf16 %v6696_v61, %v6684_v15  ;;  %v17324_v28 = vld [vmem:[#allocation201_spill] sm:$0xff]  ;;  %v13874_v7 = vpack.c.bf16 %v5418_v51, %v5406_v1  ;;  %v17337_v45 = vld [vmem:[#allocation48_spill] sm:$0xff] }
 0x666   : > { %v5441_v25 = vsub.f32 %v17310_v2, %v17322_v37  ;;  %9086 = vmatpush1.bf16.msra.mxu0 %v17323_v10  ;;  %v13876_v41 = vpack.c.bf16 %v6702_v53, %v6690_v24  ;;  %v6708_v46 = vand.u32 4294901760, %v6707_v26  ;;  %v6720_v37 = vand.u32 4294901760, %v6719_v31  ;;  %v17326_v2 = vld [vmem:[#allocation40_spill] sm:$0xff]  ;;  %v17331_v24 = vld [vmem:[#allocation255_spill] sm:$0xff]  ;;  %v17336_v10 = vld [vmem:[#allocation29_spill] sm:$0xff] }
 0x667   : > { %9470 = vmatpush1.bf16.msra.mxu1 %v17324_v28  ;;  %9088 = vmatprep.subr.bf16.mxu0 %v17325_v50  ;;  %v13879_v55 = vpack.c.bf16 %v5436_v35, %v5424_v32  ;;  %v17327_v19 = vand.u32 4294901760, %v17317_v39  ;;  %v17328_v57 = vand.u32 4294901760, %v17318_v33  ;;  %v5430_v18 = vand.u32 4294901760, %v5429_v16  ;;  %v17330_v53 = vld [vmem:[#allocation20_spill] sm:$0xff]  ;;  %v17333_v32 = vld [vmem:[#allocation23_spill] sm:$0xff]  ;;  %v17335_v28 = vld [vmem:[#allocation26_spill] sm:$0xff] }
 0x668   : > { %9472 = vmatprep.subr.bf16.mxu1 %v17326_v2  ;;  %v5442_v1 = vand.u32 4294901760, %v5441_v25  ;;  %v17332_v26 = vld [vmem:[#allocation44_spill] sm:$0xff]  ;;  %v17334_v2 = vld [vmem:[#allocation25_spill] sm:$0xff]  ;;  %v13897_v16 = vpack.c.bf16 %v6720_v37, %v6708_v46  ;;  %v17339_v25 = vld [vmem:[#allocation30_spill] sm:$0xff]  ;;  %v17346_v46 = vand.u32 4294901760, %v17330_v53  ;;  %v17347_v31 = vand.u32 4294901760, %v17331_v24 }
 0x669   : > { %v6713_v63 = vsub.f32 %v17317_v39, %v17327_v19  ;;  %v6725_v61 = vsub.f32 %v17318_v33, %v17328_v57  ;;  %v17338_v57 = vld [vmem:[#allocation51_spill] sm:$0xff]  ;;  %v17340_v15 = vld [vmem:[#allocation32_spill] sm:$0xff]  ;;  %v17341_v33 = vld [vmem:[#allocation34_spill] sm:$0xff]  ;;  %v17343_v19 = vand.u32 4294901760, %v17329_v29 }
 0x66a   : > { %9090 = vmatpush1.bf16.msra.mxu0 %v17332_v26  ;;  %v13907_v22 = vpack.c.bf16 %v5442_v1, %v5430_v18  ;;  %v5459_v37 = vsub.f32 %v17330_v53, %v17346_v46  ;;  %v6731_v26 = vsub.f32 %v17331_v24, %v17347_v31  ;;  %v17348_v51 = vld [vmem:[#allocation72_spill] sm:$0xff]  ;;  %v17352_v1 = vand.u32 4294901760, %v17335_v28  ;;  %v17354_v24 = vld [vmem:[#allocation63_spill] sm:$0xff] }
 0x66b   : > { %9474 = vmatpush1.bf16.msra.mxu1 %v17337_v45  ;;  %9092 = vmatprep.subr.bf16.mxu0 %v17338_v57  ;;  %v6714_v35 = vand.u32 4294901760, %v6713_v63  ;;  %v6726_v50 = vand.u32 4294901760, %v6725_v61  ;;  %v5447_v39 = vsub.f32 %v17329_v29, %v17343_v19  ;;  %v17349_v63 = vld [vmem:[#allocation60_spill] sm:$0xff]  ;;  %v17350_v61 = vand.u32 4294901760, %v17333_v32  ;;  %v17363_v29 = vld [vmem:[#allocation86_spill] sm:$0xff] }
 0x66c   : > { %9476 = vmatprep.subr.bf16.mxu1 %v17342_v5  ;;  %17345 = vst [vmem:[#allocation57_spill] sm:$0xff] %v13907_v22  ;;  %v17351_v45 = vand.u32 4294901760, %v17334_v2  ;;  %v5465_v46 = vsub.f32 %v17335_v28, %v17352_v1  ;;  %v17353_v57 = vand.u32 4294901760, %v17336_v10  ;;  %v17355_v5 = vld [vmem:[#allocation70_spill] sm:$0xff]  ;;  %v17359_v28 = vld [vmem:[#allocation75_spill] sm:$0xff]  ;;  %v5460_v22 = vand.u32 4294901760, %v5459_v37 }
 0x66d   : > { %v6743_v19 = vsub.f32 %v17333_v32, %v17350_v61  ;;  %v17357_v32 = vand.u32 4294901760, %v17340_v15  ;;  %v13941_v53 = vpack.c.bf16 %v6726_v50, %v6714_v35  ;;  %v6732_v50 = vand.u32 4294901760, %v6731_v26 }
 0x66e   : > { %9094 = vmatpush1.bf16.msra.mxu0 %v17349_v63  ;;  %v5453_v18 = vsub.f32 %v17334_v2, %v17351_v45  ;;  %v6737_v31 = vsub.f32 %v17336_v10, %v17353_v57  ;;  %v17356_v63 = vand.u32 4294901760, %v17339_v25  ;;  %v17358_v2 = vand.u32 4294901760, %v17341_v33 }
 0x66f   : > { %9478 = vmatpush1.bf16.msra.mxu1 %v17354_v24  ;;  %9096 = vmatprep.subr.bf16.mxu0 %v17355_v5  ;;  %v5471_v45 = vsub.f32 %v17340_v15, %v17357_v32  ;;  %17360 = vst [vmem:[#allocation163_spill] sm:$0xff] %v13941_v53  ;;  %v17361_v57 = vand.u32 4294901760, %v17344_v49  ;;  %v17362_v24 = vld [vmem:[#allocation84_spill] sm:$0xff]  ;;  %v17364_v32 = vand.u32 4294901760, %v17348_v51  ;;  %v6744_v35 = vand.u32 4294901760, %v6743_v19 }
 0x670   : > { %v6749_v61 = vsub.f32 %v17339_v25, %v17356_v63  ;;  %v5483_v1 = vsub.f32 %v17341_v33, %v17358_v2  ;;  %9480 = vmatprep.subr.bf16.mxu1 %v17359_v28  ;;  %v5448_v25 = vand.u32 4294901760, %v5447_v39  ;;  %v17366_v33 = vld [vmem:[#allocation85_spill] sm:$0xff]  ;;  %v5454_v28 = vand.u32 4294901760, %v5453_v18  ;;  %v17372_v18 = vld [vmem:[#allocation94_spill] sm:$0xff] }
 0x671   : > { %v6755_v5 = vsub.f32 %v17344_v49, %v17361_v57  ;;  %v6767_v15 = vsub.f32 %v17348_v51, %v17364_v32  ;;  %v5466_v53 = vand.u32 4294901760, %v5465_v46  ;;  %v17368_v57 = vld [vmem:[#allocation138_spill] sm:$0xff]  ;;  %v6738_v10 = vand.u32 4294901760, %v6737_v31  ;;  %v17378_v51 = vld [vmem:[#allocation192_spill] sm:$0xff]  ;;  %v17380_v46 = vld [vmem:[#allocation149_spill] sm:$0xff] }
 0x672   : > { %9098 = vmatpush1.bf16.msra.mxu0 %v17366_v33  ;;  %v6750_v63 = vand.u32 4294901760, %v6749_v61  ;;  %v5472_v39 = vand.u32 4294901760, %v5471_v45  ;;  %v5484_v37 = vand.u32 4294901760, %v5483_v1  ;;  %v17369_v49 = vld [vmem:[#allocation142_spill] sm:$0xff]  ;;  %v17370_v32 = vand.u32 4294901760, %v17362_v24  ;;  %v17374_v61 = vld [vmem:[#allocation95_spill] sm:$0xff] }
 0x673   : > { %9482 = vmatpush1.bf16.msra.mxu1 %v17367_v60  ;;  %9100 = vmatprep.subr.bf16.mxu0 %v17368_v57  ;;  %v6756_v43 = vand.u32 4294901760, %v6755_v5  ;;  %v17371_v26 = vand.u32 4294901760, %v17363_v29  ;;  %v6768_v60 = vand.u32 4294901760, %v6767_v15  ;;  %v17373_v57 = vand.u32 4294901760, %v17365_v36  ;;  %v17375_v1 = vld [vmem:[#allocation103_spill] sm:$0xff]  ;;  %v17376_v5 = vld [vmem:[#allocation146_spill] sm:$0xff] }
 0x674   : > { %9484 = vmatprep.subr.bf16.mxu1 %v17369_v49  ;;  %v5477_v2 = vsub.f32 %v17362_v24, %v17370_v32  ;;  %v13969_v33 = vpack.c.bf16 %v5460_v22, %v5448_v25  ;;  %v17377_v32 = vld [vmem:[#allocation133_spill] sm:$0xff]  ;;  %v13976_v15 = vpack.c.bf16 %v6744_v35, %v6732_v50  ;;  %v13980_v45 = vpack.c.bf16 %v6750_v63, %v6738_v10  ;;  %v17387_v35 = vld [vmem:[#allocation172_spill] sm:$0xff] }
 0x675   : > { %v5489_v19 = vsub.f32 %v17363_v29, %v17371_v26  ;;  %v6761_v31 = vsub.f32 %v17365_v36, %v17373_v57  ;;  %v17379_v26 = vld [vmem:[#allocation194_spill] sm:$0xff]  ;;  %v13978_v57 = vpack.c.bf16 %v5466_v53, %v5454_v28  ;;  %v17381_v49 = vld [vmem:[#allocation197_spill] sm:$0xff]  ;;  %v13984_v22 = vpack.c.bf16 %v5484_v37, %v5472_v39 }
 0x676   : > { %9102 = vmatpush1.bf16.msra.mxu0 %v17376_v5  ;;  %v5478_v25 = vand.u32 4294901760, %v5477_v2  ;;  %v17383_v29 = vand.u32 4294901760, %v17372_v18  ;;  %v17385_v28 = vand.u32 4294901760, %v17374_v61  ;;  %v17386_v53 = vand.u32 4294901760, %v17375_v1  ;;  %v17393_v5 = vld [vmem:[#allocation178_spill] sm:$0xff] }
 0x677   : > { %9486 = vmatpush1.bf16.msra.mxu1 %v17380_v46  ;;  %9104 = vmatprep.subr.bf16.mxu0 %v13505_v62  ;;  %17382 = vst [vmem:[#allocation62_spill] sm:$0xff] %v13984_v22  ;;  %v5490_v12 = vand.u32 4294901760, %v5489_v19  ;;  %v13989_v46 = vpack.c.bf16 %v6768_v60, %v6756_v43  ;;  %v6762_v50 = vand.u32 4294901760, %v6761_v31  ;;  %v17388_v2 = vand.u32 4294901760, %v17377_v32  ;;  %v17391_v19 = vld [vmem:[#allocation200_spill] sm:$0xff]  ;;  %v17396_v62 = vld [vmem:[#allocation38_spill] sm:$0xff] }
 0x678   : > { %9488 = vmatprep.subr.bf16.mxu1 %v13512_v9  ;;  %v6773_v24 = vsub.f32 %v17372_v18, %v17383_v29  ;;  %v5495_v10 = vsub.f32 %v17374_v61, %v17385_v28  ;;  %v5507_v63 = vsub.f32 %v17375_v1, %v17386_v53  ;;  %v17389_v37 = vand.u32 4294901760, %v17378_v51  ;;  %v17392_v28 = vld [vmem:[#allocation175_spill] sm:$0xff]  ;;  %v17399_v31 = vld [vmem:[#allocation41_spill] sm:$0xff] }
 0x679   : > { %17384 = vst [vmem:[#allocation164_spill] sm:$0xff] %v13989_v46  ;;  %v6779_v39 = vsub.f32 %v17377_v32, %v17388_v2  ;;  %v17390_v60 = vand.u32 4294901760, %v17379_v26  ;;  %v17394_v53 = vand.u32 4294901760, %v17381_v49  ;;  %v17395_v9 = vld [vmem:[#allocation203_spill] sm:$0xff]  ;;  %v14017_v61 = vpack.c.bf16 %v5490_v12, %v5478_v25  ;;  %v17401_v46 = vld [vmem:[#allocation45_spill] sm:$0xff]  ;;  %v17405_v25 = vld [vmem:[#allocation202_spill] sm:$0xff] }
 0x67a   : > { %9106 = vmatpush1.bf16.msra.mxu0 %v17387_v35  ;;  %v6791_v43 = vsub.f32 %v17378_v51, %v17389_v37  ;;  %v17397_v1 = vld [vmem:[#allocation39_spill] sm:$0xff]  ;;  %v17398_v51 = vld [vmem:[#allocation181_spill] sm:$0xff]  ;;  %v5508_v36 = vand.u32 4294901760, %v5507_v63 }
 0x67b   : > { %v5501_v29 = vsub.f32 %v17379_v26, %v17390_v60  ;;  %9490 = vmatpush1.bf16.msra.mxu1 %v17392_v28  ;;  %9108 = vmatprep.subr.bf16.mxu0 %v17393_v5  ;;  %v5513_v35 = vsub.f32 %v17381_v49, %v17394_v53  ;;  %v6774_v60 = vand.u32 4294901760, %v6773_v24  ;;  %v15905_v26 = vand.u32 4294901760, %v17399_v31  ;;  %v17400_v28 = vld [vmem:[#allocation42_spill] sm:$0xff]  ;;  %v17404_v24 = vld [vmem:[#allocation193_spill] sm:$0xff] }
 0x67c   : > { %9492 = vmatprep.subr.bf16.mxu1 %v17398_v51  ;;  %v5496_v5 = vand.u32 4294901760, %v5495_v10  ;;  %v17402_v53 = vld [vmem:[#allocation46_spill] sm:$0xff]  ;;  %v6780_v32 = vand.u32 4294901760, %v6779_v39  ;;  %v6792_v2 = vand.u32 4294901760, %v6791_v43  ;;  %v17403_v51 = vand.u32 4294901760, %v17391_v19 }
 0x67d   : > { %v5502_v37 = vand.u32 4294901760, %v5501_v29  ;;  %v5514_v18 = vand.u32 4294901760, %v5513_v35  ;;  %v17406_v10 = vand.u32 4294901760, %v17395_v9  ;;  %v17407_v49 = vand.u32 4294901760, %v17396_v62 }
 0x67e   : > { %9110 = vmatpush1.bf16.msra.mxu0 %v13549_v48  ;;  %v6785_v12 = vsub.f32 %v17391_v19, %v17403_v51  ;;  %v17408_v39 = vand.u32 4294901760, %v17397_v1  ;;  %v6803_v51 = vsub.f32 %v17399_v31, %v15905_v26  ;;  %v17409_v35 = vand.u32 4294901760, %v17400_v28  ;;  %v17416_v48 = vld [vmem:[#allocation54_spill] sm:$0xff]  ;;  %v17429_v19 = vld [vmem:[#allocation67_spill] sm:$0xff] }
 0x67f   : > { %9494 = vmatpush1.bf16.msra.mxu1 %v17404_v24  ;;  %9112 = vmatprep.subr.bf16.mxu0 %v17405_v25  ;;  %v6797_v63 = vsub.f32 %v17395_v9, %v17406_v10  ;;  %v5519_v22 = vsub.f32 %v17396_v62, %v17407_v49  ;;  %v17410_v25 = vld [vmem:[#allocation49_spill] sm:$0xff]  ;;  %v17411_v24 = vld [vmem:[#allocation50_spill] sm:$0xff]  ;;  %v14047_v9 = vpack.c.bf16 %v6774_v60, %v6762_v50  ;;  %v17412_v49 = vand.u32 4294901760, %v17401_v46 }
 0x680   : > { %v5531_v43 = vsub.f32 %v17397_v1, %v17408_v39  ;;  %9496 = vmatprep.subr.bf16.mxu1 %v13571_v8  ;;  %v6815_v29 = vsub.f32 %v17400_v28, %v17409_v35  ;;  %v17413_v8 = vand.u32 4294901760, %v17402_v53  ;;  %v17414_v62 = vld [vmem:[#allocation53_spill] sm:$0xff]  ;;  %v14057_v31 = vpack.c.bf16 %v5508_v36, %v5496_v5 }
 0x681   : > { %v5525_v39 = vsub.f32 %v17401_v46, %v17412_v49  ;;  %v14059_v35 = vpack.c.bf16 %v6792_v2, %v6780_v32  ;;  %v6786_v10 = vand.u32 4294901760, %v6785_v12  ;;  %v14064_v60 = vpack.c.bf16 %v5514_v18, %v5502_v37  ;;  %v17482_v46 = vld [vmem:[#allocation157_spill] sm:$0xff] }
 0x682   : > { %v5537_v1 = vsub.f32 %v17402_v53, %v17413_v8  ;;  %9114 = vmatpush1.bf16.msra.mxu0 %v13580_v27  ;;  %v6798_v49 = vand.u32 4294901760, %v6797_v63  ;;  %v5520_v28 = vand.u32 4294901760, %v5519_v22  ;;  %v5532_v8 = vand.u32 4294901760, %v5531_v43  ;;  %v17421_v22 = vld [vmem:[#allocation56_spill] sm:$0xff]  ;;  %v17428_v63 = vld [vmem:[#allocation66_spill] sm:$0xff]  ;;  %v17483_v53 = vld [vmem:[#allocation33_spill] sm:$0xff] }
 0x683   : > { %17415 = vst [vmem:[#allocation69_spill] sm:$0xff] %v14059_v35  ;;  %9498 = vmatpush1.bf16.msra.mxu1 %v13588_v38  ;;  %9116 = vmatprep.subr.bf16.mxu0 %v13598_v40  ;;  %17417 = vst [vmem:[#allocation165_spill] sm:$0xff] %v14064_v60  ;;  %v6804_v26 = vand.u32 4294901760, %v6803_v51  ;;  %v6816_v27 = vand.u32 4294901760, %v6815_v29  ;;  %v17418_v36 = vand.u32 4294901760, %v17410_v25  ;;  %v17419_v32 = vand.u32 4294901760, %v17411_v24 }
 0x684   : > { %9500 = vmatprep.subr.bf16.mxu1 %v13604_v34  ;;  %v5526_v12 = vand.u32 4294901760, %v5525_v39  ;;  %v5538_v50 = vand.u32 4294901760, %v5537_v1  ;;  %v17420_v18 = vand.u32 4294901760, %v17414_v62  ;;  %v17422_v43 = vand.u32 4294901760, %v17416_v48  ;;  %v17423_v29 = vld [vmem:[#allocation58_spill] sm:$0xff]  ;;  %v17424_v34 = vld [vmem:[#allocation59_spill] sm:$0xff] }
 0x685   : > { %v6809_v5 = vsub.f32 %v17410_v25, %v17418_v36  ;;  %v6821_v2 = vsub.f32 %v17411_v24, %v17419_v32  ;;  %v17425_v38 = vld [vmem:[#allocation61_spill] sm:$0xff]  ;;  %v14086_v1 = vpack.c.bf16 %v6798_v49, %v6786_v10  ;;  %v15921_v60 = vand.u32 4294901760, %v17429_v19  ;;  %v17432_v32 = vld [vmem:[#allocation71_spill] sm:$0xff] }
 0x686   : > { %v5543_v37 = vsub.f32 %v17414_v62, %v17420_v18  ;;  %9118 = vmatpush1.bf16.msra.mxu0 %v13611_v21  ;;  %v5555_v51 = vsub.f32 %v17416_v48, %v17422_v43  ;;  %v17427_v39 = vld [vmem:[#allocation65_spill] sm:$0xff]  ;;  %v14092_v43 = vpack.c.bf16 %v5532_v8, %v5520_v28  ;;  %v14094_v36 = vpack.c.bf16 %v6816_v27, %v6804_v26 }
 0x687   : > { %9502 = vmatpush1.bf16.msra.mxu1 %v13629_v0  ;;  %9120 = vmatprep.subr.bf16.mxu0 %v13729_v44  ;;  %17426 = vst [vmem:[#allocation76_spill] sm:$0xff] %v14086_v1  ;;  %v6810_v40 = vand.u32 4294901760, %v6809_v5  ;;  %v15923_v35 = vand.u32 4294901760, %v17432_v32  ;;  %v17433_v0 = vld [vmem:[#allocation99_spill] sm:$0xff]  ;;  %v14098_v44 = vpack.c.bf16 %v5538_v50, %v5526_v12  ;;  %v6822_v10 = vand.u32 4294901760, %v6821_v2  ;;  %v17439_v2 = vld [vmem:[#allocation249_spill] sm:$0xff] }
 0x688   : > { %9504 = vmatprep.subr.bf16.mxu1 %v13731_v20  ;;  %17430 = vst [vmem:[#allocation64_spill] sm:$0xff] %v14092_v43  ;;  %17431 = vst [vmem:[#allocation83_spill] sm:$0xff] %v14094_v36  ;;  %v5544_v49 = vand.u32 4294901760, %v5543_v37  ;;  %v17435_v18 = vand.u32 4294901760, %v17421_v22  ;;  %v5556_v20 = vand.u32 4294901760, %v5555_v51  ;;  %v17436_v27 = vand.u32 4294901760, %v17423_v29 }
 0x689   : > { %5318 = vmatmul.mubr.f32.vlgmr.msra.gmra.mrb[4].mxu0 %v17433_v0  ;;  %17434 = vst [vmem:[#allocation68_spill] sm:$0xff] %v14098_v44  ;;  %v17437_v28 = vand.u32 4294901760, %v17424_v34  ;;  %v17438_v8 = vand.u32 4294901760, %v17425_v38  ;;  %v17441_v12 = vand.u32 4294901760, %v17428_v63  ;;  %v14137_v51 = vsub.f32 %v17429_v19, %v15921_v60  ;;  %v17445_v44 = vld [vmem:[#allocation89_spill] sm:$0xff]  ;;  %v17460_v19 = vld [vmem:[#allocation151_spill] sm:$0xff] }
 0x68a   : > { %v14103_v21 = vsub.f32 %v17421_v22, %v17435_v18  ;;  %6602 = vmatmul.mubr.f32.vlgmr.msra.gmra.mrb[4].mxu1 %v17433_v0  ;;  %9122 = vmatpush1.bf16.msra.mxu0 %v13736_v23  ;;  %v14110_v26 = vsub.f32 %v17423_v29, %v17436_v27  ;;  %v17440_v23 = vand.u32 4294901760, %v17427_v39  ;;  %v17442_v18 = vld [vmem:[#allocation77_spill] sm:$0xff]  ;;  %v14151_v60 = vpack.c.bf16 %v6822_v10, %v6810_v40  ;;  %v17463_v27 = vld [vmem:[#allocation168_spill] sm:$0xff]  ;;  %v17474_v22 = vld [vmem:[#allocation187_spill] sm:$0xff] }
 0x68b   : > { %v14115_v50 = vsub.f32 %v17424_v34, %v17437_v28  ;;  %v14120_v5 = vsub.f32 %v17425_v38, %v17438_v8  ;;  %5709 = vmatprep.mubr.f32.mxu0 %v17439_v2  ;;  %9506 = vmatpush1.bf16.msra.mxu1 %v13738_v56  ;;  %v14132_v37 = vsub.f32 %v17428_v63, %v17441_v12  ;;  %v17443_v28 = vld [vmem:[#allocation79_spill] sm:$0xff]  ;;  %v17453_v10 = vand.u32 4294901760, %v17445_v44  ;;  %v17455_v12 = vld [vmem:[#allocation141_spill] sm:$0xff]  ;;  %v17471_v34 = vld [vmem:[#allocation180_spill] sm:$0xff] }
 0x68c   : > { %v14127_v0 = vsub.f32 %v17427_v39, %v17440_v23  ;;  %6993 = vmatprep.mubr.f32.mxu1 %v17439_v2  ;;  %9124 = vmatprep.subr.bf16.mxu0 %v13740_v3  ;;  %v14145_v56 = vsub.f32 %v17432_v32, %v15923_v35  ;;  %v17444_v23 = vld [vmem:[#allocation81_spill] sm:$0xff]  ;;  %17446 = vst [vmem:[#allocation90_spill] sm:$0xff] %v14151_v60  ;;  %v17447_v2 = vld [vmem:[#allocation136_spill] sm:$0xff]  ;;  %v17451_v36 = vand.u32 4294901760, %v17443_v28  ;;  %v17462_v39 = vld [vmem:[#allocation154_spill] sm:$0xff]  ;;  %v17492_v38 = vand.u32 4294901760, %v17455_v12 }
 0x68d   : > { %9508 = vmatprep.subr.bf16.mxu1 %v13742_v11  ;;  %v15924_v43 = vand.u32 4294901760, %v17447_v2  ;;  %v17448_v3 = vld [vmem:[#allocation137_spill] sm:$0xff]  ;;  %v14157_v35 = vpack.c.bf16 %v5556_v20, %v5544_v49  ;;  %v14187_v40 = vsub.f32 %v17445_v44, %v17453_v10  ;;  %v17459_v20 = vld [vmem:[#allocation148_spill] sm:$0xff]  ;;  %v17470_v63 = vld [vmem:[#allocation179_spill] sm:$0xff]  ;;  %v17497_v29 = vand.u32 4294901760, %v14110_v26 }
 0x68e   : > { %v15925_v1 = vand.u32 4294901760, %v17448_v3  ;;  %9126 = vmatpush1.bf16.msra.mxu0 %v13746_v13  ;;  %v17450_v13 = vand.u32 4294901760, %v17442_v18  ;;  %v17468_v44 = vld [vmem:[#allocation176_spill] sm:$0xff]  ;;  %v17472_v32 = vld [vmem:[#allocation183_spill] sm:$0xff]  ;;  %v17489_v8 = vld [vmem:[#allocation162_spill] sm:$0xff]  ;;  %v5603_v14 = vsub.f32 %v17455_v12, %v17492_v38 }
 0x68f   : > { %17449 = vst [vmem:[#allocation73_spill] sm:$0xff] %v14157_v35  ;;  %9510 = vmatpush1.bf16.msra.mxu1 %v13760_v42  ;;  %9128 = vmatprep.subr.bf16.mxu0 %v13853_v58  ;;  %v14177_v42 = vsub.f32 %v17443_v28, %v17451_v36  ;;  %v17452_v58 = vand.u32 4294901760, %v17444_v23  ;;  %v17469_v28 = vld [vmem:[#allocation177_spill] sm:$0xff]  ;;  %v17493_v60 = vld [vmem:[#allocation163_spill] sm:$0xff] }
 0x690   : > { %v14170_v49 = vsub.f32 %v17442_v18, %v17450_v13  ;;  %9512 = vmatprep.subr.bf16.mxu1 %v13855_v30  ;;  %v14192_v30 = vsub.f32 %v17447_v2, %v15924_v43  ;;  %v14197_v36 = vsub.f32 %v17448_v3, %v15925_v1  ;;  %v17454_v13 = vld [vmem:[#allocation139_spill] sm:$0xff]  ;;  %v17457_v43 = vld [vmem:[#allocation144_spill] sm:$0xff]  ;;  %v17466_v2 = vld [vmem:[#allocation173_spill] sm:$0xff]  ;;  %v5604_v26 = vand.u32 4294901760, %v5603_v14 }
 0x691   : > { %v14182_v11 = vsub.f32 %v17444_v23, %v17452_v58  ;;  %v17456_v1 = vld [vmem:[#allocation143_spill] sm:$0xff]  ;;  %v17467_v3 = vld [vmem:[#allocation174_spill] sm:$0xff]  ;;  %v17484_v35 = vld [vmem:[#allocation37_spill] sm:$0xff]  ;;  %v17491_v24 = vand.u32 4294901760, %v17454_v13  ;;  %v17506_v14 = vand.u32 4294901760, %v14137_v51 }
 0x692   : > { %9130 = vmatpush1.bf16.msra.mxu0 %v13864_v4  ;;  %v17458_v58 = vld [vmem:[#allocation147_spill] sm:$0xff]  ;;  %v17486_v4 = vld [vmem:[#allocation160_spill] sm:$0xff]  ;;  %v17490_v10 = vld [vmem:[#allocation57_spill] sm:$0xff]  ;;  %v6852_v25 = vand.u32 4294901760, %v14170_v49  ;;  %v17494_v62 = vand.u32 4294901760, %v17456_v1  ;;  %v6870_v49 = vand.u32 4294901760, %v14197_v36 }
 0x693   : > { %9514 = vmatpush1.bf16.msra.mxu1 %v13866_v6  ;;  %9132 = vmatprep.subr.bf16.mxu0 %v13868_v17  ;;  %v17464_v6 = vld [vmem:[#allocation170_spill] sm:$0xff]  ;;  %v17465_v23 = vld [vmem:[#allocation171_spill] sm:$0xff]  ;;  %v17488_v17 = vld [vmem:[#allocation52_spill] sm:$0xff]  ;;  %v5591_v18 = vsub.f32 %v17454_v13, %v17491_v24  ;;  %v17495_v13 = vand.u32 4294901760, %v17457_v43  ;;  %v5574_v48 = vand.u32 4294901760, %v14182_v11 }
 0x694   : > { %9516 = vmatprep.subr.bf16.mxu1 %v13870_v47  ;;  %v17461_v47 = vld [vmem:[#allocation152_spill] sm:$0xff]  ;;  %v6875_v24 = vsub.f32 %v17456_v1, %v17494_v62  ;;  %v17498_v62 = vand.u32 4294901760, %v14115_v50  ;;  %v15954_v51 = vand.u32 4294901760, %v17465_v23 }
 0x695   : > { %v6887_v38 = vsub.f32 %v17457_v43, %v17495_v13  ;;  %v17499_v13 = vand.u32 4294901760, %v14120_v5  ;;  %v17503_v5 = vand.u32 4294901760, %v17459_v20 }
 0x696   : > { %9134 = vmatpush1.bf16.msra.mxu0 %v13874_v7  ;;  %v17473_v7 = vld [vmem:[#allocation184_spill] sm:$0xff] }
 0x697   : > { %9518 = vmatpush1.bf16.msra.mxu1 %v13876_v41  ;;  %9136 = vmatprep.subr.bf16.mxu0 %v13879_v55  ;;  %v17480_v41 = vld [vmem:[#allocation208_spill] sm:$0xff]  ;;  %v17481_v55 = vld [vmem:[#allocation155_spill] sm:$0xff]  ;;  %v14305_v1 = vpack.c.bf16 %v17499_v13, %v17498_v62  ;;  %v5609_v36 = vsub.f32 %v17459_v20, %v17503_v5  ;;  %v15955_v62 = vand.u32 4294901760, %v17461_v47  ;;  %v17507_v13 = vand.u32 4294901760, %v14145_v56 }
 0x698   : > { %9520 = vmatprep.subr.bf16.mxu1 %v13897_v16  ;;  %v17487_v16 = vld [vmem:[#allocation47_spill] sm:$0xff]  ;;  %v15953_v5 = vand.u32 4294901760, %v17464_v6 }
 0x69a   : > { %9138 = vmatpush1.bf16.msra.mxu0 %v17490_v10  ;;  %v6864_v10 = vand.u32 4294901760, %v14177_v42  ;;  %v17496_v42 = vand.u32 4294901760, %v14103_v21  ;;  %v5592_v21 = vand.u32 4294901760, %v5591_v18  ;;  %v17505_v18 = vld [vmem:[#allocation164_spill] sm:$0xff] }
 0x69b   : > { %9522 = vmatpush1.bf16.msra.mxu1 %v17493_v60  ;;  %9140 = vmatprep.subr.bf16.mxu0 %v13969_v33  ;;  %v5586_v60 = vand.u32 4294901760, %v14187_v40  ;;  %v6858_v33 = vand.u32 4294901760, %v14192_v30  ;;  %v17501_v40 = vand.u32 4294901760, %v14132_v37  ;;  %v15958_v30 = vand.u32 4294901760, %v17460_v19 }
 0x69c   : > { %9524 = vmatprep.subr.bf16.mxu1 %v13976_v15  ;;  %v14299_v12 = vpack.c.bf16 %v17497_v29, %v17496_v42  ;;  %v17500_v15 = vand.u32 4294901760, %v14127_v0  ;;  %v17502_v29 = vand.u32 4294901760, %v17458_v58  ;;  %v17504_v0 = vld [vmem:[#allocation62_spill] sm:$0xff]  ;;  %v6876_v37 = vand.u32 4294901760, %v6875_v24 }
 0x69d   : > { %v6888_v42 = vand.u32 4294901760, %v6887_v38  ;;  %v6881_v24 = vsub.f32 %v17460_v19, %v15958_v30  ;;  %v15951_v38 = vand.u32 4294901760, %v17463_v27  ;;  %v14345_v56 = vpack.c.bf16 %v5604_v26, %v5592_v21  ;;  %v17508_v21 = vld [vmem:[#allocation69_spill] sm:$0xff] }
 0x69e   : > { %v14311_v11 = vpack.c.bf16 %v17501_v40, %v17500_v15  ;;  %9142 = vmatpush1.bf16.msra.mxu0 %v13978_v57  ;;  %v5597_v50 = vsub.f32 %v17458_v58, %v17502_v29  ;;  %v15952_v57 = vand.u32 4294901760, %v17462_v39  ;;  %v14330_v15 = vpack.c.bf16 %v17507_v13, %v17506_v14 }
 0x69f   : > { %9526 = vmatpush1.bf16.msra.mxu1 %v13980_v45  ;;  %9144 = vmatprep.subr.bf16.mxu0 %v17504_v0  ;;  %v14332_v40 = vpack.c.bf16 %v6864_v10, %v6852_v25  ;;  %v14334_v29 = vpack.c.bf16 %v5586_v60, %v5574_v48  ;;  %v14336_v45 = vpack.c.bf16 %v6870_v49, %v6858_v33  ;;  %v5610_v10 = vand.u32 4294901760, %v5609_v36 }
 0x6a0   : > { %9528 = vmatprep.subr.bf16.mxu1 %v17505_v18  ;;  %v5598_v25 = vand.u32 4294901760, %v5597_v50  ;;  %v15956_v48 = vand.u32 4294901760, %v17466_v2  ;;  %v14350_v60 = vpack.c.bf16 %v6888_v42, %v6876_v37  ;;  %v6893_v33 = vsub.f32 %v17461_v47, %v15955_v62  ;;  %v17509_v18 = vld [vmem:[#allocation165_spill] sm:$0xff]  ;;  %v17513_v62 = vld [vmem:[#allocation83_spill] sm:$0xff] }
 0x6a1   : > { %v15957_v49 = vand.u32 4294901760, %v17467_v3  ;;  %v15959_v26 = vand.u32 4294901760, %v17468_v44  ;;  %v15965_v50 = vand.u32 4294901760, %v17471_v34  ;;  %v6882_v36 = vand.u32 4294901760, %v6881_v24 }
 0x6a2   : > { %9146 = vmatpush1.bf16.msra.mxu0 %v14017_v61  ;;  %v5615_v61 = vsub.f32 %v17462_v39, %v15952_v57  ;;  %v5627_v0 = vsub.f32 %v17463_v27, %v15951_v38  ;;  %v6899_v37 = vsub.f32 %v17464_v6, %v15953_v5  ;;  %v6911_v42 = vsub.f32 %v17465_v23, %v15954_v51  ;;  %v17510_v38 = vld [vmem:[#allocation76_spill] sm:$0xff] }
 0x6a3   : > { %9530 = vmatpush1.bf16.msra.mxu1 %v14047_v9  ;;  %9148 = vmatprep.subr.bf16.mxu0 %v14057_v31  ;;  %v15960_v9 = vand.u32 4294901760, %v17469_v28  ;;  %v15962_v31 = vand.u32 4294901760, %v17470_v63  ;;  %v14374_v14 = vpack.c.bf16 %v5610_v10, %v5598_v25  ;;  %v5621_v13 = vsub.f32 %v17466_v2, %v15956_v48  ;;  %v17511_v57 = vld [vmem:[#allocation64_spill] sm:$0xff]  ;;  %v17523_v2 = vld [vmem:[#allocation205_spill] sm:$0xff] }
 0x6a4   : > { %9532 = vmatprep.subr.bf16.mxu1 %v17508_v21  ;;  %v15966_v24 = vand.u32 4294901760, %v17472_v32  ;;  %v6894_v5 = vand.u32 4294901760, %v6893_v33  ;;  %v5633_v51 = vsub.f32 %v17467_v3, %v15957_v49  ;;  %v17512_v10 = vld [vmem:[#allocation188_spill] sm:$0xff]  ;;  %v6905_v48 = vsub.f32 %v17468_v44, %v15959_v26 }
 0x6a5   : > { %v5651_v33 = vsub.f32 %v17471_v34, %v15965_v50  ;;  %v5616_v49 = vand.u32 4294901760, %v5615_v61  ;;  %v5628_v30 = vand.u32 4294901760, %v5627_v0  ;;  %v17514_v25 = vld [vmem:[#allocation68_spill] sm:$0xff]  ;;  %v5622_v21 = vand.u32 4294901760, %v5621_v13  ;;  %v17518_v50 = vld [vmem:[#allocation73_spill] sm:$0xff] }
 0x6a6   : > { %9150 = vmatpush1.bf16.msra.mxu0 %v17509_v18  ;;  %v6900_v18 = vand.u32 4294901760, %v6899_v37  ;;  %v6923_v26 = vsub.f32 %v17472_v32, %v15966_v24  ;;  %v5634_v61 = vand.u32 4294901760, %v5633_v51  ;;  %v17519_v0 = vand.u32 4294901760, %v17474_v22 }
 0x6a7   : > { %9534 = vmatpush1.bf16.msra.mxu1 %v17510_v38  ;;  %9152 = vmatprep.subr.bf16.mxu0 %v17511_v57  ;;  %v6917_v38 = vsub.f32 %v17469_v28, %v15960_v9  ;;  %v5639_v57 = vsub.f32 %v17470_v63, %v15962_v31  ;;  %v17515_v9 = vand.u32 4294901760, %v17473_v7  ;;  %v17516_v31 = vld [vmem:[#allocation190_spill] sm:$0xff]  ;;  %v9167_v34 = vpack.c.bf16 %v5628_v30, %v5616_v49 }
 0x6a8   : > { %9536 = vmatprep.subr.bf16.mxu1 %v17513_v62  ;;  %v6912_v62 = vand.u32 4294901760, %v6911_v42  ;;  %v17517_v28 = vld [vmem:[#allocation90_spill] sm:$0xff]  ;;  %v5645_v37 = vsub.f32 %v17474_v22, %v17519_v0  ;;  %v17520_v42 = vand.u32 4294901760, %v17512_v10  ;;  %v15988_v3 = vand.u32 4294901760, %v17523_v2 }
 0x6a9   : > { %v6935_v44 = vsub.f32 %v17473_v7, %v17515_v9  ;;  %v6906_v9 = vand.u32 4294901760, %v6905_v48  ;;  %v6918_v32 = vand.u32 4294901760, %v6917_v38  ;;  %v5640_v63 = vand.u32 4294901760, %v5639_v57 }
 0x6aa   : > { %9154 = vmatpush1.bf16.msra.mxu0 %v17514_v25  ;;  %v5657_v13 = vsub.f32 %v17512_v10, %v17520_v42  ;;  %v17521_v25 = vld [vmem:[#allocation196_spill] sm:$0xff]  ;;  %v5652_v7 = vand.u32 4294901760, %v5651_v33  ;;  %v9551_v0 = vpack.c.bf16 %v6912_v62, %v6900_v18  ;;  %v6924_v22 = vand.u32 4294901760, %v6923_v26 }
 0x6ab   : > { %9538 = vmatpush1.bf16.msra.mxu1 %v17517_v28  ;;  %9156 = vmatprep.subr.bf16.mxu0 %v17518_v50  ;;  %v9549_v28 = vpack.c.bf16 %v6894_v5, %v6882_v36  ;;  %v17522_v50 = vld [vmem:[#allocation204_spill] sm:$0xff]  ;;  %v6936_v6 = vand.u32 4294901760, %v6935_v44  ;;  %v17524_v42 = vand.u32 4294901760, %v17516_v31  ;;  %v5646_v5 = vand.u32 4294901760, %v5645_v37 }
 0x6ac   : > { %9540 = vmatprep.subr.bf16.mxu1 %v14299_v12  ;;  %v15989_v51 = vand.u32 4294901760, %v17522_v50  ;;  %v9169_v12 = vpack.c.bf16 %v5634_v61, %v5622_v21  ;;  %v5658_v30 = vand.u32 4294901760, %v5657_v13  ;;  %v17525_v48 = vand.u32 4294901760, %v17521_v25 }
 0x6ad   : > { %v6929_v24 = vsub.f32 %v17516_v31, %v17524_v42  ;;  %v9171_v26 = vpack.c.bf16 %v5652_v7, %v5640_v63  ;;  %v15987_v44 = vand.u32 4294901760, %v13573_v52  ;;  %v15980_v36 = vand.u32 4294901760, %v17480_v41 }
 0x6ae   : > { %9158 = vmatpush1.bf16.msra.mxu0 %v14305_v1  ;;  %v6941_v49 = vsub.f32 %v17521_v25, %v17525_v48  ;;  %v9553_v1 = vpack.c.bf16 %v6918_v32, %v6906_v9  ;;  %v15978_v21 = vand.u32 4294901760, %v17481_v55  ;;  %v15977_v18 = vand.u32 4294901760, %v13586_v59 }
 0x6af   : > { %9542 = vmatpush1.bf16.msra.mxu1 %v14311_v11  ;;  %9160 = vmatprep.subr.bf16.mxu0 %v14330_v15  ;;  %v5663_v11 = vsub.f32 %v17522_v50, %v15989_v51  ;;  %v5675_v15 = vsub.f32 %v17523_v2, %v15988_v3  ;;  %v9555_v32 = vpack.c.bf16 %v6936_v6, %v6924_v22  ;;  %v6930_v63 = vand.u32 4294901760, %v6929_v24  ;;  %v17555_v3 = vld [vmem:[#allocation228_spill] sm:$0xff] }
 0x6b0   : > { %9544 = vmatprep.subr.bf16.mxu1 %v14332_v40  ;;  %v15976_v7 = vand.u32 4294901760, %v13590_v54  ;;  %v17526_v40 = vld [vmem:[#allocation156_spill] sm:$0xff]  ;;  %v9173_v57 = vpack.c.bf16 %v5658_v30, %v5646_v5  ;;  %v6942_v33 = vand.u32 4294901760, %v6941_v49  ;;  %v15975_v62 = vand.u32 4294901760, %v17482_v46 }
 0x6b1   : > { %v15974_v38 = vand.u32 4294901760, %v17526_v40  ;;  %v15979_v61 = vand.u32 4294901760, %v17483_v53  ;;  %v6947_v22 = vsub.f32 %v13573_v52, %v15987_v44  ;;  %v6959_v6 = vsub.f32 %v17480_v41, %v15980_v36  ;;  %v17554_v44 = vld [vmem:[#allocation227_spill] sm:$0xff] }
 0x6b2   : > { %9162 = vmatpush1.bf16.msra.mxu0 %v14334_v29  ;;  %v15981_v29 = vand.u32 4294901760, %v17484_v35  ;;  %v5664_v24 = vand.u32 4294901760, %v5663_v11  ;;  %v5676_v37 = vand.u32 4294901760, %v5675_v15  ;;  %v5669_v13 = vsub.f32 %v17481_v55, %v15978_v21 }
 0x6b3   : > { %9546 = vmatpush1.bf16.msra.mxu1 %v14336_v45  ;;  %9164 = vmatprep.subr.bf16.mxu0 %v14345_v56  ;;  %v17527_v45 = vld [vmem:[#allocation159_spill] sm:$0xff]  ;;  %v6953_v9 = vsub.f32 %v13590_v54, %v15976_v7  ;;  %v6965_v42 = vsub.f32 %v17526_v40, %v15974_v38  ;;  %v15985_v5 = vand.u32 4294901760, %v17486_v4  ;;  %v15984_v30 = vand.u32 4294901760, %v17487_v16 }
 0x6b4   : > { %9548 = vmatprep.subr.bf16.mxu1 %v14350_v60  ;;  %v15986_v56 = vand.u32 4294901760, %v17527_v45  ;;  %v5681_v60 = vsub.f32 %v13586_v59, %v15977_v18  ;;  %v5687_v48 = vsub.f32 %v17482_v46, %v15975_v62  ;;  %v15982_v49 = vand.u32 4294901760, %v17488_v17 }
 0x6b5   : > { %v15983_v11 = vand.u32 4294901760, %v17489_v8  ;;  %v6948_v15 = vand.u32 4294901760, %v6947_v22  ;;  %v6960_v38 = vand.u32 4294901760, %v6959_v6  ;;  %v9557_v62 = vpack.c.bf16 %v6942_v33, %v6930_v63 }
 0x6b6   : > { %9166 = vmatpush1.bf16.msra.mxu0 %v14374_v14  ;;  %v5699_v14 = vsub.f32 %v17483_v53, %v15979_v61  ;;  %v9175_v7 = vpack.c.bf16 %v5676_v37, %v5664_v24  ;;  %v5670_v18 = vand.u32 4294901760, %v5669_v13  ;;  %v5682_v21 = vand.u32 4294901760, %v5681_v60 }
 0x6b7   : > { %9550 = vmatpush1.bf16.msra.mxu1 %v9549_v28  ;;  %9168 = vmatprep.subr.bf16.mxu0 %v9167_v34  ;;  %v6971_v28 = vsub.f32 %v17484_v35, %v15981_v29  ;;  %v6983_v34 = vsub.f32 %v17527_v45, %v15986_v56  ;;  %v6954_v61 = vand.u32 4294901760, %v6953_v9  ;;  %v6966_v36 = vand.u32 4294901760, %v6965_v42 }
 0x6b8   : > { %9552 = vmatprep.subr.bf16.mxu1 %v9551_v0  ;;  %v5693_v0 = vsub.f32 %v17486_v4, %v15985_v5  ;;  %v5705_v22 = vsub.f32 %v17487_v16, %v15984_v30  ;;  %v5688_v6 = vand.u32 4294901760, %v5687_v48  ;;  %v5700_v29 = vand.u32 4294901760, %v5699_v14  ;;  %v17553_v5 = vld [vmem:[#allocation129_spill] sm:$0xff] }
 0x6b9   : > { %v6977_v63 = vsub.f32 %v17488_v17, %v15982_v49  ;;  %v9559_v33 = vpack.c.bf16 %v6960_v38, %v6948_v15  ;;  %v6972_v24 = vand.u32 4294901760, %v6971_v28  ;;  %v6984_v37 = vand.u32 4294901760, %v6983_v34  ;;  %v17528_v38 = vld [vmem:[#allocation209_spill] sm:$0xff]  ;;  %v17529_v15 = vld [vmem:[#allocation210_spill] sm:$0xff] }
 0x6ba   : > { %9170 = vmatpush1.bf16.msra.mxu0 %v9169_v12  ;;  %v6989_v12 = vsub.f32 %v17489_v8, %v15983_v11  ;;  %v9177_v13 = vpack.c.bf16 %v5682_v21, %v5670_v18  ;;  %v5694_v60 = vand.u32 4294901760, %v5693_v0  ;;  %v5706_v9 = vand.u32 4294901760, %v5705_v22  ;;  %v17530_v21 = vld [vmem:[#allocation212_spill] sm:$0xff]  ;;  %v17531_v18 = vld [vmem:[#allocation107_spill] sm:$0xff]  ;;  %v17536_v0 = vld [vmem:[#allocation109_spill] sm:$0xff] }
 0x6bb   : > { %9554 = vmatpush1.bf16.msra.mxu1 %v9553_v1  ;;  %9172 = vmatprep.subr.bf16.mxu0 %v9171_v26  ;;  %v9561_v1 = vpack.c.bf16 %v6966_v36, %v6954_v61  ;;  %v9179_v26 = vpack.c.bf16 %v5700_v29, %v5688_v6  ;;  %v6978_v42 = vand.u32 4294901760, %v6977_v63  ;;  %v9563_v14 = vpack.c.bf16 %v6984_v37, %v6972_v24  ;;  %v17533_v36 = vld [vmem:[#allocation215_spill] sm:$0xff]  ;;  %v17534_v61 = vld [vmem:[#allocation108_spill] sm:$0xff]  ;;  %v17535_v29 = vld [vmem:[#allocation217_spill] sm:$0xff] }
 0x6bc   : > { %9556 = vmatprep.subr.bf16.mxu1 %v9555_v32  ;;  %v6990_v48 = vand.u32 4294901760, %v6989_v12  ;;  %v9181_v49 = vpack.c.bf16 %v5706_v9, %v5694_v60  ;;  %v9183_v28 = vpack.c.bf16 %v17529_v15, %v17528_v38  ;;  %v9569_v34 = vpack.c.bf16 %v17535_v29, %v17534_v61  ;;  %v17537_v22 = vld [vmem:[#allocation219_spill] sm:$0xff]  ;;  %v17538_v63 = vld [vmem:[#allocation248_spill] sm:$0xff]  ;;  %v17542_v37 = vld [vmem:[#allocation222_spill] sm:$0xff] }
 0x6bd   : > { %v9187_v6 = vpack.c.bf16 %v17537_v22, %v17536_v0  ;;  %v17539_v12 = vld [vmem:[#allocation112_spill] sm:$0xff]  ;;  %v17551_v11 = vld [vmem:[#allocation254_spill] sm:$0xff]  ;;  %v9195_v51 = vpack.c.bf16 %v17555_v3, %v17554_v44 }
 0x6be   : > { %9174 = vmatpush1.bf16.msra.mxu0 %v9173_v57  ;;  %v9565_v32 = vpack.c.bf16 %v6990_v48, %v6978_v42  ;;  %v9567_v57 = vpack.c.bf16 %v17531_v18, %v17530_v21  ;;  %v17543_v60 = vld [vmem:[#allocation252_spill] sm:$0xff]  ;;  %v17547_v48 = vld [vmem:[#allocation225_spill] sm:$0xff]  ;;  %v17567_v44 = vld [vmem:[#allocation246_spill] sm:$0xff] }
 0x6bf   : > { %9558 = vmatpush1.bf16.msra.mxu1 %v9557_v62  ;;  %9176 = vmatprep.subr.bf16.mxu0 %v9175_v7  ;;  %v17532_v7 = vld [vmem:[#allocation214_spill] sm:$0xff]  ;;  %v17544_v9 = vld [vmem:[#allocation116_spill] sm:$0xff] }
 0x6c0   : > { %9560 = vmatprep.subr.bf16.mxu1 %v9559_v33  ;;  %v9185_v62 = vpack.c.bf16 %v17533_v36, %v17532_v7  ;;  %v17540_v33 = vld [vmem:[#allocation113_spill] sm:$0xff]  ;;  %v17546_v42 = vld [vmem:[#allocation120_spill] sm:$0xff] }
 0x6c1   : > { %v9571_v24 = vpack.c.bf16 %v17540_v33, %v17539_v12 }
 0x6c2   : > { %9178 = vmatpush1.bf16.msra.mxu0 %v9177_v13 }
 0x6c3   : > { %9562 = vmatpush1.bf16.msra.mxu1 %v9561_v1  ;;  %9180 = vmatprep.subr.bf16.mxu0 %v9179_v26  ;;  %v17545_v1 = vld [vmem:[#allocation224_spill] sm:$0xff] }
 0x6c4   : > { %9564 = vmatprep.subr.bf16.mxu1 %v9563_v14  ;;  %v9573_v26 = vpack.c.bf16 %v17545_v1, %v17544_v9  ;;  %v9191_v14 = vpack.c.bf16 %v17547_v48, %v17546_v42  ;;  %v17558_v48 = vld [vmem:[#allocation233_spill] sm:$0xff] }
 0x6c6   : > { %9182 = vmatpush1.bf16.msra.mxu0 %v9181_v49  ;;  %v17541_v49 = vld [vmem:[#allocation221_spill] sm:$0xff] }
 0x6c7   : > { %9566 = vmatpush1.bf16.msra.mxu1 %v9565_v32  ;;  %9184 = vmatprep.subr.bf16.mxu0 %v9183_v28  ;;  %v9189_v13 = vpack.c.bf16 %v17542_v37, %v17541_v49  ;;  %v17548_v32 = vld [vmem:[#allocation121_spill] sm:$0xff]  ;;  %v17549_v28 = vld [vmem:[#allocation122_spill] sm:$0xff] }
 0x6c8   : > { %9568 = vmatprep.subr.bf16.mxu1 %v9567_v57  ;;  %v9575_v57 = vpack.c.bf16 %v17549_v28, %v17548_v32  ;;  %v17559_v28 = vld [vmem:[#allocation234_spill] sm:$0xff] }
 0x6c9   : > { %5711 = vmatmul.mubr.f32.vlgmr.msra.gmra.mrb[4].mxu0 %v17538_v63 }
 0x6ca   : > { %6995 = vmatmul.mubr.f32.vlgmr.msra.gmra.mrb[4].mxu1 %v17538_v63  ;;  %9186 = vmatpush1.bf16.msra.mxu0 %v9185_v62  ;;  %v17550_v62 = vld [vmem:[#allocation131_spill] sm:$0xff]  ;;  %v17556_v63 = vld [vmem:[#allocation230_spill] sm:$0xff] }
 0x6cb   : > { %5911 = vmatprep.mubr.f32.mxu0 %v17543_v60  ;;  %9570 = vmatpush1.bf16.msra.mxu1 %v9569_v34  ;;  %v9193_v30 = vpack.c.bf16 %v17551_v11, %v17550_v62  ;;  %v17552_v34 = vld [vmem:[#allocation127_spill] sm:$0xff]  ;;  %v17561_v11 = vld [vmem:[#allocation237_spill] sm:$0xff]  ;;  %v17563_v62 = vld [vmem:[#allocation240_spill] sm:$0xff] }
 0x6cc   : > { %7195 = vmatprep.mubr.f32.mxu1 %v17543_v60  ;;  %9188 = vmatprep.subr.bf16.mxu0 %v9187_v6  ;;  %v9577_v56 = vpack.c.bf16 %v17553_v5, %v17552_v34  ;;  %v17557_v60 = vld [vmem:[#allocation231_spill] sm:$0xff]  ;;  %v17564_v5 = vld [vmem:[#allocation242_spill] sm:$0xff] }
 0x6cd   : > { %9572 = vmatprep.subr.bf16.mxu1 %v9571_v24  ;;  %v9579_v6 = vpack.c.bf16 %v17557_v60, %v17556_v63  ;;  %v9197_v24 = vpack.c.bf16 %v17559_v28, %v17558_v48  ;;  %v17565_v34 = vld [vmem:[#allocation243_spill] sm:$0xff]  ;;  %v17569_v28 = vld [vmem:[#allocation250_spill] sm:$0xff]  ;;  %v17571_v48 = vld [vmem:[#allocation20_spill] sm:$0xff] }
 0x6ce   : > { %9190 = vmatpush1.bf16.msra.mxu0 %v9189_v13  ;;  %v17560_v13 = vld [vmem:[#allocation236_spill] sm:$0xff]  ;;  %v9583_v3 = vpack.c.bf16 %v17565_v34, %v17564_v5 }
 0x6cf   : > { %9574 = vmatpush1.bf16.msra.mxu1 %v9573_v26  ;;  %9192 = vmatprep.subr.bf16.mxu0 %v9191_v14  ;;  %v9581_v26 = vpack.c.bf16 %v17561_v11, %v17560_v13  ;;  %v17562_v14 = vld [vmem:[#allocation239_spill] sm:$0xff] }
 0x6d0   : > { %9576 = vmatprep.subr.bf16.mxu1 %v9575_v57  ;;  %v9199_v32 = vpack.c.bf16 %v17563_v62, %v17562_v14  ;;  %v17566_v57 = vld [vmem:[#allocation245_spill] sm:$0xff]  ;;  %v17572_v11 = vld [vmem:[#allocation255_spill] sm:$0xff]  ;;  %v17575_v14 = vld [vmem:[#allocation26_spill] sm:$0xff] }
 0x6d1   : > { %v9201_v60 = vpack.c.bf16 %v17567_v44, %v17566_v57  ;;  %v17573_v13 = vld [vmem:[#allocation23_spill] sm:$0xff]  ;;  %v17577_v44 = vld [vmem:[#allocation30_spill] sm:$0xff] }
 0x6d2   : > { %9194 = vmatpush1.bf16.msra.mxu0 %v9193_v30  ;;  %v17568_v30 = vld [vmem:[#allocation16_spill] sm:$0xff]  ;;  %v9587_v62 = vpack.c.bf16 %v17573_v13, %v17572_v11  ;;  %v17579_v57 = vld [vmem:[#allocation34_spill] sm:$0xff] }
 0x6d3   : > { %9578 = vmatpush1.bf16.msra.mxu1 %v9577_v56  ;;  %9196 = vmatprep.subr.bf16.mxu0 %v9195_v51  ;;  %v9585_v56 = vpack.c.bf16 %v17569_v28, %v17568_v30  ;;  %v17570_v51 = vld [vmem:[#allocation19_spill] sm:$0xff]  ;;  %v17580_v28 = vld [vmem:[#allocation36_spill] sm:$0xff] }
 0x6d4   : > { %9580 = vmatprep.subr.bf16.mxu1 %v9579_v6  ;;  %v9203_v63 = vpack.c.bf16 %v17571_v48, %v17570_v51  ;;  %v17574_v6 = vld [vmem:[#allocation25_spill] sm:$0xff]  ;;  %v17581_v30 = vld [vmem:[#allocation72_spill] sm:$0xff]  ;;  %v17583_v51 = vld [vmem:[#allocation86_spill] sm:$0xff] }
 0x6d5   : > { %v9205_v34 = vpack.c.bf16 %v17575_v14, %v17574_v6  ;;  %v9591_v48 = vpack.c.bf16 %v17581_v30, %v17580_v28  ;;  %v17585_v14 = vld [vmem:[#allocation94_spill] sm:$0xff]  ;;  %v17587_v6 = vld [vmem:[#allocation103_spill] sm:$0xff] }
 0x6d6   : > { %9198 = vmatpush1.bf16.msra.mxu0 %v9197_v24  ;;  %v17576_v24 = vld [vmem:[#allocation29_spill] sm:$0xff] }
 0x6d7   : > { %9582 = vmatpush1.bf16.msra.mxu1 %v9581_v26  ;;  %9200 = vmatprep.subr.bf16.mxu0 %v9199_v32  ;;  %v9589_v26 = vpack.c.bf16 %v17577_v44, %v17576_v24  ;;  %v17578_v32 = vld [vmem:[#allocation32_spill] sm:$0xff]  ;;  %v17588_v44 = vld [vmem:[#allocation133_spill] sm:$0xff] }
 0x6d8   : > { %9584 = vmatprep.subr.bf16.mxu1 %v9583_v3  ;;  %v9207_v5 = vpack.c.bf16 %v17579_v57, %v17578_v32  ;;  %v17582_v3 = vld [vmem:[#allocation84_spill] sm:$0xff]  ;;  %v17591_v32 = vld [vmem:[#allocation197_spill] sm:$0xff] }
 0x6d9   : > { %v9209_v13 = vpack.c.bf16 %v17583_v51, %v17582_v3  ;;  %v17589_v24 = vld [vmem:[#allocation192_spill] sm:$0xff]  ;;  %v17593_v51 = vld [vmem:[#allocation203_spill] sm:$0xff] }
 0x6da   : > { %9202 = vmatpush1.bf16.msra.mxu0 %v9201_v60  ;;  %v17584_v60 = vld [vmem:[#allocation93_spill] sm:$0xff]  ;;  %v9595_v57 = vpack.c.bf16 %v17589_v24, %v17588_v44  ;;  %v17595_v3 = vld [vmem:[#allocation39_spill] sm:$0xff] }
 0x6db   : > { %9586 = vmatpush1.bf16.msra.mxu1 %v9585_v56  ;;  %9204 = vmatprep.subr.bf16.mxu0 %v9203_v63  ;;  %v9593_v56 = vpack.c.bf16 %v17585_v14, %v17584_v60  ;;  %v17586_v63 = vld [vmem:[#allocation95_spill] sm:$0xff]  ;;  %v17596_v14 = vld [vmem:[#allocation41_spill] sm:$0xff]  ;;  %v17597_v60 = vld [vmem:[#allocation42_spill] sm:$0xff] }
 0x6dc   : > { %9588 = vmatprep.subr.bf16.mxu1 %v9587_v62  ;;  %v9211_v11 = vpack.c.bf16 %v17587_v6, %v17586_v63  ;;  %v17590_v62 = vld [vmem:[#allocation194_spill] sm:$0xff]  ;;  %v9599_v6 = vpack.c.bf16 %v17597_v60, %v17596_v14  ;;  %v17614_v60 = vld [vmem:[#allocation65_spill] sm:$0xff] }
 0x6dd   : > { %v9213_v30 = vpack.c.bf16 %v17591_v32, %v17590_v62 }
 0x6de   : > { %9206 = vmatpush1.bf16.msra.mxu0 %v9205_v34  ;;  %v17592_v34 = vld [vmem:[#allocation200_spill] sm:$0xff] }
 0x6df   : > { %9590 = vmatpush1.bf16.msra.mxu1 %v9589_v26  ;;  %9208 = vmatprep.subr.bf16.mxu0 %v9207_v5  ;;  %v9597_v26 = vpack.c.bf16 %v17593_v51, %v17592_v34  ;;  %v17594_v5 = vld [vmem:[#allocation38_spill] sm:$0xff]  ;;  %v17605_v34 = vld [vmem:[#allocation53_spill] sm:$0xff] }
 0x6e0   : > { %9592 = vmatprep.subr.bf16.mxu1 %v9591_v48  ;;  %v9215_v28 = vpack.c.bf16 %v17595_v3, %v17594_v5  ;;  %v17598_v48 = vld [vmem:[#allocation46_spill] sm:$0xff]  ;;  %v17608_v3 = vld [vmem:[#allocation56_spill] sm:$0xff] }
 0x6e1   : > { %v17604_v51 = vld [vmem:[#allocation54_spill] sm:$0xff] }
 0x6e2   : > { %9210 = vmatpush1.bf16.msra.mxu0 %v9209_v13  ;;  %v17599_v13 = vld [vmem:[#allocation45_spill] sm:$0xff]  ;;  %v17606_v62 = vpack.c.bf16 %v17604_v51, %v17605_v34 }
 0x6e3   : > { %9594 = vmatpush1.bf16.msra.mxu1 %v9593_v56  ;;  %9212 = vmatprep.subr.bf16.mxu0 %v9211_v11  ;;  %v17600_v24 = vpack.c.bf16 %v17598_v48, %v17599_v13  ;;  %v17601_v56 = vld [vmem:[#allocation50_spill] sm:$0xff]  ;;  %v17602_v11 = vld [vmem:[#allocation49_spill] sm:$0xff]  ;;  %v17617_v13 = vld [vmem:[#allocation67_spill] sm:$0xff] }
 0x6e4   : > { %9596 = vmatprep.subr.bf16.mxu1 %v9595_v57  ;;  %v17603_v32 = vpack.c.bf16 %v17601_v56, %v17602_v11  ;;  %v17607_v57 = vld [vmem:[#allocation58_spill] sm:$0xff]  ;;  %v17620_v11 = vld [vmem:[#allocation77_spill] sm:$0xff] }
 0x6e5   : > { %v17609_v5 = vpack.c.bf16 %v17607_v57, %v17608_v3  ;;  %v17623_v34 = vld [vmem:[#allocation81_spill] sm:$0xff]  ;;  %v17626_v3 = vld [vmem:[#allocation136_spill] sm:$0xff] }
 0x6e6   : > { %9214 = vmatpush1.bf16.msra.mxu0 %v9213_v30  ;;  %v17610_v30 = vld [vmem:[#allocation61_spill] sm:$0xff] }
 0x6e7   : > { %9598 = vmatpush1.bf16.msra.mxu1 %v9597_v26  ;;  %9216 = vmatprep.subr.bf16.mxu0 %v9215_v28  ;;  %v17611_v26 = vld [vmem:[#allocation59_spill] sm:$0xff] }
 0x6e8   : > { %9600 = vmatprep.subr.bf16.mxu1 %v9599_v6  ;;  %v17612_v28 = vpack.c.bf16 %v17610_v30, %v17611_v26  ;;  %v17613_v6 = vld [vmem:[#allocation66_spill] sm:$0xff]  ;;  %v17629_v26 = vld [vmem:[#allocation139_spill] sm:$0xff] }
 0x6e9   : > { %v17615_v48 = vpack.c.bf16 %v17613_v6, %v17614_v60 }
 0x6ea   : > { %9218 = vmatpush1.bf16.msra.mxu0 %v17600_v24  ;;  %v17616_v24 = vld [vmem:[#allocation71_spill] sm:$0xff] }
 0x6eb   : > { %9602 = vmatpush1.bf16.msra.mxu1 %v17603_v32  ;;  %9220 = vmatprep.subr.bf16.mxu0 %v17606_v62  ;;  %v17618_v56 = vpack.c.bf16 %v17616_v24, %v17617_v13  ;;  %v17619_v32 = vld [vmem:[#allocation79_spill] sm:$0xff]  ;;  %v17622_v62 = vld [vmem:[#allocation89_spill] sm:$0xff] }
 0x6ec   : > { %9604 = vmatprep.subr.bf16.mxu1 %v17609_v5  ;;  %v17621_v51 = vpack.c.bf16 %v17619_v32, %v17620_v11  ;;  %v17624_v57 = vpack.c.bf16 %v17622_v62, %v17623_v34  ;;  %v17625_v5 = vld [vmem:[#allocation137_spill] sm:$0xff] }
 0x6ed   : > { %v17627_v30 = vpack.c.bf16 %v17625_v5, %v17626_v3 }
 0x6ee   : > { %9222 = vmatpush1.bf16.msra.mxu0 %v17612_v28  ;;  %v17628_v28 = vld [vmem:[#allocation141_spill] sm:$0xff] }
 0x6ef   : > { %9606 = vmatpush1.bf16.msra.mxu1 %v17615_v48  ;;  %9224 = vmatprep.subr.bf16.mxu0 %v17618_v56  ;;  %v17630_v6 = vpack.c.bf16 %v17628_v28, %v17629_v26  ;;  %v17631_v48 = vld [vmem:[#allocation143_spill] sm:$0xff]  ;;  %v17633_v56 = vpack.c.bf16 %v17459_v20, %v17458_v58  ;;  %v17639_v26 = vld [vmem:[#allocation173_spill] sm:$0xff] }
 0x6f0   : > { %9608 = vmatprep.subr.bf16.mxu1 %v17621_v51  ;;  %v17632_v24 = vpack.c.bf16 %v17457_v43, %v17631_v48  ;;  %v17634_v51 = vpack.c.bf16 %v17461_v47, %v17460_v19  ;;  %v17642_v48 = vld [vmem:[#allocation176_spill] sm:$0xff]  ;;  %v17645_v58 = vld [vmem:[#allocation179_spill] sm:$0xff] }
 0x6f1   : > { %v17648_v19 = vld [vmem:[#allocation183_spill] sm:$0xff] }
 0x6f2   : > { %9226 = vmatpush1.bf16.msra.mxu0 %v17624_v57  ;;  %v17635_v57 = vpack.c.bf16 %v17463_v27, %v17462_v39 }
 0x6f3   : > { %9610 = vmatpush1.bf16.msra.mxu1 %v17627_v30  ;;  %9228 = vmatprep.subr.bf16.mxu0 %v17630_v6  ;;  %v17636_v30 = vld [vmem:[#allocation170_spill] sm:$0xff] }
 0x6f4   : > { %9612 = vmatprep.subr.bf16.mxu1 %v17632_v24  ;;  %v17637_v28 = vpack.c.bf16 %v17465_v23, %v17636_v30  ;;  %v17638_v6 = vld [vmem:[#allocation174_spill] sm:$0xff]  ;;  %v17641_v24 = vld [vmem:[#allocation177_spill] sm:$0xff] }
 0x6f5   : > { %v17640_v43 = vpack.c.bf16 %v17638_v6, %v17639_v26  ;;  %v17643_v20 = vpack.c.bf16 %v17641_v24, %v17642_v48 }
 0x6f6   : > { %9230 = vmatpush1.bf16.msra.mxu0 %v17633_v56  ;;  %v17644_v56 = vld [vmem:[#allocation180_spill] sm:$0xff] }
 0x6f7   : > { %9614 = vmatpush1.bf16.msra.mxu1 %v17634_v51  ;;  %9232 = vmatprep.subr.bf16.mxu0 %v17635_v57  ;;  %v17646_v47 = vpack.c.bf16 %v17644_v56, %v17645_v58  ;;  %v17647_v51 = vld [vmem:[#allocation184_spill] sm:$0xff]  ;;  %v17650_v57 = vld [vmem:[#allocation187_spill] sm:$0xff] }
 0x6f8   : > { %9616 = vmatprep.subr.bf16.mxu1 %v17637_v28  ;;  %v17649_v27 = vpack.c.bf16 %v17647_v51, %v17648_v19  ;;  %v17651_v23 = vpack.c.bf16 %v17512_v10, %v17650_v57  ;;  %v17652_v28 = vpack.c.bf16 %v17521_v25, %v17516_v31 }
 0x6fa   : > { %9234 = vmatpush1.bf16.msra.mxu0 %v17640_v43  ;;  %v17653_v43 = vpack.c.bf16 %v17523_v2, %v17522_v50 }
 0x6fb   : > { %9618 = vmatpush1.bf16.msra.mxu1 %v17643_v20  ;;  %9236 = vmatprep.subr.bf16.mxu0 %v17646_v47  ;;  %v17654_v20 = vpack.c.bf16 %v17480_v41, %v13573_v52  ;;  %v17655_v47 = vpack.c.bf16 %v13586_v59, %v17481_v55 }
 0x6fc   : > { %9620 = vmatprep.subr.bf16.mxu1 %v17649_v27  ;;  %v17656_v27 = vpack.c.bf16 %v17526_v40, %v13590_v54  ;;  %v17662_v40 = vld [vmem:[#allocation211_spill] sm:$0xff] }
 0x6fe   : > { %9238 = vmatpush1.bf16.msra.mxu0 %v17651_v23  ;;  %v17657_v23 = vpack.c.bf16 %v17483_v53, %v17482_v46 }
 0x6ff   : > { %9622 = vmatpush1.bf16.msra.mxu1 %v17652_v28  ;;  %9240 = vmatprep.subr.bf16.mxu0 %v17653_v43  ;;  %v17658_v28 = vpack.c.bf16 %v17527_v45, %v17484_v35  ;;  %v17659_v43 = vpack.c.bf16 %v17487_v16, %v17486_v4  ;;  %v17665_v45 = vld [vmem:[#allocation256_spill] sm:$0xff] }
 0x700   : > { %9624 = vmatprep.subr.bf16.mxu1 %v17654_v20  ;;  %v17660_v20 = vpack.c.bf16 %v17489_v8, %v17488_v17  ;;  %v17671_v8 = vld [vmem:[#allocation118_spill] sm:$0xff]  ;;  %v17677_v16 = vld [vmem:[#allocation232_spill] sm:$0xff] }
 0x701   : > { %v17674_v17 = vld [vmem:[#allocation126_spill] sm:$0xff]  ;;  %v17685_v35 = vld [vmem:[#allocation24_spill] sm:$0xff] }
 0x702   : > { %9242 = vmatpush1.bf16.msra.mxu0 %v17655_v47  ;;  %v17661_v47 = vld [vmem:[#allocation100_spill] sm:$0xff] }
 0x703   : > { %9626 = vmatpush1.bf16.msra.mxu1 %v17656_v27  ;;  %9244 = vmatprep.subr.bf16.mxu0 %v17657_v23  ;;  %v17663_v27 = vld [vmem:[#allocation251_spill] sm:$0xff]  ;;  %v17664_v23 = vld [vmem:[#allocation213_spill] sm:$0xff] }
 0x704   : > { %9628 = vmatprep.subr.bf16.mxu1 %v17658_v28  ;;  %v17666_v28 = vld [vmem:[#allocation216_spill] sm:$0xff] }
 0x706   : > { %9246 = vmatpush1.bf16.msra.mxu0 %v17659_v43  ;;  %v17667_v43 = vld [vmem:[#allocation218_spill] sm:$0xff] }
 0x707   : > { %9630 = vmatpush1.bf16.msra.mxu1 %v17660_v20  ;;  %9248 = vmatprep.subr.bf16.mxu0 %v17661_v47  ;;  %v17668_v20 = vld [vmem:[#allocation220_spill] sm:$0xff]  ;;  %v17669_v47 = vld [vmem:[#allocation114_spill] sm:$0xff] }
 0x708   : > { %9632 = vmatprep.subr.bf16.mxu1 %v17662_v40  ;;  %v17670_v40 = vld [vmem:[#allocation223_spill] sm:$0xff] }
 0x709   : > { %5914 = vmatmul.mubr.f32.vlgmr.msra.gmra.mrb[4].mxu0 %v17663_v27 }
 0x70a   : > { %7198 = vmatmul.mubr.f32.vlgmr.msra.gmra.mrb[4].mxu1 %v17663_v27  ;;  %9250 = vmatpush1.bf16.msra.mxu0 %v17664_v23  ;;  %v17672_v27 = vld [vmem:[#allocation226_spill] sm:$0xff]  ;;  %v17673_v23 = vld [vmem:[#allocation125_spill] sm:$0xff] }
 0x70b   : > { %6051 = vmatprep.mubr.f32.mxu0 %v17665_v45  ;;  %9634 = vmatpush1.bf16.msra.mxu1 %v17666_v28  ;;  %v17675_v28 = vld [vmem:[#allocation132_spill] sm:$0xff] }
 0x70c   : > { %7335 = vmatprep.mubr.f32.mxu1 %v17665_v45  ;;  %9252 = vmatprep.subr.bf16.mxu0 %v17667_v43  ;;  %v17676_v45 = vld [vmem:[#allocation229_spill] sm:$0xff]  ;;  %v17678_v43 = vld [vmem:[#allocation235_spill] sm:$0xff] }
 0x70d   : > { %9636 = vmatprep.subr.bf16.mxu1 %v17668_v20  ;;  %v17679_v20 = vld [vmem:[#allocation238_spill] sm:$0xff] }
 0x70e   : > { %9254 = vmatpush1.bf16.msra.mxu0 %v17669_v47  ;;  %v17680_v47 = vld [vmem:[#allocation241_spill] sm:$0xff] }
 0x70f   : > { %9638 = vmatpush1.bf16.msra.mxu1 %v17670_v40  ;;  %9256 = vmatprep.subr.bf16.mxu0 %v17671_v8  ;;  %v17681_v40 = vld [vmem:[#allocation244_spill] sm:$0xff]  ;;  %v17684_v8 = vld [vmem:[#allocation21_spill] sm:$0xff] }
 0x710   : > { %9640 = vmatprep.subr.bf16.mxu1 %v17672_v27  ;;  %v17682_v27 = vld [vmem:[#allocation247_spill] sm:$0xff] }
 0x712   : > { %9258 = vmatpush1.bf16.msra.mxu0 %v17673_v23  ;;  %v17683_v23 = vld [vmem:[#allocation18_spill] sm:$0xff] }
 0x713   : > { %9642 = vmatpush1.bf16.msra.mxu1 %v17674_v17  ;;  %9260 = vmatprep.subr.bf16.mxu0 %v17675_v28 }
 0x714   : > { %9644 = vmatprep.subr.bf16.mxu1 %v17676_v45 }
 0x716   : > { %9262 = vmatpush1.bf16.msra.mxu0 %v17677_v16 }
 0x717   : > { %9646 = vmatpush1.bf16.msra.mxu1 %v17678_v43  ;;  %9264 = vmatprep.subr.bf16.mxu0 %v17679_v20  ;;  %v17686_v20 = vld [vmem:[#allocation27_spill] sm:$0xff] }
 0x718   : > { %9648 = vmatprep.subr.bf16.mxu1 %v17680_v47  ;;  %v17687_v47 = vld [vmem:[#allocation31_spill] sm:$0xff] }
 0x71a   : > { %9266 = vmatpush1.bf16.msra.mxu0 %v17681_v40 }
 0x71b   : > { %9650 = vmatpush1.bf16.msra.mxu1 %v17682_v27  ;;  %9268 = vmatprep.subr.bf16.mxu0 %v17683_v23  ;;  %v17688_v23 = vld [vmem:[#allocation35_spill] sm:$0xff] }
 0x71c   : > { %v3890_v17 = vpop.f32.mrb[2].mxu0  ;;  %9652 = vmatprep.subr.bf16.mxu1 %v17684_v8  ;;  %v17689_v8 = vld [vmem:[#allocation80_spill] sm:$0xff]  ;;  %v17690_v27 = vld [vmem:[#allocation91_spill] sm:$0xff] }
 0x71d   : > { %v5174_v28 = vpop.f32.mrb[2].mxu1  ;;  %v3892_v45 = vpop.f32.mrb[3].mxu0 }
 0x71e   : > { %v7755_v4 = vcombine.low %v3890_v17, %v3892_v45  ;;  %v5176_v16 = vpop.f32.mrb[3].mxu1  ;;  %9270 = vmatpush1.bf16.msra.mxu0 %v17685_v35  ;;  %v17691_v17 = vld [vmem:[#allocation98_spill] sm:$0xff]  ;;  %v17692_v45 = vld [vmem:[#allocation105_spill] sm:$0xff]  ;;  %v17729_v35 = vld [vmem:[#allocation43_spill] sm:$0xff] }
 0x71f   : > { %v7756_v43 = vcombine.low %v5174_v28, %v5176_v16  ;;  %9654 = vmatpush1.bf16.msra.mxu1 %v17686_v20  ;;  %9272 = vmatprep.subr.bf16.mxu0 %v17687_v47  ;;  %v17693_v16 = vld [vmem:[#allocation199_spill] sm:$0xff]  ;;  %v17694_v28 = vld [vmem:[#allocation201_spill] sm:$0xff]  ;;  %v17695_v47 = vld [vmem:[#allocation206_spill] sm:$0xff] }
 0x720   : > { %7763 = vst [vmem:[%s14690_s24] sm:$0xff] %v7755_v4  ;;  %9656 = vmatprep.subr.bf16.mxu1 %v17688_v23  ;;  %v17696_v20 = vld [vmem:[#allocation40_spill] sm:$0xff] }
 0x721   : > { %7764 = vst [vmem:[%s14690_s24 + $0x8] sm:$0xff] %v7756_v43  ;;  %v17697_v4 = vld [vmem:[#allocation44_spill] sm:$0xff]  ;;  %v17699_v43 = vld [vmem:[#allocation51_spill] sm:$0xff] }
 0x722   : > { %9274 = vmatpush1.bf16.msra.mxu0 %v17689_v8  ;;  %v17698_v23 = vld [vmem:[#allocation48_spill] sm:$0xff]  ;;  %v17700_v8 = vld [vmem:[#allocation55_spill] sm:$0xff] }
 0x723   : > { %9658 = vmatpush1.bf16.msra.mxu1 %v17690_v27  ;;  %9276 = vmatprep.subr.bf16.mxu0 %v17691_v17  ;;  %v17701_v27 = vld [vmem:[#allocation60_spill] sm:$0xff]  ;;  %v17702_v17 = vld [vmem:[#allocation63_spill] sm:$0xff] }
 0x724   : > { %9660 = vmatprep.subr.bf16.mxu1 %v17692_v45  ;;  %v17703_v45 = vld [vmem:[#allocation70_spill] sm:$0xff] }
 0x726   : > { %9278 = vmatpush1.bf16.msra.mxu0 %v17693_v16  ;;  %v17704_v16 = vld [vmem:[#allocation75_spill] sm:$0xff] }
 0x727   : > { %9662 = vmatpush1.bf16.msra.mxu1 %v17694_v28  ;;  %9280 = vmatprep.subr.bf16.mxu0 %v17695_v47  ;;  %v17705_v28 = vld [vmem:[#allocation85_spill] sm:$0xff]  ;;  %v17706_v47 = vld [vmem:[#allocation134_spill] sm:$0xff] }
 0x728   : > { %9664 = vmatprep.subr.bf16.mxu1 %v17696_v20  ;;  %v17707_v20 = vld [vmem:[#allocation138_spill] sm:$0xff] }
 0x72a   : > { %9282 = vmatpush1.bf16.msra.mxu0 %v17697_v4  ;;  %v17708_v4 = vld [vmem:[#allocation142_spill] sm:$0xff] }
 0x72b   : > { %9666 = vmatpush1.bf16.msra.mxu1 %v17698_v23  ;;  %9284 = vmatprep.subr.bf16.mxu0 %v17699_v43  ;;  %v17709_v23 = vld [vmem:[#allocation146_spill] sm:$0xff]  ;;  %v17710_v43 = vld [vmem:[#allocation149_spill] sm:$0xff] }
 0x72c   : > { %9668 = vmatprep.subr.bf16.mxu1 %v17700_v8  ;;  %v17711_v8 = vld [vmem:[#allocation153_spill] sm:$0xff] }
 0x72e   : > { %9286 = vmatpush1.bf16.msra.mxu0 %v17701_v27  ;;  %v17712_v27 = vld [vmem:[#allocation169_spill] sm:$0xff] }
 0x72f   : > { %9670 = vmatpush1.bf16.msra.mxu1 %v17702_v17  ;;  %9288 = vmatprep.subr.bf16.mxu0 %v17703_v45  ;;  %v17713_v17 = vld [vmem:[#allocation172_spill] sm:$0xff]  ;;  %v17714_v45 = vld [vmem:[#allocation175_spill] sm:$0xff] }
 0x730   : > { %9672 = vmatprep.subr.bf16.mxu1 %v17704_v16  ;;  %v17715_v16 = vld [vmem:[#allocation178_spill] sm:$0xff] }
 0x732   : > { %9290 = vmatpush1.bf16.msra.mxu0 %v17705_v28  ;;  %v17716_v28 = vld [vmem:[#allocation181_spill] sm:$0xff] }
 0x733   : > { %9674 = vmatpush1.bf16.msra.mxu1 %v17706_v47  ;;  %9292 = vmatprep.subr.bf16.mxu0 %v17707_v20  ;;  %v17717_v47 = vld [vmem:[#allocation186_spill] sm:$0xff]  ;;  %v17718_v20 = vld [vmem:[#allocation193_spill] sm:$0xff] }
 0x734   : > { %9676 = vmatprep.subr.bf16.mxu1 %v17708_v4  ;;  %v17719_v4 = vld [vmem:[#allocation202_spill] sm:$0xff] }
 0x736   : > { %9294 = vmatpush1.bf16.msra.mxu0 %v17709_v23  ;;  %v17720_v23 = vld [vmem:[#allocation207_spill] sm:$0xff] }
 0x737   : > { %9678 = vmatpush1.bf16.msra.mxu1 %v17710_v43  ;;  %9296 = vmatprep.subr.bf16.mxu0 %v17711_v8  ;;  %v17721_v43 = vld [vmem:[#allocation17_spill] sm:$0xff]  ;;  %v17722_v8 = vld [vmem:[#allocation22_spill] sm:$0xff] }
 0x738   : > { %9680 = vmatprep.subr.bf16.mxu1 %v17712_v27  ;;  %v17723_v27 = vld [vmem:[#allocation28_spill] sm:$0xff] }
 0x73a   : > { %9298 = vmatpush1.bf16.msra.mxu0 %v17713_v17 }
 0x73b   : > { %9682 = vmatpush1.bf16.msra.mxu1 %v17714_v45  ;;  %9300 = vmatprep.subr.bf16.mxu0 %v17715_v16  ;;  %v17724_v45 = vand.u32 4294901760, %v17528_v38  ;;  %v17725_v16 = vand.u32 4294901760, %v17529_v15  ;;  %v17733_v38 = vand.u32 4294901760, %v17534_v61  ;;  %v17734_v15 = vand.u32 4294901760, %v17535_v29 }
 0x73c   : > { %9684 = vmatprep.subr.bf16.mxu1 %v17716_v28  ;;  %v17726_v28 = vld [vmem:[#allocation158_spill] sm:$0xff]  ;;  %v17740_v61 = vand.u32 4294901760, %v17541_v49  ;;  %v17741_v29 = vand.u32 4294901760, %v17542_v37  ;;  %v17748_v49 = vld [vmem:[#allocation121_spill] sm:$0xff] }
 0x73d   : > { %v9311_v17 = vpack.c.bf16 %v17725_v16, %v17724_v45  ;;  %v9697_v45 = vpack.c.bf16 %v17734_v15, %v17733_v38  ;;  %v17742_v16 = vld [vmem:[#allocation249_spill] sm:$0xff]  ;;  %v17750_v37 = vld [vmem:[#allocation122_spill] sm:$0xff] }
 0x73e   : > { %9302 = vmatpush1.bf16.msra.mxu0 %v17717_v47  ;;  %v17727_v47 = vand.u32 4294901760, %v17530_v21  ;;  %v17735_v21 = vand.u32 4294901760, %v17536_v0  ;;  %v17743_v0 = vand.u32 4294901760, %v17544_v9  ;;  %v17751_v15 = vand.u32 4294901760, %v17750_v37  ;;  %v17768_v37 = vld [vmem:[#allocation233_spill] sm:$0xff] }
 0x73f   : > { %9686 = vmatpush1.bf16.msra.mxu1 %v17718_v20  ;;  %9304 = vmatprep.subr.bf16.mxu0 %v17719_v4  ;;  %v17728_v20 = vand.u32 4294901760, %v17531_v18  ;;  %v17736_v18 = vand.u32 4294901760, %v17537_v22  ;;  %v17744_v22 = vand.u32 4294901760, %v17545_v1 }
 0x740   : > { %9688 = vmatprep.subr.bf16.mxu1 %v17720_v23 }
 0x741   : > { %v9695_v4 = vpack.c.bf16 %v17728_v20, %v17727_v47  ;;  %v9315_v47 = vpack.c.bf16 %v17736_v18, %v17735_v21  ;;  %v17737_v20 = vld [vmem:[#allocation253_spill] sm:$0xff]  ;;  %v17754_v18 = vld [vmem:[#allocation254_spill] sm:$0xff] }
 0x742   : > { %9306 = vmatpush1.bf16.msra.mxu0 %v17721_v43  ;;  %v17730_v43 = vand.u32 4294901760, %v17532_v7  ;;  %v17738_v7 = vand.u32 4294901760, %v17539_v12  ;;  %v17745_v12 = vand.u32 4294901760, %v17546_v42  ;;  %v17755_v1 = vand.u32 4294901760, %v17754_v18  ;;  %v17756_v42 = vld [vmem:[#allocation127_spill] sm:$0xff] }
 0x743   : > { %9690 = vmatpush1.bf16.msra.mxu1 %v17722_v8  ;;  %9308 = vmatprep.subr.bf16.mxu0 %v17723_v27  ;;  %v17731_v8 = vand.u32 4294901760, %v17533_v36  ;;  %v17732_v27 = vld [vmem:[#allocation161_spill] sm:$0xff] }
 0x744   : > { %9692 = vmatprep.subr.bf16.mxu1 %v17726_v28 }
 0x745   : > { %v9313_v23 = vpack.c.bf16 %v17731_v8, %v17730_v43  ;;  %v17739_v8 = vand.u32 4294901760, %v17540_v33  ;;  %v17746_v33 = vld [vmem:[#allocation225_spill] sm:$0xff] }
 0x746   : > { %9310 = vmatpush1.bf16.msra.mxu0 %v17729_v35  ;;  %v17747_v43 = vand.u32 4294901760, %v17746_v33 }
 0x747   : > { %9694 = vmatpush1.bf16.msra.mxu1 %v17732_v27  ;;  %9312 = vmatprep.subr.bf16.mxu0 %v9311_v17  ;;  %v9699_v36 = vpack.c.bf16 %v17739_v8, %v17738_v7  ;;  %v9317_v17 = vpack.c.bf16 %v17741_v29, %v17740_v61  ;;  %v17757_v7 = vand.u32 4294901760, %v17756_v42  ;;  %v17758_v8 = vld [vmem:[#allocation129_spill] sm:$0xff] }
 0x748   : > { %9696 = vmatprep.subr.bf16.mxu1 %v9695_v4  ;;  %v9701_v4 = vpack.c.bf16 %v17744_v22, %v17743_v0  ;;  %v9319_v38 = vpack.c.bf16 %v17747_v43, %v17745_v12  ;;  %v17759_v61 = vand.u32 4294901760, %v17758_v8  ;;  %v17762_v22 = vld [vmem:[#allocation228_spill] sm:$0xff]  ;;  %v17766_v43 = vld [vmem:[#allocation231_spill] sm:$0xff] }
 0x749   : > { %6055 = vmatmul.mubr.f32.vlgmr.msra.gmra.mrb[4].mxu0 %v17737_v20  ;;  %v17763_v12 = vand.u32 4294901760, %v17762_v22  ;;  %v17776_v8 = vld [vmem:[#allocation239_spill] sm:$0xff]  ;;  %v17780_v22 = vld [vmem:[#allocation242_spill] sm:$0xff] }
 0x74a   : > { %7339 = vmatmul.mubr.f32.vlgmr.msra.gmra.mrb[4].mxu1 %v17737_v20  ;;  %9314 = vmatpush1.bf16.msra.mxu0 %v9313_v23  ;;  %v17749_v23 = vand.u32 4294901760, %v17748_v49  ;;  %v9705_v29 = vpack.c.bf16 %v17759_v61, %v17757_v7  ;;  %v17767_v49 = vand.u32 4294901760, %v17766_v43  ;;  %v17778_v61 = vld [vmem:[#allocation240_spill] sm:$0xff]  ;;  %v17784_v43 = vld [vmem:[#allocation245_spill] sm:$0xff] }
 0x74b   : > { %6318 = vmatprep.mubr.f32.mxu0 %v17742_v16  ;;  %9698 = vmatpush1.bf16.msra.mxu1 %v9697_v45  ;;  %v17752_v45 = vld [vmem:[#allocation131_spill] sm:$0xff] }
 0x74c   : > { %7602 = vmatprep.mubr.f32.mxu1 %v17742_v16  ;;  %9316 = vmatprep.subr.bf16.mxu0 %v9315_v47  ;;  %v9703_v21 = vpack.c.bf16 %v17751_v15, %v17749_v23  ;;  %v17753_v9 = vand.u32 4294901760, %v17752_v45  ;;  %v17760_v47 = vld [vmem:[#allocation227_spill] sm:$0xff] }
 0x74d   : > { %9700 = vmatprep.subr.bf16.mxu1 %v9699_v36  ;;  %v17761_v0 = vand.u32 4294901760, %v17760_v47  ;;  %v17764_v36 = vld [vmem:[#allocation230_spill] sm:$0xff]  ;;  %v17779_v47 = vand.u32 4294901760, %v17778_v61  ;;  %v17796_v61 = vld [vmem:[#allocation255_spill] sm:$0xff] }
 0x74e   : > { %9318 = vmatpush1.bf16.msra.mxu0 %v9317_v17  ;;  %v9321_v20 = vpack.c.bf16 %v17755_v1, %v17753_v9  ;;  %v17765_v17 = vand.u32 4294901760, %v17764_v36  ;;  %v17772_v9 = vld [vmem:[#allocation236_spill] sm:$0xff]  ;;  %v17774_v1 = vld [vmem:[#allocation237_spill] sm:$0xff] }
 0x74f   : > { %9702 = vmatpush1.bf16.msra.mxu1 %v9701_v4  ;;  %9320 = vmatprep.subr.bf16.mxu0 %v9319_v38  ;;  %v9323_v33 = vpack.c.bf16 %v17763_v12, %v17761_v0  ;;  %v17769_v4 = vand.u32 4294901760, %v17768_v37  ;;  %v17770_v38 = vld [vmem:[#allocation234_spill] sm:$0xff]  ;;  %v17773_v18 = vand.u32 4294901760, %v17772_v9  ;;  %v17775_v42 = vand.u32 4294901760, %v17774_v1  ;;  %v17782_v12 = vld [vmem:[#allocation243_spill] sm:$0xff] }
 0x750   : > { %9704 = vmatprep.subr.bf16.mxu1 %v9703_v21  ;;  %v9707_v23 = vpack.c.bf16 %v17767_v49, %v17765_v17  ;;  %v17771_v15 = vand.u32 4294901760, %v17770_v38  ;;  %v17777_v21 = vand.u32 4294901760, %v17776_v8  ;;  %v17783_v36 = vand.u32 4294901760, %v17782_v12  ;;  %v17792_v1 = vld [vmem:[#allocation19_spill] sm:$0xff]  ;;  %v17800_v12 = vld [vmem:[#allocation25_spill] sm:$0xff] }
 0x751   : > { %v9709_v7 = vpack.c.bf16 %v17775_v42, %v17773_v18  ;;  %v17794_v42 = vld [vmem:[#allocation20_spill] sm:$0xff] }
 0x752   : > { %9322 = vmatpush1.bf16.msra.mxu0 %v9321_v20  ;;  %v9325_v45 = vpack.c.bf16 %v17771_v15, %v17769_v4  ;;  %v9327_v0 = vpack.c.bf16 %v17779_v47, %v17777_v21  ;;  %v17781_v20 = vand.u32 4294901760, %v17780_v22  ;;  %v17788_v4 = vld [vmem:[#allocation16_spill] sm:$0xff]  ;;  %v17790_v15 = vld [vmem:[#allocation250_spill] sm:$0xff]  ;;  %v17795_v8 = vand.u32 4294901760, %v17794_v42  ;;  %v17798_v47 = vld [vmem:[#allocation23_spill] sm:$0xff] }
 0x753   : > { %9706 = vmatpush1.bf16.msra.mxu1 %v9705_v29  ;;  %9324 = vmatprep.subr.bf16.mxu0 %v9323_v33  ;;  %v17785_v29 = vand.u32 4294901760, %v17784_v43  ;;  %v17786_v33 = vld [vmem:[#allocation246_spill] sm:$0xff]  ;;  %v17789_v38 = vand.u32 4294901760, %v17788_v4  ;;  %v17791_v9 = vand.u32 4294901760, %v17790_v15  ;;  %v17799_v22 = vand.u32 4294901760, %v17798_v47  ;;  %v17808_v15 = vld [vmem:[#allocation32_spill] sm:$0xff] }
 0x754   : > { %9708 = vmatprep.subr.bf16.mxu1 %v9707_v23  ;;  %v9711_v17 = vpack.c.bf16 %v17783_v36, %v17781_v20  ;;  %v17787_v49 = vand.u32 4294901760, %v17786_v33  ;;  %v17793_v23 = vand.u32 4294901760, %v17792_v1  ;;  %v17812_v42 = vld [vmem:[#allocation36_spill] sm:$0xff] }
 0x755   : > { %v9713_v18 = vpack.c.bf16 %v17791_v9, %v17789_v38  ;;  %v17810_v9 = vld [vmem:[#allocation34_spill] sm:$0xff]  ;;  %v17816_v47 = vld [vmem:[#allocation84_spill] sm:$0xff] }
 0x756   : > { %9326 = vmatpush1.bf16.msra.mxu0 %v9325_v45  ;;  %v9329_v37 = vpack.c.bf16 %v17787_v49, %v17785_v29  ;;  %v9331_v21 = vpack.c.bf16 %v17795_v8, %v17793_v23  ;;  %v17797_v45 = vand.u32 4294901760, %v17796_v61  ;;  %v17804_v29 = vld [vmem:[#allocation29_spill] sm:$0xff]  ;;  %v17806_v49 = vld [vmem:[#allocation30_spill] sm:$0xff]  ;;  %v17811_v1 = vand.u32 4294901760, %v17810_v9  ;;  %v17814_v8 = vld [vmem:[#allocation72_spill] sm:$0xff] }
 0x757   : > { %9710 = vmatpush1.bf16.msra.mxu1 %v9709_v7  ;;  %9328 = vmatprep.subr.bf16.mxu0 %v9327_v0  ;;  %v17801_v7 = vand.u32 4294901760, %v17800_v12  ;;  %v17802_v0 = vld [vmem:[#allocation26_spill] sm:$0xff]  ;;  %v17805_v33 = vand.u32 4294901760, %v17804_v29  ;;  %v17807_v4 = vand.u32 4294901760, %v17806_v49  ;;  %v17815_v61 = vand.u32 4294901760, %v17814_v8  ;;  %v17825_v49 = vld [vmem:[#allocation103_spill] sm:$0xff] }
 0x758   : > { %9712 = vmatprep.subr.bf16.mxu1 %v9711_v17  ;;  %v9715_v20 = vpack.c.bf16 %v17799_v22, %v17797_v45  ;;  %v17803_v36 = vand.u32 4294901760, %v17802_v0  ;;  %v17809_v17 = vand.u32 4294901760, %v17808_v15 }
 0x759   : > { %v9717_v38 = vpack.c.bf16 %v17807_v4, %v17805_v33  ;;  %v17826_v4 = vand.u32 4294901760, %v17825_v49  ;;  %v17845_v49 = vld [vmem:[#allocation45_spill] sm:$0xff] }
 0x75a   : > { %9330 = vmatpush1.bf16.msra.mxu0 %v9329_v37  ;;  %v9333_v43 = vpack.c.bf16 %v17803_v36, %v17801_v7  ;;  %v9335_v23 = vpack.c.bf16 %v17811_v1, %v17809_v17  ;;  %v17813_v37 = vand.u32 4294901760, %v17812_v42  ;;  %v17820_v7 = vld [vmem:[#allocation93_spill] sm:$0xff]  ;;  %v17822_v36 = vld [vmem:[#allocation94_spill] sm:$0xff]  ;;  %v17828_v17 = vld [vmem:[#allocation192_spill] sm:$0xff] }
 0x75b   : > { %9714 = vmatpush1.bf16.msra.mxu1 %v9713_v18  ;;  %9332 = vmatprep.subr.bf16.mxu0 %v9331_v21  ;;  %v17817_v18 = vand.u32 4294901760, %v17816_v47  ;;  %v17818_v21 = vld [vmem:[#allocation86_spill] sm:$0xff]  ;;  %v17821_v0 = vand.u32 4294901760, %v17820_v7  ;;  %v17823_v29 = vand.u32 4294901760, %v17822_v36  ;;  %v17829_v9 = vand.u32 4294901760, %v17828_v17  ;;  %v17840_v7 = vld [vmem:[#allocation39_spill] sm:$0xff] }
 0x75c   : > { %9716 = vmatprep.subr.bf16.mxu1 %v9715_v20  ;;  %v9719_v45 = vpack.c.bf16 %v17815_v61, %v17813_v37  ;;  %v17819_v22 = vand.u32 4294901760, %v17818_v21  ;;  %v17824_v20 = vand.u32 4294901760, %v17586_v63  ;;  %v17830_v42 = vld [vmem:[#allocation194_spill] sm:$0xff]  ;;  %v17834_v61 = vld [vmem:[#allocation200_spill] sm:$0xff]  ;;  %v17836_v63 = vld [vmem:[#allocation203_spill] sm:$0xff] }
 0x75d   : > { %v9721_v33 = vpack.c.bf16 %v17823_v29, %v17821_v0  ;;  %v17835_v47 = vand.u32 4294901760, %v17834_v61  ;;  %v17843_v36 = vld [vmem:[#allocation42_spill] sm:$0xff]  ;;  %v17849_v17 = vld [vmem:[#allocation49_spill] sm:$0xff] }
 0x75e   : > { %9334 = vmatpush1.bf16.msra.mxu0 %v9333_v43  ;;  %v9337_v12 = vpack.c.bf16 %v17819_v22, %v17817_v18  ;;  %v9339_v15 = vpack.c.bf16 %v17826_v4, %v17824_v20  ;;  %v17827_v43 = vand.u32 4294901760, %v17588_v44  ;;  %v17837_v18 = vand.u32 4294901760, %v17836_v63  ;;  %v17838_v22 = vld [vmem:[#allocation38_spill] sm:$0xff]  ;;  %v17857_v63 = vld [vmem:[#allocation56_spill] sm:$0xff] }
 0x75f   : > { %9718 = vmatpush1.bf16.msra.mxu1 %v9717_v38  ;;  %9336 = vmatprep.subr.bf16.mxu0 %v9335_v23  ;;  %v17831_v38 = vand.u32 4294901760, %v17830_v42  ;;  %v17832_v23 = vld [vmem:[#allocation197_spill] sm:$0xff]  ;;  %v17841_v44 = vand.u32 4294901760, %v17840_v7  ;;  %v17844_v29 = vand.u32 4294901760, %v17843_v36  ;;  %v17847_v4 = vld [vmem:[#allocation46_spill] sm:$0xff]  ;;  %v17861_v7 = vld [vmem:[#allocation59_spill] sm:$0xff] }
 0x760   : > { %9720 = vmatprep.subr.bf16.mxu1 %v9719_v45  ;;  %v9723_v1 = vpack.c.bf16 %v17829_v9, %v17827_v43  ;;  %v17833_v37 = vand.u32 4294901760, %v17832_v23  ;;  %v9725_v21 = vpack.c.bf16 %v17837_v18, %v17835_v47  ;;  %v17839_v45 = vand.u32 4294901760, %v17838_v22  ;;  %v17851_v42 = vld [vmem:[#allocation50_spill] sm:$0xff] }
 0x761   : > { %v17850_v9 = vand.u32 4294901760, %v17849_v17  ;;  %v17855_v61 = vld [vmem:[#allocation54_spill] sm:$0xff]  ;;  %v17865_v36 = vand.u32 4294901760, %v17614_v60 }
 0x762   : > { %9338 = vmatpush1.bf16.msra.mxu0 %v9337_v12  ;;  %v9341_v8 = vpack.c.bf16 %v17833_v37, %v17831_v38  ;;  %v9343_v0 = vpack.c.bf16 %v17841_v44, %v17839_v45  ;;  %v17842_v12 = vand.u32 4294901760, %v17596_v14  ;;  %v17852_v38 = vand.u32 4294901760, %v17851_v42  ;;  %v17853_v37 = vld [vmem:[#allocation53_spill] sm:$0xff]  ;;  %v17859_v18 = vld [vmem:[#allocation58_spill] sm:$0xff] }
 0x763   : > { %9722 = vmatpush1.bf16.msra.mxu1 %v9721_v33  ;;  %9340 = vmatprep.subr.bf16.mxu0 %v9339_v15  ;;  %v17846_v33 = vand.u32 4294901760, %v17845_v49  ;;  %v17848_v15 = vand.u32 4294901760, %v17847_v4  ;;  %v17856_v14 = vand.u32 4294901760, %v17855_v61  ;;  %v17860_v22 = vand.u32 4294901760, %v17859_v18  ;;  %v17863_v44 = vld [vmem:[#allocation61_spill] sm:$0xff]  ;;  %v17869_v4 = vld [vmem:[#allocation71_spill] sm:$0xff] }
 0x764   : > { %9724 = vmatprep.subr.bf16.mxu1 %v9723_v1  ;;  %v9727_v20 = vpack.c.bf16 %v17844_v29, %v17842_v12  ;;  %v9729_v23 = vpack.c.bf16 %v17852_v38, %v17850_v9  ;;  %v17854_v1 = vand.u32 4294901760, %v17853_v37  ;;  %v17866_v29 = vld [vmem:[#allocation66_spill] sm:$0xff]  ;;  %v17872_v9 = vand.u32 4294901760, %v17619_v32  ;;  %v17877_v61 = vld [vmem:[#allocation139_spill] sm:$0xff]  ;;  %v17883_v18 = vld [vmem:[#allocation144_spill] sm:$0xff] }
 0x765   : > { %v9345_v43 = vpack.c.bf16 %v17848_v15, %v17846_v33  ;;  %v17867_v49 = vand.u32 4294901760, %v17866_v29  ;;  %v17870_v15 = vand.u32 4294901760, %v17869_v4  ;;  %v17873_v38 = vand.u32 4294901760, %v17623_v34  ;;  %v17881_v32 = vld [vmem:[#allocation143_spill] sm:$0xff] }
 0x766   : > { %9342 = vmatpush1.bf16.msra.mxu0 %v9341_v8  ;;  %v9347_v47 = vpack.c.bf16 %v17856_v14, %v17854_v1  ;;  %v17858_v8 = vand.u32 4294901760, %v17857_v63  ;;  %v17875_v37 = vand.u32 4294901760, %v17626_v3  ;;  %v17878_v14 = vand.u32 4294901760, %v17877_v61 }
 0x767   : > { %9726 = vmatpush1.bf16.msra.mxu1 %v9725_v21  ;;  %9344 = vmatprep.subr.bf16.mxu0 %v9343_v0  ;;  %v17862_v21 = vand.u32 4294901760, %v17861_v7  ;;  %v17864_v0 = vand.u32 4294901760, %v17863_v44  ;;  %v9733_v33 = vpack.c.bf16 %v17867_v49, %v17865_v36  ;;  %v17884_v34 = vand.u32 4294901760, %v17883_v18  ;;  %v17887_v7 = vld [vmem:[#allocation148_spill] sm:$0xff] }
 0x768   : > { %9728 = vmatprep.subr.bf16.mxu1 %v9727_v20  ;;  %v9731_v45 = vpack.c.bf16 %v17860_v22, %v17858_v8  ;;  %v17868_v20 = vand.u32 4294901760, %v17617_v13  ;;  %v17876_v13 = vand.u32 4294901760, %v17625_v5  ;;  %v17882_v8 = vand.u32 4294901760, %v17881_v32  ;;  %v17889_v5 = vld [vmem:[#allocation151_spill] sm:$0xff]  ;;  %v17894_v49 = vld [vmem:[#allocation168_spill] sm:$0xff] }
 0x769   : > { %v9349_v12 = vpack.c.bf16 %v17864_v0, %v17862_v21  ;;  %v17888_v21 = vand.u32 4294901760, %v17887_v7  ;;  %v17890_v44 = vand.u32 4294901760, %v17889_v5  ;;  %v17891_v0 = vld [vmem:[#allocation152_spill] sm:$0xff]  ;;  %v17893_v29 = vand.u32 4294901760, %v17462_v39 }
 0x76a   : > { %9346 = vmatpush1.bf16.msra.mxu0 %v9345_v43  ;;  %v9351_v17 = vpack.c.bf16 %v17870_v15, %v17868_v20  ;;  %v17871_v43 = vand.u32 4294901760, %v17620_v11  ;;  %v9737_v1 = vpack.c.bf16 %v17876_v13, %v17875_v37  ;;  %v9739_v22 = vpack.c.bf16 %v17884_v34, %v17882_v8  ;;  %v17897_v15 = vld [vmem:[#allocation171_spill] sm:$0xff]  ;;  %v17930_v5 = vld [vmem:[#allocation52_spill] sm:$0xff] }
 0x76b   : > { %9730 = vmatpush1.bf16.msra.mxu1 %v9729_v23  ;;  %9348 = vmatprep.subr.bf16.mxu0 %v9347_v47  ;;  %v17874_v23 = vand.u32 4294901760, %v17622_v62  ;;  %v17879_v47 = vld [vmem:[#allocation141_spill] sm:$0xff]  ;;  %v17885_v62 = vld [vmem:[#allocation147_spill] sm:$0xff]  ;;  %v17896_v4 = vand.u32 4294901760, %v17636_v30  ;;  %v17902_v39 = vand.u32 4294901760, %v17641_v24  ;;  %v17903_v37 = vand.u32 4294901760, %v17645_v58 }
 0x76c   : > { %9732 = vmatprep.subr.bf16.mxu1 %v9731_v45  ;;  %v9735_v42 = vpack.c.bf16 %v17872_v9, %v17871_v43  ;;  %v17880_v11 = vand.u32 4294901760, %v17879_v47  ;;  %v17886_v45 = vand.u32 4294901760, %v17885_v62  ;;  %v17899_v9 = vand.u32 4294901760, %v17639_v26  ;;  %v17924_v62 = vld [vmem:[#allocation159_spill] sm:$0xff] }
 0x76d   : > { %v9353_v60 = vpack.c.bf16 %v17874_v23, %v17873_v38  ;;  %v17901_v23 = vand.u32 4294901760, %v17642_v48  ;;  %v17904_v30 = vand.u32 4294901760, %v17644_v56  ;;  %v17906_v26 = vand.u32 4294901760, %v17647_v51 }
 0x76e   : > { %9350 = vmatpush1.bf16.msra.mxu0 %v9349_v12  ;;  %v9355_v63 = vpack.c.bf16 %v17880_v11, %v17878_v14  ;;  %v9357_v3 = vpack.c.bf16 %v17888_v21, %v17886_v45  ;;  %v17892_v12 = vand.u32 4294901760, %v17891_v0  ;;  %v17908_v14 = vand.u32 4294901760, %v17512_v10  ;;  %v17928_v21 = vld [vmem:[#allocation47_spill] sm:$0xff] }
 0x76f   : > { %9734 = vmatpush1.bf16.msra.mxu1 %v9733_v33  ;;  %9352 = vmatprep.subr.bf16.mxu0 %v9351_v17  ;;  %v17895_v33 = vand.u32 4294901760, %v17894_v49  ;;  %v17898_v17 = vand.u32 4294901760, %v17897_v15  ;;  %v9363_v13 = vpack.c.bf16 %v17904_v30, %v17903_v37  ;;  %v17909_v24 = vand.u32 4294901760, %v17516_v31  ;;  %v17937_v49 = vld [vmem:[#allocation213_spill] sm:$0xff]  ;;  %v17941_v15 = vld [vmem:[#allocation114_spill] sm:$0xff] }
 0x770   : > { %9736 = vmatprep.subr.bf16.mxu1 %v9735_v42  ;;  %v9741_v36 = vpack.c.bf16 %v17892_v12, %v17890_v44  ;;  %v17900_v42 = vand.u32 4294901760, %v17638_v6  ;;  %v17907_v6 = vand.u32 4294901760, %v17650_v57  ;;  %v17910_v58 = vand.u32 4294901760, %v17521_v25  ;;  %v17934_v12 = vld [vmem:[#allocation100_spill] sm:$0xff]  ;;  %v17951_v37 = vld [vmem:[#allocation238_spill] sm:$0xff]  ;;  %v17952_v30 = vld [vmem:[#allocation241_spill] sm:$0xff] }
 0x771   : > { %v9359_v20 = vpack.c.bf16 %v17895_v33, %v17893_v29  ;;  %v9743_v43 = vpack.c.bf16 %v17898_v17, %v17896_v4  ;;  %v17911_v47 = vand.u32 4294901760, %v17522_v50  ;;  %v17913_v51 = vand.u32 4294901760, %v13573_v52  ;;  %v17918_v50 = vld [vmem:[#allocation156_spill] sm:$0xff]  ;;  %v17942_v17 = vld [vmem:[#allocation223_spill] sm:$0xff] }
 0x772   : > { %9354 = vmatpush1.bf16.msra.mxu0 %v9353_v60  ;;  %v9361_v38 = vpack.c.bf16 %v17900_v42, %v17899_v9  ;;  %v9745_v60 = vpack.c.bf16 %v17902_v39, %v17901_v23  ;;  %v9365_v48 = vpack.c.bf16 %v17908_v14, %v17907_v6  ;;  %v9749_v56 = vpack.c.bf16 %v17910_v58, %v17909_v24  ;;  %v17936_v29 = vld [vmem:[#allocation248_spill] sm:$0xff]  ;;  %v17944_v9 = vld [vmem:[#allocation226_spill] sm:$0xff]  ;;  %v17945_v42 = vld [vmem:[#allocation125_spill] sm:$0xff] }
 0x773   : > { %9738 = vmatpush1.bf16.msra.mxu1 %v9737_v1  ;;  %9356 = vmatprep.subr.bf16.mxu0 %v9355_v63  ;;  %v17905_v1 = vand.u32 4294901760, %v17648_v19  ;;  %v17912_v19 = vand.u32 4294901760, %v17523_v2  ;;  %v17914_v57 = vand.u32 4294901760, %v17480_v41  ;;  %v17915_v10 = vand.u32 4294901760, %v17481_v55  ;;  %v17922_v41 = vld [vmem:[#allocation37_spill] sm:$0xff]  ;;  %v17938_v33 = vld [vmem:[#allocation216_spill] sm:$0xff] }
 0x774   : > { %9740 = vmatprep.subr.bf16.mxu1 %v9739_v22  ;;  %v17916_v32 = vand.u32 4294901760, %v13586_v59  ;;  %v17917_v25 = vand.u32 4294901760, %v13590_v54  ;;  %v17919_v8 = vand.u32 4294901760, %v17918_v50  ;;  %v17920_v18 = vand.u32 4294901760, %v17482_v46  ;;  %v17926_v59 = vld [vmem:[#allocation160_spill] sm:$0xff]  ;;  %v17932_v46 = vld [vmem:[#allocation162_spill] sm:$0xff] }
 0x775   : > { %v9747_v61 = vpack.c.bf16 %v17906_v26, %v17905_v1  ;;  %v9367_v11 = vpack.c.bf16 %v17912_v19, %v17911_v47  ;;  %v9751_v63 = vpack.c.bf16 %v17914_v57, %v17913_v51  ;;  %v17921_v52 = vand.u32 4294901760, %v17483_v53  ;;  %v17940_v4 = vld [vmem:[#allocation220_spill] sm:$0xff]  ;;  %v17948_v39 = vld [vmem:[#allocation229_spill] sm:$0xff]  ;;  %v17954_v1 = vld [vmem:[#allocation18_spill] sm:$0xff] }
 0x776   : > { %9358 = vmatpush1.bf16.msra.mxu0 %v9357_v3  ;;  %v9369_v31 = vpack.c.bf16 %v17916_v32, %v17915_v10  ;;  %v9753_v2 = vpack.c.bf16 %v17919_v8, %v17917_v25  ;;  %v17923_v22 = vand.u32 4294901760, %v17922_v41  ;;  %v17925_v55 = vand.u32 4294901760, %v17924_v62  ;;  %v17947_v23 = vld [vmem:[#allocation132_spill] sm:$0xff]  ;;  %v17955_v26 = vld [vmem:[#allocation21_spill] sm:$0xff]  ;;  %v17957_v6 = vld [vmem:[#allocation27_spill] sm:$0xff] }
 0x777   : > { %9742 = vmatpush1.bf16.msra.mxu1 %v9741_v36  ;;  %9360 = vmatprep.subr.bf16.mxu0 %v9359_v20  ;;  %v9371_v34 = vpack.c.bf16 %v17921_v52, %v17920_v18  ;;  %v17927_v7 = vand.u32 4294901760, %v17926_v59  ;;  %v17929_v3 = vand.u32 4294901760, %v17928_v21  ;;  %v17931_v44 = vand.u32 4294901760, %v17930_v5  ;;  %v17935_v36 = vld [vmem:[#allocation211_spill] sm:$0xff]  ;;  %v17939_v20 = vld [vmem:[#allocation218_spill] sm:$0xff]  ;;  %v17960_v24 = vld [vmem:[#allocation80_spill] sm:$0xff] }
 0x778   : > { %9744 = vmatprep.subr.bf16.mxu1 %v9743_v43  ;;  %v9755_v45 = vpack.c.bf16 %v17925_v55, %v17923_v22  ;;  %v17933_v0 = vand.u32 4294901760, %v17932_v46  ;;  %v17943_v43 = vld [vmem:[#allocation118_spill] sm:$0xff]  ;;  %v17958_v14 = vld [vmem:[#allocation31_spill] sm:$0xff]  ;;  %v17965_v19 = vld [vmem:[#allocation201_spill] sm:$0xff] }
 0x779   : > { %v9373_v54 = vpack.c.bf16 %v17929_v3, %v17927_v7  ;;  %v17961_v58 = vld [vmem:[#allocation91_spill] sm:$0xff]  ;;  %v17967_v51 = vld [vmem:[#allocation40_spill] sm:$0xff]  ;;  %v17974_v50 = vld [vmem:[#allocation70_spill] sm:$0xff] }
 0x77a   : > { %9362 = vmatpush1.bf16.msra.mxu0 %v9361_v38  ;;  %v9757_v53 = vpack.c.bf16 %v17933_v0, %v17931_v44  ;;  %v17946_v38 = vld [vmem:[#allocation126_spill] sm:$0xff]  ;;  %v17964_v47 = vld [vmem:[#allocation199_spill] sm:$0xff]  ;;  %v17968_v57 = vld [vmem:[#allocation44_spill] sm:$0xff] }
 0x77b   : > { %9746 = vmatpush1.bf16.msra.mxu1 %v9745_v60  ;;  %9364 = vmatprep.subr.bf16.mxu0 %v9363_v13  ;;  %v17950_v60 = vld [vmem:[#allocation235_spill] sm:$0xff]  ;;  %v17977_v18 = vld [vmem:[#allocation134_spill] sm:$0xff]  ;;  %v17981_v22 = vld [vmem:[#allocation149_spill] sm:$0xff] }
 0x77c   : > { %9748 = vmatprep.subr.bf16.mxu1 %v9747_v61  ;;  %v17953_v13 = vld [vmem:[#allocation247_spill] sm:$0xff]  ;;  %v17956_v61 = vld [vmem:[#allocation24_spill] sm:$0xff]  ;;  %v17978_v52 = vld [vmem:[#allocation138_spill] sm:$0xff] }
 0x77d   : > { %v17970_v10 = vld [vmem:[#allocation51_spill] sm:$0xff]  ;;  %v17980_v41 = vld [vmem:[#allocation146_spill] sm:$0xff]  ;;  %v17982_v62 = vld [vmem:[#allocation153_spill] sm:$0xff] }
 0x77e   : > { %9366 = vmatpush1.bf16.msra.mxu0 %v9365_v48  ;;  %v17959_v48 = vld [vmem:[#allocation35_spill] sm:$0xff]  ;;  %v17983_v55 = vld [vmem:[#allocation169_spill] sm:$0xff]  ;;  %v17986_v7 = vld [vmem:[#allocation178_spill] sm:$0xff] }
 0x77f   : > { %9750 = vmatpush1.bf16.msra.mxu1 %v9749_v56  ;;  %9368 = vmatprep.subr.bf16.mxu0 %v9367_v11  ;;  %v17962_v56 = vld [vmem:[#allocation98_spill] sm:$0xff]  ;;  %v17971_v32 = vld [vmem:[#allocation55_spill] sm:$0xff]  ;;  %v17987_v21 = vld [vmem:[#allocation181_spill] sm:$0xff] }
 0x780   : > { %9752 = vmatprep.subr.bf16.mxu1 %v9751_v63  ;;  %v17966_v11 = vld [vmem:[#allocation206_spill] sm:$0xff]  ;;  %v17969_v63 = vld [vmem:[#allocation48_spill] sm:$0xff]  ;;  %v17973_v25 = vld [vmem:[#allocation63_spill] sm:$0xff] }
 0x781   : > { %v17975_v8 = vld [vmem:[#allocation75_spill] sm:$0xff]  ;;  %v17988_v3 = vld [vmem:[#allocation186_spill] sm:$0xff]  ;;  %v17992_v46 = vld [vmem:[#allocation17_spill] sm:$0xff] }
 0x782   : > { %9370 = vmatpush1.bf16.msra.mxu0 %v9369_v31  ;;  %v17972_v31 = vld [vmem:[#allocation60_spill] sm:$0xff]  ;;  %v17985_v59 = vld [vmem:[#allocation175_spill] sm:$0xff]  ;;  %v17990_v5 = vld [vmem:[#allocation202_spill] sm:$0xff] }
 0x783   : > { %9754 = vmatpush1.bf16.msra.mxu1 %v9753_v2  ;;  %9372 = vmatprep.subr.bf16.mxu0 %v9371_v34  ;;  %v17976_v2 = vld [vmem:[#allocation85_spill] sm:$0xff]  ;;  %v17979_v34 = vld [vmem:[#allocation142_spill] sm:$0xff]  ;;  %v17991_v44 = vld [vmem:[#allocation207_spill] sm:$0xff] }
 0x784   : > { %9756 = vmatprep.subr.bf16.mxu1 %v9755_v45  ;;  %v17984_v45 = vld [vmem:[#allocation172_spill] sm:$0xff]  ;;  %v17993_v0 = vld [vmem:[#allocation22_spill] sm:$0xff] }
 0x786   : > { %9374 = vmatpush1.bf16.msra.mxu0 %v9373_v54  ;;  %v17989_v54 = vld [vmem:[#allocation193_spill] sm:$0xff] }
 0x787   : > { %9758 = vmatpush1.bf16.msra.mxu1 %v9757_v53  ;;  %9376 = vmatprep.subr.bf16.mxu0 %v17934_v12  ;;  %v17994_v53 = vld [vmem:[#allocation28_spill] sm:$0xff] }
 0x788   : > { %9760 = vmatprep.subr.bf16.mxu1 %v17935_v36 }
 0x789   : > { %6320 = vmatmul.mubr.f32.vlgmr.msra.gmra.mrb[4].mxu0 %v17936_v29 }
 0x78a   : > { %7604 = vmatmul.mubr.f32.vlgmr.msra.gmra.mrb[4].mxu1 %v17936_v29  ;;  %9378 = vmatpush1.bf16.msra.mxu0 %v17937_v49 }
 0x78b   : > { %6455 = vmatprep.mubr.f32.mxu0 %v17742_v16  ;;  %9762 = vmatpush1.bf16.msra.mxu1 %v17938_v33 }
 0x78c   : > { %7739 = vmatprep.mubr.f32.mxu1 %v17742_v16  ;;  %9380 = vmatprep.subr.bf16.mxu0 %v17939_v20  ;;  %v17949_v16 = vld [vmem:[#allocation232_spill] sm:$0xff] }
 0x78d   : > { %9764 = vmatprep.subr.bf16.mxu1 %v17940_v4 }
 0x78e   : > { %9382 = vmatpush1.bf16.msra.mxu0 %v17941_v15 }
 0x78f   : > { %9766 = vmatpush1.bf16.msra.mxu1 %v17942_v17  ;;  %9384 = vmatprep.subr.bf16.mxu0 %v17943_v43 }
 0x790   : > { %9768 = vmatprep.subr.bf16.mxu1 %v17944_v9 }
 0x792   : > { %9386 = vmatpush1.bf16.msra.mxu0 %v17945_v42 }
 0x793   : > { %9770 = vmatpush1.bf16.msra.mxu1 %v17946_v38  ;;  %9388 = vmatprep.subr.bf16.mxu0 %v17947_v23 }
 0x794   : > { %9772 = vmatprep.subr.bf16.mxu1 %v17948_v39 }
 0x796   : > { %9390 = vmatpush1.bf16.msra.mxu0 %v17949_v16 }
 0x797   : > { %9774 = vmatpush1.bf16.msra.mxu1 %v17950_v60  ;;  %9392 = vmatprep.subr.bf16.mxu0 %v17951_v37 }
 0x798   : > { %9776 = vmatprep.subr.bf16.mxu1 %v17952_v30 }
 0x79a   : > { %9394 = vmatpush1.bf16.msra.mxu0 %v17681_v40  ;;  %v17963_v40 = vld [vmem:[#allocation105_spill] sm:$0xff] }
 0x79b   : > { %9778 = vmatpush1.bf16.msra.mxu1 %v17953_v13  ;;  %9396 = vmatprep.subr.bf16.mxu0 %v17954_v1 }
 0x79c   : > { %9780 = vmatprep.subr.bf16.mxu1 %v17955_v26 }
 0x79e   : > { %9398 = vmatpush1.bf16.msra.mxu0 %v17956_v61 }
 0x79f   : > { %9782 = vmatpush1.bf16.msra.mxu1 %v17957_v6  ;;  %9400 = vmatprep.subr.bf16.mxu0 %v17958_v14 }
 0x7a0   : > { %9784 = vmatprep.subr.bf16.mxu1 %v17959_v48 }
 0x7a2   : > { %9402 = vmatpush1.bf16.msra.mxu0 %v17960_v24 }
 0x7a3   : > { %9786 = vmatpush1.bf16.msra.mxu1 %v17961_v58  ;;  %9404 = vmatprep.subr.bf16.mxu0 %v17962_v56 }
 0x7a4   : > { %9788 = vmatprep.subr.bf16.mxu1 %v17963_v40 }
 0x7a6   : > { %9406 = vmatpush1.bf16.msra.mxu0 %v17964_v47 }
 0x7a7   : > { %9790 = vmatpush1.bf16.msra.mxu1 %v17965_v19  ;;  %9408 = vmatprep.subr.bf16.mxu0 %v17966_v11 }
 0x7a8   : > { %9792 = vmatprep.subr.bf16.mxu1 %v17967_v51 }
 0x7aa   : > { %9410 = vmatpush1.bf16.msra.mxu0 %v17968_v57 }
 0x7ab   : > { %9794 = vmatpush1.bf16.msra.mxu1 %v17969_v63  ;;  %9412 = vmatprep.subr.bf16.mxu0 %v17970_v10 }
 0x7ac   : > { %9796 = vmatprep.subr.bf16.mxu1 %v17971_v32 }
 0x7ae   : > { %9414 = vmatpush1.bf16.msra.mxu0 %v17972_v31 }
 0x7af   : > { %9798 = vmatpush1.bf16.msra.mxu1 %v17973_v25  ;;  %9416 = vmatprep.subr.bf16.mxu0 %v17974_v50 }
 0x7b0   : > { %9800 = vmatprep.subr.bf16.mxu1 %v17975_v8 }
 0x7b2   : > { %9418 = vmatpush1.bf16.msra.mxu0 %v17976_v2 }
 0x7b3   : > { %9802 = vmatpush1.bf16.msra.mxu1 %v17977_v18  ;;  %9420 = vmatprep.subr.bf16.mxu0 %v17978_v52 }
 0x7b4   : > { %9804 = vmatprep.subr.bf16.mxu1 %v17979_v34 }
 0x7b6   : > { %9422 = vmatpush1.bf16.msra.mxu0 %v17980_v41 }
 0x7b7   : > { %9806 = vmatpush1.bf16.msra.mxu1 %v17981_v22  ;;  %9424 = vmatprep.subr.bf16.mxu0 %v17982_v62 }
 0x7b8   : > { %9808 = vmatprep.subr.bf16.mxu1 %v17983_v55 }
 0x7ba   : > { %9426 = vmatpush1.bf16.msra.mxu0 %v17984_v45 }
 0x7bb   : > { %9810 = vmatpush1.bf16.msra.mxu1 %v17985_v59  ;;  %9428 = vmatprep.subr.bf16.mxu0 %v17986_v7 }
 0x7bc   : > { %9812 = vmatprep.subr.bf16.mxu1 %v17987_v21 }
 0x7be   : > { %9430 = vmatpush1.bf16.msra.mxu0 %v17988_v3 }
 0x7bf   : > { %9814 = vmatpush1.bf16.msra.mxu1 %v17989_v54  ;;  %9432 = vmatprep.subr.bf16.mxu0 %v17990_v5 }
 0x7c0   : > { %9816 = vmatprep.subr.bf16.mxu1 %v17991_v44 }
 0x7c2   : > { %9434 = vmatpush1.bf16.msra.mxu0 %v17992_v46 }
 0x7c3   : > { %9818 = vmatpush1.bf16.msra.mxu1 %v17993_v0  ;;  %9436 = vmatprep.subr.bf16.mxu0 %v17994_v53 }
 0x7c4   : > { %9820 = vmatprep.subr.bf16.mxu1 %v17726_v28 }
 0x7c6   : > { %9438 = vmatpush1.bf16.msra.mxu0 %v17729_v35 }
 0x7c7   : > { %9822 = vmatpush1.bf16.msra.mxu1 %v17732_v27 }
 0x7c9   : > { %6457 = vmatmul.mubr.f32.vlgmr.msra.gmra.mrb[4].mxu0 %v17936_v29 }
 0x7ca   : > { %7741 = vmatmul.mubr.f32.vlgmr.msra.gmra.mrb[4].mxu1 %v17936_v29 }
 0x89c   : > { %v6458_v12 = vpop.f32.mrb[4].mxu0 }
 0x89d   : > { %v7742_v36 = vpop.f32.mrb[4].mxu1  ;;  %v6460_v49 = vpop.f32.mrb[5].mxu0 }
 0x89e   : > { %v7757_v33 = vcombine.low %v6458_v12, %v6460_v49  ;;  %v7744_v20 = vpop.f32.mrb[5].mxu1 }
 0x89f   : > { %v7758_v4 = vcombine.low %v7742_v36, %v7744_v20 }
 0x8a0   : > { %7765 = vst [vmem:[%s14690_s24 + $0x10] sm:$0xff] %v7757_v33 }
 0x8a1   : > { %7766 = vst [vmem:[%s14690_s24 + $0x18] sm:$0xff] %v7758_v4 }
 0x8a2   : > { %10113 = shalt.err (!%p10110_p4)
}
 0x8a3   : > { %s10114_s5 = scalar_lea.hbm %s15068_s9, 512  ;;  %s10118_s28 = scalar_lea.hbm %s15118_s4, 1024 }
 0x8a4   : > { %p10115_p0 = scmp.ne.s32.totalorder %s15068_s9, %s10114_s5  ;;  %p10119_p8 = scmp.lt.u32.totalorder %s15068_s9, %s15118_s4 }
 0x8a5   : > { %p10120_p13 = scmp.lt.u32.totalorder %s10118_s28, %s10114_s5  ;;  %p10122_p3 = scmp.lt.u32.totalorder %s10114_s5, %s15068_s9 }
 0x8a6   : > { %p10116_p9 = pnand %p10115_p0, %p10363_p10 }
 0x8a7   : > { %p10121_p6 = por %p10120_p13, %p10119_p8 }
 0x8a8   : > { %p10117_p11 = pneg %p10116_p9 }
 0x8a9   : > { %p10123_p5 = por %p10122_p3, %p10121_p6 }
 0x8ab   : > { %p10124_p7 = pnand %p10123_p5, %p10117_p11 }
 0x8ad   : > { %10127 = shalt.err (!%p10124_p7)
}
 0x8ae   : > { %9897 = dma.vmem_to_hbm [thread:$0]  (%p10363_p10), %s15070_s20, 512, %s15068_s9, %s7768_s10  }
 0x8af PF: > { %s7794_s27 = sand.u32 1, %s10162_s15   ;;  %p17995_p12 = scmp.ne.s32.totalorder %s16006_s22, 0 }
 0x8b0   : > { %p17996_p1 = scmp.ge.s32.totalorder %s10174_s18, 2  ;;  %s7795_s24 = scalar_lea.sflag [#allocation5], %s7794_s27 }
 0x8b2   : > { %p9914_p2 = pnand %p17996_p1, %p17995_p12 }
 0x8b4   : > { %10157 = dma.done.wait (!%p9914_p2), %s7795_s24, 512  }
 0x8b5   : > { %10159 = vsyncadd (!%p9914_p2), %s7795_s24, 4294966784  ;;  %p19_p4 = scmp.ge.s32.totalorder %s10353_s8, 4   ;;  %s17997_s15 = smov %s10166_s16 }
 0x8b6   : > { %s17998_s16 = smov %s10170_s17  ;;  %s17999_s17 = smov %s10369_s14 }
 0x8b7   : > { %s18000_s18 = smov %s10353_s8  ;;  %21 = sbr.rel (!%p19_p4) target bundleno = 7 (0x7), region = 102 }
 0x8be   :  { %7800 = vsyncpa [#allocation4], 1 }
 0x8bf   :  { %7802 = vsyncpa [#allocation4 + $0x1], 1 }
 0x8c0   :  { %7803 = vsyncpa [#allocation7], 1 }
 0x8c1   :  { %7804 = vsyncpa [#allocation10], 1 }
 0x8c2   :  { %7805 = vsyncpa [#allocation5], 1 }
 0x8c3   :  { %7807 = vsyncpa [#allocation5 + $0x1], 1 }

</bundles_post_ra>
